<compile_context>
chip_gen: v6e
topology: v6e:2x2x1
jax: 0.10.0
libtpu: 0.0.40
codegen_flags: <defaults>
</compile_context>

<pallas_src>
import functools
import math

import numpy as np
import jax
import jax.numpy as jnp
from jax.experimental import pallas as pl
from jax.experimental.pallas import tpu as pltpu

_LN_EPS = 1e-5
_SQRT2_INV = 1.0 / math.sqrt(2.0)
_VMEM_LIMIT = 32 * 1024 * 1024   # conservative scoped-VMEM request (fits v5e/v6e/v7x)


# ------------------------------------------------------------------
# small helpers used inside kernels
# ------------------------------------------------------------------
def _ln_f32(v, g, b, eps=_LN_EPS):
    mu = jnp.mean(v, axis=-1, keepdims=True)
    var = jnp.mean(jnp.square(v - mu), axis=-1, keepdims=True)
    return (v - mu) * jax.lax.rsqrt(var + eps) * g.astype(jnp.float32) + b.astype(jnp.float32)


def _gelu_exact(v):                      # exact erf GELU, matching nn.GELU
    return 0.5 * v * (1.0 + jax.lax.erf(v * _SQRT2_INV))


def _tile_rows(M, target=512):
    """Row tile <= target; prefer an exact divisor, else fixed tile + masked tail."""
    if M <= target:
        return M
    t = target
    while t >= 8:
        if M % t == 0:
            return t
        t //= 2
    return target          # ragged tail handled by pl.cdiv grid + Pallas masking


def _pick_window_tile(NW, target=8):
    """Largest divisor of NW that is <= target (bounds per-step VMEM footprint)."""
    if NW <= target:
        return NW
    t = target
    while t > 1:
        if NW % t == 0:
            return t
        t -= 1
    return 1


def _const_spec(shape):
    n = len(shape)
    return pl.BlockSpec(shape, lambda *_: (0,) * n)


# ------------------------------------------------------------------
# Pallas kernels
# ------------------------------------------------------------------
def _patch_embed_kernel(x_ref, w_ref, b_ref, g_ref, be_ref, o_ref):
    """o = LN(x @ w + b)   (patch embed)."""
    x = x_ref[...].astype(jnp.bfloat16)
    y = jnp.dot(x, w_ref[...], preferred_element_type=jnp.float32) \
        + b_ref[...].astype(jnp.float32)
    o_ref[...] = _ln_f32(y, g_ref[...], be_ref[...]).astype(o_ref.dtype)


def _patch_merge_kernel(x_ref, g_ref, be_ref, w_ref, o_ref):
    """o = LN(x) @ w   (patch-merging reduction, bias-free)."""
    x = x_ref[...].astype(jnp.float32)
    y = _ln_f32(x, g_ref[...], be_ref[...])
    o_ref[...] = jnp.dot(y.astype(jnp.bfloat16), w_ref[...],
                         preferred_element_type=jnp.float32).astype(o_ref.dtype)


def _swin_block_kernel(xw_ref, wqkv_ref, bqkv_ref, wp_ref, bp_ref,
                       scale_ref, rbias_ref, g1_ref, be1_ref,
                       w1_ref, b1_ref, w2_ref, b2_ref, g2_ref, be2_ref,
                       *rest, num_heads, use_mask, ln_out):
    """One full SwinV2-CR block (post-norm) for a tile of windows of one image:

        y   = x + LN1( proj( cosine_attn( qkv(x) ) ) )
        out = [LN3]( y + LN2( fc2( gelu( fc1(y) ) ) ) )

    x: (1, TW, L, C) windowed tokens; everything stays in VMEM between the two halves.
    """
    idx = 0
    mask_ref = None
    if use_mask:
        mask_ref = rest[idx]; idx += 1
    if ln_out:
        g3_ref, be3_ref = rest[idx], rest[idx + 1]; idx += 2
    o_ref = rest[idx]

    _, TW, L, C = xw_ref.shape
    nH = num_heads
    hd = C // nH

    x = xw_ref[0].astype(jnp.float32).reshape(TW * L, C)
    xb = x.astype(jnp.bfloat16)

    # ---- fused QKV projection: single (C, 3C) matmul -----------------------
    qkv = jnp.dot(xb, wqkv_ref[...], preferred_element_type=jnp.float32) \
        + bqkv_ref[...].astype(jnp.float32)                      # (TW*L, 3C)

    scale = scale_ref[...].astype(jnp.float32)                    # (1, nH)
    rbias = rbias_ref[...].astype(jnp.float32)                    # (nH, L, L)
    mask = mask_ref[...].astype(jnp.float32) if use_mask else None  # (TW, L, L)
    wp = wp_ref[...]                                               # (C, C) bf16

    proj_acc = None
    for h in range(nH):        # nH is small & static -> fully unrolled
        qh = qkv[:, h * hd:(h + 1) * hd].reshape(TW, L, hd)
        kh = qkv[:, C + h * hd:C + (h + 1) * hd].reshape(TW, L, hd)
        vh = qkv[:, 2 * C + h * hd:2 * C + (h + 1) * hd].reshape(TW, L, hd)

        # cosine attention: L2-normalize q/k (rsqrt -> EUP), fold the per-head
        # logit scale into q before the bf16 QK^T matmul.
        qn = qh * (jax.lax.rsqrt(jnp.sum(qh * qh, axis=-1, keepdims=True) + 1e-24)
                   * scale[0, h])
        kn = kh * jax.lax.rsqrt(jnp.sum(kh * kh, axis=-1, keepdims=True) + 1e-24)

        a = jnp.einsum("wld,wmd->wlm", qn.astype(jnp.bfloat16), kn.astype(jnp.bfloat16),
                       preferred_element_type=jnp.float32)        # (TW, L, L)
        a = a + rbias[h][None]
        if use_mask:
            a = a + mask
        a = a - jnp.max(a, axis=-1, keepdims=True)
        a = jnp.exp(a)
        a = a * pl.reciprocal(jnp.sum(a, axis=-1, keepdims=True), approx=True)

        oh = jnp.einsum("wlm,wmd->wld", a.astype(jnp.bfloat16), vh.astype(jnp.bfloat16),
                        preferred_element_type=jnp.float32)       # (TW, L, hd)

        # accumulate this head's contribution to the output projection (no concat):
        #   proj = sum_h  oh_h @ wp[h*hd:(h+1)*hd, :]
        d = jnp.dot(oh.reshape(TW * L, hd).astype(jnp.bfloat16),
                    wp[h * hd:(h + 1) * hd, :],
                    preferred_element_type=jnp.float32)
        proj_acc = d if proj_acc is None else proj_acc + d

    proj = proj_acc + bp_ref[...].astype(jnp.float32)
    y = x + _ln_f32(proj, g1_ref[...], be1_ref[...])               # post-norm residual

    # ---- fused MLP half-block (per-token; done directly in windowed domain) ----
    hmid = jnp.dot(y.astype(jnp.bfloat16), w1_ref[...],
                   preferred_element_type=jnp.float32) + b1_ref[...].astype(jnp.float32)
    hmid = _gelu_exact(hmid)
    z = jnp.dot(hmid.astype(jnp.bfloat16), w2_ref[...],
                preferred_element_type=jnp.float32) + b2_ref[...].astype(jnp.float32)
    out = y + _ln_f32(z, g2_ref[...], be2_ref[...])
    if ln_out:
        out = _ln_f32(out, g3_ref[...], be3_ref[...])
    o_ref[0] = out.reshape(TW, L, C).astype(o_ref.dtype)


# ------------------------------------------------------------------
# pallas_call wrappers
# ------------------------------------------------------------------
def pallas_patch_embed(x, w, b, g, be):
    M, K = x.shape
    N = w.shape[1]
    TM = _tile_rows(M)
    return pl.pallas_call(
        _patch_embed_kernel,
        out_shape=jax.ShapeDtypeStruct((M, N), jnp.bfloat16),
        grid=(pl.cdiv(M, TM),),
        in_specs=[pl.BlockSpec((TM, K), lambda i: (i, 0)),
                  _const_spec((K, N)), _const_spec((1, N)),
                  _const_spec((1, N)), _const_spec((1, N))],
        out_specs=pl.BlockSpec((TM, N), lambda i: (i, 0)),
        compiler_params=pltpu.CompilerParams(
            dimension_semantics=("parallel",), vmem_limit_bytes=_VMEM_LIMIT),
    )(x, w, b.reshape(1, N), g.reshape(1, N), be.reshape(1, N))


def pallas_patch_merge(x, g, be, w):
    M, K = x.shape
    N = w.shape[1]
    TM = _tile_rows(M)
    return pl.pallas_call(
        _patch_merge_kernel,
        out_shape=jax.ShapeDtypeStruct((M, N), jnp.bfloat16),
        grid=(pl.cdiv(M, TM),),
        in_specs=[pl.BlockSpec((TM, K), lambda i: (i, 0)),
                  _const_spec((1, K)), _const_spec((1, K)),
                  _const_spec((K, N))],
        out_specs=pl.BlockSpec((TM, N), lambda i: (i, 0)),
        compiler_params=pltpu.CompilerParams(
            dimension_semantics=("parallel",), vmem_limit_bytes=_VMEM_LIMIT),
    )(x, g.reshape(1, K), be.reshape(1, K), w)


def pallas_swin_block(xw, p):
    """Fused attention + MLP half-blocks, grid over (batch, window tiles)."""
    B, NW, L, C = xw.shape
    nH = p["num_heads"]
    Hn = p["fc1_w"].shape[1]
    TW = _pick_window_tile(NW)
    use_mask = p["shift"] > 0
    ln_out = p["extra_norm"]

    in_specs = [pl.BlockSpec((1, TW, L, C), lambda b, w: (b, w, 0, 0)),
                _const_spec((C, 3 * C)), _const_spec((1, 3 * C)),
                _const_spec((C, C)), _const_spec((1, C)),
                _const_spec((1, nH)), _const_spec((nH, L, L)),
                _const_spec((1, C)), _const_spec((1, C)),
                _const_spec((C, Hn)), _const_spec((1, Hn)),
                _const_spec((Hn, C)), _const_spec((1, C)),
                _const_spec((1, C)), _const_spec((1, C))]
    args = [xw, p["wqkv"], p["bqkv"].reshape(1, 3 * C),
            p["proj_w"], p["proj_b"].reshape(1, C),
            p["scale"].reshape(1, nH), p["rel_bias"],
            p["norm1_g"].reshape(1, C), p["norm1_b"].reshape(1, C),
            p["fc1_w"], p["fc1_b"].reshape(1, Hn),
            p["fc2_w"], p["fc2_b"].reshape(1, C),
            p["norm2_g"].reshape(1, C), p["norm2_b"].reshape(1, C)]
    if use_mask:
        in_specs.append(pl.BlockSpec((TW, L, L), lambda b, w: (w, 0, 0)))
        args.append(p["attn_mask"])
    if ln_out:
        in_specs += [_const_spec((1, C)), _const_spec((1, C))]
        args += [p["norm3_g"].reshape(1, C), p["norm3_b"].reshape(1, C)]

    return pl.pallas_call(
        functools.partial(_swin_block_kernel, num_heads=nH,
                          use_mask=use_mask, ln_out=ln_out),
        out_shape=jax.ShapeDtypeStruct((B, NW, L, C), jnp.bfloat16),
        grid=(B, NW // TW),
        in_specs=in_specs,
        out_specs=pl.BlockSpec((1, TW, L, C), lambda b, w: (b, w, 0, 0)),
        compiler_params=pltpu.CompilerParams(
            dimension_semantics=("parallel", "parallel"),
            vmem_limit_bytes=_VMEM_LIMIT),
    )(*args)


# ------------------------------------------------------------------
# static helpers (numpy glue)
# ------------------------------------------------------------------
def _relative_coords_log(ws):
    coords = np.stack(np.meshgrid(np.arange(ws), np.arange(ws), indexing="ij"),
                      axis=0).reshape(2, -1)
    rel = coords[:, :, None] - coords[:, None, :]            # (2, L, L)
    rel = rel.transpose(1, 2, 0).reshape(-1, 2).astype(np.float32)
    return np.sign(rel) * np.log1p(np.abs(rel))               # (L*L, 2)


def _make_attn_mask(H, W, ws, shift):
    if shift == 0:
        return None
    img = np.zeros((H, W), np.float32)
    cnt = 0
    for hs in (slice(0, -ws), slice(-ws, -shift), slice(-shift, None)):
        for wsl in (slice(0, -ws), slice(-ws, -shift), slice(-shift, None)):
            img[hs, wsl] = cnt
            cnt += 1
    mw = img.reshape(H // ws, ws, W // ws, ws).transpose(0, 2, 1, 3).reshape(-1, ws * ws)
    diff = mw[:, None, :] - mw[:, :, None]
    return jnp.asarray(np.where(diff != 0, -100.0, 0.0).astype(np.float32))


def _window_partition(x, ws):
    """(B,H,W,C) -> (B, num_win, ws*ws, C), windows row-major within each image."""
    B, H, W, C = x.shape
    x = x.reshape(B, H // ws, ws, W // ws, ws, C)
    return x.transpose(0, 1, 3, 2, 4, 5).reshape(B, (H // ws) * (W // ws), ws * ws, C)


def _window_reverse(xw, ws, H, W):
    B = xw.shape[0]
    C = xw.shape[-1]
    x = xw.reshape(B, H // ws, W // ws, ws, ws, C)
    return x.transpose(0, 1, 3, 2, 4, 5).reshape(B, H, W, C)


# ------------------------------------------------------------------
# model forward
# ------------------------------------------------------------------
def _swin_block(feat, p):
    B, H, W, C = feat.shape
    ws, shift = p["window_size"], p["shift"]

    xa = feat
    if shift > 0:
        xa = jnp.roll(xa, shift=(-shift, -shift), axis=(1, 2))
    xw = _window_partition(xa, ws)                       # (B, NW, L, C) bf16

    # One fused kernel per block: attention half + MLP half (both per-token /
    # per-window, so they commute with roll / window-partition permutations).
    yw = pallas_swin_block(xw, p)

    y = _window_reverse(yw, ws, H, W)
    if shift > 0:
        y = jnp.roll(y, shift=(shift, shift), axis=(1, 2))
    return y


def _patch_merging(feat, p):
    B, H, W, C = feat.shape
    x = feat.reshape(B, H // 2, 2, W // 2, 2, C)
    x = x.transpose(0, 1, 3, 4, 2, 5).reshape(B * (H // 2) * (W // 2), 4 * C)
    x = pallas_patch_merge(x, p["norm_g"], p["norm_b"], p["red_w"])
    return x.reshape(B, H // 2, W // 2, 2 * C)


def swin_forward(x_nchw, params):
    """Returns (low_level_features, high_level_features), both NCHW f32."""
    B, Cin, H, W = x_nchw.shape
    ps = params["patch_size"]
    Hp, Wp = H // ps, W // ps
    # patch-embed conv (kernel=stride=patch) as patchify + fused matmul+LN
    patches = x_nchw.reshape(B, Cin, Hp, ps, Wp, ps).transpose(0, 2, 4, 1, 3, 5)
    patches = patches.reshape(B * Hp * Wp, Cin * ps * ps)
    emb = pallas_patch_embed(patches, params["patch_w"], params["patch_b"],
                             params["patch_ln_g"], params["patch_ln_b"])
    feat = emb.reshape(B, Hp, Wp, params["embed_dim"])   # bf16 activations between kernels

    feats = []
    for stage in params["stages"]:
        if stage["merge"] is not None:
            feat = _patch_merging(feat, stage["merge"])
        for blk in stage["blocks"]:
            feat = _swin_block(feat, blk)
        feats.append(jnp.transpose(feat, (0, 3, 1, 2)).astype(jnp.float32))  # NCHW
    return feats[0], feats[-1]


# ------------------------------------------------------------------
# deterministic synthetic parameters
# ------------------------------------------------------------------
# TODO(synk): pretrained timm checkpoint loading has no in-script equivalent;
# weights here are deterministic synthetic initializations of the same shapes.
def init_swin_params(key, *, img_size=16, patch_size=4, in_chans=3, embed_dim=32,
                     depths=(2, 2), num_heads=(2, 4), window_size=2, mlp_ratio=4,
                     meta_hidden=32):
    def dense(k, shape, scale=0.02, dtype=jnp.float32):
        return (scale * jax.random.normal(k, shape)).astype(dtype)

    keys = iter(jax.random.split(key, 512))
    nk = lambda: next(keys)
    bf = jnp.bfloat16

    params = {"patch_size": patch_size, "embed_dim": embed_dim}
    params["patch_w"] = dense(nk(), (in_chans * patch_size * patch_size, embed_dim), dtype=bf)
    params["patch_b"] = jnp.zeros((embed_dim,), jnp.float32)
    params["patch_ln_g"] = jnp.ones((embed_dim,), jnp.float32)
    params["patch_ln_b"] = jnp.zeros((embed_dim,), jnp.float32)

    feat_hw = img_size // patch_size
    dim = embed_dim
    stages = []
    for si, (depth, nH) in enumerate(zip(depths, num_heads)):
        stage = {"merge": None}
        if si > 0:
            stage["merge"] = dict(
                norm_g=jnp.ones((4 * dim,), jnp.float32),
                norm_b=jnp.zeros((4 * dim,), jnp.float32),
                red_w=dense(nk(), (4 * dim, 2 * dim), dtype=bf),
            )
            dim = 2 * dim
            feat_hw = feat_hw // 2
        blocks = []
        for bi in range(depth):
            ws = feat_hw if feat_hw <= window_size else window_size
            target_shift = 0 if bi % 2 == 0 else window_size // 2
            shift = 0 if feat_hw <= ws else target_shift
            hidden = int(dim * mlp_ratio)
            L = ws * ws
            blk = dict(window_size=ws, shift=shift, num_heads=nH,
                       extra_norm=(bi == depth - 1))          # "ns": extra norm per stage

            # Fused QKV linear (single (dim, 3*dim) weight, one bias)
            blk["wqkv"] = dense(nk(), (dim, 3 * dim), dtype=bf)
            blk["bqkv"] = jnp.zeros((3 * dim,), jnp.float32)
            blk["proj_w"] = dense(nk(), (dim, dim), dtype=bf)
            blk["proj_b"] = jnp.zeros((dim,), jnp.float32)

            # cosine-attention logit scale: clamp + exp folded at init; kept as a
            # tiny (nH,) vector that the kernel folds into q before QK^T.
            logit_scale = jnp.full((nH,), math.log(10.0), jnp.float32)
            blk["scale"] = jnp.exp(jnp.minimum(logit_scale, math.log(1.0 / 0.01)))

            # relative-position-bias meta MLP (Linear(2,h)->ReLU->Linear(h,nH)) is
            # input-independent -> evaluated once at init and stored as (nH,L,L).
            mw1 = dense(nk(), (2, meta_hidden))
            mb1 = jnp.zeros((meta_hidden,), jnp.float32)
            mw2 = dense(nk(), (meta_hidden, nH))
            mb2 = jnp.zeros((nH,), jnp.float32)
            coords = jnp.asarray(_relative_coords_log(ws))        # (L*L, 2)
            hmeta = jnp.maximum(coords @ mw1 + mb1, 0.0)
            rel = hmeta @ mw2 + mb2                               # (L*L, nH)
            blk["rel_bias"] = rel.T.reshape(nH, L, L)

            mask = _make_attn_mask(feat_hw, feat_hw, ws, shift)   # (num_win, L, L) or None
            if mask is not None:
                blk["attn_mask"] = mask                           # only stored when shifted

            blk["norm1_g"] = jnp.ones((dim,), jnp.float32)
            blk["norm1_b"] = jnp.zeros((dim,), jnp.float32)
            blk["fc1_w"] = dense(nk(), (dim, hidden), dtype=bf)
            blk["fc1_b"] = jnp.zeros((hidden,), jnp.float32)
            blk["fc2_w"] = dense(nk(), (hidden, dim), dtype=bf)
            blk["fc2_b"] = jnp.zeros((dim,), jnp.float32)
            blk["norm2_g"] = jnp.ones((dim,), jnp.float32)
            blk["norm2_b"] = jnp.zeros((dim,), jnp.float32)
            if blk["extra_norm"]:
                blk["norm3_g"] = jnp.ones((dim,), jnp.float32)
                blk["norm3_b"] = jnp.zeros((dim,), jnp.float32)
            blocks.append(blk)
        stage["blocks"] = blocks
        stages.append(stage)
    params["stages"] = stages
    return params


if __name__ == "__main__":
    key = jax.random.PRNGKey(0)
    pkey, xkey = jax.random.split(key)
    params = init_swin_params(pkey)
    x = jax.random.normal(xkey, (2, 3, 16, 16), dtype=jnp.float32)   # NCHW, like PyTorch

    fwd = jax.jit(lambda inp: swin_forward(inp, params))
    low, high = fwd(x)
    jax.block_until_ready((low, high))

    assert low.shape == (2, 32, 4, 4), low.shape     # stage-0 (low-level) features, NCHW
    assert high.shape == (2, 64, 2, 2), high.shape   # last-stage (high-level) features, NCHW
    assert bool(jnp.all(jnp.isfinite(low))) and bool(jnp.all(jnp.isfinite(high)))
    print("KERNEL_OK")
</pallas_src>

<mosaic_0001>
module attributes {stable_mosaic.version = 11 : i64} {
  func.func @_patch_embed_kernel(%arg0: i32, %arg1: memref<32x48xf32, #tpu.memory_space<vmem>>, %arg2: memref<48x32xbf16, #tpu.memory_space<vmem>>, %arg3: memref<1x32xf32, #tpu.memory_space<vmem>>, %arg4: memref<1x32xf32, #tpu.memory_space<vmem>>, %arg5: memref<1x32xf32, #tpu.memory_space<vmem>>, %arg6: memref<32x32xbf16, #tpu.memory_space<vmem>>) attributes {dimension_semantics = [#tpu.dimension_semantics<parallel>], iteration_bounds = array<i64: 1>, scalar_prefetch = 0 : i64, scratch_operands = 0 : i64, tpu.core_type = #tpu.core_type<tc>, window_params = [{transform_indices = @transform_0, window_bounds = array<i64: 32, 48>}, {pipeline_mode = #tpu.pipeline_mode<synchronous>, transform_indices = @transform_1, window_bounds = array<i64: 48, 32>}, {pipeline_mode = #tpu.pipeline_mode<synchronous>, transform_indices = @transform_2, window_bounds = array<i64: 1, 32>}, {pipeline_mode = #tpu.pipeline_mode<synchronous>, transform_indices = @transform_3, window_bounds = array<i64: 1, 32>}, {pipeline_mode = #tpu.pipeline_mode<synchronous>, transform_indices = @transform_4, window_bounds = array<i64: 1, 32>}, {transform_indices = @transform_5, window_bounds = array<i64: 32, 32>}]} {
    %c0 = arith.constant 0 : index
    %c0_0 = arith.constant 0 : index
    %0 = vector.load %arg1[%c0, %c0_0] : memref<32x48xf32, #tpu.memory_space<vmem>>, vector<32x48xf32>
    %1 = arith.truncf %0 : vector<32x48xf32> to vector<32x48xbf16>
    %c0_1 = arith.constant 0 : index
    %c0_2 = arith.constant 0 : index
    %2 = vector.load %arg2[%c0_1, %c0_2] : memref<48x32xbf16, #tpu.memory_space<vmem>>, vector<48x32xbf16>
    %cst = arith.constant dense<0.000000e+00> : vector<32x32xf32>
    %3 = tpu.matmul %1, %2, %cst {dimension_numbers = #tpu.dot_dimension_numbers<[1], [0], [0], [1], [0, 0, 1, 1], [], []>} : vector<32x48xbf16>, vector<48x32xbf16>, vector<32x32xf32> -> vector<32x32xf32>
    %c0_3 = arith.constant 0 : index
    %c0_4 = arith.constant 0 : index
    %4 = vector.load %arg3[%c0_3, %c0_4] : memref<1x32xf32, #tpu.memory_space<vmem>>, vector<1x32xf32>
    %5 = vector.broadcast %4 : vector<1x32xf32> to vector<32x32xf32>
    %6 = arith.addf %3, %5 : vector<32x32xf32>
    %c0_5 = arith.constant 0 : index
    %c0_6 = arith.constant 0 : index
    %7 = vector.load %arg4[%c0_5, %c0_6] : memref<1x32xf32, #tpu.memory_space<vmem>>, vector<1x32xf32>
    %c0_7 = arith.constant 0 : index
    %c0_8 = arith.constant 0 : index
    %8 = vector.load %arg5[%c0_7, %c0_8] : memref<1x32xf32, #tpu.memory_space<vmem>>, vector<1x32xf32>
    %cst_9 = arith.constant dense<0.000000e+00> : vector<32xf32>
    %9 = vector.multi_reduction <add>, %6, %cst_9 [1] : vector<32x32xf32> to vector<32xf32>
    %10 = vector.shape_cast %9 : vector<32xf32> to vector<32x1xf32>
    %cst_10 = arith.constant 3.200000e+01 : f32
    %11 = vector.broadcast %cst_10 : f32 to vector<32x1xf32>
    %12 = arith.divf %10, %11 : vector<32x1xf32>
    %13 = vector.broadcast %12 : vector<32x1xf32> to vector<32x32xf32>
    %14 = arith.subf %6, %13 : vector<32x32xf32>
    %15 = arith.mulf %14, %14 : vector<32x32xf32>
    %cst_11 = arith.constant dense<0.000000e+00> : vector<32xf32>
    %16 = vector.multi_reduction <add>, %15, %cst_11 [1] : vector<32x32xf32> to vector<32xf32>
    %17 = vector.shape_cast %16 : vector<32xf32> to vector<32x1xf32>
    %cst_12 = arith.constant 3.200000e+01 : f32
    %18 = vector.broadcast %cst_12 : f32 to vector<32x1xf32>
    %19 = arith.divf %17, %18 : vector<32x1xf32>
    %20 = vector.broadcast %12 : vector<32x1xf32> to vector<32x32xf32>
    %21 = arith.subf %6, %20 : vector<32x32xf32>
    %cst_13 = arith.constant 9.99999974E-6 : f32
    %22 = vector.broadcast %cst_13 : f32 to vector<32x1xf32>
    %23 = arith.addf %19, %22 : vector<32x1xf32>
    %24 = math.rsqrt %23 : vector<32x1xf32>
    %25 = vector.broadcast %24 : vector<32x1xf32> to vector<32x32xf32>
    %26 = arith.mulf %21, %25 : vector<32x32xf32>
    %27 = vector.broadcast %7 : vector<1x32xf32> to vector<32x32xf32>
    %28 = arith.mulf %26, %27 : vector<32x32xf32>
    %29 = vector.broadcast %8 : vector<1x32xf32> to vector<32x32xf32>
    %30 = arith.addf %28, %29 : vector<32x32xf32>
    %31 = arith.truncf %30 : vector<32x32xf32> to vector<32x32xbf16>
    %c0_14 = arith.constant 0 : index
    %c0_15 = arith.constant 0 : index
    %32 = vector.load %arg6[%c0_14, %c0_15] : memref<32x32xbf16, #tpu.memory_space<vmem>>, vector<32x32xbf16>
    tpu.vector_store %arg6[%c0_14, %c0_15], %31 {strides = array<i32>} : memref<32x32xbf16, #tpu.memory_space<vmem>>, vector<32x32xbf16>,
    return
  }
  func.func @transform_0(%arg0: i32) -> (i32, i32) {
    %c0_i32 = arith.constant 0 : i32
    %c0_i32_0 = arith.constant 0 : i32
    return %arg0, %c0_i32 : i32, i32
  }
  func.func @transform_1(%arg0: i32) -> (i32, i32) {
    %c0_i32 = arith.constant 0 : i32
    %c0_i32_0 = arith.constant 0 : i32
    %c0_i32_1 = arith.constant 0 : i32
    return %c0_i32, %c0_i32_0 : i32, i32
  }
  func.func @transform_2(%arg0: i32) -> (i32, i32) {
    %c0_i32 = arith.constant 0 : i32
    %c0_i32_0 = arith.constant 0 : i32
    %c0_i32_1 = arith.constant 0 : i32
    return %c0_i32, %c0_i32_0 : i32, i32
  }
  func.func @transform_3(%arg0: i32) -> (i32, i32) {
    %c0_i32 = arith.constant 0 : i32
    %c0_i32_0 = arith.constant 0 : i32
    %c0_i32_1 = arith.constant 0 : i32
    return %c0_i32, %c0_i32_0 : i32, i32
  }
  func.func @transform_4(%arg0: i32) -> (i32, i32) {
    %c0_i32 = arith.constant 0 : i32
    %c0_i32_0 = arith.constant 0 : i32
    %c0_i32_1 = arith.constant 0 : i32
    return %c0_i32, %c0_i32_0 : i32, i32
  }
  func.func @transform_5(%arg0: i32) -> (i32, i32) {
    %c0_i32 = arith.constant 0 : i32
    %c0_i32_0 = arith.constant 0 : i32
    return %arg0, %c0_i32 : i32, i32
  }
}

module attributes {stable_mosaic.version = 11 : i64} {
  func.func @_swin_block_kernel(%arg0: i32, %arg1: i32, %arg2: memref<1x4x4x32xbf16, #tpu.memory_space<vmem>>, %arg3: memref<32x96xbf16, #tpu.memory_space<vmem>>, %arg4: memref<1x96xf32, #tpu.memory_space<vmem>>, %arg5: memref<32x32xbf16, #tpu.memory_space<vmem>>, %arg6: memref<1x32xf32, #tpu.memory_space<vmem>>, %arg7: memref<1x2xf32, #tpu.memory_space<vmem>>, %arg8: memref<2x4x4xf32, #tpu.memory_space<vmem>>, %arg9: memref<1x32xf32, #tpu.memory_space<vmem>>, %arg10: memref<1x32xf32, #tpu.memory_space<vmem>>, %arg11: memref<32x128xbf16, #tpu.memory_space<vmem>>, %arg12: memref<1x128xf32, #tpu.memory_space<vmem>>, %arg13: memref<128x32xbf16, #tpu.memory_space<vmem>>, %arg14: memref<1x32xf32, #tpu.memory_space<vmem>>, %arg15: memref<1x32xf32, #tpu.memory_space<vmem>>, %arg16: memref<1x32xf32, #tpu.memory_space<vmem>>, %arg17: memref<1x4x4x32xbf16, #tpu.memory_space<vmem>>) attributes {dimension_semantics = [#tpu.dimension_semantics<parallel>, #tpu.dimension_semantics<parallel>], iteration_bounds = array<i64: 2, 1>, scalar_prefetch = 0 : i64, scratch_operands = 0 : i64, tpu.core_type = #tpu.core_type<tc>, window_params = [{transform_indices = @transform_0, window_bounds = array<i64: 1, 4, 4, 32>}, {pipeline_mode = #tpu.pipeline_mode<synchronous>, transform_indices = @transform_1, window_bounds = array<i64: 32, 96>}, {pipeline_mode = #tpu.pipeline_mode<synchronous>, transform_indices = @transform_2, window_bounds = array<i64: 1, 96>}, {pipeline_mode = #tpu.pipeline_mode<synchronous>, transform_indices = @transform_3, window_bounds = array<i64: 32, 32>}, {pipeline_mode = #tpu.pipeline_mode<synchronous>, transform_indices = @transform_4, window_bounds = array<i64: 1, 32>}, {pipeline_mode = #tpu.pipeline_mode<synchronous>, transform_indices = @transform_5, window_bounds = array<i64: 1, 2>}, {pipeline_mode = #tpu.pipeline_mode<synchronous>, transform_indices = @transform_6, window_bounds = array<i64: 2, 4, 4>}, {pipeline_mode = #tpu.pipeline_mode<synchronous>, transform_indices = @transform_7, window_bounds = array<i64: 1, 32>}, {pipeline_mode = #tpu.pipeline_mode<synchronous>, transform_indices = @transform_8, window_bounds = array<i64: 1, 32>}, {pipeline_mode = #tpu.pipeline_mode<synchronous>, transform_indices = @transform_9, window_bounds = array<i64: 32, 128>}, {pipeline_mode = #tpu.pipeline_mode<synchronous>, transform_indices = @transform_10, window_bounds = array<i64: 1, 128>}, {pipeline_mode = #tpu.pipeline_mode<synchronous>, transform_indices = @transform_11, window_bounds = array<i64: 128, 32>}, {pipeline_mode = #tpu.pipeline_mode<synchronous>, transform_indices = @transform_12, window_bounds = array<i64: 1, 32>}, {pipeline_mode = #tpu.pipeline_mode<synchronous>, transform_indices = @transform_13, window_bounds = array<i64: 1, 32>}, {pipeline_mode = #tpu.pipeline_mode<synchronous>, transform_indices = @transform_14, window_bounds = array<i64: 1, 32>}, {transform_indices = @transform_15, window_bounds = array<i64: 1, 4, 4, 32>}]} {
    %c0 = arith.constant 0 : index
    %c0_0 = arith.constant 0 : index
    %c0_1 = arith.constant 0 : index
    %c0_2 = arith.constant 0 : index
    %0 = vector.load %arg2[%c0, %c0_0, %c0_1, %c0_2] : memref<1x4x4x32xbf16, #tpu.memory_space<vmem>>, vector<1x4x4x32xbf16>
    %1 = vector.shape_cast %0 : vector<1x4x4x32xbf16> to vector<4x4x32xbf16>
    %2 = arith.extf %1 : vector<4x4x32xbf16> to vector<4x4x32xf32>
    %3 = vector.shape_cast %2 : vector<4x4x32xf32> to vector<16x32xf32>
    %4 = arith.truncf %3 : vector<16x32xf32> to vector<16x32xbf16>
    %c0_3 = arith.constant 0 : index
    %c0_4 = arith.constant 0 : index
    %5 = vector.load %arg3[%c0_3, %c0_4] : memref<32x96xbf16, #tpu.memory_space<vmem>>, vector<32x96xbf16>
    %cst = arith.constant dense<0.000000e+00> : vector<16x96xf32>
    %6 = tpu.matmul %4, %5, %cst {dimension_numbers = #tpu.dot_dimension_numbers<[1], [0], [0], [1], [0, 0, 1, 1], [], []>} : vector<16x32xbf16>, vector<32x96xbf16>, vector<16x96xf32> -> vector<16x96xf32>
    %c0_5 = arith.constant 0 : index
    %c0_6 = arith.constant 0 : index
    %7 = vector.load %arg4[%c0_5, %c0_6] : memref<1x96xf32, #tpu.memory_space<vmem>>, vector<1x96xf32>
    %8 = vector.broadcast %7 : vector<1x96xf32> to vector<16x96xf32>
    %9 = arith.addf %6, %8 : vector<16x96xf32>
    %c0_7 = arith.constant 0 : index
    %c0_8 = arith.constant 0 : index
    %10 = vector.load %arg7[%c0_7, %c0_8] : memref<1x2xf32, #tpu.memory_space<vmem>>, vector<1x2xf32>
    %c0_9 = arith.constant 0 : index
    %c0_10 = arith.constant 0 : index
    %c0_11 = arith.constant 0 : index
    %11 = vector.load %arg8[%c0_9, %c0_10, %c0_11] : memref<2x4x4xf32, #tpu.memory_space<vmem>>, vector<2x4x4xf32>
    %c0_12 = arith.constant 0 : index
    %c0_13 = arith.constant 0 : index
    %12 = vector.load %arg5[%c0_12, %c0_13] : memref<32x32xbf16, #tpu.memory_space<vmem>>, vector<32x32xbf16>
    %13 = vector.extract_strided_slice %9 {offsets = [0, 0], sizes = [16, 16], strides = [1, 1]} : vector<16x96xf32> to vector<16x16xf32>
    %14 = vector.shape_cast %13 : vector<16x16xf32> to vector<4x4x16xf32>
    %15 = vector.extract_strided_slice %9 {offsets = [0, 32], sizes = [16, 16], strides = [1, 1]} : vector<16x96xf32> to vector<16x16xf32>
    %16 = vector.shape_cast %15 : vector<16x16xf32> to vector<4x4x16xf32>
    %17 = vector.extract_strided_slice %9 {offsets = [0, 64], sizes = [16, 16], strides = [1, 1]} : vector<16x96xf32> to vector<16x16xf32>
    %18 = vector.shape_cast %17 : vector<16x16xf32> to vector<4x4x16xf32>
    %19 = arith.mulf %14, %14 : vector<4x4x16xf32>
    %cst_14 = arith.constant dense<0.000000e+00> : vector<4x4xf32>
    %20 = vector.multi_reduction <add>, %19, %cst_14 [2] : vector<4x4x16xf32> to vector<4x4xf32>
    %21 = vector.shape_cast %20 : vector<4x4xf32> to vector<4x4x1xf32>
    %cst_15 = arith.constant 1.000000e-24 : f32
    %22 = vector.broadcast %cst_15 : f32 to vector<4x4x1xf32>
    %23 = arith.addf %21, %22 : vector<4x4x1xf32>
    %24 = math.rsqrt %23 : vector<4x4x1xf32>
    %25 = vector.extract_strided_slice %10 {offsets = [0, 0], sizes = [1, 1], strides = [1, 1]} : vector<1x2xf32> to vector<1x1xf32>
    %26 = vector.extract %25[0, 0] : f32 from vector<1x1xf32>
    %27 = vector.broadcast %26 : f32 to vector<4x4x1xf32>
    %28 = arith.mulf %24, %27 : vector<4x4x1xf32>
    %29 = vector.broadcast %28 : vector<4x4x1xf32> to vector<4x4x16xf32>
    %30 = arith.mulf %14, %29 : vector<4x4x16xf32>
    %31 = arith.mulf %16, %16 : vector<4x4x16xf32>
    %cst_16 = arith.constant dense<0.000000e+00> : vector<4x4xf32>
    %32 = vector.multi_reduction <add>, %31, %cst_16 [2] : vector<4x4x16xf32> to vector<4x4xf32>
    %33 = vector.shape_cast %32 : vector<4x4xf32> to vector<4x4x1xf32>
    %cst_17 = arith.constant 1.000000e-24 : f32
    %34 = vector.broadcast %cst_17 : f32 to vector<4x4x1xf32>
    %35 = arith.addf %33, %34 : vector<4x4x1xf32>
    %36 = math.rsqrt %35 : vector<4x4x1xf32>
    %37 = vector.broadcast %36 : vector<4x4x1xf32> to vector<4x4x16xf32>
    %38 = arith.mulf %16, %37 : vector<4x4x16xf32>
    %39 = arith.truncf %30 : vector<4x4x16xf32> to vector<4x4x16xbf16>
    %40 = arith.truncf %38 : vector<4x4x16xf32> to vector<4x4x16xbf16>
    "tpu.trace_start"() <{level = 10 : i32, message = "wld,wmd->wlm"}> : () -> ()
    %cst_18 = arith.constant dense<0.000000e+00> : vector<4x4x4xf32>
    %41 = tpu.matmul %39, %40, %cst_18 {dimension_numbers = #tpu.dot_dimension_numbers<[2], [2], [1], [1], [0, 0, 0, 1, 1, 1], [0], [0]>} : vector<4x4x16xbf16>, vector<4x4x16xbf16>, vector<4x4x4xf32> -> vector<4x4x4xf32>
    "tpu.trace_stop"() : () -> ()
    %42 = vector.extract_strided_slice %11 {offsets = [0, 0, 0], sizes = [1, 4, 4], strides = [1, 1, 1]} : vector<2x4x4xf32> to vector<1x4x4xf32>
    %43 = vector.shape_cast %42 : vector<1x4x4xf32> to vector<4x4xf32>
    %44 = vector.shape_cast %43 : vector<4x4xf32> to vector<1x4x4xf32>
    %45 = vector.broadcast %44 : vector<1x4x4xf32> to vector<4x4x4xf32>
    %46 = arith.addf %41, %45 : vector<4x4x4xf32>
    %cst_19 = arith.constant dense<0xFF800000> : vector<4x4xf32>
    %47 = vector.multi_reduction <maximumf>, %46, %cst_19 [2] : vector<4x4x4xf32> to vector<4x4xf32>
    %48 = vector.shape_cast %47 : vector<4x4xf32> to vector<4x4x1xf32>
    %49 = vector.broadcast %48 : vector<4x4x1xf32> to vector<4x4x4xf32>
    %50 = arith.subf %46, %49 : vector<4x4x4xf32>
    %51 = math.exp %50 : vector<4x4x4xf32>
    %cst_20 = arith.constant dense<0.000000e+00> : vector<4x4xf32>
    %52 = vector.multi_reduction <add>, %51, %cst_20 [2] : vector<4x4x4xf32> to vector<4x4xf32>
    %53 = vector.shape_cast %52 : vector<4x4xf32> to vector<4x4x1xf32>
    %54 = tpu.reciprocal %53 {approx = true} : vector<4x4x1xf32> -> vector<4x4x1xf32>
    %55 = vector.broadcast %54 : vector<4x4x1xf32> to vector<4x4x4xf32>
    %56 = arith.mulf %51, %55 : vector<4x4x4xf32>
    %57 = arith.truncf %56 : vector<4x4x4xf32> to vector<4x4x4xbf16>
    %58 = arith.truncf %18 : vector<4x4x16xf32> to vector<4x4x16xbf16>
    "tpu.trace_start"() <{level = 10 : i32, message = "wlm,wmd->wld"}> : () -> ()
    %cst_21 = arith.constant dense<0.000000e+00> : vector<4x4x16xf32>
    %59 = tpu.matmul %57, %58, %cst_21 {dimension_numbers = #tpu.dot_dimension_numbers<[2], [1], [1], [2], [0, 0, 0, 1, 1, 2], [0], [0]>} : vector<4x4x4xbf16>, vector<4x4x16xbf16>, vector<4x4x16xf32> -> vector<4x4x16xf32>
    "tpu.trace_stop"() : () -> ()
    %60 = vector.shape_cast %59 : vector<4x4x16xf32> to vector<16x16xf32>
    %61 = arith.truncf %60 : vector<16x16xf32> to vector<16x16xbf16>
    %62 = vector.extract_strided_slice %12 {offsets = [0, 0], sizes = [16, 32], strides = [1, 1]} : vector<32x32xbf16> to vector<16x32xbf16>
    %cst_22 = arith.constant dense<0.000000e+00> : vector<16x32xf32>
    %63 = tpu.matmul %61, %62, %cst_22 {dimension_numbers = #tpu.dot_dimension_numbers<[1], [0], [0], [1], [0, 0, 1, 1], [], []>} : vector<16x16xbf16>, vector<16x32xbf16>, vector<16x32xf32> -> vector<16x32xf32>
    %64 = vector.extract_strided_slice %9 {offsets = [0, 16], sizes = [16, 16], strides = [1, 1]} : vector<16x96xf32> to vector<16x16xf32>
    %65 = vector.shape_cast %64 : vector<16x16xf32> to vector<4x4x16xf32>
    %66 = vector.extract_strided_slice %9 {offsets = [0, 48], sizes = [16, 16], strides = [1, 1]} : vector<16x96xf32> to vector<16x16xf32>
    %67 = vector.shape_cast %66 : vector<16x16xf32> to vector<4x4x16xf32>
    %68 = vector.extract_strided_slice %9 {offsets = [0, 80], sizes = [16, 16], strides = [1, 1]} : vector<16x96xf32> to vector<16x16xf32>
    %69 = vector.shape_cast %68 : vector<16x16xf32> to vector<4x4x16xf32>
    %70 = arith.mulf %65, %65 : vector<4x4x16xf32>
    %cst_23 = arith.constant dense<0.000000e+00> : vector<4x4xf32>
    %71 = vector.multi_reduction <add>, %70, %cst_23 [2] : vector<4x4x16xf32> to vector<4x4xf32>
    %72 = vector.shape_cast %71 : vector<4x4xf32> to vector<4x4x1xf32>
    %cst_24 = arith.constant 1.000000e-24 : f32
    %73 = vector.broadcast %cst_24 : f32 to vector<4x4x1xf32>
    %74 = arith.addf %72, %73 : vector<4x4x1xf32>
    %75 = math.rsqrt %74 : vector<4x4x1xf32>
    %76 = vector.extract_strided_slice %10 {offsets = [0, 1], sizes = [1, 1], strides = [1, 1]} : vector<1x2xf32> to vector<1x1xf32>
    %77 = vector.extract %76[0, 0] : f32 from vector<1x1xf32>
    %78 = vector.broadcast %77 : f32 to vector<4x4x1xf32>
    %79 = arith.mulf %75, %78 : vector<4x4x1xf32>
    %80 = vector.broadcast %79 : vector<4x4x1xf32> to vector<4x4x16xf32>
    %81 = arith.mulf %65, %80 : vector<4x4x16xf32>
    %82 = arith.mulf %67, %67 : vector<4x4x16xf32>
    %cst_25 = arith.constant dense<0.000000e+00> : vector<4x4xf32>
    %83 = vector.multi_reduction <add>, %82, %cst_25 [2] : vector<4x4x16xf32> to vector<4x4xf32>
    %84 = vector.shape_cast %83 : vector<4x4xf32> to vector<4x4x1xf32>
    %cst_26 = arith.constant 1.000000e-24 : f32
    %85 = vector.broadcast %cst_26 : f32 to vector<4x4x1xf32>
    %86 = arith.addf %84, %85 : vector<4x4x1xf32>
    %87 = math.rsqrt %86 : vector<4x4x1xf32>
    %88 = vector.broadcast %87 : vector<4x4x1xf32> to vector<4x4x16xf32>
    %89 = arith.mulf %67, %88 : vector<4x4x16xf32>
    %90 = arith.truncf %81 : vector<4x4x16xf32> to vector<4x4x16xbf16>
    %91 = arith.truncf %89 : vector<4x4x16xf32> to vector<4x4x16xbf16>
    "tpu.trace_start"() <{level = 10 : i32, message = "wld,wmd->wlm"}> : () -> ()
    %cst_27 = arith.constant dense<0.000000e+00> : vector<4x4x4xf32>
    %92 = tpu.matmul %90, %91, %cst_27 {dimension_numbers = #tpu.dot_dimension_numbers<[2], [2], [1], [1], [0, 0, 0, 1, 1, 1], [0], [0]>} : vector<4x4x16xbf16>, vector<4x4x16xbf16>, vector<4x4x4xf32> -> vector<4x4x4xf32>
    "tpu.trace_stop"() : () -> ()
    %93 = vector.extract_strided_slice %11 {offsets = [1, 0, 0], sizes = [1, 4, 4], strides = [1, 1, 1]} : vector<2x4x4xf32> to vector<1x4x4xf32>
    %94 = vector.shape_cast %93 : vector<1x4x4xf32> to vector<4x4xf32>
    %95 = vector.shape_cast %94 : vector<4x4xf32> to vector<1x4x4xf32>
    %96 = vector.broadcast %95 : vector<1x4x4xf32> to vector<4x4x4xf32>
    %97 = arith.addf %92, %96 : vector<4x4x4xf32>
    %cst_28 = arith.constant dense<0xFF800000> : vector<4x4xf32>
    %98 = vector.multi_reduction <maximumf>, %97, %cst_28 [2] : vector<4x4x4xf32> to vector<4x4xf32>
    %99 = vector.shape_cast %98 : vector<4x4xf32> to vector<4x4x1xf32>
    %100 = vector.broadcast %99 : vector<4x4x1xf32> to vector<4x4x4xf32>
    %101 = arith.subf %97, %100 : vector<4x4x4xf32>
    %102 = math.exp %101 : vector<4x4x4xf32>
    %cst_29 = arith.constant dense<0.000000e+00> : vector<4x4xf32>
    %103 = vector.multi_reduction <add>, %102, %cst_29 [2] : vector<4x4x4xf32> to vector<4x4xf32>
    %104 = vector.shape_cast %103 : vector<4x4xf32> to vector<4x4x1xf32>
    %105 = tpu.reciprocal %104 {approx = true} : vector<4x4x1xf32> -> vector<4x4x1xf32>
    %106 = vector.broadcast %105 : vector<4x4x1xf32> to vector<4x4x4xf32>
    %107 = arith.mulf %102, %106 : vector<4x4x4xf32>
    %108 = arith.truncf %107 : vector<4x4x4xf32> to vector<4x4x4xbf16>
    %109 = arith.truncf %69 : vector<4x4x16xf32> to vector<4x4x16xbf16>
    "tpu.trace_start"() <{level = 10 : i32, message = "wlm,wmd->wld"}> : () -> ()
    %cst_30 = arith.constant dense<0.000000e+00> : vector<4x4x16xf32>
    %110 = tpu.matmul %108, %109, %cst_30 {dimension_numbers = #tpu.dot_dimension_numbers<[2], [1], [1], [2], [0, 0, 0, 1, 1, 2], [0], [0]>} : vector<4x4x4xbf16>, vector<4x4x16xbf16>, vector<4x4x16xf32> -> vector<4x4x16xf32>
    "tpu.trace_stop"() : () -> ()
    %111 = vector.shape_cast %110 : vector<4x4x16xf32> to vector<16x16xf32>
    %112 = arith.truncf %111 : vector<16x16xf32> to vector<16x16xbf16>
    %113 = vector.extract_strided_slice %12 {offsets = [16, 0], sizes = [16, 32], strides = [1, 1]} : vector<32x32xbf16> to vector<16x32xbf16>
    %cst_31 = arith.constant dense<0.000000e+00> : vector<16x32xf32>
    %114 = tpu.matmul %112, %113, %cst_31 {dimension_numbers = #tpu.dot_dimension_numbers<[1], [0], [0], [1], [0, 0, 1, 1], [], []>} : vector<16x16xbf16>, vector<16x32xbf16>, vector<16x32xf32> -> vector<16x32xf32>
    %115 = arith.addf %63, %114 : vector<16x32xf32>
    %c0_32 = arith.constant 0 : index
    %c0_33 = arith.constant 0 : index
    %116 = vector.load %arg6[%c0_32, %c0_33] : memref<1x32xf32, #tpu.memory_space<vmem>>, vector<1x32xf32>
    %117 = vector.broadcast %116 : vector<1x32xf32> to vector<16x32xf32>
    %118 = arith.addf %115, %117 : vector<16x32xf32>
    %c0_34 = arith.constant 0 : index
    %c0_35 = arith.constant 0 : index
    %119 = vector.load %arg9[%c0_34, %c0_35] : memref<1x32xf32, #tpu.memory_space<vmem>>, vector<1x32xf32>
    %c0_36 = arith.constant 0 : index
    %c0_37 = arith.constant 0 : index
    %120 = vector.load %arg10[%c0_36, %c0_37] : memref<1x32xf32, #tpu.memory_space<vmem>>, vector<1x32xf32>
    %cst_38 = arith.constant dense<0.000000e+00> : vector<16xf32>
    %121 = vector.multi_reduction <add>, %118, %cst_38 [1] : vector<16x32xf32> to vector<16xf32>
    %122 = vector.shape_cast %121 : vector<16xf32> to vector<16x1xf32>
    %cst_39 = arith.constant 3.200000e+01 : f32
    %123 = vector.broadcast %cst_39 : f32 to vector<16x1xf32>
    %124 = arith.divf %122, %123 : vector<16x1xf32>
    %125 = vector.broadcast %124 : vector<16x1xf32> to vector<16x32xf32>
    %126 = arith.subf %118, %125 : vector<16x32xf32>
    %127 = arith.mulf %126, %126 : vector<16x32xf32>
    %cst_40 = arith.constant dense<0.000000e+00> : vector<16xf32>
    %128 = vector.multi_reduction <add>, %127, %cst_40 [1] : vector<16x32xf32> to vector<16xf32>
    %129 = vector.shape_cast %128 : vector<16xf32> to vector<16x1xf32>
    %cst_41 = arith.constant 3.200000e+01 : f32
    %130 = vector.broadcast %cst_41 : f32 to vector<16x1xf32>
    %131 = arith.divf %129, %130 : vector<16x1xf32>
    %132 = vector.broadcast %124 : vector<16x1xf32> to vector<16x32xf32>
    %133 = arith.subf %118, %132 : vector<16x32xf32>
    %cst_42 = arith.constant 9.99999974E-6 : f32
    %134 = vector.broadcast %cst_42 : f32 to vector<16x1xf32>
    %135 = arith.addf %131, %134 : vector<16x1xf32>
    %136 = math.rsqrt %135 : vector<16x1xf32>
    %137 = vector.broadcast %136 : vector<16x1xf32> to vector<16x32xf32>
    %138 = arith.mulf %133, %137 : vector<16x32xf32>
    %139 = vector.broadcast %119 : vector<1x32xf32> to vector<16x32xf32>
    %140 = arith.mulf %138, %139 : vector<16x32xf32>
    %141 = vector.broadcast %120 : vector<1x32xf32> to vector<16x32xf32>
    %142 = arith.addf %140, %141 : vector<16x32xf32>
    %143 = arith.addf %3, %142 : vector<16x32xf32>
    %144 = arith.truncf %143 : vector<16x32xf32> to vector<16x32xbf16>
    %c0_43 = arith.constant 0 : index
    %c0_44 = arith.constant 0 : index
    %145 = vector.load %arg11[%c0_43, %c0_44] : memref<32x128xbf16, #tpu.memory_space<vmem>>, vector<32x128xbf16>
    %cst_45 = arith.constant dense<0.000000e+00> : vector<16x128xf32>
    %146 = tpu.matmul %144, %145, %cst_45 {dimension_numbers = #tpu.dot_dimension_numbers<[1], [0], [0], [1], [0, 0, 1, 1], [], []>} : vector<16x32xbf16>, vector<32x128xbf16>, vector<16x128xf32> -> vector<16x128xf32>
    %c0_46 = arith.constant 0 : index
    %c0_47 = arith.constant 0 : index
    %147 = vector.load %arg12[%c0_46, %c0_47] : memref<1x128xf32, #tpu.memory_space<vmem>>, vector<1x128xf32>
    %148 = vector.broadcast %147 : vector<1x128xf32> to vector<16x128xf32>
    %149 = arith.addf %146, %148 : vector<16x128xf32>
    %cst_48 = arith.constant 5.000000e-01 : f32
    %150 = vector.broadcast %cst_48 : f32 to vector<16x128xf32>
    %151 = arith.mulf %150, %149 : vector<16x128xf32>
    %cst_49 = arith.constant 0.707106769 : f32
    %152 = vector.broadcast %cst_49 : f32 to vector<16x128xf32>
    %153 = arith.mulf %149, %152 : vector<16x128xf32>
    %154 = math.erf %153 : vector<16x128xf32>
    %cst_50 = arith.constant 1.000000e+00 : f32
    %155 = vector.broadcast %cst_50 : f32 to vector<16x128xf32>
    %156 = arith.addf %155, %154 : vector<16x128xf32>
    %157 = arith.mulf %151, %156 : vector<16x128xf32>
    %158 = arith.truncf %157 : vector<16x128xf32> to vector<16x128xbf16>
    %c0_51 = arith.constant 0 : index
    %c0_52 = arith.constant 0 : index
    %159 = vector.load %arg13[%c0_51, %c0_52] : memref<128x32xbf16, #tpu.memory_space<vmem>>, vector<128x32xbf16>
    %cst_53 = arith.constant dense<0.000000e+00> : vector<16x32xf32>
    %160 = tpu.matmul %158, %159, %cst_53 {dimension_numbers = #tpu.dot_dimension_numbers<[1], [0], [0], [1], [0, 0, 1, 1], [], []>} : vector<16x128xbf16>, vector<128x32xbf16>, vector<16x32xf32> -> vector<16x32xf32>
    %c0_54 = arith.constant 0 : index
    %c0_55 = arith.constant 0 : index
    %161 = vector.load %arg14[%c0_54, %c0_55] : memref<1x32xf32, #tpu.memory_space<vmem>>, vector<1x32xf32>
    %162 = vector.broadcast %161 : vector<1x32xf32> to vector<16x32xf32>
    %163 = arith.addf %160, %162 : vector<16x32xf32>
    %c0_56 = arith.constant 0 : index
    %c0_57 = arith.constant 0 : index
    %164 = vector.load %arg15[%c0_56, %c0_57] : memref<1x32xf32, #tpu.memory_space<vmem>>, vector<1x32xf32>
    %c0_58 = arith.constant 0 : index
    %c0_59 = arith.constant 0 : index
    %165 = vector.load %arg16[%c0_58, %c0_59] : memref<1x32xf32, #tpu.memory_space<vmem>>, vector<1x32xf32>
    %cst_60 = arith.constant dense<0.000000e+00> : vector<16xf32>
    %166 = vector.multi_reduction <add>, %163, %cst_60 [1] : vector<16x32xf32> to vector<16xf32>
    %167 = vector.shape_cast %166 : vector<16xf32> to vector<16x1xf32>
    %cst_61 = arith.constant 3.200000e+01 : f32
    %168 = vector.broadcast %cst_61 : f32 to vector<16x1xf32>
    %169 = arith.divf %167, %168 : vector<16x1xf32>
    %170 = vector.broadcast %169 : vector<16x1xf32> to vector<16x32xf32>
    %171 = arith.subf %163, %170 : vector<16x32xf32>
    %172 = arith.mulf %171, %171 : vector<16x32xf32>
    %cst_62 = arith.constant dense<0.000000e+00> : vector<16xf32>
    %173 = vector.multi_reduction <add>, %172, %cst_62 [1] : vector<16x32xf32> to vector<16xf32>
    %174 = vector.shape_cast %173 : vector<16xf32> to vector<16x1xf32>
    %cst_63 = arith.constant 3.200000e+01 : f32
    %175 = vector.broadcast %cst_63 : f32 to vector<16x1xf32>
    %176 = arith.divf %174, %175 : vector<16x1xf32>
    %177 = vector.broadcast %169 : vector<16x1xf32> to vector<16x32xf32>
    %178 = arith.subf %163, %177 : vector<16x32xf32>
    %cst_64 = arith.constant 9.99999974E-6 : f32
    %179 = vector.broadcast %cst_64 : f32 to vector<16x1xf32>
    %180 = arith.addf %176, %179 : vector<16x1xf32>
    %181 = math.rsqrt %180 : vector<16x1xf32>
    %182 = vector.broadcast %181 : vector<16x1xf32> to vector<16x32xf32>
    %183 = arith.mulf %178, %182 : vector<16x32xf32>
    %184 = vector.broadcast %164 : vector<1x32xf32> to vector<16x32xf32>
    %185 = arith.mulf %183, %184 : vector<16x32xf32>
    %186 = vector.broadcast %165 : vector<1x32xf32> to vector<16x32xf32>
    %187 = arith.addf %185, %186 : vector<16x32xf32>
    %188 = arith.addf %143, %187 : vector<16x32xf32>
    %189 = vector.shape_cast %188 : vector<16x32xf32> to vector<4x4x32xf32>
    %190 = arith.truncf %189 : vector<4x4x32xf32> to vector<4x4x32xbf16>
    %c0_65 = arith.constant 0 : index
    %c0_66 = arith.constant 0 : index
    %c0_67 = arith.constant 0 : index
    %c0_68 = arith.constant 0 : index
    %191 = vector.load %arg17[%c0_65, %c0_66, %c0_67, %c0_68] : memref<1x4x4x32xbf16, #tpu.memory_space<vmem>>, vector<1x4x4x32xbf16>
    %192 = vector.shape_cast %191 : vector<1x4x4x32xbf16> to vector<4x4x32xbf16>
    %193 = vector.shape_cast %190 : vector<4x4x32xbf16> to vector<1x4x4x32xbf16>
    tpu.vector_store %arg17[%c0_65, %c0_66, %c0_67, %c0_68], %193 {strides = array<i32>} : memref<1x4x4x32xbf16, #tpu.memory_space<vmem>>, vector<1x4x4x32xbf16>,
    return
  }
  func.func @transform_0(%arg0: i32, %arg1: i32) -> (i32, i32, i32, i32) {
    %c0_i32 = arith.constant 0 : i32
    %c0_i32_0 = arith.constant 0 : i32
    %c0_i32_1 = arith.constant 0 : i32
    return %arg0, %arg1, %c0_i32, %c0_i32_0 : i32, i32, i32, i32
  }
  func.func @transform_1(%arg0: i32, %arg1: i32) -> (i32, i32) {
    %c0_i32 = arith.constant 0 : i32
    %c0_i32_0 = arith.constant 0 : i32
    %c0_i32_1 = arith.constant 0 : i32
    return %c0_i32, %c0_i32_0 : i32, i32
  }
  func.func @transform_2(%arg0: i32, %arg1: i32) -> (i32, i32) {
    %c0_i32 = arith.constant 0 : i32
    %c0_i32_0 = arith.constant 0 : i32
    %c0_i32_1 = arith.constant 0 : i32
    return %c0_i32, %c0_i32_0 : i32, i32
  }
  func.func @transform_3(%arg0: i32, %arg1: i32) -> (i32, i32) {
    %c0_i32 = arith.constant 0 : i32
    %c0_i32_0 = arith.constant 0 : i32
    %c0_i32_1 = arith.constant 0 : i32
    return %c0_i32, %c0_i32_0 : i32, i32
  }
  func.func @transform_4(%arg0: i32, %arg1: i32) -> (i32, i32) {
    %c0_i32 = arith.constant 0 : i32
    %c0_i32_0 = arith.constant 0 : i32
    %c0_i32_1 = arith.constant 0 : i32
    return %c0_i32, %c0_i32_0 : i32, i32
  }
  func.func @transform_5(%arg0: i32, %arg1: i32) -> (i32, i32) {
    %c0_i32 = arith.constant 0 : i32
    %c0_i32_0 = arith.constant 0 : i32
    %c0_i32_1 = arith.constant 0 : i32
    return %c0_i32, %c0_i32_0 : i32, i32
  }
  func.func @transform_6(%arg0: i32, %arg1: i32) -> (i32, i32, i32) {
    %c0_i32 = arith.constant 0 : i32
    %c0_i32_0 = arith.constant 0 : i32
    %c0_i32_1 = arith.constant 0 : i32
    %c0_i32_2 = arith.constant 0 : i32
    return %c0_i32, %c0_i32_0, %c0_i32_1 : i32, i32, i32
  }
  func.func @transform_7(%arg0: i32, %arg1: i32) -> (i32, i32) {
    %c0_i32 = arith.constant 0 : i32
    %c0_i32_0 = arith.constant 0 : i32
    %c0_i32_1 = arith.constant 0 : i32
    return %c0_i32, %c0_i32_0 : i32, i32
  }
  func.func @transform_8(%arg0: i32, %arg1: i32) -> (i32, i32) {
    %c0_i32 = arith.constant 0 : i32
    %c0_i32_0 = arith.constant 0 : i32
    %c0_i32_1 = arith.constant 0 : i32
    return %c0_i32, %c0_i32_0 : i32, i32
  }
  func.func @transform_9(%arg0: i32, %arg1: i32) -> (i32, i32) {
    %c0_i32 = arith.constant 0 : i32
    %c0_i32_0 = arith.constant 0 : i32
    %c0_i32_1 = arith.constant 0 : i32
    return %c0_i32, %c0_i32_0 : i32, i32
  }
  func.func @transform_10(%arg0: i32, %arg1: i32) -> (i32, i32) {
    %c0_i32 = arith.constant 0 : i32
    %c0_i32_0 = arith.constant 0 : i32
    %c0_i32_1 = arith.constant 0 : i32
    return %c0_i32, %c0_i32_0 : i32, i32
  }
  func.func @transform_11(%arg0: i32, %arg1: i32) -> (i32, i32) {
    %c0_i32 = arith.constant 0 : i32
    %c0_i32_0 = arith.constant 0 : i32
    %c0_i32_1 = arith.constant 0 : i32
    return %c0_i32, %c0_i32_0 : i32, i32
  }
  func.func @transform_12(%arg0: i32, %arg1: i32) -> (i32, i32) {
    %c0_i32 = arith.constant 0 : i32
    %c0_i32_0 = arith.constant 0 : i32
    %c0_i32_1 = arith.constant 0 : i32
    return %c0_i32, %c0_i32_0 : i32, i32
  }
  func.func @transform_13(%arg0: i32, %arg1: i32) -> (i32, i32) {
    %c0_i32 = arith.constant 0 : i32
    %c0_i32_0 = arith.constant 0 : i32
    %c0_i32_1 = arith.constant 0 : i32
    return %c0_i32, %c0_i32_0 : i32, i32
  }
  func.func @transform_14(%arg0: i32, %arg1: i32) -> (i32, i32) {
    %c0_i32 = arith.constant 0 : i32
    %c0_i32_0 = arith.constant 0 : i32
    %c0_i32_1 = arith.constant 0 : i32
    return %c0_i32, %c0_i32_0 : i32, i32
  }
  func.func @transform_15(%arg0: i32, %arg1: i32) -> (i32, i32, i32, i32) {
    %c0_i32 = arith.constant 0 : i32
    %c0_i32_0 = arith.constant 0 : i32
    %c0_i32_1 = arith.constant 0 : i32
    return %arg0, %arg1, %c0_i32, %c0_i32_0 : i32, i32, i32, i32
  }
}

module attributes {stable_mosaic.version = 11 : i64} {
  func.func @_swin_block_kernel(%arg0: i32, %arg1: i32, %arg2: memref<1x4x4x32xbf16, #tpu.memory_space<vmem>>, %arg3: memref<32x96xbf16, #tpu.memory_space<vmem>>, %arg4: memref<1x96xf32, #tpu.memory_space<vmem>>, %arg5: memref<32x32xbf16, #tpu.memory_space<vmem>>, %arg6: memref<1x32xf32, #tpu.memory_space<vmem>>, %arg7: memref<1x2xf32, #tpu.memory_space<vmem>>, %arg8: memref<2x4x4xf32, #tpu.memory_space<vmem>>, %arg9: memref<1x32xf32, #tpu.memory_space<vmem>>, %arg10: memref<1x32xf32, #tpu.memory_space<vmem>>, %arg11: memref<32x128xbf16, #tpu.memory_space<vmem>>, %arg12: memref<1x128xf32, #tpu.memory_space<vmem>>, %arg13: memref<128x32xbf16, #tpu.memory_space<vmem>>, %arg14: memref<1x32xf32, #tpu.memory_space<vmem>>, %arg15: memref<1x32xf32, #tpu.memory_space<vmem>>, %arg16: memref<1x32xf32, #tpu.memory_space<vmem>>, %arg17: memref<4x4x4xf32, #tpu.memory_space<vmem>>, %arg18: memref<1x32xf32, #tpu.memory_space<vmem>>, %arg19: memref<1x32xf32, #tpu.memory_space<vmem>>, %arg20: memref<1x4x4x32xbf16, #tpu.memory_space<vmem>>) attributes {dimension_semantics = [#tpu.dimension_semantics<parallel>, #tpu.dimension_semantics<parallel>], iteration_bounds = array<i64: 2, 1>, scalar_prefetch = 0 : i64, scratch_operands = 0 : i64, tpu.core_type = #tpu.core_type<tc>, window_params = [{transform_indices = @transform_0, window_bounds = array<i64: 1, 4, 4, 32>}, {pipeline_mode = #tpu.pipeline_mode<synchronous>, transform_indices = @transform_1, window_bounds = array<i64: 32, 96>}, {pipeline_mode = #tpu.pipeline_mode<synchronous>, transform_indices = @transform_2, window_bounds = array<i64: 1, 96>}, {pipeline_mode = #tpu.pipeline_mode<synchronous>, transform_indices = @transform_3, window_bounds = array<i64: 32, 32>}, {pipeline_mode = #tpu.pipeline_mode<synchronous>, transform_indices = @transform_4, window_bounds = array<i64: 1, 32>}, {pipeline_mode = #tpu.pipeline_mode<synchronous>, transform_indices = @transform_5, window_bounds = array<i64: 1, 2>}, {pipeline_mode = #tpu.pipeline_mode<synchronous>, transform_indices = @transform_6, window_bounds = array<i64: 2, 4, 4>}, {pipeline_mode = #tpu.pipeline_mode<synchronous>, transform_indices = @transform_7, window_bounds = array<i64: 1, 32>}, {pipeline_mode = #tpu.pipeline_mode<synchronous>, transform_indices = @transform_8, window_bounds = array<i64: 1, 32>}, {pipeline_mode = #tpu.pipeline_mode<synchronous>, transform_indices = @transform_9, window_bounds = array<i64: 32, 128>}, {pipeline_mode = #tpu.pipeline_mode<synchronous>, transform_indices = @transform_10, window_bounds = array<i64: 1, 128>}, {pipeline_mode = #tpu.pipeline_mode<synchronous>, transform_indices = @transform_11, window_bounds = array<i64: 128, 32>}, {pipeline_mode = #tpu.pipeline_mode<synchronous>, transform_indices = @transform_12, window_bounds = array<i64: 1, 32>}, {pipeline_mode = #tpu.pipeline_mode<synchronous>, transform_indices = @transform_13, window_bounds = array<i64: 1, 32>}, {pipeline_mode = #tpu.pipeline_mode<synchronous>, transform_indices = @transform_14, window_bounds = array<i64: 1, 32>}, {transform_indices = @transform_15, window_bounds = array<i64: 4, 4, 4>}, {pipeline_mode = #tpu.pipeline_mode<synchronous>, transform_indices = @transform_16, window_bounds = array<i64: 1, 32>}, {pipeline_mode = #tpu.pipeline_mode<synchronous>, transform_indices = @transform_17, window_bounds = array<i64: 1, 32>}, {transform_indices = @transform_18, window_bounds = array<i64: 1, 4, 4, 32>}]} {
    %c0 = arith.constant 0 : index
    %c0_0 = arith.constant 0 : index
    %c0_1 = arith.constant 0 : index
    %c0_2 = arith.constant 0 : index
    %0 = vector.load %arg2[%c0, %c0_0, %c0_1, %c0_2] : memref<1x4x4x32xbf16, #tpu.memory_space<vmem>>, vector<1x4x4x32xbf16>
    %1 = vector.shape_cast %0 : vector<1x4x4x32xbf16> to vector<4x4x32xbf16>
    %2 = arith.extf %1 : vector<4x4x32xbf16> to vector<4x4x32xf32>
    %3 = vector.shape_cast %2 : vector<4x4x32xf32> to vector<16x32xf32>
    %4 = arith.truncf %3 : vector<16x32xf32> to vector<16x32xbf16>
    %c0_3 = arith.constant 0 : index
    %c0_4 = arith.constant 0 : index
    %5 = vector.load %arg3[%c0_3, %c0_4] : memref<32x96xbf16, #tpu.memory_space<vmem>>, vector<32x96xbf16>
    %cst = arith.constant dense<0.000000e+00> : vector<16x96xf32>
    %6 = tpu.matmul %4, %5, %cst {dimension_numbers = #tpu.dot_dimension_numbers<[1], [0], [0], [1], [0, 0, 1, 1], [], []>} : vector<16x32xbf16>, vector<32x96xbf16>, vector<16x96xf32> -> vector<16x96xf32>
    %c0_5 = arith.constant 0 : index
    %c0_6 = arith.constant 0 : index
    %7 = vector.load %arg4[%c0_5, %c0_6] : memref<1x96xf32, #tpu.memory_space<vmem>>, vector<1x96xf32>
    %8 = vector.broadcast %7 : vector<1x96xf32> to vector<16x96xf32>
    %9 = arith.addf %6, %8 : vector<16x96xf32>
    %c0_7 = arith.constant 0 : index
    %c0_8 = arith.constant 0 : index
    %10 = vector.load %arg7[%c0_7, %c0_8] : memref<1x2xf32, #tpu.memory_space<vmem>>, vector<1x2xf32>
    %c0_9 = arith.constant 0 : index
    %c0_10 = arith.constant 0 : index
    %c0_11 = arith.constant 0 : index
    %11 = vector.load %arg8[%c0_9, %c0_10, %c0_11] : memref<2x4x4xf32, #tpu.memory_space<vmem>>, vector<2x4x4xf32>
    %c0_12 = arith.constant 0 : index
    %c0_13 = arith.constant 0 : index
    %c0_14 = arith.constant 0 : index
    %12 = vector.load %arg17[%c0_12, %c0_13, %c0_14] : memref<4x4x4xf32, #tpu.memory_space<vmem>>, vector<4x4x4xf32>
    %c0_15 = arith.constant 0 : index
    %c0_16 = arith.constant 0 : index
    %13 = vector.load %arg5[%c0_15, %c0_16] : memref<32x32xbf16, #tpu.memory_space<vmem>>, vector<32x32xbf16>
    %14 = vector.extract_strided_slice %9 {offsets = [0, 0], sizes = [16, 16], strides = [1, 1]} : vector<16x96xf32> to vector<16x16xf32>
    %15 = vector.shape_cast %14 : vector<16x16xf32> to vector<4x4x16xf32>
    %16 = vector.extract_strided_slice %9 {offsets = [0, 32], sizes = [16, 16], strides = [1, 1]} : vector<16x96xf32> to vector<16x16xf32>
    %17 = vector.shape_cast %16 : vector<16x16xf32> to vector<4x4x16xf32>
    %18 = vector.extract_strided_slice %9 {offsets = [0, 64], sizes = [16, 16], strides = [1, 1]} : vector<16x96xf32> to vector<16x16xf32>
    %19 = vector.shape_cast %18 : vector<16x16xf32> to vector<4x4x16xf32>
    %20 = arith.mulf %15, %15 : vector<4x4x16xf32>
    %cst_17 = arith.constant dense<0.000000e+00> : vector<4x4xf32>
    %21 = vector.multi_reduction <add>, %20, %cst_17 [2] : vector<4x4x16xf32> to vector<4x4xf32>
    %22 = vector.shape_cast %21 : vector<4x4xf32> to vector<4x4x1xf32>
    %cst_18 = arith.constant 1.000000e-24 : f32
    %23 = vector.broadcast %cst_18 : f32 to vector<4x4x1xf32>
    %24 = arith.addf %22, %23 : vector<4x4x1xf32>
    %25 = math.rsqrt %24 : vector<4x4x1xf32>
    %26 = vector.extract_strided_slice %10 {offsets = [0, 0], sizes = [1, 1], strides = [1, 1]} : vector<1x2xf32> to vector<1x1xf32>
    %27 = vector.extract %26[0, 0] : f32 from vector<1x1xf32>
    %28 = vector.broadcast %27 : f32 to vector<4x4x1xf32>
    %29 = arith.mulf %25, %28 : vector<4x4x1xf32>
    %30 = vector.broadcast %29 : vector<4x4x1xf32> to vector<4x4x16xf32>
    %31 = arith.mulf %15, %30 : vector<4x4x16xf32>
    %32 = arith.mulf %17, %17 : vector<4x4x16xf32>
    %cst_19 = arith.constant dense<0.000000e+00> : vector<4x4xf32>
    %33 = vector.multi_reduction <add>, %32, %cst_19 [2] : vector<4x4x16xf32> to vector<4x4xf32>
    %34 = vector.shape_cast %33 : vector<4x4xf32> to vector<4x4x1xf32>
    %cst_20 = arith.constant 1.000000e-24 : f32
    %35 = vector.broadcast %cst_20 : f32 to vector<4x4x1xf32>
    %36 = arith.addf %34, %35 : vector<4x4x1xf32>
    %37 = math.rsqrt %36 : vector<4x4x1xf32>
    %38 = vector.broadcast %37 : vector<4x4x1xf32> to vector<4x4x16xf32>
    %39 = arith.mulf %17, %38 : vector<4x4x16xf32>
    %40 = arith.truncf %31 : vector<4x4x16xf32> to vector<4x4x16xbf16>
    %41 = arith.truncf %39 : vector<4x4x16xf32> to vector<4x4x16xbf16>
    "tpu.trace_start"() <{level = 10 : i32, message = "wld,wmd->wlm"}> : () -> ()
    %cst_21 = arith.constant dense<0.000000e+00> : vector<4x4x4xf32>
    %42 = tpu.matmul %40, %41, %cst_21 {dimension_numbers = #tpu.dot_dimension_numbers<[2], [2], [1], [1], [0, 0, 0, 1, 1, 1], [0], [0]>} : vector<4x4x16xbf16>, vector<4x4x16xbf16>, vector<4x4x4xf32> -> vector<4x4x4xf32>
    "tpu.trace_stop"() : () -> ()
    %43 = vector.extract_strided_slice %11 {offsets = [0, 0, 0], sizes = [1, 4, 4], strides = [1, 1, 1]} : vector<2x4x4xf32> to vector<1x4x4xf32>
    %44 = vector.shape_cast %43 : vector<1x4x4xf32> to vector<4x4xf32>
    %45 = vector.shape_cast %44 : vector<4x4xf32> to vector<1x4x4xf32>
    %46 = vector.broadcast %45 : vector<1x4x4xf32> to vector<4x4x4xf32>
    %47 = arith.addf %42, %46 : vector<4x4x4xf32>
    %48 = arith.addf %47, %12 : vector<4x4x4xf32>
    %cst_22 = arith.constant dense<0xFF800000> : vector<4x4xf32>
    %49 = vector.multi_reduction <maximumf>, %48, %cst_22 [2] : vector<4x4x4xf32> to vector<4x4xf32>
    %50 = vector.shape_cast %49 : vector<4x4xf32> to vector<4x4x1xf32>
    %51 = vector.broadcast %50 : vector<4x4x1xf32> to vector<4x4x4xf32>
    %52 = arith.subf %48, %51 : vector<4x4x4xf32>
    %53 = math.exp %52 : vector<4x4x4xf32>
    %cst_23 = arith.constant dense<0.000000e+00> : vector<4x4xf32>
    %54 = vector.multi_reduction <add>, %53, %cst_23 [2] : vector<4x4x4xf32> to vector<4x4xf32>
    %55 = vector.shape_cast %54 : vector<4x4xf32> to vector<4x4x1xf32>
    %56 = tpu.reciprocal %55 {approx = true} : vector<4x4x1xf32> -> vector<4x4x1xf32>
    %57 = vector.broadcast %56 : vector<4x4x1xf32> to vector<4x4x4xf32>
    %58 = arith.mulf %53, %57 : vector<4x4x4xf32>
    %59 = arith.truncf %58 : vector<4x4x4xf32> to vector<4x4x4xbf16>
    %60 = arith.truncf %19 : vector<4x4x16xf32> to vector<4x4x16xbf16>
    "tpu.trace_start"() <{level = 10 : i32, message = "wlm,wmd->wld"}> : () -> ()
    %cst_24 = arith.constant dense<0.000000e+00> : vector<4x4x16xf32>
    %61 = tpu.matmul %59, %60, %cst_24 {dimension_numbers = #tpu.dot_dimension_numbers<[2], [1], [1], [2], [0, 0, 0, 1, 1, 2], [0], [0]>} : vector<4x4x4xbf16>, vector<4x4x16xbf16>, vector<4x4x16xf32> -> vector<4x4x16xf32>
    "tpu.trace_stop"() : () -> ()
    %62 = vector.shape_cast %61 : vector<4x4x16xf32> to vector<16x16xf32>
    %63 = arith.truncf %62 : vector<16x16xf32> to vector<16x16xbf16>
    %64 = vector.extract_strided_slice %13 {offsets = [0, 0], sizes = [16, 32], strides = [1, 1]} : vector<32x32xbf16> to vector<16x32xbf16>
    %cst_25 = arith.constant dense<0.000000e+00> : vector<16x32xf32>
    %65 = tpu.matmul %63, %64, %cst_25 {dimension_numbers = #tpu.dot_dimension_numbers<[1], [0], [0], [1], [0, 0, 1, 1], [], []>} : vector<16x16xbf16>, vector<16x32xbf16>, vector<16x32xf32> -> vector<16x32xf32>
    %66 = vector.extract_strided_slice %9 {offsets = [0, 16], sizes = [16, 16], strides = [1, 1]} : vector<16x96xf32> to vector<16x16xf32>
    %67 = vector.shape_cast %66 : vector<16x16xf32> to vector<4x4x16xf32>
    %68 = vector.extract_strided_slice %9 {offsets = [0, 48], sizes = [16, 16], strides = [1, 1]} : vector<16x96xf32> to vector<16x16xf32>
    %69 = vector.shape_cast %68 : vector<16x16xf32> to vector<4x4x16xf32>
    %70 = vector.extract_strided_slice %9 {offsets = [0, 80], sizes = [16, 16], strides = [1, 1]} : vector<16x96xf32> to vector<16x16xf32>
    %71 = vector.shape_cast %70 : vector<16x16xf32> to vector<4x4x16xf32>
    %72 = arith.mulf %67, %67 : vector<4x4x16xf32>
    %cst_26 = arith.constant dense<0.000000e+00> : vector<4x4xf32>
    %73 = vector.multi_reduction <add>, %72, %cst_26 [2] : vector<4x4x16xf32> to vector<4x4xf32>
    %74 = vector.shape_cast %73 : vector<4x4xf32> to vector<4x4x1xf32>
    %cst_27 = arith.constant 1.000000e-24 : f32
    %75 = vector.broadcast %cst_27 : f32 to vector<4x4x1xf32>
    %76 = arith.addf %74, %75 : vector<4x4x1xf32>
    %77 = math.rsqrt %76 : vector<4x4x1xf32>
    %78 = vector.extract_strided_slice %10 {offsets = [0, 1], sizes = [1, 1], strides = [1, 1]} : vector<1x2xf32> to vector<1x1xf32>
    %79 = vector.extract %78[0, 0] : f32 from vector<1x1xf32>
    %80 = vector.broadcast %79 : f32 to vector<4x4x1xf32>
    %81 = arith.mulf %77, %80 : vector<4x4x1xf32>
    %82 = vector.broadcast %81 : vector<4x4x1xf32> to vector<4x4x16xf32>
    %83 = arith.mulf %67, %82 : vector<4x4x16xf32>
    %84 = arith.mulf %69, %69 : vector<4x4x16xf32>
    %cst_28 = arith.constant dense<0.000000e+00> : vector<4x4xf32>
    %85 = vector.multi_reduction <add>, %84, %cst_28 [2] : vector<4x4x16xf32> to vector<4x4xf32>
    %86 = vector.shape_cast %85 : vector<4x4xf32> to vector<4x4x1xf32>
    %cst_29 = arith.constant 1.000000e-24 : f32
    %87 = vector.broadcast %cst_29 : f32 to vector<4x4x1xf32>
    %88 = arith.addf %86, %87 : vector<4x4x1xf32>
    %89 = math.rsqrt %88 : vector<4x4x1xf32>
    %90 = vector.broadcast %89 : vector<4x4x1xf32> to vector<4x4x16xf32>
    %91 = arith.mulf %69, %90 : vector<4x4x16xf32>
    %92 = arith.truncf %83 : vector<4x4x16xf32> to vector<4x4x16xbf16>
    %93 = arith.truncf %91 : vector<4x4x16xf32> to vector<4x4x16xbf16>
    "tpu.trace_start"() <{level = 10 : i32, message = "wld,wmd->wlm"}> : () -> ()
    %cst_30 = arith.constant dense<0.000000e+00> : vector<4x4x4xf32>
    %94 = tpu.matmul %92, %93, %cst_30 {dimension_numbers = #tpu.dot_dimension_numbers<[2], [2], [1], [1], [0, 0, 0, 1, 1, 1], [0], [0]>} : vector<4x4x16xbf16>, vector<4x4x16xbf16>, vector<4x4x4xf32> -> vector<4x4x4xf32>
    "tpu.trace_stop"() : () -> ()
    %95 = vector.extract_strided_slice %11 {offsets = [1, 0, 0], sizes = [1, 4, 4], strides = [1, 1, 1]} : vector<2x4x4xf32> to vector<1x4x4xf32>
    %96 = vector.shape_cast %95 : vector<1x4x4xf32> to vector<4x4xf32>
    %97 = vector.shape_cast %96 : vector<4x4xf32> to vector<1x4x4xf32>
    %98 = vector.broadcast %97 : vector<1x4x4xf32> to vector<4x4x4xf32>
    %99 = arith.addf %94, %98 : vector<4x4x4xf32>
    %100 = arith.addf %99, %12 : vector<4x4x4xf32>
    %cst_31 = arith.constant dense<0xFF800000> : vector<4x4xf32>
    %101 = vector.multi_reduction <maximumf>, %100, %cst_31 [2] : vector<4x4x4xf32> to vector<4x4xf32>
    %102 = vector.shape_cast %101 : vector<4x4xf32> to vector<4x4x1xf32>
    %103 = vector.broadcast %102 : vector<4x4x1xf32> to vector<4x4x4xf32>
    %104 = arith.subf %100, %103 : vector<4x4x4xf32>
    %105 = math.exp %104 : vector<4x4x4xf32>
    %cst_32 = arith.constant dense<0.000000e+00> : vector<4x4xf32>
    %106 = vector.multi_reduction <add>, %105, %cst_32 [2] : vector<4x4x4xf32> to vector<4x4xf32>
    %107 = vector.shape_cast %106 : vector<4x4xf32> to vector<4x4x1xf32>
    %108 = tpu.reciprocal %107 {approx = true} : vector<4x4x1xf32> -> vector<4x4x1xf32>
    %109 = vector.broadcast %108 : vector<4x4x1xf32> to vector<4x4x4xf32>
    %110 = arith.mulf %105, %109 : vector<4x4x4xf32>
    %111 = arith.truncf %110 : vector<4x4x4xf32> to vector<4x4x4xbf16>
    %112 = arith.truncf %71 : vector<4x4x16xf32> to vector<4x4x16xbf16>
    "tpu.trace_start"() <{level = 10 : i32, message = "wlm,wmd->wld"}> : () -> ()
    %cst_33 = arith.constant dense<0.000000e+00> : vector<4x4x16xf32>
    %113 = tpu.matmul %111, %112, %cst_33 {dimension_numbers = #tpu.dot_dimension_numbers<[2], [1], [1], [2], [0, 0, 0, 1, 1, 2], [0], [0]>} : vector<4x4x4xbf16>, vector<4x4x16xbf16>, vector<4x4x16xf32> -> vector<4x4x16xf32>
    "tpu.trace_stop"() : () -> ()
    %114 = vector.shape_cast %113 : vector<4x4x16xf32> to vector<16x16xf32>
    %115 = arith.truncf %114 : vector<16x16xf32> to vector<16x16xbf16>
    %116 = vector.extract_strided_slice %13 {offsets = [16, 0], sizes = [16, 32], strides = [1, 1]} : vector<32x32xbf16> to vector<16x32xbf16>
    %cst_34 = arith.constant dense<0.000000e+00> : vector<16x32xf32>
    %117 = tpu.matmul %115, %116, %cst_34 {dimension_numbers = #tpu.dot_dimension_numbers<[1], [0], [0], [1], [0, 0, 1, 1], [], []>} : vector<16x16xbf16>, vector<16x32xbf16>, vector<16x32xf32> -> vector<16x32xf32>
    %118 = arith.addf %65, %117 : vector<16x32xf32>
    %c0_35 = arith.constant 0 : index
    %c0_36 = arith.constant 0 : index
    %119 = vector.load %arg6[%c0_35, %c0_36] : memref<1x32xf32, #tpu.memory_space<vmem>>, vector<1x32xf32>
    %120 = vector.broadcast %119 : vector<1x32xf32> to vector<16x32xf32>
    %121 = arith.addf %118, %120 : vector<16x32xf32>
    %c0_37 = arith.constant 0 : index
    %c0_38 = arith.constant 0 : index
    %122 = vector.load %arg9[%c0_37, %c0_38] : memref<1x32xf32, #tpu.memory_space<vmem>>, vector<1x32xf32>
    %c0_39 = arith.constant 0 : index
    %c0_40 = arith.constant 0 : index
    %123 = vector.load %arg10[%c0_39, %c0_40] : memref<1x32xf32, #tpu.memory_space<vmem>>, vector<1x32xf32>
    %cst_41 = arith.constant dense<0.000000e+00> : vector<16xf32>
    %124 = vector.multi_reduction <add>, %121, %cst_41 [1] : vector<16x32xf32> to vector<16xf32>
    %125 = vector.shape_cast %124 : vector<16xf32> to vector<16x1xf32>
    %cst_42 = arith.constant 3.200000e+01 : f32
    %126 = vector.broadcast %cst_42 : f32 to vector<16x1xf32>
    %127 = arith.divf %125, %126 : vector<16x1xf32>
    %128 = vector.broadcast %127 : vector<16x1xf32> to vector<16x32xf32>
    %129 = arith.subf %121, %128 : vector<16x32xf32>
    %130 = arith.mulf %129, %129 : vector<16x32xf32>
    %cst_43 = arith.constant dense<0.000000e+00> : vector<16xf32>
    %131 = vector.multi_reduction <add>, %130, %cst_43 [1] : vector<16x32xf32> to vector<16xf32>
    %132 = vector.shape_cast %131 : vector<16xf32> to vector<16x1xf32>
    %cst_44 = arith.constant 3.200000e+01 : f32
    %133 = vector.broadcast %cst_44 : f32 to vector<16x1xf32>
    %134 = arith.divf %132, %133 : vector<16x1xf32>
    %135 = vector.broadcast %127 : vector<16x1xf32> to vector<16x32xf32>
    %136 = arith.subf %121, %135 : vector<16x32xf32>
    %cst_45 = arith.constant 9.99999974E-6 : f32
    %137 = vector.broadcast %cst_45 : f32 to vector<16x1xf32>
    %138 = arith.addf %134, %137 : vector<16x1xf32>
    %139 = math.rsqrt %138 : vector<16x1xf32>
    %140 = vector.broadcast %139 : vector<16x1xf32> to vector<16x32xf32>
    %141 = arith.mulf %136, %140 : vector<16x32xf32>
    %142 = vector.broadcast %122 : vector<1x32xf32> to vector<16x32xf32>
    %143 = arith.mulf %141, %142 : vector<16x32xf32>
    %144 = vector.broadcast %123 : vector<1x32xf32> to vector<16x32xf32>
    %145 = arith.addf %143, %144 : vector<16x32xf32>
    %146 = arith.addf %3, %145 : vector<16x32xf32>
    %147 = arith.truncf %146 : vector<16x32xf32> to vector<16x32xbf16>
    %c0_46 = arith.constant 0 : index
    %c0_47 = arith.constant 0 : index
    %148 = vector.load %arg11[%c0_46, %c0_47] : memref<32x128xbf16, #tpu.memory_space<vmem>>, vector<32x128xbf16>
    %cst_48 = arith.constant dense<0.000000e+00> : vector<16x128xf32>
    %149 = tpu.matmul %147, %148, %cst_48 {dimension_numbers = #tpu.dot_dimension_numbers<[1], [0], [0], [1], [0, 0, 1, 1], [], []>} : vector<16x32xbf16>, vector<32x128xbf16>, vector<16x128xf32> -> vector<16x128xf32>
    %c0_49 = arith.constant 0 : index
    %c0_50 = arith.constant 0 : index
    %150 = vector.load %arg12[%c0_49, %c0_50] : memref<1x128xf32, #tpu.memory_space<vmem>>, vector<1x128xf32>
    %151 = vector.broadcast %150 : vector<1x128xf32> to vector<16x128xf32>
    %152 = arith.addf %149, %151 : vector<16x128xf32>
    %cst_51 = arith.constant 5.000000e-01 : f32
    %153 = vector.broadcast %cst_51 : f32 to vector<16x128xf32>
    %154 = arith.mulf %153, %152 : vector<16x128xf32>
    %cst_52 = arith.constant 0.707106769 : f32
    %155 = vector.broadcast %cst_52 : f32 to vector<16x128xf32>
    %156 = arith.mulf %152, %155 : vector<16x128xf32>
    %157 = math.erf %156 : vector<16x128xf32>
    %cst_53 = arith.constant 1.000000e+00 : f32
    %158 = vector.broadcast %cst_53 : f32 to vector<16x128xf32>
    %159 = arith.addf %158, %157 : vector<16x128xf32>
    %160 = arith.mulf %154, %159 : vector<16x128xf32>
    %161 = arith.truncf %160 : vector<16x128xf32> to vector<16x128xbf16>
    %c0_54 = arith.constant 0 : index
    %c0_55 = arith.constant 0 : index
    %162 = vector.load %arg13[%c0_54, %c0_55] : memref<128x32xbf16, #tpu.memory_space<vmem>>, vector<128x32xbf16>
    %cst_56 = arith.constant dense<0.000000e+00> : vector<16x32xf32>
    %163 = tpu.matmul %161, %162, %cst_56 {dimension_numbers = #tpu.dot_dimension_numbers<[1], [0], [0], [1], [0, 0, 1, 1], [], []>} : vector<16x128xbf16>, vector<128x32xbf16>, vector<16x32xf32> -> vector<16x32xf32>
    %c0_57 = arith.constant 0 : index
    %c0_58 = arith.constant 0 : index
    %164 = vector.load %arg14[%c0_57, %c0_58] : memref<1x32xf32, #tpu.memory_space<vmem>>, vector<1x32xf32>
    %165 = vector.broadcast %164 : vector<1x32xf32> to vector<16x32xf32>
    %166 = arith.addf %163, %165 : vector<16x32xf32>
    %c0_59 = arith.constant 0 : index
    %c0_60 = arith.constant 0 : index
    %167 = vector.load %arg15[%c0_59, %c0_60] : memref<1x32xf32, #tpu.memory_space<vmem>>, vector<1x32xf32>
    %c0_61 = arith.constant 0 : index
    %c0_62 = arith.constant 0 : index
    %168 = vector.load %arg16[%c0_61, %c0_62] : memref<1x32xf32, #tpu.memory_space<vmem>>, vector<1x32xf32>
    %cst_63 = arith.constant dense<0.000000e+00> : vector<16xf32>
    %169 = vector.multi_reduction <add>, %166, %cst_63 [1] : vector<16x32xf32> to vector<16xf32>
    %170 = vector.shape_cast %169 : vector<16xf32> to vector<16x1xf32>
    %cst_64 = arith.constant 3.200000e+01 : f32
    %171 = vector.broadcast %cst_64 : f32 to vector<16x1xf32>
    %172 = arith.divf %170, %171 : vector<16x1xf32>
    %173 = vector.broadcast %172 : vector<16x1xf32> to vector<16x32xf32>
    %174 = arith.subf %166, %173 : vector<16x32xf32>
    %175 = arith.mulf %174, %174 : vector<16x32xf32>
    %cst_65 = arith.constant dense<0.000000e+00> : vector<16xf32>
    %176 = vector.multi_reduction <add>, %175, %cst_65 [1] : vector<16x32xf32> to vector<16xf32>
    %177 = vector.shape_cast %176 : vector<16xf32> to vector<16x1xf32>
    %cst_66 = arith.constant 3.200000e+01 : f32
    %178 = vector.broadcast %cst_66 : f32 to vector<16x1xf32>
    %179 = arith.divf %177, %178 : vector<16x1xf32>
    %180 = vector.broadcast %172 : vector<16x1xf32> to vector<16x32xf32>
    %181 = arith.subf %166, %180 : vector<16x32xf32>
    %cst_67 = arith.constant 9.99999974E-6 : f32
    %182 = vector.broadcast %cst_67 : f32 to vector<16x1xf32>
    %183 = arith.addf %179, %182 : vector<16x1xf32>
    %184 = math.rsqrt %183 : vector<16x1xf32>
    %185 = vector.broadcast %184 : vector<16x1xf32> to vector<16x32xf32>
    %186 = arith.mulf %181, %185 : vector<16x32xf32>
    %187 = vector.broadcast %167 : vector<1x32xf32> to vector<16x32xf32>
    %188 = arith.mulf %186, %187 : vector<16x32xf32>
    %189 = vector.broadcast %168 : vector<1x32xf32> to vector<16x32xf32>
    %190 = arith.addf %188, %189 : vector<16x32xf32>
    %191 = arith.addf %146, %190 : vector<16x32xf32>
    %c0_68 = arith.constant 0 : index
    %c0_69 = arith.constant 0 : index
    %192 = vector.load %arg18[%c0_68, %c0_69] : memref<1x32xf32, #tpu.memory_space<vmem>>, vector<1x32xf32>
    %c0_70 = arith.constant 0 : index
    %c0_71 = arith.constant 0 : index
    %193 = vector.load %arg19[%c0_70, %c0_71] : memref<1x32xf32, #tpu.memory_space<vmem>>, vector<1x32xf32>
    %cst_72 = arith.constant dense<0.000000e+00> : vector<16xf32>
    %194 = vector.multi_reduction <add>, %191, %cst_72 [1] : vector<16x32xf32> to vector<16xf32>
    %195 = vector.shape_cast %194 : vector<16xf32> to vector<16x1xf32>
    %cst_73 = arith.constant 3.200000e+01 : f32
    %196 = vector.broadcast %cst_73 : f32 to vector<16x1xf32>
    %197 = arith.divf %195, %196 : vector<16x1xf32>
    %198 = vector.broadcast %197 : vector<16x1xf32> to vector<16x32xf32>
    %199 = arith.subf %191, %198 : vector<16x32xf32>
    %200 = arith.mulf %199, %199 : vector<16x32xf32>
    %cst_74 = arith.constant dense<0.000000e+00> : vector<16xf32>
    %201 = vector.multi_reduction <add>, %200, %cst_74 [1] : vector<16x32xf32> to vector<16xf32>
    %202 = vector.shape_cast %201 : vector<16xf32> to vector<16x1xf32>
    %cst_75 = arith.constant 3.200000e+01 : f32
    %203 = vector.broadcast %cst_75 : f32 to vector<16x1xf32>
    %204 = arith.divf %202, %203 : vector<16x1xf32>
    %205 = vector.broadcast %197 : vector<16x1xf32> to vector<16x32xf32>
    %206 = arith.subf %191, %205 : vector<16x32xf32>
    %cst_76 = arith.constant 9.99999974E-6 : f32
    %207 = vector.broadcast %cst_76 : f32 to vector<16x1xf32>
    %208 = arith.addf %204, %207 : vector<16x1xf32>
    %209 = math.rsqrt %208 : vector<16x1xf32>
    %210 = vector.broadcast %209 : vector<16x1xf32> to vector<16x32xf32>
    %211 = arith.mulf %206, %210 : vector<16x32xf32>
    %212 = vector.broadcast %192 : vector<1x32xf32> to vector<16x32xf32>
    %213 = arith.mulf %211, %212 : vector<16x32xf32>
    %214 = vector.broadcast %193 : vector<1x32xf32> to vector<16x32xf32>
    %215 = arith.addf %213, %214 : vector<16x32xf32>
    %216 = vector.shape_cast %215 : vector<16x32xf32> to vector<4x4x32xf32>
    %217 = arith.truncf %216 : vector<4x4x32xf32> to vector<4x4x32xbf16>
    %c0_77 = arith.constant 0 : index
    %c0_78 = arith.constant 0 : index
    %c0_79 = arith.constant 0 : index
    %c0_80 = arith.constant 0 : index
    %218 = vector.load %arg20[%c0_77, %c0_78, %c0_79, %c0_80] : memref<1x4x4x32xbf16, #tpu.memory_space<vmem>>, vector<1x4x4x32xbf16>
    %219 = vector.shape_cast %218 : vector<1x4x4x32xbf16> to vector<4x4x32xbf16>
    %220 = vector.shape_cast %217 : vector<4x4x32xbf16> to vector<1x4x4x32xbf16>
    tpu.vector_store %arg20[%c0_77, %c0_78, %c0_79, %c0_80], %220 {strides = array<i32>} : memref<1x4x4x32xbf16, #tpu.memory_space<vmem>>, vector<1x4x4x32xbf16>,
    return
  }
  func.func @transform_0(%arg0: i32, %arg1: i32) -> (i32, i32, i32, i32) {
    %c0_i32 = arith.constant 0 : i32
    %c0_i32_0 = arith.constant 0 : i32
    %c0_i32_1 = arith.constant 0 : i32
    return %arg0, %arg1, %c0_i32, %c0_i32_0 : i32, i32, i32, i32
  }
  func.func @transform_1(%arg0: i32, %arg1: i32) -> (i32, i32) {
    %c0_i32 = arith.constant 0 : i32
    %c0_i32_0 = arith.constant 0 : i32
    %c0_i32_1 = arith.constant 0 : i32
    return %c0_i32, %c0_i32_0 : i32, i32
  }
  func.func @transform_2(%arg0: i32, %arg1: i32) -> (i32, i32) {
    %c0_i32 = arith.constant 0 : i32
    %c0_i32_0 = arith.constant 0 : i32
    %c0_i32_1 = arith.constant 0 : i32
    return %c0_i32, %c0_i32_0 : i32, i32
  }
  func.func @transform_3(%arg0: i32, %arg1: i32) -> (i32, i32) {
    %c0_i32 = arith.constant 0 : i32
    %c0_i32_0 = arith.constant 0 : i32
    %c0_i32_1 = arith.constant 0 : i32
    return %c0_i32, %c0_i32_0 : i32, i32
  }
  func.func @transform_4(%arg0: i32, %arg1: i32) -> (i32, i32) {
    %c0_i32 = arith.constant 0 : i32
    %c0_i32_0 = arith.constant 0 : i32
    %c0_i32_1 = arith.constant 0 : i32
    return %c0_i32, %c0_i32_0 : i32, i32
  }
  func.func @transform_5(%arg0: i32, %arg1: i32) -> (i32, i32) {
    %c0_i32 = arith.constant 0 : i32
    %c0_i32_0 = arith.constant 0 : i32
    %c0_i32_1 = arith.constant 0 : i32
    return %c0_i32, %c0_i32_0 : i32, i32
  }
  func.func @transform_6(%arg0: i32, %arg1: i32) -> (i32, i32, i32) {
    %c0_i32 = arith.constant 0 : i32
    %c0_i32_0 = arith.constant 0 : i32
    %c0_i32_1 = arith.constant 0 : i32
    %c0_i32_2 = arith.constant 0 : i32
    return %c0_i32, %c0_i32_0, %c0_i32_1 : i32, i32, i32
  }
  func.func @transform_7(%arg0: i32, %arg1: i32) -> (i32, i32) {
    %c0_i32 = arith.constant 0 : i32
    %c0_i32_0 = arith.constant 0 : i32
    %c0_i32_1 = arith.constant 0 : i32
    return %c0_i32, %c0_i32_0 : i32, i32
  }
  func.func @transform_8(%arg0: i32, %arg1: i32) -> (i32, i32) {
    %c0_i32 = arith.constant 0 : i32
    %c0_i32_0 = arith.constant 0 : i32
    %c0_i32_1 = arith.constant 0 : i32
    return %c0_i32, %c0_i32_0 : i32, i32
  }
  func.func @transform_9(%arg0: i32, %arg1: i32) -> (i32, i32) {
    %c0_i32 = arith.constant 0 : i32
    %c0_i32_0 = arith.constant 0 : i32
    %c0_i32_1 = arith.constant 0 : i32
    return %c0_i32, %c0_i32_0 : i32, i32
  }
  func.func @transform_10(%arg0: i32, %arg1: i32) -> (i32, i32) {
    %c0_i32 = arith.constant 0 : i32
    %c0_i32_0 = arith.constant 0 : i32
    %c0_i32_1 = arith.constant 0 : i32
    return %c0_i32, %c0_i32_0 : i32, i32
  }
  func.func @transform_11(%arg0: i32, %arg1: i32) -> (i32, i32) {
    %c0_i32 = arith.constant 0 : i32
    %c0_i32_0 = arith.constant 0 : i32
    %c0_i32_1 = arith.constant 0 : i32
    return %c0_i32, %c0_i32_0 : i32, i32
  }
  func.func @transform_12(%arg0: i32, %arg1: i32) -> (i32, i32) {
    %c0_i32 = arith.constant 0 : i32
    %c0_i32_0 = arith.constant 0 : i32
    %c0_i32_1 = arith.constant 0 : i32
    return %c0_i32, %c0_i32_0 : i32, i32
  }
  func.func @transform_13(%arg0: i32, %arg1: i32) -> (i32, i32) {
    %c0_i32 = arith.constant 0 : i32
    %c0_i32_0 = arith.constant 0 : i32
    %c0_i32_1 = arith.constant 0 : i32
    return %c0_i32, %c0_i32_0 : i32, i32
  }
  func.func @transform_14(%arg0: i32, %arg1: i32) -> (i32, i32) {
    %c0_i32 = arith.constant 0 : i32
    %c0_i32_0 = arith.constant 0 : i32
    %c0_i32_1 = arith.constant 0 : i32
    return %c0_i32, %c0_i32_0 : i32, i32
  }
  func.func @transform_15(%arg0: i32, %arg1: i32) -> (i32, i32, i32) {
    %c0_i32 = arith.constant 0 : i32
    %c0_i32_0 = arith.constant 0 : i32
    %c0_i32_1 = arith.constant 0 : i32
    return %arg1, %c0_i32, %c0_i32_0 : i32, i32, i32
  }
  func.func @transform_16(%arg0: i32, %arg1: i32) -> (i32, i32) {
    %c0_i32 = arith.constant 0 : i32
    %c0_i32_0 = arith.constant 0 : i32
    %c0_i32_1 = arith.constant 0 : i32
    return %c0_i32, %c0_i32_0 : i32, i32
  }
  func.func @transform_17(%arg0: i32, %arg1: i32) -> (i32, i32) {
    %c0_i32 = arith.constant 0 : i32
    %c0_i32_0 = arith.constant 0 : i32
    %c0_i32_1 = arith.constant 0 : i32
    return %c0_i32, %c0_i32_0 : i32, i32
  }
  func.func @transform_18(%arg0: i32, %arg1: i32) -> (i32, i32, i32, i32) {
    %c0_i32 = arith.constant 0 : i32
    %c0_i32_0 = arith.constant 0 : i32
    %c0_i32_1 = arith.constant 0 : i32
    return %arg0, %arg1, %c0_i32, %c0_i32_0 : i32, i32, i32, i32
  }
}

module attributes {stable_mosaic.version = 11 : i64} {
  func.func @_patch_merge_kernel(%arg0: i32, %arg1: memref<8x128xbf16, #tpu.memory_space<vmem>>, %arg2: memref<1x128xf32, #tpu.memory_space<vmem>>, %arg3: memref<1x128xf32, #tpu.memory_space<vmem>>, %arg4: memref<128x64xbf16, #tpu.memory_space<vmem>>, %arg5: memref<8x64xbf16, #tpu.memory_space<vmem>>) attributes {dimension_semantics = [#tpu.dimension_semantics<parallel>], iteration_bounds = array<i64: 1>, scalar_prefetch = 0 : i64, scratch_operands = 0 : i64, tpu.core_type = #tpu.core_type<tc>, window_params = [{transform_indices = @transform_0, window_bounds = array<i64: 8, 128>}, {pipeline_mode = #tpu.pipeline_mode<synchronous>, transform_indices = @transform_1, window_bounds = array<i64: 1, 128>}, {pipeline_mode = #tpu.pipeline_mode<synchronous>, transform_indices = @transform_2, window_bounds = array<i64: 1, 128>}, {pipeline_mode = #tpu.pipeline_mode<synchronous>, transform_indices = @transform_3, window_bounds = array<i64: 128, 64>}, {transform_indices = @transform_4, window_bounds = array<i64: 8, 64>}]} {
    %c0 = arith.constant 0 : index
    %c0_0 = arith.constant 0 : index
    %0 = vector.load %arg1[%c0, %c0_0] : memref<8x128xbf16, #tpu.memory_space<vmem>>, vector<8x128xbf16>
    %1 = arith.extf %0 : vector<8x128xbf16> to vector<8x128xf32>
    %c0_1 = arith.constant 0 : index
    %c0_2 = arith.constant 0 : index
    %2 = vector.load %arg2[%c0_1, %c0_2] : memref<1x128xf32, #tpu.memory_space<vmem>>, vector<1x128xf32>
    %c0_3 = arith.constant 0 : index
    %c0_4 = arith.constant 0 : index
    %3 = vector.load %arg3[%c0_3, %c0_4] : memref<1x128xf32, #tpu.memory_space<vmem>>, vector<1x128xf32>
    %cst = arith.constant dense<0.000000e+00> : vector<8xf32>
    %4 = vector.multi_reduction <add>, %1, %cst [1] : vector<8x128xf32> to vector<8xf32>
    %5 = vector.shape_cast %4 : vector<8xf32> to vector<8x1xf32>
    %cst_5 = arith.constant 1.280000e+02 : f32
    %6 = vector.broadcast %cst_5 : f32 to vector<8x1xf32>
    %7 = arith.divf %5, %6 : vector<8x1xf32>
    %8 = vector.broadcast %7 : vector<8x1xf32> to vector<8x128xf32>
    %9 = arith.subf %1, %8 : vector<8x128xf32>
    %10 = arith.mulf %9, %9 : vector<8x128xf32>
    %cst_6 = arith.constant dense<0.000000e+00> : vector<8xf32>
    %11 = vector.multi_reduction <add>, %10, %cst_6 [1] : vector<8x128xf32> to vector<8xf32>
    %12 = vector.shape_cast %11 : vector<8xf32> to vector<8x1xf32>
    %cst_7 = arith.constant 1.280000e+02 : f32
    %13 = vector.broadcast %cst_7 : f32 to vector<8x1xf32>
    %14 = arith.divf %12, %13 : vector<8x1xf32>
    %15 = vector.broadcast %7 : vector<8x1xf32> to vector<8x128xf32>
    %16 = arith.subf %1, %15 : vector<8x128xf32>
    %cst_8 = arith.constant 9.99999974E-6 : f32
    %17 = vector.broadcast %cst_8 : f32 to vector<8x1xf32>
    %18 = arith.addf %14, %17 : vector<8x1xf32>
    %19 = math.rsqrt %18 : vector<8x1xf32>
    %20 = vector.broadcast %19 : vector<8x1xf32> to vector<8x128xf32>
    %21 = arith.mulf %16, %20 : vector<8x128xf32>
    %22 = vector.broadcast %2 : vector<1x128xf32> to vector<8x128xf32>
    %23 = arith.mulf %21, %22 : vector<8x128xf32>
    %24 = vector.broadcast %3 : vector<1x128xf32> to vector<8x128xf32>
    %25 = arith.addf %23, %24 : vector<8x128xf32>
    %26 = arith.truncf %25 : vector<8x128xf32> to vector<8x128xbf16>
    %c0_9 = arith.constant 0 : index
    %c0_10 = arith.constant 0 : index
    %27 = vector.load %arg4[%c0_9, %c0_10] : memref<128x64xbf16, #tpu.memory_space<vmem>>, vector<128x64xbf16>
    %cst_11 = arith.constant dense<0.000000e+00> : vector<8x64xf32>
    %28 = tpu.matmul %26, %27, %cst_11 {dimension_numbers = #tpu.dot_dimension_numbers<[1], [0], [0], [1], [0, 0, 1, 1], [], []>} : vector<8x128xbf16>, vector<128x64xbf16>, vector<8x64xf32> -> vector<8x64xf32>
    %29 = arith.truncf %28 : vector<8x64xf32> to vector<8x64xbf16>
    %c0_12 = arith.constant 0 : index
    %c0_13 = arith.constant 0 : index
    %30 = vector.load %arg5[%c0_12, %c0_13] : memref<8x64xbf16, #tpu.memory_space<vmem>>, vector<8x64xbf16>
    tpu.vector_store %arg5[%c0_12, %c0_13], %29 {strides = array<i32>} : memref<8x64xbf16, #tpu.memory_space<vmem>>, vector<8x64xbf16>,
    return
  }
  func.func @transform_0(%arg0: i32) -> (i32, i32) {
    %c0_i32 = arith.constant 0 : i32
    %c0_i32_0 = arith.constant 0 : i32
    return %arg0, %c0_i32 : i32, i32
  }
  func.func @transform_1(%arg0: i32) -> (i32, i32) {
    %c0_i32 = arith.constant 0 : i32
    %c0_i32_0 = arith.constant 0 : i32
    %c0_i32_1 = arith.constant 0 : i32
    return %c0_i32, %c0_i32_0 : i32, i32
  }
  func.func @transform_2(%arg0: i32) -> (i32, i32) {
    %c0_i32 = arith.constant 0 : i32
    %c0_i32_0 = arith.constant 0 : i32
    %c0_i32_1 = arith.constant 0 : i32
    return %c0_i32, %c0_i32_0 : i32, i32
  }
  func.func @transform_3(%arg0: i32) -> (i32, i32) {
    %c0_i32 = arith.constant 0 : i32
    %c0_i32_0 = arith.constant 0 : i32
    %c0_i32_1 = arith.constant 0 : i32
    return %c0_i32, %c0_i32_0 : i32, i32
  }
  func.func @transform_4(%arg0: i32) -> (i32, i32) {
    %c0_i32 = arith.constant 0 : i32
    %c0_i32_0 = arith.constant 0 : i32
    return %arg0, %c0_i32 : i32, i32
  }
}

module attributes {stable_mosaic.version = 11 : i64} {
  func.func @_swin_block_kernel(%arg0: i32, %arg1: i32, %arg2: memref<1x1x4x64xbf16, #tpu.memory_space<vmem>>, %arg3: memref<64x192xbf16, #tpu.memory_space<vmem>>, %arg4: memref<1x192xf32, #tpu.memory_space<vmem>>, %arg5: memref<64x64xbf16, #tpu.memory_space<vmem>>, %arg6: memref<1x64xf32, #tpu.memory_space<vmem>>, %arg7: memref<1x4xf32, #tpu.memory_space<vmem>>, %arg8: memref<4x4x4xf32, #tpu.memory_space<vmem>>, %arg9: memref<1x64xf32, #tpu.memory_space<vmem>>, %arg10: memref<1x64xf32, #tpu.memory_space<vmem>>, %arg11: memref<64x256xbf16, #tpu.memory_space<vmem>>, %arg12: memref<1x256xf32, #tpu.memory_space<vmem>>, %arg13: memref<256x64xbf16, #tpu.memory_space<vmem>>, %arg14: memref<1x64xf32, #tpu.memory_space<vmem>>, %arg15: memref<1x64xf32, #tpu.memory_space<vmem>>, %arg16: memref<1x64xf32, #tpu.memory_space<vmem>>, %arg17: memref<1x1x4x64xbf16, #tpu.memory_space<vmem>>) attributes {dimension_semantics = [#tpu.dimension_semantics<parallel>, #tpu.dimension_semantics<parallel>], iteration_bounds = array<i64: 2, 1>, scalar_prefetch = 0 : i64, scratch_operands = 0 : i64, tpu.core_type = #tpu.core_type<tc>, window_params = [{transform_indices = @transform_0, window_bounds = array<i64: 1, 1, 4, 64>}, {pipeline_mode = #tpu.pipeline_mode<synchronous>, transform_indices = @transform_1, window_bounds = array<i64: 64, 192>}, {pipeline_mode = #tpu.pipeline_mode<synchronous>, transform_indices = @transform_2, window_bounds = array<i64: 1, 192>}, {pipeline_mode = #tpu.pipeline_mode<synchronous>, transform_indices = @transform_3, window_bounds = array<i64: 64, 64>}, {pipeline_mode = #tpu.pipeline_mode<synchronous>, transform_indices = @transform_4, window_bounds = array<i64: 1, 64>}, {pipeline_mode = #tpu.pipeline_mode<synchronous>, transform_indices = @transform_5, window_bounds = array<i64: 1, 4>}, {pipeline_mode = #tpu.pipeline_mode<synchronous>, transform_indices = @transform_6, window_bounds = array<i64: 4, 4, 4>}, {pipeline_mode = #tpu.pipeline_mode<synchronous>, transform_indices = @transform_7, window_bounds = array<i64: 1, 64>}, {pipeline_mode = #tpu.pipeline_mode<synchronous>, transform_indices = @transform_8, window_bounds = array<i64: 1, 64>}, {pipeline_mode = #tpu.pipeline_mode<synchronous>, transform_indices = @transform_9, window_bounds = array<i64: 64, 256>}, {pipeline_mode = #tpu.pipeline_mode<synchronous>, transform_indices = @transform_10, window_bounds = array<i64: 1, 256>}, {pipeline_mode = #tpu.pipeline_mode<synchronous>, transform_indices = @transform_11, window_bounds = array<i64: 256, 64>}, {pipeline_mode = #tpu.pipeline_mode<synchronous>, transform_indices = @transform_12, window_bounds = array<i64: 1, 64>}, {pipeline_mode = #tpu.pipeline_mode<synchronous>, transform_indices = @transform_13, window_bounds = array<i64: 1, 64>}, {pipeline_mode = #tpu.pipeline_mode<synchronous>, transform_indices = @transform_14, window_bounds = array<i64: 1, 64>}, {transform_indices = @transform_15, window_bounds = array<i64: 1, 1, 4, 64>}]} {
    %c0 = arith.constant 0 : index
    %c0_0 = arith.constant 0 : index
    %c0_1 = arith.constant 0 : index
    %c0_2 = arith.constant 0 : index
    %0 = vector.load %arg2[%c0, %c0_0, %c0_1, %c0_2] : memref<1x1x4x64xbf16, #tpu.memory_space<vmem>>, vector<1x1x4x64xbf16>
    %1 = vector.shape_cast %0 : vector<1x1x4x64xbf16> to vector<1x4x64xbf16>
    %2 = arith.extf %1 : vector<1x4x64xbf16> to vector<1x4x64xf32>
    %3 = vector.shape_cast %2 : vector<1x4x64xf32> to vector<4x64xf32>
    %4 = arith.truncf %3 : vector<4x64xf32> to vector<4x64xbf16>
    %c0_3 = arith.constant 0 : index
    %c0_4 = arith.constant 0 : index
    %5 = vector.load %arg3[%c0_3, %c0_4] : memref<64x192xbf16, #tpu.memory_space<vmem>>, vector<64x192xbf16>
    %cst = arith.constant dense<0.000000e+00> : vector<4x192xf32>
    %6 = tpu.matmul %4, %5, %cst {dimension_numbers = #tpu.dot_dimension_numbers<[1], [0], [0], [1], [0, 0, 1, 1], [], []>} : vector<4x64xbf16>, vector<64x192xbf16>, vector<4x192xf32> -> vector<4x192xf32>
    %c0_5 = arith.constant 0 : index
    %c0_6 = arith.constant 0 : index
    %7 = vector.load %arg4[%c0_5, %c0_6] : memref<1x192xf32, #tpu.memory_space<vmem>>, vector<1x192xf32>
    %8 = vector.broadcast %7 : vector<1x192xf32> to vector<4x192xf32>
    %9 = arith.addf %6, %8 : vector<4x192xf32>
    %c0_7 = arith.constant 0 : index
    %c0_8 = arith.constant 0 : index
    %10 = vector.load %arg7[%c0_7, %c0_8] : memref<1x4xf32, #tpu.memory_space<vmem>>, vector<1x4xf32>
    %c0_9 = arith.constant 0 : index
    %c0_10 = arith.constant 0 : index
    %c0_11 = arith.constant 0 : index
    %11 = vector.load %arg8[%c0_9, %c0_10, %c0_11] : memref<4x4x4xf32, #tpu.memory_space<vmem>>, vector<4x4x4xf32>
    %c0_12 = arith.constant 0 : index
    %c0_13 = arith.constant 0 : index
    %12 = vector.load %arg5[%c0_12, %c0_13] : memref<64x64xbf16, #tpu.memory_space<vmem>>, vector<64x64xbf16>
    %13 = vector.extract_strided_slice %9 {offsets = [0, 0], sizes = [4, 16], strides = [1, 1]} : vector<4x192xf32> to vector<4x16xf32>
    %14 = vector.shape_cast %13 : vector<4x16xf32> to vector<1x4x16xf32>
    %15 = vector.extract_strided_slice %9 {offsets = [0, 64], sizes = [4, 16], strides = [1, 1]} : vector<4x192xf32> to vector<4x16xf32>
    %16 = vector.shape_cast %15 : vector<4x16xf32> to vector<1x4x16xf32>
    %17 = vector.extract_strided_slice %9 {offsets = [0, 128], sizes = [4, 16], strides = [1, 1]} : vector<4x192xf32> to vector<4x16xf32>
    %18 = vector.shape_cast %17 : vector<4x16xf32> to vector<1x4x16xf32>
    %19 = arith.mulf %14, %14 : vector<1x4x16xf32>
    %cst_14 = arith.constant dense<0.000000e+00> : vector<1x4xf32>
    %20 = vector.multi_reduction <add>, %19, %cst_14 [2] : vector<1x4x16xf32> to vector<1x4xf32>
    %21 = vector.shape_cast %20 : vector<1x4xf32> to vector<1x4x1xf32>
    %cst_15 = arith.constant 1.000000e-24 : f32
    %22 = vector.broadcast %cst_15 : f32 to vector<1x4x1xf32>
    %23 = arith.addf %21, %22 : vector<1x4x1xf32>
    %24 = math.rsqrt %23 : vector<1x4x1xf32>
    %25 = vector.extract_strided_slice %10 {offsets = [0, 0], sizes = [1, 1], strides = [1, 1]} : vector<1x4xf32> to vector<1x1xf32>
    %26 = vector.extract %25[0, 0] : f32 from vector<1x1xf32>
    %27 = vector.broadcast %26 : f32 to vector<1x4x1xf32>
    %28 = arith.mulf %24, %27 : vector<1x4x1xf32>
    %29 = vector.broadcast %28 : vector<1x4x1xf32> to vector<1x4x16xf32>
    %30 = arith.mulf %14, %29 : vector<1x4x16xf32>
    %31 = arith.mulf %16, %16 : vector<1x4x16xf32>
    %cst_16 = arith.constant dense<0.000000e+00> : vector<1x4xf32>
    %32 = vector.multi_reduction <add>, %31, %cst_16 [2] : vector<1x4x16xf32> to vector<1x4xf32>
    %33 = vector.shape_cast %32 : vector<1x4xf32> to vector<1x4x1xf32>
    %cst_17 = arith.constant 1.000000e-24 : f32
    %34 = vector.broadcast %cst_17 : f32 to vector<1x4x1xf32>
    %35 = arith.addf %33, %34 : vector<1x4x1xf32>
    %36 = math.rsqrt %35 : vector<1x4x1xf32>
    %37 = vector.broadcast %36 : vector<1x4x1xf32> to vector<1x4x16xf32>
    %38 = arith.mulf %16, %37 : vector<1x4x16xf32>
    %39 = arith.truncf %30 : vector<1x4x16xf32> to vector<1x4x16xbf16>
    %40 = arith.truncf %38 : vector<1x4x16xf32> to vector<1x4x16xbf16>
    "tpu.trace_start"() <{level = 10 : i32, message = "wld,wmd->wlm"}> : () -> ()
    %cst_18 = arith.constant dense<0.000000e+00> : vector<1x4x4xf32>
    %41 = tpu.matmul %39, %40, %cst_18 {dimension_numbers = #tpu.dot_dimension_numbers<[2], [2], [1], [1], [0, 0, 0, 1, 1, 1], [0], [0]>} : vector<1x4x16xbf16>, vector<1x4x16xbf16>, vector<1x4x4xf32> -> vector<1x4x4xf32>
    "tpu.trace_stop"() : () -> ()
    %42 = vector.extract_strided_slice %11 {offsets = [0, 0, 0], sizes = [1, 4, 4], strides = [1, 1, 1]} : vector<4x4x4xf32> to vector<1x4x4xf32>
    %43 = vector.shape_cast %42 : vector<1x4x4xf32> to vector<4x4xf32>
    %44 = vector.shape_cast %43 : vector<4x4xf32> to vector<1x4x4xf32>
    %45 = arith.addf %41, %44 : vector<1x4x4xf32>
    %cst_19 = arith.constant dense<0xFF800000> : vector<1x4xf32>
    %46 = vector.multi_reduction <maximumf>, %45, %cst_19 [2] : vector<1x4x4xf32> to vector<1x4xf32>
    %47 = vector.shape_cast %46 : vector<1x4xf32> to vector<1x4x1xf32>
    %48 = vector.broadcast %47 : vector<1x4x1xf32> to vector<1x4x4xf32>
    %49 = arith.subf %45, %48 : vector<1x4x4xf32>
    %50 = math.exp %49 : vector<1x4x4xf32>
    %cst_20 = arith.constant dense<0.000000e+00> : vector<1x4xf32>
    %51 = vector.multi_reduction <add>, %50, %cst_20 [2] : vector<1x4x4xf32> to vector<1x4xf32>
    %52 = vector.shape_cast %51 : vector<1x4xf32> to vector<1x4x1xf32>
    %53 = tpu.reciprocal %52 {approx = true} : vector<1x4x1xf32> -> vector<1x4x1xf32>
    %54 = vector.broadcast %53 : vector<1x4x1xf32> to vector<1x4x4xf32>
    %55 = arith.mulf %50, %54 : vector<1x4x4xf32>
    %56 = arith.truncf %55 : vector<1x4x4xf32> to vector<1x4x4xbf16>
    %57 = arith.truncf %18 : vector<1x4x16xf32> to vector<1x4x16xbf16>
    "tpu.trace_start"() <{level = 10 : i32, message = "wlm,wmd->wld"}> : () -> ()
    %cst_21 = arith.constant dense<0.000000e+00> : vector<1x4x16xf32>
    %58 = tpu.matmul %56, %57, %cst_21 {dimension_numbers = #tpu.dot_dimension_numbers<[2], [1], [1], [2], [0, 0, 0, 1, 1, 2], [0], [0]>} : vector<1x4x4xbf16>, vector<1x4x16xbf16>, vector<1x4x16xf32> -> vector<1x4x16xf32>
    "tpu.trace_stop"() : () -> ()
    %59 = vector.shape_cast %58 : vector<1x4x16xf32> to vector<4x16xf32>
    %60 = arith.truncf %59 : vector<4x16xf32> to vector<4x16xbf16>
    %61 = vector.extract_strided_slice %12 {offsets = [0, 0], sizes = [16, 64], strides = [1, 1]} : vector<64x64xbf16> to vector<16x64xbf16>
    %cst_22 = arith.constant dense<0.000000e+00> : vector<4x64xf32>
    %62 = tpu.matmul %60, %61, %cst_22 {dimension_numbers = #tpu.dot_dimension_numbers<[1], [0], [0], [1], [0, 0, 1, 1], [], []>} : vector<4x16xbf16>, vector<16x64xbf16>, vector<4x64xf32> -> vector<4x64xf32>
    %63 = vector.extract_strided_slice %9 {offsets = [0, 16], sizes = [4, 16], strides = [1, 1]} : vector<4x192xf32> to vector<4x16xf32>
    %64 = vector.shape_cast %63 : vector<4x16xf32> to vector<1x4x16xf32>
    %65 = vector.extract_strided_slice %9 {offsets = [0, 80], sizes = [4, 16], strides = [1, 1]} : vector<4x192xf32> to vector<4x16xf32>
    %66 = vector.shape_cast %65 : vector<4x16xf32> to vector<1x4x16xf32>
    %67 = vector.extract_strided_slice %9 {offsets = [0, 144], sizes = [4, 16], strides = [1, 1]} : vector<4x192xf32> to vector<4x16xf32>
    %68 = vector.shape_cast %67 : vector<4x16xf32> to vector<1x4x16xf32>
    %69 = arith.mulf %64, %64 : vector<1x4x16xf32>
    %cst_23 = arith.constant dense<0.000000e+00> : vector<1x4xf32>
    %70 = vector.multi_reduction <add>, %69, %cst_23 [2] : vector<1x4x16xf32> to vector<1x4xf32>
    %71 = vector.shape_cast %70 : vector<1x4xf32> to vector<1x4x1xf32>
    %cst_24 = arith.constant 1.000000e-24 : f32
    %72 = vector.broadcast %cst_24 : f32 to vector<1x4x1xf32>
    %73 = arith.addf %71, %72 : vector<1x4x1xf32>
    %74 = math.rsqrt %73 : vector<1x4x1xf32>
    %75 = vector.extract_strided_slice %10 {offsets = [0, 1], sizes = [1, 1], strides = [1, 1]} : vector<1x4xf32> to vector<1x1xf32>
    %76 = vector.extract %75[0, 0] : f32 from vector<1x1xf32>
    %77 = vector.broadcast %76 : f32 to vector<1x4x1xf32>
    %78 = arith.mulf %74, %77 : vector<1x4x1xf32>
    %79 = vector.broadcast %78 : vector<1x4x1xf32> to vector<1x4x16xf32>
    %80 = arith.mulf %64, %79 : vector<1x4x16xf32>
    %81 = arith.mulf %66, %66 : vector<1x4x16xf32>
    %cst_25 = arith.constant dense<0.000000e+00> : vector<1x4xf32>
    %82 = vector.multi_reduction <add>, %81, %cst_25 [2] : vector<1x4x16xf32> to vector<1x4xf32>
    %83 = vector.shape_cast %82 : vector<1x4xf32> to vector<1x4x1xf32>
    %cst_26 = arith.constant 1.000000e-24 : f32
    %84 = vector.broadcast %cst_26 : f32 to vector<1x4x1xf32>
    %85 = arith.addf %83, %84 : vector<1x4x1xf32>
    %86 = math.rsqrt %85 : vector<1x4x1xf32>
    %87 = vector.broadcast %86 : vector<1x4x1xf32> to vector<1x4x16xf32>
    %88 = arith.mulf %66, %87 : vector<1x4x16xf32>
    %89 = arith.truncf %80 : vector<1x4x16xf32> to vector<1x4x16xbf16>
    %90 = arith.truncf %88 : vector<1x4x16xf32> to vector<1x4x16xbf16>
    "tpu.trace_start"() <{level = 10 : i32, message = "wld,wmd->wlm"}> : () -> ()
    %cst_27 = arith.constant dense<0.000000e+00> : vector<1x4x4xf32>
    %91 = tpu.matmul %89, %90, %cst_27 {dimension_numbers = #tpu.dot_dimension_numbers<[2], [2], [1], [1], [0, 0, 0, 1, 1, 1], [0], [0]>} : vector<1x4x16xbf16>, vector<1x4x16xbf16>, vector<1x4x4xf32> -> vector<1x4x4xf32>
    "tpu.trace_stop"() : () -> ()
    %92 = vector.extract_strided_slice %11 {offsets = [1, 0, 0], sizes = [1, 4, 4], strides = [1, 1, 1]} : vector<4x4x4xf32> to vector<1x4x4xf32>
    %93 = vector.shape_cast %92 : vector<1x4x4xf32> to vector<4x4xf32>
    %94 = vector.shape_cast %93 : vector<4x4xf32> to vector<1x4x4xf32>
    %95 = arith.addf %91, %94 : vector<1x4x4xf32>
    %cst_28 = arith.constant dense<0xFF800000> : vector<1x4xf32>
    %96 = vector.multi_reduction <maximumf>, %95, %cst_28 [2] : vector<1x4x4xf32> to vector<1x4xf32>
    %97 = vector.shape_cast %96 : vector<1x4xf32> to vector<1x4x1xf32>
    %98 = vector.broadcast %97 : vector<1x4x1xf32> to vector<1x4x4xf32>
    %99 = arith.subf %95, %98 : vector<1x4x4xf32>
    %100 = math.exp %99 : vector<1x4x4xf32>
    %cst_29 = arith.constant dense<0.000000e+00> : vector<1x4xf32>
    %101 = vector.multi_reduction <add>, %100, %cst_29 [2] : vector<1x4x4xf32> to vector<1x4xf32>
    %102 = vector.shape_cast %101 : vector<1x4xf32> to vector<1x4x1xf32>
    %103 = tpu.reciprocal %102 {approx = true} : vector<1x4x1xf32> -> vector<1x4x1xf32>
    %104 = vector.broadcast %103 : vector<1x4x1xf32> to vector<1x4x4xf32>
    %105 = arith.mulf %100, %104 : vector<1x4x4xf32>
    %106 = arith.truncf %105 : vector<1x4x4xf32> to vector<1x4x4xbf16>
    %107 = arith.truncf %68 : vector<1x4x16xf32> to vector<1x4x16xbf16>
    "tpu.trace_start"() <{level = 10 : i32, message = "wlm,wmd->wld"}> : () -> ()
    %cst_30 = arith.constant dense<0.000000e+00> : vector<1x4x16xf32>
    %108 = tpu.matmul %106, %107, %cst_30 {dimension_numbers = #tpu.dot_dimension_numbers<[2], [1], [1], [2], [0, 0, 0, 1, 1, 2], [0], [0]>} : vector<1x4x4xbf16>, vector<1x4x16xbf16>, vector<1x4x16xf32> -> vector<1x4x16xf32>
    "tpu.trace_stop"() : () -> ()
    %109 = vector.shape_cast %108 : vector<1x4x16xf32> to vector<4x16xf32>
    %110 = arith.truncf %109 : vector<4x16xf32> to vector<4x16xbf16>
    %111 = vector.extract_strided_slice %12 {offsets = [16, 0], sizes = [16, 64], strides = [1, 1]} : vector<64x64xbf16> to vector<16x64xbf16>
    %cst_31 = arith.constant dense<0.000000e+00> : vector<4x64xf32>
    %112 = tpu.matmul %110, %111, %cst_31 {dimension_numbers = #tpu.dot_dimension_numbers<[1], [0], [0], [1], [0, 0, 1, 1], [], []>} : vector<4x16xbf16>, vector<16x64xbf16>, vector<4x64xf32> -> vector<4x64xf32>
    %113 = arith.addf %62, %112 : vector<4x64xf32>
    %114 = vector.extract_strided_slice %9 {offsets = [0, 32], sizes = [4, 16], strides = [1, 1]} : vector<4x192xf32> to vector<4x16xf32>
    %115 = vector.shape_cast %114 : vector<4x16xf32> to vector<1x4x16xf32>
    %116 = vector.extract_strided_slice %9 {offsets = [0, 96], sizes = [4, 16], strides = [1, 1]} : vector<4x192xf32> to vector<4x16xf32>
    %117 = vector.shape_cast %116 : vector<4x16xf32> to vector<1x4x16xf32>
    %118 = vector.extract_strided_slice %9 {offsets = [0, 160], sizes = [4, 16], strides = [1, 1]} : vector<4x192xf32> to vector<4x16xf32>
    %119 = vector.shape_cast %118 : vector<4x16xf32> to vector<1x4x16xf32>
    %120 = arith.mulf %115, %115 : vector<1x4x16xf32>
    %cst_32 = arith.constant dense<0.000000e+00> : vector<1x4xf32>
    %121 = vector.multi_reduction <add>, %120, %cst_32 [2] : vector<1x4x16xf32> to vector<1x4xf32>
    %122 = vector.shape_cast %121 : vector<1x4xf32> to vector<1x4x1xf32>
    %cst_33 = arith.constant 1.000000e-24 : f32
    %123 = vector.broadcast %cst_33 : f32 to vector<1x4x1xf32>
    %124 = arith.addf %122, %123 : vector<1x4x1xf32>
    %125 = math.rsqrt %124 : vector<1x4x1xf32>
    %126 = vector.extract_strided_slice %10 {offsets = [0, 2], sizes = [1, 1], strides = [1, 1]} : vector<1x4xf32> to vector<1x1xf32>
    %127 = vector.extract %126[0, 0] : f32 from vector<1x1xf32>
    %128 = vector.broadcast %127 : f32 to vector<1x4x1xf32>
    %129 = arith.mulf %125, %128 : vector<1x4x1xf32>
    %130 = vector.broadcast %129 : vector<1x4x1xf32> to vector<1x4x16xf32>
    %131 = arith.mulf %115, %130 : vector<1x4x16xf32>
    %132 = arith.mulf %117, %117 : vector<1x4x16xf32>
    %cst_34 = arith.constant dense<0.000000e+00> : vector<1x4xf32>
    %133 = vector.multi_reduction <add>, %132, %cst_34 [2] : vector<1x4x16xf32> to vector<1x4xf32>
    %134 = vector.shape_cast %133 : vector<1x4xf32> to vector<1x4x1xf32>
    %cst_35 = arith.constant 1.000000e-24 : f32
    %135 = vector.broadcast %cst_35 : f32 to vector<1x4x1xf32>
    %136 = arith.addf %134, %135 : vector<1x4x1xf32>
    %137 = math.rsqrt %136 : vector<1x4x1xf32>
    %138 = vector.broadcast %137 : vector<1x4x1xf32> to vector<1x4x16xf32>
    %139 = arith.mulf %117, %138 : vector<1x4x16xf32>
    %140 = arith.truncf %131 : vector<1x4x16xf32> to vector<1x4x16xbf16>
    %141 = arith.truncf %139 : vector<1x4x16xf32> to vector<1x4x16xbf16>
    "tpu.trace_start"() <{level = 10 : i32, message = "wld,wmd->wlm"}> : () -> ()
    %cst_36 = arith.constant dense<0.000000e+00> : vector<1x4x4xf32>
    %142 = tpu.matmul %140, %141, %cst_36 {dimension_numbers = #tpu.dot_dimension_numbers<[2], [2], [1], [1], [0, 0, 0, 1, 1, 1], [0], [0]>} : vector<1x4x16xbf16>, vector<1x4x16xbf16>, vector<1x4x4xf32> -> vector<1x4x4xf32>
    "tpu.trace_stop"() : () -> ()
    %143 = vector.extract_strided_slice %11 {offsets = [2, 0, 0], sizes = [1, 4, 4], strides = [1, 1, 1]} : vector<4x4x4xf32> to vector<1x4x4xf32>
    %144 = vector.shape_cast %143 : vector<1x4x4xf32> to vector<4x4xf32>
    %145 = vector.shape_cast %144 : vector<4x4xf32> to vector<1x4x4xf32>
    %146 = arith.addf %142, %145 : vector<1x4x4xf32>
    %cst_37 = arith.constant dense<0xFF800000> : vector<1x4xf32>
    %147 = vector.multi_reduction <maximumf>, %146, %cst_37 [2] : vector<1x4x4xf32> to vector<1x4xf32>
    %148 = vector.shape_cast %147 : vector<1x4xf32> to vector<1x4x1xf32>
    %149 = vector.broadcast %148 : vector<1x4x1xf32> to vector<1x4x4xf32>
    %150 = arith.subf %146, %149 : vector<1x4x4xf32>
    %151 = math.exp %150 : vector<1x4x4xf32>
    %cst_38 = arith.constant dense<0.000000e+00> : vector<1x4xf32>
    %152 = vector.multi_reduction <add>, %151, %cst_38 [2] : vector<1x4x4xf32> to vector<1x4xf32>
    %153 = vector.shape_cast %152 : vector<1x4xf32> to vector<1x4x1xf32>
    %154 = tpu.reciprocal %153 {approx = true} : vector<1x4x1xf32> -> vector<1x4x1xf32>
    %155 = vector.broadcast %154 : vector<1x4x1xf32> to vector<1x4x4xf32>
    %156 = arith.mulf %151, %155 : vector<1x4x4xf32>
    %157 = arith.truncf %156 : vector<1x4x4xf32> to vector<1x4x4xbf16>
    %158 = arith.truncf %119 : vector<1x4x16xf32> to vector<1x4x16xbf16>
    "tpu.trace_start"() <{level = 10 : i32, message = "wlm,wmd->wld"}> : () -> ()
    %cst_39 = arith.constant dense<0.000000e+00> : vector<1x4x16xf32>
    %159 = tpu.matmul %157, %158, %cst_39 {dimension_numbers = #tpu.dot_dimension_numbers<[2], [1], [1], [2], [0, 0, 0, 1, 1, 2], [0], [0]>} : vector<1x4x4xbf16>, vector<1x4x16xbf16>, vector<1x4x16xf32> -> vector<1x4x16xf32>
    "tpu.trace_stop"() : () -> ()
    %160 = vector.shape_cast %159 : vector<1x4x16xf32> to vector<4x16xf32>
    %161 = arith.truncf %160 : vector<4x16xf32> to vector<4x16xbf16>
    %162 = vector.extract_strided_slice %12 {offsets = [32, 0], sizes = [16, 64], strides = [1, 1]} : vector<64x64xbf16> to vector<16x64xbf16>
    %cst_40 = arith.constant dense<0.000000e+00> : vector<4x64xf32>
    %163 = tpu.matmul %161, %162, %cst_40 {dimension_numbers = #tpu.dot_dimension_numbers<[1], [0], [0], [1], [0, 0, 1, 1], [], []>} : vector<4x16xbf16>, vector<16x64xbf16>, vector<4x64xf32> -> vector<4x64xf32>
    %164 = arith.addf %113, %163 : vector<4x64xf32>
    %165 = vector.extract_strided_slice %9 {offsets = [0, 48], sizes = [4, 16], strides = [1, 1]} : vector<4x192xf32> to vector<4x16xf32>
    %166 = vector.shape_cast %165 : vector<4x16xf32> to vector<1x4x16xf32>
    %167 = vector.extract_strided_slice %9 {offsets = [0, 112], sizes = [4, 16], strides = [1, 1]} : vector<4x192xf32> to vector<4x16xf32>
    %168 = vector.shape_cast %167 : vector<4x16xf32> to vector<1x4x16xf32>
    %169 = vector.extract_strided_slice %9 {offsets = [0, 176], sizes = [4, 16], strides = [1, 1]} : vector<4x192xf32> to vector<4x16xf32>
    %170 = vector.shape_cast %169 : vector<4x16xf32> to vector<1x4x16xf32>
    %171 = arith.mulf %166, %166 : vector<1x4x16xf32>
    %cst_41 = arith.constant dense<0.000000e+00> : vector<1x4xf32>
    %172 = vector.multi_reduction <add>, %171, %cst_41 [2] : vector<1x4x16xf32> to vector<1x4xf32>
    %173 = vector.shape_cast %172 : vector<1x4xf32> to vector<1x4x1xf32>
    %cst_42 = arith.constant 1.000000e-24 : f32
    %174 = vector.broadcast %cst_42 : f32 to vector<1x4x1xf32>
    %175 = arith.addf %173, %174 : vector<1x4x1xf32>
    %176 = math.rsqrt %175 : vector<1x4x1xf32>
    %177 = vector.extract_strided_slice %10 {offsets = [0, 3], sizes = [1, 1], strides = [1, 1]} : vector<1x4xf32> to vector<1x1xf32>
    %178 = vector.extract %177[0, 0] : f32 from vector<1x1xf32>
    %179 = vector.broadcast %178 : f32 to vector<1x4x1xf32>
    %180 = arith.mulf %176, %179 : vector<1x4x1xf32>
    %181 = vector.broadcast %180 : vector<1x4x1xf32> to vector<1x4x16xf32>
    %182 = arith.mulf %166, %181 : vector<1x4x16xf32>
    %183 = arith.mulf %168, %168 : vector<1x4x16xf32>
    %cst_43 = arith.constant dense<0.000000e+00> : vector<1x4xf32>
    %184 = vector.multi_reduction <add>, %183, %cst_43 [2] : vector<1x4x16xf32> to vector<1x4xf32>
    %185 = vector.shape_cast %184 : vector<1x4xf32> to vector<1x4x1xf32>
    %cst_44 = arith.constant 1.000000e-24 : f32
    %186 = vector.broadcast %cst_44 : f32 to vector<1x4x1xf32>
    %187 = arith.addf %185, %186 : vector<1x4x1xf32>
    %188 = math.rsqrt %187 : vector<1x4x1xf32>
    %189 = vector.broadcast %188 : vector<1x4x1xf32> to vector<1x4x16xf32>
    %190 = arith.mulf %168, %189 : vector<1x4x16xf32>
    %191 = arith.truncf %182 : vector<1x4x16xf32> to vector<1x4x16xbf16>
    %192 = arith.truncf %190 : vector<1x4x16xf32> to vector<1x4x16xbf16>
    "tpu.trace_start"() <{level = 10 : i32, message = "wld,wmd->wlm"}> : () -> ()
    %cst_45 = arith.constant dense<0.000000e+00> : vector<1x4x4xf32>
    %193 = tpu.matmul %191, %192, %cst_45 {dimension_numbers = #tpu.dot_dimension_numbers<[2], [2], [1], [1], [0, 0, 0, 1, 1, 1], [0], [0]>} : vector<1x4x16xbf16>, vector<1x4x16xbf16>, vector<1x4x4xf32> -> vector<1x4x4xf32>
    "tpu.trace_stop"() : () -> ()
    %194 = vector.extract_strided_slice %11 {offsets = [3, 0, 0], sizes = [1, 4, 4], strides = [1, 1, 1]} : vector<4x4x4xf32> to vector<1x4x4xf32>
    %195 = vector.shape_cast %194 : vector<1x4x4xf32> to vector<4x4xf32>
    %196 = vector.shape_cast %195 : vector<4x4xf32> to vector<1x4x4xf32>
    %197 = arith.addf %193, %196 : vector<1x4x4xf32>
    %cst_46 = arith.constant dense<0xFF800000> : vector<1x4xf32>
    %198 = vector.multi_reduction <maximumf>, %197, %cst_46 [2] : vector<1x4x4xf32> to vector<1x4xf32>
    %199 = vector.shape_cast %198 : vector<1x4xf32> to vector<1x4x1xf32>
    %200 = vector.broadcast %199 : vector<1x4x1xf32> to vector<1x4x4xf32>
    %201 = arith.subf %197, %200 : vector<1x4x4xf32>
    %202 = math.exp %201 : vector<1x4x4xf32>
    %cst_47 = arith.constant dense<0.000000e+00> : vector<1x4xf32>
    %203 = vector.multi_reduction <add>, %202, %cst_47 [2] : vector<1x4x4xf32> to vector<1x4xf32>
    %204 = vector.shape_cast %203 : vector<1x4xf32> to vector<1x4x1xf32>
    %205 = tpu.reciprocal %204 {approx = true} : vector<1x4x1xf32> -> vector<1x4x1xf32>
    %206 = vector.broadcast %205 : vector<1x4x1xf32> to vector<1x4x4xf32>
    %207 = arith.mulf %202, %206 : vector<1x4x4xf32>
    %208 = arith.truncf %207 : vector<1x4x4xf32> to vector<1x4x4xbf16>
    %209 = arith.truncf %170 : vector<1x4x16xf32> to vector<1x4x16xbf16>
    "tpu.trace_start"() <{level = 10 : i32, message = "wlm,wmd->wld"}> : () -> ()
    %cst_48 = arith.constant dense<0.000000e+00> : vector<1x4x16xf32>
    %210 = tpu.matmul %208, %209, %cst_48 {dimension_numbers = #tpu.dot_dimension_numbers<[2], [1], [1], [2], [0, 0, 0, 1, 1, 2], [0], [0]>} : vector<1x4x4xbf16>, vector<1x4x16xbf16>, vector<1x4x16xf32> -> vector<1x4x16xf32>
    "tpu.trace_stop"() : () -> ()
    %211 = vector.shape_cast %210 : vector<1x4x16xf32> to vector<4x16xf32>
    %212 = arith.truncf %211 : vector<4x16xf32> to vector<4x16xbf16>
    %213 = vector.extract_strided_slice %12 {offsets = [48, 0], sizes = [16, 64], strides = [1, 1]} : vector<64x64xbf16> to vector<16x64xbf16>
    %cst_49 = arith.constant dense<0.000000e+00> : vector<4x64xf32>
    %214 = tpu.matmul %212, %213, %cst_49 {dimension_numbers = #tpu.dot_dimension_numbers<[1], [0], [0], [1], [0, 0, 1, 1], [], []>} : vector<4x16xbf16>, vector<16x64xbf16>, vector<4x64xf32> -> vector<4x64xf32>
    %215 = arith.addf %164, %214 : vector<4x64xf32>
    %c0_50 = arith.constant 0 : index
    %c0_51 = arith.constant 0 : index
    %216 = vector.load %arg6[%c0_50, %c0_51] : memref<1x64xf32, #tpu.memory_space<vmem>>, vector<1x64xf32>
    %217 = vector.broadcast %216 : vector<1x64xf32> to vector<4x64xf32>
    %218 = arith.addf %215, %217 : vector<4x64xf32>
    %c0_52 = arith.constant 0 : index
    %c0_53 = arith.constant 0 : index
    %219 = vector.load %arg9[%c0_52, %c0_53] : memref<1x64xf32, #tpu.memory_space<vmem>>, vector<1x64xf32>
    %c0_54 = arith.constant 0 : index
    %c0_55 = arith.constant 0 : index
    %220 = vector.load %arg10[%c0_54, %c0_55] : memref<1x64xf32, #tpu.memory_space<vmem>>, vector<1x64xf32>
    %cst_56 = arith.constant dense<0.000000e+00> : vector<4xf32>
    %221 = vector.multi_reduction <add>, %218, %cst_56 [1] : vector<4x64xf32> to vector<4xf32>
    %222 = vector.shape_cast %221 : vector<4xf32> to vector<4x1xf32>
    %cst_57 = arith.constant 6.400000e+01 : f32
    %223 = vector.broadcast %cst_57 : f32 to vector<4x1xf32>
    %224 = arith.divf %222, %223 : vector<4x1xf32>
    %225 = vector.broadcast %224 : vector<4x1xf32> to vector<4x64xf32>
    %226 = arith.subf %218, %225 : vector<4x64xf32>
    %227 = arith.mulf %226, %226 : vector<4x64xf32>
    %cst_58 = arith.constant dense<0.000000e+00> : vector<4xf32>
    %228 = vector.multi_reduction <add>, %227, %cst_58 [1] : vector<4x64xf32> to vector<4xf32>
    %229 = vector.shape_cast %228 : vector<4xf32> to vector<4x1xf32>
    %cst_59 = arith.constant 6.400000e+01 : f32
    %230 = vector.broadcast %cst_59 : f32 to vector<4x1xf32>
    %231 = arith.divf %229, %230 : vector<4x1xf32>
    %232 = vector.broadcast %224 : vector<4x1xf32> to vector<4x64xf32>
    %233 = arith.subf %218, %232 : vector<4x64xf32>
    %cst_60 = arith.constant 9.99999974E-6 : f32
    %234 = vector.broadcast %cst_60 : f32 to vector<4x1xf32>
    %235 = arith.addf %231, %234 : vector<4x1xf32>
    %236 = math.rsqrt %235 : vector<4x1xf32>
    %237 = vector.broadcast %236 : vector<4x1xf32> to vector<4x64xf32>
    %238 = arith.mulf %233, %237 : vector<4x64xf32>
    %239 = vector.broadcast %219 : vector<1x64xf32> to vector<4x64xf32>
    %240 = arith.mulf %238, %239 : vector<4x64xf32>
    %241 = vector.broadcast %220 : vector<1x64xf32> to vector<4x64xf32>
    %242 = arith.addf %240, %241 : vector<4x64xf32>
    %243 = arith.addf %3, %242 : vector<4x64xf32>
    %244 = arith.truncf %243 : vector<4x64xf32> to vector<4x64xbf16>
    %c0_61 = arith.constant 0 : index
    %c0_62 = arith.constant 0 : index
    %245 = vector.load %arg11[%c0_61, %c0_62] : memref<64x256xbf16, #tpu.memory_space<vmem>>, vector<64x256xbf16>
    %cst_63 = arith.constant dense<0.000000e+00> : vector<4x256xf32>
    %246 = tpu.matmul %244, %245, %cst_63 {dimension_numbers = #tpu.dot_dimension_numbers<[1], [0], [0], [1], [0, 0, 1, 1], [], []>} : vector<4x64xbf16>, vector<64x256xbf16>, vector<4x256xf32> -> vector<4x256xf32>
    %c0_64 = arith.constant 0 : index
    %c0_65 = arith.constant 0 : index
    %247 = vector.load %arg12[%c0_64, %c0_65] : memref<1x256xf32, #tpu.memory_space<vmem>>, vector<1x256xf32>
    %248 = vector.broadcast %247 : vector<1x256xf32> to vector<4x256xf32>
    %249 = arith.addf %246, %248 : vector<4x256xf32>
    %cst_66 = arith.constant 5.000000e-01 : f32
    %250 = vector.broadcast %cst_66 : f32 to vector<4x256xf32>
    %251 = arith.mulf %250, %249 : vector<4x256xf32>
    %cst_67 = arith.constant 0.707106769 : f32
    %252 = vector.broadcast %cst_67 : f32 to vector<4x256xf32>
    %253 = arith.mulf %249, %252 : vector<4x256xf32>
    %254 = math.erf %253 : vector<4x256xf32>
    %cst_68 = arith.constant 1.000000e+00 : f32
    %255 = vector.broadcast %cst_68 : f32 to vector<4x256xf32>
    %256 = arith.addf %255, %254 : vector<4x256xf32>
    %257 = arith.mulf %251, %256 : vector<4x256xf32>
    %258 = arith.truncf %257 : vector<4x256xf32> to vector<4x256xbf16>
    %c0_69 = arith.constant 0 : index
    %c0_70 = arith.constant 0 : index
    %259 = vector.load %arg13[%c0_69, %c0_70] : memref<256x64xbf16, #tpu.memory_space<vmem>>, vector<256x64xbf16>
    %cst_71 = arith.constant dense<0.000000e+00> : vector<4x64xf32>
    %260 = tpu.matmul %258, %259, %cst_71 {dimension_numbers = #tpu.dot_dimension_numbers<[1], [0], [0], [1], [0, 0, 1, 1], [], []>} : vector<4x256xbf16>, vector<256x64xbf16>, vector<4x64xf32> -> vector<4x64xf32>
    %c0_72 = arith.constant 0 : index
    %c0_73 = arith.constant 0 : index
    %261 = vector.load %arg14[%c0_72, %c0_73] : memref<1x64xf32, #tpu.memory_space<vmem>>, vector<1x64xf32>
    %262 = vector.broadcast %261 : vector<1x64xf32> to vector<4x64xf32>
    %263 = arith.addf %260, %262 : vector<4x64xf32>
    %c0_74 = arith.constant 0 : index
    %c0_75 = arith.constant 0 : index
    %264 = vector.load %arg15[%c0_74, %c0_75] : memref<1x64xf32, #tpu.memory_space<vmem>>, vector<1x64xf32>
    %c0_76 = arith.constant 0 : index
    %c0_77 = arith.constant 0 : index
    %265 = vector.load %arg16[%c0_76, %c0_77] : memref<1x64xf32, #tpu.memory_space<vmem>>, vector<1x64xf32>
    %cst_78 = arith.constant dense<0.000000e+00> : vector<4xf32>
    %266 = vector.multi_reduction <add>, %263, %cst_78 [1] : vector<4x64xf32> to vector<4xf32>
    %267 = vector.shape_cast %266 : vector<4xf32> to vector<4x1xf32>
    %cst_79 = arith.constant 6.400000e+01 : f32
    %268 = vector.broadcast %cst_79 : f32 to vector<4x1xf32>
    %269 = arith.divf %267, %268 : vector<4x1xf32>
    %270 = vector.broadcast %269 : vector<4x1xf32> to vector<4x64xf32>
    %271 = arith.subf %263, %270 : vector<4x64xf32>
    %272 = arith.mulf %271, %271 : vector<4x64xf32>
    %cst_80 = arith.constant dense<0.000000e+00> : vector<4xf32>
    %273 = vector.multi_reduction <add>, %272, %cst_80 [1] : vector<4x64xf32> to vector<4xf32>
    %274 = vector.shape_cast %273 : vector<4xf32> to vector<4x1xf32>
    %cst_81 = arith.constant 6.400000e+01 : f32
    %275 = vector.broadcast %cst_81 : f32 to vector<4x1xf32>
    %276 = arith.divf %274, %275 : vector<4x1xf32>
    %277 = vector.broadcast %269 : vector<4x1xf32> to vector<4x64xf32>
    %278 = arith.subf %263, %277 : vector<4x64xf32>
    %cst_82 = arith.constant 9.99999974E-6 : f32
    %279 = vector.broadcast %cst_82 : f32 to vector<4x1xf32>
    %280 = arith.addf %276, %279 : vector<4x1xf32>
    %281 = math.rsqrt %280 : vector<4x1xf32>
    %282 = vector.broadcast %281 : vector<4x1xf32> to vector<4x64xf32>
    %283 = arith.mulf %278, %282 : vector<4x64xf32>
    %284 = vector.broadcast %264 : vector<1x64xf32> to vector<4x64xf32>
    %285 = arith.mulf %283, %284 : vector<4x64xf32>
    %286 = vector.broadcast %265 : vector<1x64xf32> to vector<4x64xf32>
    %287 = arith.addf %285, %286 : vector<4x64xf32>
    %288 = arith.addf %243, %287 : vector<4x64xf32>
    %289 = vector.shape_cast %288 : vector<4x64xf32> to vector<1x4x64xf32>
    %290 = arith.truncf %289 : vector<1x4x64xf32> to vector<1x4x64xbf16>
    %c0_83 = arith.constant 0 : index
    %c0_84 = arith.constant 0 : index
    %c0_85 = arith.constant 0 : index
    %c0_86 = arith.constant 0 : index
    %291 = vector.load %arg17[%c0_83, %c0_84, %c0_85, %c0_86] : memref<1x1x4x64xbf16, #tpu.memory_space<vmem>>, vector<1x1x4x64xbf16>
    %292 = vector.shape_cast %291 : vector<1x1x4x64xbf16> to vector<1x4x64xbf16>
    %293 = vector.shape_cast %290 : vector<1x4x64xbf16> to vector<1x1x4x64xbf16>
    tpu.vector_store %arg17[%c0_83, %c0_84, %c0_85, %c0_86], %293 {strides = array<i32>} : memref<1x1x4x64xbf16, #tpu.memory_space<vmem>>, vector<1x1x4x64xbf16>,
    return
  }
  func.func @transform_0(%arg0: i32, %arg1: i32) -> (i32, i32, i32, i32) {
    %c0_i32 = arith.constant 0 : i32
    %c0_i32_0 = arith.constant 0 : i32
    %c0_i32_1 = arith.constant 0 : i32
    return %arg0, %arg1, %c0_i32, %c0_i32_0 : i32, i32, i32, i32
  }
  func.func @transform_1(%arg0: i32, %arg1: i32) -> (i32, i32) {
    %c0_i32 = arith.constant 0 : i32
    %c0_i32_0 = arith.constant 0 : i32
    %c0_i32_1 = arith.constant 0 : i32
    return %c0_i32, %c0_i32_0 : i32, i32
  }
  func.func @transform_2(%arg0: i32, %arg1: i32) -> (i32, i32) {
    %c0_i32 = arith.constant 0 : i32
    %c0_i32_0 = arith.constant 0 : i32
    %c0_i32_1 = arith.constant 0 : i32
    return %c0_i32, %c0_i32_0 : i32, i32
  }
  func.func @transform_3(%arg0: i32, %arg1: i32) -> (i32, i32) {
    %c0_i32 = arith.constant 0 : i32
    %c0_i32_0 = arith.constant 0 : i32
    %c0_i32_1 = arith.constant 0 : i32
    return %c0_i32, %c0_i32_0 : i32, i32
  }
  func.func @transform_4(%arg0: i32, %arg1: i32) -> (i32, i32) {
    %c0_i32 = arith.constant 0 : i32
    %c0_i32_0 = arith.constant 0 : i32
    %c0_i32_1 = arith.constant 0 : i32
    return %c0_i32, %c0_i32_0 : i32, i32
  }
  func.func @transform_5(%arg0: i32, %arg1: i32) -> (i32, i32) {
    %c0_i32 = arith.constant 0 : i32
    %c0_i32_0 = arith.constant 0 : i32
    %c0_i32_1 = arith.constant 0 : i32
    return %c0_i32, %c0_i32_0 : i32, i32
  }
  func.func @transform_6(%arg0: i32, %arg1: i32) -> (i32, i32, i32) {
    %c0_i32 = arith.constant 0 : i32
    %c0_i32_0 = arith.constant 0 : i32
    %c0_i32_1 = arith.constant 0 : i32
    %c0_i32_2 = arith.constant 0 : i32
    return %c0_i32, %c0_i32_0, %c0_i32_1 : i32, i32, i32
  }
  func.func @transform_7(%arg0: i32, %arg1: i32) -> (i32, i32) {
    %c0_i32 = arith.constant 0 : i32
    %c0_i32_0 = arith.constant 0 : i32
    %c0_i32_1 = arith.constant 0 : i32
    return %c0_i32, %c0_i32_0 : i32, i32
  }
  func.func @transform_8(%arg0: i32, %arg1: i32) -> (i32, i32) {
    %c0_i32 = arith.constant 0 : i32
    %c0_i32_0 = arith.constant 0 : i32
    %c0_i32_1 = arith.constant 0 : i32
    return %c0_i32, %c0_i32_0 : i32, i32
  }
  func.func @transform_9(%arg0: i32, %arg1: i32) -> (i32, i32) {
    %c0_i32 = arith.constant 0 : i32
    %c0_i32_0 = arith.constant 0 : i32
    %c0_i32_1 = arith.constant 0 : i32
    return %c0_i32, %c0_i32_0 : i32, i32
  }
  func.func @transform_10(%arg0: i32, %arg1: i32) -> (i32, i32) {
    %c0_i32 = arith.constant 0 : i32
    %c0_i32_0 = arith.constant 0 : i32
    %c0_i32_1 = arith.constant 0 : i32
    return %c0_i32, %c0_i32_0 : i32, i32
  }
  func.func @transform_11(%arg0: i32, %arg1: i32) -> (i32, i32) {
    %c0_i32 = arith.constant 0 : i32
    %c0_i32_0 = arith.constant 0 : i32
    %c0_i32_1 = arith.constant 0 : i32
    return %c0_i32, %c0_i32_0 : i32, i32
  }
  func.func @transform_12(%arg0: i32, %arg1: i32) -> (i32, i32) {
    %c0_i32 = arith.constant 0 : i32
    %c0_i32_0 = arith.constant 0 : i32
    %c0_i32_1 = arith.constant 0 : i32
    return %c0_i32, %c0_i32_0 : i32, i32
  }
  func.func @transform_13(%arg0: i32, %arg1: i32) -> (i32, i32) {
    %c0_i32 = arith.constant 0 : i32
    %c0_i32_0 = arith.constant 0 : i32
    %c0_i32_1 = arith.constant 0 : i32
    return %c0_i32, %c0_i32_0 : i32, i32
  }
  func.func @transform_14(%arg0: i32, %arg1: i32) -> (i32, i32) {
    %c0_i32 = arith.constant 0 : i32
    %c0_i32_0 = arith.constant 0 : i32
    %c0_i32_1 = arith.constant 0 : i32
    return %c0_i32, %c0_i32_0 : i32, i32
  }
  func.func @transform_15(%arg0: i32, %arg1: i32) -> (i32, i32, i32, i32) {
    %c0_i32 = arith.constant 0 : i32
    %c0_i32_0 = arith.constant 0 : i32
    %c0_i32_1 = arith.constant 0 : i32
    return %arg0, %arg1, %c0_i32, %c0_i32_0 : i32, i32, i32, i32
  }
}

module attributes {stable_mosaic.version = 11 : i64} {
  func.func @_swin_block_kernel(%arg0: i32, %arg1: i32, %arg2: memref<1x1x4x64xbf16, #tpu.memory_space<vmem>>, %arg3: memref<64x192xbf16, #tpu.memory_space<vmem>>, %arg4: memref<1x192xf32, #tpu.memory_space<vmem>>, %arg5: memref<64x64xbf16, #tpu.memory_space<vmem>>, %arg6: memref<1x64xf32, #tpu.memory_space<vmem>>, %arg7: memref<1x4xf32, #tpu.memory_space<vmem>>, %arg8: memref<4x4x4xf32, #tpu.memory_space<vmem>>, %arg9: memref<1x64xf32, #tpu.memory_space<vmem>>, %arg10: memref<1x64xf32, #tpu.memory_space<vmem>>, %arg11: memref<64x256xbf16, #tpu.memory_space<vmem>>, %arg12: memref<1x256xf32, #tpu.memory_space<vmem>>, %arg13: memref<256x64xbf16, #tpu.memory_space<vmem>>, %arg14: memref<1x64xf32, #tpu.memory_space<vmem>>, %arg15: memref<1x64xf32, #tpu.memory_space<vmem>>, %arg16: memref<1x64xf32, #tpu.memory_space<vmem>>, %arg17: memref<1x64xf32, #tpu.memory_space<vmem>>, %arg18: memref<1x64xf32, #tpu.memory_space<vmem>>, %arg19: memref<1x1x4x64xbf16, #tpu.memory_space<vmem>>) attributes {dimension_semantics = [#tpu.dimension_semantics<parallel>, #tpu.dimension_semantics<parallel>], iteration_bounds = array<i64: 2, 1>, scalar_prefetch = 0 : i64, scratch_operands = 0 : i64, tpu.core_type = #tpu.core_type<tc>, window_params = [{transform_indices = @transform_0, window_bounds = array<i64: 1, 1, 4, 64>}, {pipeline_mode = #tpu.pipeline_mode<synchronous>, transform_indices = @transform_1, window_bounds = array<i64: 64, 192>}, {pipeline_mode = #tpu.pipeline_mode<synchronous>, transform_indices = @transform_2, window_bounds = array<i64: 1, 192>}, {pipeline_mode = #tpu.pipeline_mode<synchronous>, transform_indices = @transform_3, window_bounds = array<i64: 64, 64>}, {pipeline_mode = #tpu.pipeline_mode<synchronous>, transform_indices = @transform_4, window_bounds = array<i64: 1, 64>}, {pipeline_mode = #tpu.pipeline_mode<synchronous>, transform_indices = @transform_5, window_bounds = array<i64: 1, 4>}, {pipeline_mode = #tpu.pipeline_mode<synchronous>, transform_indices = @transform_6, window_bounds = array<i64: 4, 4, 4>}, {pipeline_mode = #tpu.pipeline_mode<synchronous>, transform_indices = @transform_7, window_bounds = array<i64: 1, 64>}, {pipeline_mode = #tpu.pipeline_mode<synchronous>, transform_indices = @transform_8, window_bounds = array<i64: 1, 64>}, {pipeline_mode = #tpu.pipeline_mode<synchronous>, transform_indices = @transform_9, window_bounds = array<i64: 64, 256>}, {pipeline_mode = #tpu.pipeline_mode<synchronous>, transform_indices = @transform_10, window_bounds = array<i64: 1, 256>}, {pipeline_mode = #tpu.pipeline_mode<synchronous>, transform_indices = @transform_11, window_bounds = array<i64: 256, 64>}, {pipeline_mode = #tpu.pipeline_mode<synchronous>, transform_indices = @transform_12, window_bounds = array<i64: 1, 64>}, {pipeline_mode = #tpu.pipeline_mode<synchronous>, transform_indices = @transform_13, window_bounds = array<i64: 1, 64>}, {pipeline_mode = #tpu.pipeline_mode<synchronous>, transform_indices = @transform_14, window_bounds = array<i64: 1, 64>}, {pipeline_mode = #tpu.pipeline_mode<synchronous>, transform_indices = @transform_15, window_bounds = array<i64: 1, 64>}, {pipeline_mode = #tpu.pipeline_mode<synchronous>, transform_indices = @transform_16, window_bounds = array<i64: 1, 64>}, {transform_indices = @transform_17, window_bounds = array<i64: 1, 1, 4, 64>}]} {
    %c0 = arith.constant 0 : index
    %c0_0 = arith.constant 0 : index
    %c0_1 = arith.constant 0 : index
    %c0_2 = arith.constant 0 : index
    %0 = vector.load %arg2[%c0, %c0_0, %c0_1, %c0_2] : memref<1x1x4x64xbf16, #tpu.memory_space<vmem>>, vector<1x1x4x64xbf16>
    %1 = vector.shape_cast %0 : vector<1x1x4x64xbf16> to vector<1x4x64xbf16>
    %2 = arith.extf %1 : vector<1x4x64xbf16> to vector<1x4x64xf32>
    %3 = vector.shape_cast %2 : vector<1x4x64xf32> to vector<4x64xf32>
    %4 = arith.truncf %3 : vector<4x64xf32> to vector<4x64xbf16>
    %c0_3 = arith.constant 0 : index
    %c0_4 = arith.constant 0 : index
    %5 = vector.load %arg3[%c0_3, %c0_4] : memref<64x192xbf16, #tpu.memory_space<vmem>>, vector<64x192xbf16>
    %cst = arith.constant dense<0.000000e+00> : vector<4x192xf32>
    %6 = tpu.matmul %4, %5, %cst {dimension_numbers = #tpu.dot_dimension_numbers<[1], [0], [0], [1], [0, 0, 1, 1], [], []>} : vector<4x64xbf16>, vector<64x192xbf16>, vector<4x192xf32> -> vector<4x192xf32>
    %c0_5 = arith.constant 0 : index
    %c0_6 = arith.constant 0 : index
    %7 = vector.load %arg4[%c0_5, %c0_6] : memref<1x192xf32, #tpu.memory_space<vmem>>, vector<1x192xf32>
    %8 = vector.broadcast %7 : vector<1x192xf32> to vector<4x192xf32>
    %9 = arith.addf %6, %8 : vector<4x192xf32>
    %c0_7 = arith.constant 0 : index
    %c0_8 = arith.constant 0 : index
    %10 = vector.load %arg7[%c0_7, %c0_8] : memref<1x4xf32, #tpu.memory_space<vmem>>, vector<1x4xf32>
    %c0_9 = arith.constant 0 : index
    %c0_10 = arith.constant 0 : index
    %c0_11 = arith.constant 0 : index
    %11 = vector.load %arg8[%c0_9, %c0_10, %c0_11] : memref<4x4x4xf32, #tpu.memory_space<vmem>>, vector<4x4x4xf32>
    %c0_12 = arith.constant 0 : index
    %c0_13 = arith.constant 0 : index
    %12 = vector.load %arg5[%c0_12, %c0_13] : memref<64x64xbf16, #tpu.memory_space<vmem>>, vector<64x64xbf16>
    %13 = vector.extract_strided_slice %9 {offsets = [0, 0], sizes = [4, 16], strides = [1, 1]} : vector<4x192xf32> to vector<4x16xf32>
    %14 = vector.shape_cast %13 : vector<4x16xf32> to vector<1x4x16xf32>
    %15 = vector.extract_strided_slice %9 {offsets = [0, 64], sizes = [4, 16], strides = [1, 1]} : vector<4x192xf32> to vector<4x16xf32>
    %16 = vector.shape_cast %15 : vector<4x16xf32> to vector<1x4x16xf32>
    %17 = vector.extract_strided_slice %9 {offsets = [0, 128], sizes = [4, 16], strides = [1, 1]} : vector<4x192xf32> to vector<4x16xf32>
    %18 = vector.shape_cast %17 : vector<4x16xf32> to vector<1x4x16xf32>
    %19 = arith.mulf %14, %14 : vector<1x4x16xf32>
    %cst_14 = arith.constant dense<0.000000e+00> : vector<1x4xf32>
    %20 = vector.multi_reduction <add>, %19, %cst_14 [2] : vector<1x4x16xf32> to vector<1x4xf32>
    %21 = vector.shape_cast %20 : vector<1x4xf32> to vector<1x4x1xf32>
    %cst_15 = arith.constant 1.000000e-24 : f32
    %22 = vector.broadcast %cst_15 : f32 to vector<1x4x1xf32>
    %23 = arith.addf %21, %22 : vector<1x4x1xf32>
    %24 = math.rsqrt %23 : vector<1x4x1xf32>
    %25 = vector.extract_strided_slice %10 {offsets = [0, 0], sizes = [1, 1], strides = [1, 1]} : vector<1x4xf32> to vector<1x1xf32>
    %26 = vector.extract %25[0, 0] : f32 from vector<1x1xf32>
    %27 = vector.broadcast %26 : f32 to vector<1x4x1xf32>
    %28 = arith.mulf %24, %27 : vector<1x4x1xf32>
    %29 = vector.broadcast %28 : vector<1x4x1xf32> to vector<1x4x16xf32>
    %30 = arith.mulf %14, %29 : vector<1x4x16xf32>
    %31 = arith.mulf %16, %16 : vector<1x4x16xf32>
    %cst_16 = arith.constant dense<0.000000e+00> : vector<1x4xf32>
    %32 = vector.multi_reduction <add>, %31, %cst_16 [2] : vector<1x4x16xf32> to vector<1x4xf32>
    %33 = vector.shape_cast %32 : vector<1x4xf32> to vector<1x4x1xf32>
    %cst_17 = arith.constant 1.000000e-24 : f32
    %34 = vector.broadcast %cst_17 : f32 to vector<1x4x1xf32>
    %35 = arith.addf %33, %34 : vector<1x4x1xf32>
    %36 = math.rsqrt %35 : vector<1x4x1xf32>
    %37 = vector.broadcast %36 : vector<1x4x1xf32> to vector<1x4x16xf32>
    %38 = arith.mulf %16, %37 : vector<1x4x16xf32>
    %39 = arith.truncf %30 : vector<1x4x16xf32> to vector<1x4x16xbf16>
    %40 = arith.truncf %38 : vector<1x4x16xf32> to vector<1x4x16xbf16>
    "tpu.trace_start"() <{level = 10 : i32, message = "wld,wmd->wlm"}> : () -> ()
    %cst_18 = arith.constant dense<0.000000e+00> : vector<1x4x4xf32>
    %41 = tpu.matmul %39, %40, %cst_18 {dimension_numbers = #tpu.dot_dimension_numbers<[2], [2], [1], [1], [0, 0, 0, 1, 1, 1], [0], [0]>} : vector<1x4x16xbf16>, vector<1x4x16xbf16>, vector<1x4x4xf32> -> vector<1x4x4xf32>
    "tpu.trace_stop"() : () -> ()
    %42 = vector.extract_strided_slice %11 {offsets = [0, 0, 0], sizes = [1, 4, 4], strides = [1, 1, 1]} : vector<4x4x4xf32> to vector<1x4x4xf32>
    %43 = vector.shape_cast %42 : vector<1x4x4xf32> to vector<4x4xf32>
    %44 = vector.shape_cast %43 : vector<4x4xf32> to vector<1x4x4xf32>
    %45 = arith.addf %41, %44 : vector<1x4x4xf32>
    %cst_19 = arith.constant dense<0xFF800000> : vector<1x4xf32>
    %46 = vector.multi_reduction <maximumf>, %45, %cst_19 [2] : vector<1x4x4xf32> to vector<1x4xf32>
    %47 = vector.shape_cast %46 : vector<1x4xf32> to vector<1x4x1xf32>
    %48 = vector.broadcast %47 : vector<1x4x1xf32> to vector<1x4x4xf32>
    %49 = arith.subf %45, %48 : vector<1x4x4xf32>
    %50 = math.exp %49 : vector<1x4x4xf32>
    %cst_20 = arith.constant dense<0.000000e+00> : vector<1x4xf32>
    %51 = vector.multi_reduction <add>, %50, %cst_20 [2] : vector<1x4x4xf32> to vector<1x4xf32>
    %52 = vector.shape_cast %51 : vector<1x4xf32> to vector<1x4x1xf32>
    %53 = tpu.reciprocal %52 {approx = true} : vector<1x4x1xf32> -> vector<1x4x1xf32>
    %54 = vector.broadcast %53 : vector<1x4x1xf32> to vector<1x4x4xf32>
    %55 = arith.mulf %50, %54 : vector<1x4x4xf32>
    %56 = arith.truncf %55 : vector<1x4x4xf32> to vector<1x4x4xbf16>
    %57 = arith.truncf %18 : vector<1x4x16xf32> to vector<1x4x16xbf16>
    "tpu.trace_start"() <{level = 10 : i32, message = "wlm,wmd->wld"}> : () -> ()
    %cst_21 = arith.constant dense<0.000000e+00> : vector<1x4x16xf32>
    %58 = tpu.matmul %56, %57, %cst_21 {dimension_numbers = #tpu.dot_dimension_numbers<[2], [1], [1], [2], [0, 0, 0, 1, 1, 2], [0], [0]>} : vector<1x4x4xbf16>, vector<1x4x16xbf16>, vector<1x4x16xf32> -> vector<1x4x16xf32>
    "tpu.trace_stop"() : () -> ()
    %59 = vector.shape_cast %58 : vector<1x4x16xf32> to vector<4x16xf32>
    %60 = arith.truncf %59 : vector<4x16xf32> to vector<4x16xbf16>
    %61 = vector.extract_strided_slice %12 {offsets = [0, 0], sizes = [16, 64], strides = [1, 1]} : vector<64x64xbf16> to vector<16x64xbf16>
    %cst_22 = arith.constant dense<0.000000e+00> : vector<4x64xf32>
    %62 = tpu.matmul %60, %61, %cst_22 {dimension_numbers = #tpu.dot_dimension_numbers<[1], [0], [0], [1], [0, 0, 1, 1], [], []>} : vector<4x16xbf16>, vector<16x64xbf16>, vector<4x64xf32> -> vector<4x64xf32>
    %63 = vector.extract_strided_slice %9 {offsets = [0, 16], sizes = [4, 16], strides = [1, 1]} : vector<4x192xf32> to vector<4x16xf32>
    %64 = vector.shape_cast %63 : vector<4x16xf32> to vector<1x4x16xf32>
    %65 = vector.extract_strided_slice %9 {offsets = [0, 80], sizes = [4, 16], strides = [1, 1]} : vector<4x192xf32> to vector<4x16xf32>
    %66 = vector.shape_cast %65 : vector<4x16xf32> to vector<1x4x16xf32>
    %67 = vector.extract_strided_slice %9 {offsets = [0, 144], sizes = [4, 16], strides = [1, 1]} : vector<4x192xf32> to vector<4x16xf32>
    %68 = vector.shape_cast %67 : vector<4x16xf32> to vector<1x4x16xf32>
    %69 = arith.mulf %64, %64 : vector<1x4x16xf32>
    %cst_23 = arith.constant dense<0.000000e+00> : vector<1x4xf32>
    %70 = vector.multi_reduction <add>, %69, %cst_23 [2] : vector<1x4x16xf32> to vector<1x4xf32>
    %71 = vector.shape_cast %70 : vector<1x4xf32> to vector<1x4x1xf32>
    %cst_24 = arith.constant 1.000000e-24 : f32
    %72 = vector.broadcast %cst_24 : f32 to vector<1x4x1xf32>
    %73 = arith.addf %71, %72 : vector<1x4x1xf32>
    %74 = math.rsqrt %73 : vector<1x4x1xf32>
    %75 = vector.extract_strided_slice %10 {offsets = [0, 1], sizes = [1, 1], strides = [1, 1]} : vector<1x4xf32> to vector<1x1xf32>
    %76 = vector.extract %75[0, 0] : f32 from vector<1x1xf32>
    %77 = vector.broadcast %76 : f32 to vector<1x4x1xf32>
    %78 = arith.mulf %74, %77 : vector<1x4x1xf32>
    %79 = vector.broadcast %78 : vector<1x4x1xf32> to vector<1x4x16xf32>
    %80 = arith.mulf %64, %79 : vector<1x4x16xf32>
    %81 = arith.mulf %66, %66 : vector<1x4x16xf32>
    %cst_25 = arith.constant dense<0.000000e+00> : vector<1x4xf32>
    %82 = vector.multi_reduction <add>, %81, %cst_25 [2] : vector<1x4x16xf32> to vector<1x4xf32>
    %83 = vector.shape_cast %82 : vector<1x4xf32> to vector<1x4x1xf32>
    %cst_26 = arith.constant 1.000000e-24 : f32
    %84 = vector.broadcast %cst_26 : f32 to vector<1x4x1xf32>
    %85 = arith.addf %83, %84 : vector<1x4x1xf32>
    %86 = math.rsqrt %85 : vector<1x4x1xf32>
    %87 = vector.broadcast %86 : vector<1x4x1xf32> to vector<1x4x16xf32>
    %88 = arith.mulf %66, %87 : vector<1x4x16xf32>
    %89 = arith.truncf %80 : vector<1x4x16xf32> to vector<1x4x16xbf16>
    %90 = arith.truncf %88 : vector<1x4x16xf32> to vector<1x4x16xbf16>
    "tpu.trace_start"() <{level = 10 : i32, message = "wld,wmd->wlm"}> : () -> ()
    %cst_27 = arith.constant dense<0.000000e+00> : vector<1x4x4xf32>
    %91 = tpu.matmul %89, %90, %cst_27 {dimension_numbers = #tpu.dot_dimension_numbers<[2], [2], [1], [1], [0, 0, 0, 1, 1, 1], [0], [0]>} : vector<1x4x16xbf16>, vector<1x4x16xbf16>, vector<1x4x4xf32> -> vector<1x4x4xf32>
    "tpu.trace_stop"() : () -> ()
    %92 = vector.extract_strided_slice %11 {offsets = [1, 0, 0], sizes = [1, 4, 4], strides = [1, 1, 1]} : vector<4x4x4xf32> to vector<1x4x4xf32>
    %93 = vector.shape_cast %92 : vector<1x4x4xf32> to vector<4x4xf32>
    %94 = vector.shape_cast %93 : vector<4x4xf32> to vector<1x4x4xf32>
    %95 = arith.addf %91, %94 : vector<1x4x4xf32>
    %cst_28 = arith.constant dense<0xFF800000> : vector<1x4xf32>
    %96 = vector.multi_reduction <maximumf>, %95, %cst_28 [2] : vector<1x4x4xf32> to vector<1x4xf32>
    %97 = vector.shape_cast %96 : vector<1x4xf32> to vector<1x4x1xf32>
    %98 = vector.broadcast %97 : vector<1x4x1xf32> to vector<1x4x4xf32>
    %99 = arith.subf %95, %98 : vector<1x4x4xf32>
    %100 = math.exp %99 : vector<1x4x4xf32>
    %cst_29 = arith.constant dense<0.000000e+00> : vector<1x4xf32>
    %101 = vector.multi_reduction <add>, %100, %cst_29 [2] : vector<1x4x4xf32> to vector<1x4xf32>
    %102 = vector.shape_cast %101 : vector<1x4xf32> to vector<1x4x1xf32>
    %103 = tpu.reciprocal %102 {approx = true} : vector<1x4x1xf32> -> vector<1x4x1xf32>
    %104 = vector.broadcast %103 : vector<1x4x1xf32> to vector<1x4x4xf32>
    %105 = arith.mulf %100, %104 : vector<1x4x4xf32>
    %106 = arith.truncf %105 : vector<1x4x4xf32> to vector<1x4x4xbf16>
    %107 = arith.truncf %68 : vector<1x4x16xf32> to vector<1x4x16xbf16>
    "tpu.trace_start"() <{level = 10 : i32, message = "wlm,wmd->wld"}> : () -> ()
    %cst_30 = arith.constant dense<0.000000e+00> : vector<1x4x16xf32>
    %108 = tpu.matmul %106, %107, %cst_30 {dimension_numbers = #tpu.dot_dimension_numbers<[2], [1], [1], [2], [0, 0, 0, 1, 1, 2], [0], [0]>} : vector<1x4x4xbf16>, vector<1x4x16xbf16>, vector<1x4x16xf32> -> vector<1x4x16xf32>
    "tpu.trace_stop"() : () -> ()
    %109 = vector.shape_cast %108 : vector<1x4x16xf32> to vector<4x16xf32>
    %110 = arith.truncf %109 : vector<4x16xf32> to vector<4x16xbf16>
    %111 = vector.extract_strided_slice %12 {offsets = [16, 0], sizes = [16, 64], strides = [1, 1]} : vector<64x64xbf16> to vector<16x64xbf16>
    %cst_31 = arith.constant dense<0.000000e+00> : vector<4x64xf32>
    %112 = tpu.matmul %110, %111, %cst_31 {dimension_numbers = #tpu.dot_dimension_numbers<[1], [0], [0], [1], [0, 0, 1, 1], [], []>} : vector<4x16xbf16>, vector<16x64xbf16>, vector<4x64xf32> -> vector<4x64xf32>
    %113 = arith.addf %62, %112 : vector<4x64xf32>
    %114 = vector.extract_strided_slice %9 {offsets = [0, 32], sizes = [4, 16], strides = [1, 1]} : vector<4x192xf32> to vector<4x16xf32>
    %115 = vector.shape_cast %114 : vector<4x16xf32> to vector<1x4x16xf32>
    %116 = vector.extract_strided_slice %9 {offsets = [0, 96], sizes = [4, 16], strides = [1, 1]} : vector<4x192xf32> to vector<4x16xf32>
    %117 = vector.shape_cast %116 : vector<4x16xf32> to vector<1x4x16xf32>
    %118 = vector.extract_strided_slice %9 {offsets = [0, 160], sizes = [4, 16], strides = [1, 1]} : vector<4x192xf32> to vector<4x16xf32>
    %119 = vector.shape_cast %118 : vector<4x16xf32> to vector<1x4x16xf32>
    %120 = arith.mulf %115, %115 : vector<1x4x16xf32>
    %cst_32 = arith.constant dense<0.000000e+00> : vector<1x4xf32>
    %121 = vector.multi_reduction <add>, %120, %cst_32 [2] : vector<1x4x16xf32> to vector<1x4xf32>
    %122 = vector.shape_cast %121 : vector<1x4xf32> to vector<1x4x1xf32>
    %cst_33 = arith.constant 1.000000e-24 : f32
    %123 = vector.broadcast %cst_33 : f32 to vector<1x4x1xf32>
    %124 = arith.addf %122, %123 : vector<1x4x1xf32>
    %125 = math.rsqrt %124 : vector<1x4x1xf32>
    %126 = vector.extract_strided_slice %10 {offsets = [0, 2], sizes = [1, 1], strides = [1, 1]} : vector<1x4xf32> to vector<1x1xf32>
    %127 = vector.extract %126[0, 0] : f32 from vector<1x1xf32>
    %128 = vector.broadcast %127 : f32 to vector<1x4x1xf32>
    %129 = arith.mulf %125, %128 : vector<1x4x1xf32>
    %130 = vector.broadcast %129 : vector<1x4x1xf32> to vector<1x4x16xf32>
    %131 = arith.mulf %115, %130 : vector<1x4x16xf32>
    %132 = arith.mulf %117, %117 : vector<1x4x16xf32>
    %cst_34 = arith.constant dense<0.000000e+00> : vector<1x4xf32>
    %133 = vector.multi_reduction <add>, %132, %cst_34 [2] : vector<1x4x16xf32> to vector<1x4xf32>
    %134 = vector.shape_cast %133 : vector<1x4xf32> to vector<1x4x1xf32>
    %cst_35 = arith.constant 1.000000e-24 : f32
    %135 = vector.broadcast %cst_35 : f32 to vector<1x4x1xf32>
    %136 = arith.addf %134, %135 : vector<1x4x1xf32>
    %137 = math.rsqrt %136 : vector<1x4x1xf32>
    %138 = vector.broadcast %137 : vector<1x4x1xf32> to vector<1x4x16xf32>
    %139 = arith.mulf %117, %138 : vector<1x4x16xf32>
    %140 = arith.truncf %131 : vector<1x4x16xf32> to vector<1x4x16xbf16>
    %141 = arith.truncf %139 : vector<1x4x16xf32> to vector<1x4x16xbf16>
    "tpu.trace_start"() <{level = 10 : i32, message = "wld,wmd->wlm"}> : () -> ()
    %cst_36 = arith.constant dense<0.000000e+00> : vector<1x4x4xf32>
    %142 = tpu.matmul %140, %141, %cst_36 {dimension_numbers = #tpu.dot_dimension_numbers<[2], [2], [1], [1], [0, 0, 0, 1, 1, 1], [0], [0]>} : vector<1x4x16xbf16>, vector<1x4x16xbf16>, vector<1x4x4xf32> -> vector<1x4x4xf32>
    "tpu.trace_stop"() : () -> ()
    %143 = vector.extract_strided_slice %11 {offsets = [2, 0, 0], sizes = [1, 4, 4], strides = [1, 1, 1]} : vector<4x4x4xf32> to vector<1x4x4xf32>
    %144 = vector.shape_cast %143 : vector<1x4x4xf32> to vector<4x4xf32>
    %145 = vector.shape_cast %144 : vector<4x4xf32> to vector<1x4x4xf32>
    %146 = arith.addf %142, %145 : vector<1x4x4xf32>
    %cst_37 = arith.constant dense<0xFF800000> : vector<1x4xf32>
    %147 = vector.multi_reduction <maximumf>, %146, %cst_37 [2] : vector<1x4x4xf32> to vector<1x4xf32>
    %148 = vector.shape_cast %147 : vector<1x4xf32> to vector<1x4x1xf32>
    %149 = vector.broadcast %148 : vector<1x4x1xf32> to vector<1x4x4xf32>
    %150 = arith.subf %146, %149 : vector<1x4x4xf32>
    %151 = math.exp %150 : vector<1x4x4xf32>
    %cst_38 = arith.constant dense<0.000000e+00> : vector<1x4xf32>
    %152 = vector.multi_reduction <add>, %151, %cst_38 [2] : vector<1x4x4xf32> to vector<1x4xf32>
    %153 = vector.shape_cast %152 : vector<1x4xf32> to vector<1x4x1xf32>
    %154 = tpu.reciprocal %153 {approx = true} : vector<1x4x1xf32> -> vector<1x4x1xf32>
    %155 = vector.broadcast %154 : vector<1x4x1xf32> to vector<1x4x4xf32>
    %156 = arith.mulf %151, %155 : vector<1x4x4xf32>
    %157 = arith.truncf %156 : vector<1x4x4xf32> to vector<1x4x4xbf16>
    %158 = arith.truncf %119 : vector<1x4x16xf32> to vector<1x4x16xbf16>
    "tpu.trace_start"() <{level = 10 : i32, message = "wlm,wmd->wld"}> : () -> ()
    %cst_39 = arith.constant dense<0.000000e+00> : vector<1x4x16xf32>
    %159 = tpu.matmul %157, %158, %cst_39 {dimension_numbers = #tpu.dot_dimension_numbers<[2], [1], [1], [2], [0, 0, 0, 1, 1, 2], [0], [0]>} : vector<1x4x4xbf16>, vector<1x4x16xbf16>, vector<1x4x16xf32> -> vector<1x4x16xf32>
    "tpu.trace_stop"() : () -> ()
    %160 = vector.shape_cast %159 : vector<1x4x16xf32> to vector<4x16xf32>
    %161 = arith.truncf %160 : vector<4x16xf32> to vector<4x16xbf16>
    %162 = vector.extract_strided_slice %12 {offsets = [32, 0], sizes = [16, 64], strides = [1, 1]} : vector<64x64xbf16> to vector<16x64xbf16>
    %cst_40 = arith.constant dense<0.000000e+00> : vector<4x64xf32>
    %163 = tpu.matmul %161, %162, %cst_40 {dimension_numbers = #tpu.dot_dimension_numbers<[1], [0], [0], [1], [0, 0, 1, 1], [], []>} : vector<4x16xbf16>, vector<16x64xbf16>, vector<4x64xf32> -> vector<4x64xf32>
    %164 = arith.addf %113, %163 : vector<4x64xf32>
    %165 = vector.extract_strided_slice %9 {offsets = [0, 48], sizes = [4, 16], strides = [1, 1]} : vector<4x192xf32> to vector<4x16xf32>
    %166 = vector.shape_cast %165 : vector<4x16xf32> to vector<1x4x16xf32>
    %167 = vector.extract_strided_slice %9 {offsets = [0, 112], sizes = [4, 16], strides = [1, 1]} : vector<4x192xf32> to vector<4x16xf32>
    %168 = vector.shape_cast %167 : vector<4x16xf32> to vector<1x4x16xf32>
    %169 = vector.extract_strided_slice %9 {offsets = [0, 176], sizes = [4, 16], strides = [1, 1]} : vector<4x192xf32> to vector<4x16xf32>
    %170 = vector.shape_cast %169 : vector<4x16xf32> to vector<1x4x16xf32>
    %171 = arith.mulf %166, %166 : vector<1x4x16xf32>
    %cst_41 = arith.constant dense<0.000000e+00> : vector<1x4xf32>
    %172 = vector.multi_reduction <add>, %171, %cst_41 [2] : vector<1x4x16xf32> to vector<1x4xf32>
    %173 = vector.shape_cast %172 : vector<1x4xf32> to vector<1x4x1xf32>
    %cst_42 = arith.constant 1.000000e-24 : f32
    %174 = vector.broadcast %cst_42 : f32 to vector<1x4x1xf32>
    %175 = arith.addf %173, %174 : vector<1x4x1xf32>
    %176 = math.rsqrt %175 : vector<1x4x1xf32>
    %177 = vector.extract_strided_slice %10 {offsets = [0, 3], sizes = [1, 1], strides = [1, 1]} : vector<1x4xf32> to vector<1x1xf32>
    %178 = vector.extract %177[0, 0] : f32 from vector<1x1xf32>
    %179 = vector.broadcast %178 : f32 to vector<1x4x1xf32>
    %180 = arith.mulf %176, %179 : vector<1x4x1xf32>
    %181 = vector.broadcast %180 : vector<1x4x1xf32> to vector<1x4x16xf32>
    %182 = arith.mulf %166, %181 : vector<1x4x16xf32>
    %183 = arith.mulf %168, %168 : vector<1x4x16xf32>
    %cst_43 = arith.constant dense<0.000000e+00> : vector<1x4xf32>
    %184 = vector.multi_reduction <add>, %183, %cst_43 [2] : vector<1x4x16xf32> to vector<1x4xf32>
    %185 = vector.shape_cast %184 : vector<1x4xf32> to vector<1x4x1xf32>
    %cst_44 = arith.constant 1.000000e-24 : f32
    %186 = vector.broadcast %cst_44 : f32 to vector<1x4x1xf32>
    %187 = arith.addf %185, %186 : vector<1x4x1xf32>
    %188 = math.rsqrt %187 : vector<1x4x1xf32>
    %189 = vector.broadcast %188 : vector<1x4x1xf32> to vector<1x4x16xf32>
    %190 = arith.mulf %168, %189 : vector<1x4x16xf32>
    %191 = arith.truncf %182 : vector<1x4x16xf32> to vector<1x4x16xbf16>
    %192 = arith.truncf %190 : vector<1x4x16xf32> to vector<1x4x16xbf16>
    "tpu.trace_start"() <{level = 10 : i32, message = "wld,wmd->wlm"}> : () -> ()
    %cst_45 = arith.constant dense<0.000000e+00> : vector<1x4x4xf32>
    %193 = tpu.matmul %191, %192, %cst_45 {dimension_numbers = #tpu.dot_dimension_numbers<[2], [2], [1], [1], [0, 0, 0, 1, 1, 1], [0], [0]>} : vector<1x4x16xbf16>, vector<1x4x16xbf16>, vector<1x4x4xf32> -> vector<1x4x4xf32>
    "tpu.trace_stop"() : () -> ()
    %194 = vector.extract_strided_slice %11 {offsets = [3, 0, 0], sizes = [1, 4, 4], strides = [1, 1, 1]} : vector<4x4x4xf32> to vector<1x4x4xf32>
    %195 = vector.shape_cast %194 : vector<1x4x4xf32> to vector<4x4xf32>
    %196 = vector.shape_cast %195 : vector<4x4xf32> to vector<1x4x4xf32>
    %197 = arith.addf %193, %196 : vector<1x4x4xf32>
    %cst_46 = arith.constant dense<0xFF800000> : vector<1x4xf32>
    %198 = vector.multi_reduction <maximumf>, %197, %cst_46 [2] : vector<1x4x4xf32> to vector<1x4xf32>
    %199 = vector.shape_cast %198 : vector<1x4xf32> to vector<1x4x1xf32>
    %200 = vector.broadcast %199 : vector<1x4x1xf32> to vector<1x4x4xf32>
    %201 = arith.subf %197, %200 : vector<1x4x4xf32>
    %202 = math.exp %201 : vector<1x4x4xf32>
    %cst_47 = arith.constant dense<0.000000e+00> : vector<1x4xf32>
    %203 = vector.multi_reduction <add>, %202, %cst_47 [2] : vector<1x4x4xf32> to vector<1x4xf32>
    %204 = vector.shape_cast %203 : vector<1x4xf32> to vector<1x4x1xf32>
    %205 = tpu.reciprocal %204 {approx = true} : vector<1x4x1xf32> -> vector<1x4x1xf32>
    %206 = vector.broadcast %205 : vector<1x4x1xf32> to vector<1x4x4xf32>
    %207 = arith.mulf %202, %206 : vector<1x4x4xf32>
    %208 = arith.truncf %207 : vector<1x4x4xf32> to vector<1x4x4xbf16>
    %209 = arith.truncf %170 : vector<1x4x16xf32> to vector<1x4x16xbf16>
    "tpu.trace_start"() <{level = 10 : i32, message = "wlm,wmd->wld"}> : () -> ()
    %cst_48 = arith.constant dense<0.000000e+00> : vector<1x4x16xf32>
    %210 = tpu.matmul %208, %209, %cst_48 {dimension_numbers = #tpu.dot_dimension_numbers<[2], [1], [1], [2], [0, 0, 0, 1, 1, 2], [0], [0]>} : vector<1x4x4xbf16>, vector<1x4x16xbf16>, vector<1x4x16xf32> -> vector<1x4x16xf32>
    "tpu.trace_stop"() : () -> ()
    %211 = vector.shape_cast %210 : vector<1x4x16xf32> to vector<4x16xf32>
    %212 = arith.truncf %211 : vector<4x16xf32> to vector<4x16xbf16>
    %213 = vector.extract_strided_slice %12 {offsets = [48, 0], sizes = [16, 64], strides = [1, 1]} : vector<64x64xbf16> to vector<16x64xbf16>
    %cst_49 = arith.constant dense<0.000000e+00> : vector<4x64xf32>
    %214 = tpu.matmul %212, %213, %cst_49 {dimension_numbers = #tpu.dot_dimension_numbers<[1], [0], [0], [1], [0, 0, 1, 1], [], []>} : vector<4x16xbf16>, vector<16x64xbf16>, vector<4x64xf32> -> vector<4x64xf32>
    %215 = arith.addf %164, %214 : vector<4x64xf32>
    %c0_50 = arith.constant 0 : index
    %c0_51 = arith.constant 0 : index
    %216 = vector.load %arg6[%c0_50, %c0_51] : memref<1x64xf32, #tpu.memory_space<vmem>>, vector<1x64xf32>
    %217 = vector.broadcast %216 : vector<1x64xf32> to vector<4x64xf32>
    %218 = arith.addf %215, %217 : vector<4x64xf32>
    %c0_52 = arith.constant 0 : index
    %c0_53 = arith.constant 0 : index
    %219 = vector.load %arg9[%c0_52, %c0_53] : memref<1x64xf32, #tpu.memory_space<vmem>>, vector<1x64xf32>
    %c0_54 = arith.constant 0 : index
    %c0_55 = arith.constant 0 : index
    %220 = vector.load %arg10[%c0_54, %c0_55] : memref<1x64xf32, #tpu.memory_space<vmem>>, vector<1x64xf32>
    %cst_56 = arith.constant dense<0.000000e+00> : vector<4xf32>
    %221 = vector.multi_reduction <add>, %218, %cst_56 [1] : vector<4x64xf32> to vector<4xf32>
    %222 = vector.shape_cast %221 : vector<4xf32> to vector<4x1xf32>
    %cst_57 = arith.constant 6.400000e+01 : f32
    %223 = vector.broadcast %cst_57 : f32 to vector<4x1xf32>
    %224 = arith.divf %222, %223 : vector<4x1xf32>
    %225 = vector.broadcast %224 : vector<4x1xf32> to vector<4x64xf32>
    %226 = arith.subf %218, %225 : vector<4x64xf32>
    %227 = arith.mulf %226, %226 : vector<4x64xf32>
    %cst_58 = arith.constant dense<0.000000e+00> : vector<4xf32>
    %228 = vector.multi_reduction <add>, %227, %cst_58 [1] : vector<4x64xf32> to vector<4xf32>
    %229 = vector.shape_cast %228 : vector<4xf32> to vector<4x1xf32>
    %cst_59 = arith.constant 6.400000e+01 : f32
    %230 = vector.broadcast %cst_59 : f32 to vector<4x1xf32>
    %231 = arith.divf %229, %230 : vector<4x1xf32>
    %232 = vector.broadcast %224 : vector<4x1xf32> to vector<4x64xf32>
    %233 = arith.subf %218, %232 : vector<4x64xf32>
    %cst_60 = arith.constant 9.99999974E-6 : f32
    %234 = vector.broadcast %cst_60 : f32 to vector<4x1xf32>
    %235 = arith.addf %231, %234 : vector<4x1xf32>
    %236 = math.rsqrt %235 : vector<4x1xf32>
    %237 = vector.broadcast %236 : vector<4x1xf32> to vector<4x64xf32>
    %238 = arith.mulf %233, %237 : vector<4x64xf32>
    %239 = vector.broadcast %219 : vector<1x64xf32> to vector<4x64xf32>
    %240 = arith.mulf %238, %239 : vector<4x64xf32>
    %241 = vector.broadcast %220 : vector<1x64xf32> to vector<4x64xf32>
    %242 = arith.addf %240, %241 : vector<4x64xf32>
    %243 = arith.addf %3, %242 : vector<4x64xf32>
    %244 = arith.truncf %243 : vector<4x64xf32> to vector<4x64xbf16>
    %c0_61 = arith.constant 0 : index
    %c0_62 = arith.constant 0 : index
    %245 = vector.load %arg11[%c0_61, %c0_62] : memref<64x256xbf16, #tpu.memory_space<vmem>>, vector<64x256xbf16>
    %cst_63 = arith.constant dense<0.000000e+00> : vector<4x256xf32>
    %246 = tpu.matmul %244, %245, %cst_63 {dimension_numbers = #tpu.dot_dimension_numbers<[1], [0], [0], [1], [0, 0, 1, 1], [], []>} : vector<4x64xbf16>, vector<64x256xbf16>, vector<4x256xf32> -> vector<4x256xf32>
    %c0_64 = arith.constant 0 : index
    %c0_65 = arith.constant 0 : index
    %247 = vector.load %arg12[%c0_64, %c0_65] : memref<1x256xf32, #tpu.memory_space<vmem>>, vector<1x256xf32>
    %248 = vector.broadcast %247 : vector<1x256xf32> to vector<4x256xf32>
    %249 = arith.addf %246, %248 : vector<4x256xf32>
    %cst_66 = arith.constant 5.000000e-01 : f32
    %250 = vector.broadcast %cst_66 : f32 to vector<4x256xf32>
    %251 = arith.mulf %250, %249 : vector<4x256xf32>
    %cst_67 = arith.constant 0.707106769 : f32
    %252 = vector.broadcast %cst_67 : f32 to vector<4x256xf32>
    %253 = arith.mulf %249, %252 : vector<4x256xf32>
    %254 = math.erf %253 : vector<4x256xf32>
    %cst_68 = arith.constant 1.000000e+00 : f32
    %255 = vector.broadcast %cst_68 : f32 to vector<4x256xf32>
    %256 = arith.addf %255, %254 : vector<4x256xf32>
    %257 = arith.mulf %251, %256 : vector<4x256xf32>
    %258 = arith.truncf %257 : vector<4x256xf32> to vector<4x256xbf16>
    %c0_69 = arith.constant 0 : index
    %c0_70 = arith.constant 0 : index
    %259 = vector.load %arg13[%c0_69, %c0_70] : memref<256x64xbf16, #tpu.memory_space<vmem>>, vector<256x64xbf16>
    %cst_71 = arith.constant dense<0.000000e+00> : vector<4x64xf32>
    %260 = tpu.matmul %258, %259, %cst_71 {dimension_numbers = #tpu.dot_dimension_numbers<[1], [0], [0], [1], [0, 0, 1, 1], [], []>} : vector<4x256xbf16>, vector<256x64xbf16>, vector<4x64xf32> -> vector<4x64xf32>
    %c0_72 = arith.constant 0 : index
    %c0_73 = arith.constant 0 : index
    %261 = vector.load %arg14[%c0_72, %c0_73] : memref<1x64xf32, #tpu.memory_space<vmem>>, vector<1x64xf32>
    %262 = vector.broadcast %261 : vector<1x64xf32> to vector<4x64xf32>
    %263 = arith.addf %260, %262 : vector<4x64xf32>
    %c0_74 = arith.constant 0 : index
    %c0_75 = arith.constant 0 : index
    %264 = vector.load %arg15[%c0_74, %c0_75] : memref<1x64xf32, #tpu.memory_space<vmem>>, vector<1x64xf32>
    %c0_76 = arith.constant 0 : index
    %c0_77 = arith.constant 0 : index
    %265 = vector.load %arg16[%c0_76, %c0_77] : memref<1x64xf32, #tpu.memory_space<vmem>>, vector<1x64xf32>
    %cst_78 = arith.constant dense<0.000000e+00> : vector<4xf32>
    %266 = vector.multi_reduction <add>, %263, %cst_78 [1] : vector<4x64xf32> to vector<4xf32>
    %267 = vector.shape_cast %266 : vector<4xf32> to vector<4x1xf32>
    %cst_79 = arith.constant 6.400000e+01 : f32
    %268 = vector.broadcast %cst_79 : f32 to vector<4x1xf32>
    %269 = arith.divf %267, %268 : vector<4x1xf32>
    %270 = vector.broadcast %269 : vector<4x1xf32> to vector<4x64xf32>
    %271 = arith.subf %263, %270 : vector<4x64xf32>
    %272 = arith.mulf %271, %271 : vector<4x64xf32>
    %cst_80 = arith.constant dense<0.000000e+00> : vector<4xf32>
    %273 = vector.multi_reduction <add>, %272, %cst_80 [1] : vector<4x64xf32> to vector<4xf32>
    %274 = vector.shape_cast %273 : vector<4xf32> to vector<4x1xf32>
    %cst_81 = arith.constant 6.400000e+01 : f32
    %275 = vector.broadcast %cst_81 : f32 to vector<4x1xf32>
    %276 = arith.divf %274, %275 : vector<4x1xf32>
    %277 = vector.broadcast %269 : vector<4x1xf32> to vector<4x64xf32>
    %278 = arith.subf %263, %277 : vector<4x64xf32>
    %cst_82 = arith.constant 9.99999974E-6 : f32
    %279 = vector.broadcast %cst_82 : f32 to vector<4x1xf32>
    %280 = arith.addf %276, %279 : vector<4x1xf32>
    %281 = math.rsqrt %280 : vector<4x1xf32>
    %282 = vector.broadcast %281 : vector<4x1xf32> to vector<4x64xf32>
    %283 = arith.mulf %278, %282 : vector<4x64xf32>
    %284 = vector.broadcast %264 : vector<1x64xf32> to vector<4x64xf32>
    %285 = arith.mulf %283, %284 : vector<4x64xf32>
    %286 = vector.broadcast %265 : vector<1x64xf32> to vector<4x64xf32>
    %287 = arith.addf %285, %286 : vector<4x64xf32>
    %288 = arith.addf %243, %287 : vector<4x64xf32>
    %c0_83 = arith.constant 0 : index
    %c0_84 = arith.constant 0 : index
    %289 = vector.load %arg17[%c0_83, %c0_84] : memref<1x64xf32, #tpu.memory_space<vmem>>, vector<1x64xf32>
    %c0_85 = arith.constant 0 : index
    %c0_86 = arith.constant 0 : index
    %290 = vector.load %arg18[%c0_85, %c0_86] : memref<1x64xf32, #tpu.memory_space<vmem>>, vector<1x64xf32>
    %cst_87 = arith.constant dense<0.000000e+00> : vector<4xf32>
    %291 = vector.multi_reduction <add>, %288, %cst_87 [1] : vector<4x64xf32> to vector<4xf32>
    %292 = vector.shape_cast %291 : vector<4xf32> to vector<4x1xf32>
    %cst_88 = arith.constant 6.400000e+01 : f32
    %293 = vector.broadcast %cst_88 : f32 to vector<4x1xf32>
    %294 = arith.divf %292, %293 : vector<4x1xf32>
    %295 = vector.broadcast %294 : vector<4x1xf32> to vector<4x64xf32>
    %296 = arith.subf %288, %295 : vector<4x64xf32>
    %297 = arith.mulf %296, %296 : vector<4x64xf32>
    %cst_89 = arith.constant dense<0.000000e+00> : vector<4xf32>
    %298 = vector.multi_reduction <add>, %297, %cst_89 [1] : vector<4x64xf32> to vector<4xf32>
    %299 = vector.shape_cast %298 : vector<4xf32> to vector<4x1xf32>
    %cst_90 = arith.constant 6.400000e+01 : f32
    %300 = vector.broadcast %cst_90 : f32 to vector<4x1xf32>
    %301 = arith.divf %299, %300 : vector<4x1xf32>
    %302 = vector.broadcast %294 : vector<4x1xf32> to vector<4x64xf32>
    %303 = arith.subf %288, %302 : vector<4x64xf32>
    %cst_91 = arith.constant 9.99999974E-6 : f32
    %304 = vector.broadcast %cst_91 : f32 to vector<4x1xf32>
    %305 = arith.addf %301, %304 : vector<4x1xf32>
    %306 = math.rsqrt %305 : vector<4x1xf32>
    %307 = vector.broadcast %306 : vector<4x1xf32> to vector<4x64xf32>
    %308 = arith.mulf %303, %307 : vector<4x64xf32>
    %309 = vector.broadcast %289 : vector<1x64xf32> to vector<4x64xf32>
    %310 = arith.mulf %308, %309 : vector<4x64xf32>
    %311 = vector.broadcast %290 : vector<1x64xf32> to vector<4x64xf32>
    %312 = arith.addf %310, %311 : vector<4x64xf32>
    %313 = vector.shape_cast %312 : vector<4x64xf32> to vector<1x4x64xf32>
    %314 = arith.truncf %313 : vector<1x4x64xf32> to vector<1x4x64xbf16>
    %c0_92 = arith.constant 0 : index
    %c0_93 = arith.constant 0 : index
    %c0_94 = arith.constant 0 : index
    %c0_95 = arith.constant 0 : index
    %315 = vector.load %arg19[%c0_92, %c0_93, %c0_94, %c0_95] : memref<1x1x4x64xbf16, #tpu.memory_space<vmem>>, vector<1x1x4x64xbf16>
    %316 = vector.shape_cast %315 : vector<1x1x4x64xbf16> to vector<1x4x64xbf16>
    %317 = vector.shape_cast %314 : vector<1x4x64xbf16> to vector<1x1x4x64xbf16>
    tpu.vector_store %arg19[%c0_92, %c0_93, %c0_94, %c0_95], %317 {strides = array<i32>} : memref<1x1x4x64xbf16, #tpu.memory_space<vmem>>, vector<1x1x4x64xbf16>,
    return
  }
  func.func @transform_0(%arg0: i32, %arg1: i32) -> (i32, i32, i32, i32) {
    %c0_i32 = arith.constant 0 : i32
    %c0_i32_0 = arith.constant 0 : i32
    %c0_i32_1 = arith.constant 0 : i32
    return %arg0, %arg1, %c0_i32, %c0_i32_0 : i32, i32, i32, i32
  }
  func.func @transform_1(%arg0: i32, %arg1: i32) -> (i32, i32) {
    %c0_i32 = arith.constant 0 : i32
    %c0_i32_0 = arith.constant 0 : i32
    %c0_i32_1 = arith.constant 0 : i32
    return %c0_i32, %c0_i32_0 : i32, i32
  }
  func.func @transform_2(%arg0: i32, %arg1: i32) -> (i32, i32) {
    %c0_i32 = arith.constant 0 : i32
    %c0_i32_0 = arith.constant 0 : i32
    %c0_i32_1 = arith.constant 0 : i32
    return %c0_i32, %c0_i32_0 : i32, i32
  }
  func.func @transform_3(%arg0: i32, %arg1: i32) -> (i32, i32) {
    %c0_i32 = arith.constant 0 : i32
    %c0_i32_0 = arith.constant 0 : i32
    %c0_i32_1 = arith.constant 0 : i32
    return %c0_i32, %c0_i32_0 : i32, i32
  }
  func.func @transform_4(%arg0: i32, %arg1: i32) -> (i32, i32) {
    %c0_i32 = arith.constant 0 : i32
    %c0_i32_0 = arith.constant 0 : i32
    %c0_i32_1 = arith.constant 0 : i32
    return %c0_i32, %c0_i32_0 : i32, i32
  }
  func.func @transform_5(%arg0: i32, %arg1: i32) -> (i32, i32) {
    %c0_i32 = arith.constant 0 : i32
    %c0_i32_0 = arith.constant 0 : i32
    %c0_i32_1 = arith.constant 0 : i32
    return %c0_i32, %c0_i32_0 : i32, i32
  }
  func.func @transform_6(%arg0: i32, %arg1: i32) -> (i32, i32, i32) {
    %c0_i32 = arith.constant 0 : i32
    %c0_i32_0 = arith.constant 0 : i32
    %c0_i32_1 = arith.constant 0 : i32
    %c0_i32_2 = arith.constant 0 : i32
    return %c0_i32, %c0_i32_0, %c0_i32_1 : i32, i32, i32
  }
  func.func @transform_7(%arg0: i32, %arg1: i32) -> (i32, i32) {
    %c0_i32 = arith.constant 0 : i32
    %c0_i32_0 = arith.constant 0 : i32
    %c0_i32_1 = arith.constant 0 : i32
    return %c0_i32, %c0_i32_0 : i32, i32
  }
  func.func @transform_8(%arg0: i32, %arg1: i32) -> (i32, i32) {
    %c0_i32 = arith.constant 0 : i32
    %c0_i32_0 = arith.constant 0 : i32
    %c0_i32_1 = arith.constant 0 : i32
    return %c0_i32, %c0_i32_0 : i32, i32
  }
  func.func @transform_9(%arg0: i32, %arg1: i32) -> (i32, i32) {
    %c0_i32 = arith.constant 0 : i32
    %c0_i32_0 = arith.constant 0 : i32
    %c0_i32_1 = arith.constant 0 : i32
    return %c0_i32, %c0_i32_0 : i32, i32
  }
  func.func @transform_10(%arg0: i32, %arg1: i32) -> (i32, i32) {
    %c0_i32 = arith.constant 0 : i32
    %c0_i32_0 = arith.constant 0 : i32
    %c0_i32_1 = arith.constant 0 : i32
    return %c0_i32, %c0_i32_0 : i32, i32
  }
  func.func @transform_11(%arg0: i32, %arg1: i32) -> (i32, i32) {
    %c0_i32 = arith.constant 0 : i32
    %c0_i32_0 = arith.constant 0 : i32
    %c0_i32_1 = arith.constant 0 : i32
    return %c0_i32, %c0_i32_0 : i32, i32
  }
  func.func @transform_12(%arg0: i32, %arg1: i32) -> (i32, i32) {
    %c0_i32 = arith.constant 0 : i32
    %c0_i32_0 = arith.constant 0 : i32
    %c0_i32_1 = arith.constant 0 : i32
    return %c0_i32, %c0_i32_0 : i32, i32
  }
  func.func @transform_13(%arg0: i32, %arg1: i32) -> (i32, i32) {
    %c0_i32 = arith.constant 0 : i32
    %c0_i32_0 = arith.constant 0 : i32
    %c0_i32_1 = arith.constant 0 : i32
    return %c0_i32, %c0_i32_0 : i32, i32
  }
  func.func @transform_14(%arg0: i32, %arg1: i32) -> (i32, i32) {
    %c0_i32 = arith.constant 0 : i32
    %c0_i32_0 = arith.constant 0 : i32
    %c0_i32_1 = arith.constant 0 : i32
    return %c0_i32, %c0_i32_0 : i32, i32
  }
  func.func @transform_15(%arg0: i32, %arg1: i32) -> (i32, i32) {
    %c0_i32 = arith.constant 0 : i32
    %c0_i32_0 = arith.constant 0 : i32
    %c0_i32_1 = arith.constant 0 : i32
    return %c0_i32, %c0_i32_0 : i32, i32
  }
  func.func @transform_16(%arg0: i32, %arg1: i32) -> (i32, i32) {
    %c0_i32 = arith.constant 0 : i32
    %c0_i32_0 = arith.constant 0 : i32
    %c0_i32_1 = arith.constant 0 : i32
    return %c0_i32, %c0_i32_0 : i32, i32
  }
  func.func @transform_17(%arg0: i32, %arg1: i32) -> (i32, i32, i32, i32) {
    %c0_i32 = arith.constant 0 : i32
    %c0_i32_0 = arith.constant 0 : i32
    %c0_i32_1 = arith.constant 0 : i32
    return %arg0, %arg1, %c0_i32, %c0_i32_0 : i32, i32, i32, i32
  }
}

</mosaic_0001>

<bundles_post_ra>
// kernel: _lambda_.6
= control target key start
LH: loop header
LB: loop body
LE: loop exit
PB: predicated region body
PF: predicated region fallthrough
CT: control target
= control target key end

     0   :  { %vm58_vm0 = vcmask 392192   ;;  %vm116_vm1 = vcmask 261120   ;;  %vm206_vm2 = vcmask 257024   ;;  %s341_s1 = inlined_call_operand.vmem [shape: bf16[48,32], index: 1, kind: input, shape index: {}]   ;;  %s342_s0 = inlined_call_operand.vmem [shape: f32[32,48], index: 0, kind: input, shape index: {}]   ;;  %s343_s2 = inlined_call_operand.vmem [shape: f32[1,32], index: 2, kind: input, shape index: {}, may-alias: {2,4}]   ;;  %s344_s3 = inlined_call_operand.vmem [shape: f32[1,32], index: 3, kind: input, shape index: {}]   ;;  %s345_s4 = inlined_call_operand.vmem [shape: f32[1,32], index: 4, kind: input, shape index: {}, may-alias: {2,4}]   ;;  %s346_s5 = inlined_call_operand.vmem [shape: bf16[32,32], index: 5, kind: output, shape index: {}]  }
   0x1   :  { %v246_v0 = vld [vmem:[%s341_s1 + $0x10] sm:$0xff]   ;;  %v247_v1 = vld [vmem:[%s341_s1 + $0x8] sm:$0xff]   ;;  %v21_v2 = vld [vmem:[%s342_s0] sm:$0xff] }
   0x2   :  { %236 = vmatprep.subr.bf16.mxu0 %v246_v0  ;;  %v22_v3 = vld [vmem:[%s342_s0 + $0x8] sm:$0xff]  ;;  %v248_v4 = vld [vmem:[%s341_s1] sm:$0xff]   ;;  %v23_v6 = vld [vmem:[%s342_s0 + $0x10] sm:$0xff] }
   0x3   :  { %237 = vmatpush3.bf16.msra.mxu0 %v246_v0  ;;  %v25_v5 = vpack.c.bf16 %v22_v3, %v21_v2  ;;  %v24_v7 = vld [vmem:[%s342_s0 + $0x18] sm:$0xff]  ;;  %v215_v9 = vld [vmem:[%s343_s2] ss:$0 sm:$0xff] }
   0x4   :  { %238 = vmatprep.subr.bf16.mxu0 %v247_v1  ;;  %v26_v8 = vpack.c.bf16 %v24_v7, %v23_v6  ;;  %v221_v55 = vld [vmem:[%s344_s3] ss:$0 sm:$0xff] }
   0x5   :  { %242 = vmatprep.mubr.msk.bf16.mxu0 %vm58_vm0, %v25_v5  ;;  %v222_v57 = vld [vmem:[%s345_s4] ss:$0 sm:$0xff] }
   0x7   :  { %239 = vmatpush3.bf16.msra.mxu0 %v247_v1 }
   0x8   :  { %240 = vmatprep.subr.bf16.mxu0 %v248_v4 }
   0xb   :  { %241 = vmatpush3.bf16.msra.mxu0 %v248_v4 }
   0xe   :  { %243 = vmatmul.mubr.msk.bf16.vlgmr.msra.gmra.mxu0 %vm58_vm0, %v26_v8 }
  0xce   :  { %v244_v10 = vpop.f32.mrf.mxu0 }
  0xcf   :  { %v108_v11 = vadd.f32 %v244_v10, %v215_v9 }
  0xd0   :  { %v99_v12 = vpop.f32.mrf.mxu0 }
  0xd1   :  { %v100_v13 = vadd.f32 %v215_v9, %v99_v12  ;;  %v123_v14 = vsel %vm116_vm1, %v108_v11, 0.0 }
  0xd2   :  { %124 = vadd.xlane.f32.xlu1 %v123_v14  ;;  %v245_v15 = vpop.f32.mrf.mxu0 }
  0xd3   :  { %v111_v16 = vadd.f32 %v245_v15, %v215_v9  ;;  %v117_v17 = vsel %vm116_vm1, %v100_v13, 0.0 }
  0xd4   :  { %v102_v18 = vpop.f32.mrf.mxu0  ;;  %118 = vadd.xlane.f32.xlu0 %v117_v17 }
  0xd5   :  { %v103_v19 = vadd.f32 %v215_v9, %v102_v18  ;;  %v126_v20 = vsel %vm116_vm1, %v111_v16, 0.0 }
  0xd6   :  { %127 = vadd.xlane.f32.xlu1 %v126_v20 }
  0xd7   :  { %v120_v21 = vsel %vm116_vm1, %v103_v19, 0.0 }
  0xd8   :  { %121 = vadd.xlane.f32.xlu0 %v120_v21 }
 0x15b   :  { %v125_v22 = vpop.xlane.xlu1 %124 }
 0x15c   :  { %v132_v23 = vmul.f32 0.03125, %v125_v22 }
 0x15d   :  { %v119_v24 = vpop.xlane.xlu0 %118 }
 0x15e   :  { %v130_v25 = vmul.f32 0.03125, %v119_v24  ;;  %v136_v27 = vsub.f32 %v108_v11, %v132_v23 }
 0x15f   :  { %v128_v26 = vpop.xlane.xlu1 %127 }
 0x160   :  { %v134_v28 = vsub.f32 %v100_v13, %v130_v25  ;;  %v133_v29 = vmul.f32 0.03125, %v128_v26  ;;  %v140_v36 = vmul.f32 %v136_v27, %v136_v27 }
 0x161   :  { %v122_v30 = vpop.xlane.xlu0 %121 }
 0x162   :  { %v131_v31 = vmul.f32 0.03125, %v122_v30  ;;  %v138_v32 = vmul.f32 %v134_v28, %v134_v28  ;;  %v137_v33 = vsub.f32 %v111_v16, %v133_v29  ;;  %v148_v38 = vsel %vm116_vm1, %v140_v36, 0.0 }
 0x164   :  { %v135_v34 = vsub.f32 %v103_v19, %v131_v31  ;;  %v142_v35 = vsel %vm116_vm1, %v138_v32, 0.0  ;;  %v141_v40 = vmul.f32 %v137_v33, %v137_v33 }
 0x165   :  { %143 = vadd.xlane.f32.xlu0 %v142_v35 }
 0x166   :  { %v139_v37 = vmul.f32 %v135_v34, %v135_v34  ;;  %v151_v41 = vsel %vm116_vm1, %v141_v40, 0.0 }
 0x168   :  { %v145_v39 = vsel %vm116_vm1, %v139_v37, 0.0 }
 0x169   :  { %149 = vadd.xlane.f32.xlu0 %v148_v38  ;;  %146 = vadd.xlane.f32.xlu1 %v145_v39 }
 0x16d   :  { %152 = vadd.xlane.f32.xlu1 %v151_v41 }
 0x1ee   :  { %v144_v42 = vpop.xlane.xlu0 %143 }
 0x1ef   :  { %v154_v43 = vmul.f32 0.03125, %v144_v42 }
 0x1f1   :  { %v158_v44 = vadd.f32 1e-05, %v154_v43 }
 0x1f2   :  { %v147_v45 = vpop.xlane.xlu1 %146  ;;  %v150_v46 = vpop.xlane.xlu0 %149 }
 0x1f3   :  { %249 = vrsqrt.f32 %v158_v44  ;;  %v155_v47 = vmul.f32 0.03125, %v147_v45  ;;  %v156_v48 = vmul.f32 0.03125, %v150_v46 }
 0x1f5   :  { %v159_v49 = vadd.f32 1e-05, %v155_v47  ;;  %v160_v50 = vadd.f32 1e-05, %v156_v48 }
 0x1f6   :  { %v153_v51 = vpop.xlane.xlu1 %152 }
 0x1f7   :  { %251 = vrsqrt.f32 %v159_v49  ;;  %v157_v52 = vmul.f32 0.03125, %v153_v51 }
 0x1f8   :  { %253 = vrsqrt.f32 %v160_v50 }
 0x1f9   :  { %v161_v53 = vadd.f32 1e-05, %v157_v52 }
 0x1fb   :  { %255 = vrsqrt.f32 %v161_v53 }
 0x200   :  { %v250_v54 = vpop.eup %249 }
 0x201   :  { %v166_v56 = vmul.f32 %v250_v54, %v134_v28 }
 0x203   :  { %v176_v58 = vmul.f32 %v221_v55, %v166_v56 }
 0x204   :  { %v252_v59 = vpop.eup %251 }
 0x205   :  { %v254_v60 = vpop.eup %253  ;;  %v186_v61 = vadd.f32 %v222_v57, %v176_v58  ;;  %v167_v62 = vmul.f32 %v252_v59, %v135_v34 }
 0x206   :  { %v168_v63 = vmul.f32 %v254_v60, %v136_v27 }
 0x207   :  { %v227_v0 = vpack.c.bf16 %v186_v61, %v186_v61  ;;  %v177_v1 = vmul.f32 %v221_v55, %v167_v62 }
 0x208   :  { %v256_v2 = vpop.eup %255  ;;  %v178_v3 = vmul.f32 %v221_v55, %v168_v63 }
 0x209   :  { %207 = vst.msk [vmem:[%s346_s5] sm:$0xf] %vm206_vm2, %v227_v0  ;;  %v187_v4 = vadd.f32 %v222_v57, %v177_v1  ;;  %v169_v5 = vmul.f32 %v256_v2, %v137_v33 }
 0x20a   :  { %v188_v6 = vadd.f32 %v222_v57, %v178_v3 }
 0x20b   :  { %v228_v7 = vpack.c.bf16 %v187_v4, %v187_v4  ;;  %v179_v8 = vmul.f32 %v221_v55, %v169_v5 }
 0x20c   :  { %v229_v9 = vpack.c.bf16 %v188_v6, %v188_v6 }
 0x20d   :  { %208 = vst.msk [vmem:[%s346_s5 + $0x4] sm:$0xf] %vm206_vm2, %v228_v7  ;;  %v189_v10 = vadd.f32 %v222_v57, %v179_v8 }
 0x20e   :  { %209 = vst.msk [vmem:[%s346_s5 + $0x8] sm:$0xf] %vm206_vm2, %v229_v9 }
 0x20f   :  { %v230_v11 = vpack.c.bf16 %v189_v10, %v189_v10 }
 0x211   :  { %210 = vst.msk [vmem:[%s346_s5 + $0xc] sm:$0xf] %vm206_vm2, %v230_v11 }

// kernel: _lambda_.9
= control target key start
LH: loop header
LB: loop body
LE: loop exit
PB: predicated region body
PF: predicated region fallthrough
CT: control target
= control target key end

     0   :  { %v211_v2 = vmov 0.0   ;;  %vm212_vm0 = vmmov 0   ;;  %vm154_vm1 = vcmask 519168   ;;  %s274_s0 = inlined_call_operand.vmem [shape: bf16[8,128], index: 0, kind: input, shape index: {}]   ;;  %s275_s3 = inlined_call_operand.vmem [shape: bf16[128,64], index: 3, kind: input, shape index: {}]   ;;  %s276_s1 = inlined_call_operand.vmem [shape: f32[1,128], index: 1, kind: input, shape index: {}]   ;;  %s277_s2 = inlined_call_operand.vmem [shape: f32[1,128], index: 2, kind: input, shape index: {}]   ;;  %s278_s4 = inlined_call_operand.vmem [shape: bf16[8,64], index: 4, kind: output, shape index: {}]  }
   0x1   :  { %v18_v0 = vld [vmem:[%s274_s0] sm:$0xf]  ;;  %179 = vmatprep.subr.bf16.mxu0 %v211_v2  ;;  %v201_v3 = vld [vmem:[%s275_s3 + $0x38] sm:$0xff]   ;;  %v202_v4 = vld [vmem:[%s275_s3 + $0x30] sm:$0xff]   ;;  %195 = vmatprep.mubr.msk.bf16.mxu0 %vm212_vm0, %v211_v2 }
   0x2   :  { %v19_v1 = vunpack.c.l.bf16 %v18_v0  ;;  %180 = vmatpush3.bf16.msra.mxu0 %v201_v3  ;;  %v203_v9 = vld [vmem:[%s275_s3 + $0x28] sm:$0xff]   ;;  %v204_v10 = vld [vmem:[%s275_s3 + $0x20] sm:$0xff]   ;;  %v205_v11 = vld [vmem:[%s275_s3 + $0x18] sm:$0xff]  }
   0x3   :  { %181 = vmatprep.subr.bf16.mxu0 %v211_v2  ;;  %v206_v12 = vld [vmem:[%s275_s3 + $0x10] sm:$0xff]   ;;  %v207_v13 = vld [vmem:[%s275_s3 + $0x8] sm:$0xff]   ;;  %v208_v14 = vld [vmem:[%s275_s3] sm:$0xff]  }
   0x4   :  { %22 = vadd.xlane.f32.xlu0 %v19_v1  ;;  %v160_v19 = vld [vmem:[%s276_s1] ss:$0 sm:$0xff] }
   0x5   :  { %v161_v21 = vld [vmem:[%s277_s2] ss:$0 sm:$0xff] }
   0x6   :  { %182 = vmatpush3.bf16.msra.mxu0 %v202_v4 }
   0x7   :  { %183 = vmatprep.subr.bf16.mxu0 %v211_v2 }
   0xa   :  { %184 = vmatpush3.bf16.msra.mxu0 %v203_v9 }
   0xb   :  { %185 = vmatprep.subr.bf16.mxu0 %v211_v2 }
   0xe   :  { %186 = vmatpush3.bf16.msra.mxu0 %v204_v10 }
   0xf   :  { %187 = vmatprep.subr.bf16.mxu0 %v211_v2 }
  0x12   :  { %188 = vmatpush3.bf16.msra.mxu0 %v205_v11 }
  0x13   :  { %189 = vmatprep.subr.bf16.mxu0 %v211_v2 }
  0x16   :  { %190 = vmatpush3.bf16.msra.mxu0 %v206_v12 }
  0x17   :  { %191 = vmatprep.subr.bf16.mxu0 %v211_v2 }
  0x1a   :  { %192 = vmatpush3.bf16.msra.mxu0 %v207_v13 }
  0x1b   :  { %193 = vmatprep.subr.bf16.mxu0 %v211_v2 }
  0x1e   :  { %194 = vmatpush3.bf16.msra.mxu0 %v208_v14 }
  0x8d   :  { %v23_v5 = vpop.xlane.xlu0 %22 }
  0x8e   :  { %v25_v6 = vmul.f32 0.0078125, %v23_v5 }
  0x90   :  { %v26_v7 = vsub.f32 %v19_v1, %v25_v6 }
  0x92   :  { %v27_v8 = vmul.f32 %v26_v7, %v26_v7 }
  0x94   :  { %28 = vadd.xlane.f32.xlu0 %v27_v8 }
 0x11d   :  { %v29_v15 = vpop.xlane.xlu0 %28 }
 0x11e   :  { %v30_v16 = vmul.f32 0.0078125, %v29_v15 }
 0x120   :  { %v31_v17 = vadd.f32 1e-05, %v30_v16 }
 0x122   :  { %209 = vrsqrt.f32 %v31_v17 }
 0x12f   :  { %v210_v18 = vpop.eup %209 }
 0x130   :  { %v33_v20 = vmul.f32 %v210_v18, %v26_v7 }
 0x132   :  { %v40_v22 = vmul.f32 %v160_v19, %v33_v20 }
 0x134   :  { %v47_v23 = vadd.f32 %v161_v21, %v40_v22 }
 0x136   :  { %v48_v24 = vpack.c.bf16 %v47_v23, %v47_v23 }
 0x138   :  { %196 = vmatmul.mubr.bf16.vlgmr.msra.gmra.mxu0 %v48_v24 }
 0x1f8   :  { %v147_v25 = vpop.f32.mrf.mxu0 }
 0x1f9   :  { %v153_v26 = vpack.c.bf16 %v147_v25, %v147_v25 }
 0x1fa   :  { %v197_v27 = vpop.f32.mrf.mxu0 }
 0x1fb   :  { %155 = vst.msk [vmem:[%s278_s4] sm:$0xf] %vm154_vm1, %v153_v26 }
 0x1fc   :  { %v150_v28 = vpop.f32.mrf.mxu0 }
 0x1fe   :  { %v198_v29 = vpop.f32.mrf.mxu0 }

// kernel: _lambda_.7
= control target key start
LH: loop header
LB: loop body
LE: loop exit
PB: predicated region body
PF: predicated region fallthrough
CT: control target
= control target key end

     0   :  { %s2719_s18 = smov 0   ;;  %s2721_s19 = smov 0   ;;  %s3160_s0 = inlined_call_operand.vmem [shape: bf16[2,4,4,32], index: 0, kind: input, shape index: {}]   ;;  %s3161_s1 = inlined_call_operand.vmem [shape: bf16[32,96], index: 1, kind: input, shape index: {}]   ;;  %s3162_s2 = inlined_call_operand.vmem [shape: f32[1,96], index: 2, kind: input, shape index: {}]   ;;  %s3163_s3 = inlined_call_operand.vmem [shape: bf16[32,32], index: 3, kind: input, shape index: {}]   ;;  %s3164_s4 = inlined_call_operand.vmem [shape: f32[1,32], index: 4, kind: input, shape index: {}, may-alias: {4,8,12,14}]   ;;  %s3165_s5 = inlined_call_operand.vmem [shape: f32[1,2], index: 5, kind: input, shape index: {}]   ;;  %s3166_s6 = inlined_call_operand.vmem [shape: f32[2,4,4], index: 6, kind: input, shape index: {}]   ;;  %s3167_s7 = inlined_call_operand.vmem [shape: f32[1,32], index: 7, kind: input, shape index: {}, may-alias: {7,13}]   ;;  %s3168_s8 = inlined_call_operand.vmem [shape: f32[1,32], index: 8, kind: input, shape index: {}, may-alias: {4,8,12,14}]   ;;  %s3169_s9 = inlined_call_operand.vmem [shape: bf16[32,128], index: 9, kind: input, shape index: {}]   ;;  %s3170_s10 = inlined_call_operand.vmem [shape: f32[1,128], index: 10, kind: input, shape index: {}]   ;;  %s3171_s11 = inlined_call_operand.vmem [shape: bf16[128,32], index: 11, kind: input, shape index: {}]   ;;  %s3172_s12 = inlined_call_operand.vmem [shape: f32[1,32], index: 12, kind: input, shape index: {}, may-alias: {4,8,12,14}]   ;;  %s3173_s13 = inlined_call_operand.vmem [shape: f32[1,32], index: 13, kind: input, shape index: {}, may-alias: {7,13}]   ;;  %s3174_s14 = inlined_call_operand.vmem [shape: f32[1,32], index: 14, kind: input, shape index: {}, may-alias: {4,8,12,14}]   ;;  %s3175_s15 = inlined_call_operand.vmem [shape: bf16[2,4,4,32], index: 15, kind: output, shape index: {}]  }
   0x1   :  { %s2723_s20 = smov 0  }
   0x2 LB: > { %s37_s21 = sadd.s32 1, %s2625_s19  ;;  %p2235_p0 = scmp.ge.s32.totalorder %s2629_s20, 1  ;;  %s2629_s20 = sphi %s2723_s20, %s25_s20   ;;  %s2625_s19 = sphi %s2721_s19, %s3177_s19   ;;  %s2621_s18 = sphi %s2719_s18, %s3176_s18  }
   0x3   : > { %p39_p1 = scmp.ge.s32.totalorder %s37_s21, 2  ;;  %p458_p2 = scmp.lt.s32.totalorder %s2629_s20, 3 }
   0x5   : > { %s3179_s21 = smov (%p39_p1, %s37_s21), 0  ;;  %p459_p3 = pnand %p2235_p0, %p458_p2 }
   0x6   : > { %p515_p4 = scmp.lt.s32.totalorder (!%p459_p3), %s2621_s18, 1  ;;  %s2633_s17 = smov (!%p459_p3), 96  }
   0x7   : > { %462 = sbr.rel (%p459_p3) target bundleno = 3169 (0xc61), region = 80  ;;  %s2634_s24 = smov (!%p459_p3), 80  }
   0x8   : > { %s2635_s25 = smov (!%p459_p3), 112   ;;  %s2636_s30 = smov (!%p459_p3), 127  }
   0x9   : > { %s2637_s16 = smov (!%p459_p3), 64  }
   0xc   : > { %v2517_v0 = vld [vmem:[%s3161_s1 + $0x8] sm:$0xff]   ;;  %v2631_v1 = vmov 0.0   ;;  %v2518_v2 = vld [vmem:[%s3161_s1] sm:$0xff]   ;;  %vm2632_vm0 = vmmov 0   ;;  %s3181_s18 = smov (!%p515_p4, %s2621_s18), 1  ;;  %vm575_vm1 = vcmask 261120  }
   0xd   : > { %2337 = vmatprep.subr.bf16.mxu1 %v2631_v1  ;;  %2363 = vmatprep.subr.bf16.mxu0 %v2631_v1  ;;  %s2284_s26 = sshll.u32 %s3181_s18, 3  ;;  %v2240_v14 = vld [vmem:[%s3162_s2] ss:$0 sm:$0xff]  ;;  %vm637_vm2 = vcmask 125952   ;;  %vm719_vm3 = vcmask 130048   ;;  %vm913_vm4 = vcmask 27648  }
   0xe   : > { %2338 = vmatpush3.bf16.msra.mxu1 %v2517_v0  ;;  %2341 = vmatprep.mubr.msk.bf16.mxu1 %vm2632_vm0, %v2631_v1  ;;  %s522_s29 = scalar_lea.vmem %s3160_s0, %s2284_s26  ;;  %v2815_v26 = vld [vmem:[%s3165_s5] sm:$0x1]  ;;  %vm973_vm5 = vcmask 1041408   ;;  %vm969_vm6 = vcmask 31744   ;;  %vm2139_vm7 = vcmask 254976  }
   0xf   : > { %2339 = vmatprep.subr.bf16.mxu1 %v2631_v1  ;;  %2365 = vmatprep.mubr.msk.bf16.mxu0 %vm2632_vm0, %v2631_v1  ;;  %v2759_v3 = vld [vmem:[%s522_s29] sm:$0x3]  ;;  %v2761_v4 = vld [vmem:[%s522_s29 + $0x2] sm:$0x3]  ;;  %v2763_v5 = vld [vmem:[%s522_s29 + $0x4] sm:$0x3]  ;;  %2481 = vpush %v2815_v26 }
  0x10   : > { %v2765_v6 = vld [vmem:[%s522_s29 + $0x6] sm:$0x3]  ;;  %v539_v7 = vunpack.c.l.bf16 %v2759_v3  ;;  %v540_v8 = vunpack.c.l.bf16 %v2761_v4  ;;  %v541_v9 = vunpack.c.l.bf16 %v2763_v5  ;;  %v2524_v3 = vld [vmem:[%s3171_s11 + $0x30] sm:$0xff]   ;;  %v2525_v5 = vld [vmem:[%s3171_s11 + $0x28] sm:$0xff]  }
  0x11   : > { %v542_v10 = vunpack.c.l.bf16 %v2765_v6  ;;  %v2526_v6 = vld [vmem:[%s3171_s11 + $0x20] sm:$0xff]  }
  0x12   : > { %2340 = vmatpush3.bf16.msra.mxu1 %v2518_v2  ;;  %v547_v11 = vcombine.low %v539_v7, %v540_v8 }
  0x13   : > { %2345 = vmatprep.subr.bf16.mxu1 %v2631_v1  ;;  %v548_v12 = vcombine.low %v541_v9, %v542_v10 }
  0x15   : > { %v551_v13 = vpack.c.bf16 %v548_v12, %v547_v11 }
  0x17   : > { %2342 = vmatmul.mubr.msk.bf16.vlgmr.msra.gmra.mxu1 %vm575_vm1, %v551_v13 }
  0x18   : > { %2347 = vmatprep.mubr.msk.bf16.mxu1 %vm2632_vm0, %v2631_v1 }
  0x40   : > { %s2482_s27 = spop %2481 }
  0xd7   : > { %v613_v15 = vpop.f32.mrf.mxu1 }
  0xd8   : > { %v2785_v16 = vadd.f32 %v2240_v14, %v613_v15 }
  0xd9   : > { %v2343_v17 = vpop.f32.mrf.mxu1 }
  0xda   : > { %v2789_v18 = vcombine.high %v2785_v16, %v2785_v16  ;;  %v2793_v19 = vmul.f32 %v2785_v16, %v2785_v16 }
  0xdb   : > { %v616_v20 = vpop.f32.mrf.mxu1 }
  0xdc   : > { %v2795_v21 = vadd.f32 %v2240_v14, %v616_v20  ;;  %672 = vrot.lane.b32.xlu0 %v2793_v19, %s2633_s17  ;;  %v634_v24 = vmul.f32 %v2789_v18, %v2789_v18  ;;  %v638_v35 = vsel %vm637_vm2, %v2793_v19, 0.0  ;;  %v659_v14 = vstv %s2482_s27 }
  0xdd   : > { %v2344_v22 = vpop.f32.mrf.mxu1 }
  0xde   : > { %v2801_v23 = vcombine.high %v2795_v21, %v2795_v21  ;;  %v2807_v25 = vmul.f32 %v2795_v21, %v2795_v21  ;;  %v641_v38 = vsel %vm637_vm2, %v634_v24, 0.0 }
  0xe0   : > { %674 = vrot.lane.b32.xlu0 %v634_v24, %s2633_s17  ;;  %676 = vrot.lane.b32.xlu1 %v2807_v25, %s2633_s17  ;;  %v636_v27 = vmul.f32 %v2801_v23, %v2801_v23  ;;  %v644_v37 = vsel %vm637_vm2, %v2807_v25, 0.0 }
  0xe2   : > { %v647_v39 = vsel %vm637_vm2, %v636_v27, 0.0 }
  0xe4   : > { %678 = vrot.lane.b32.xlu1 %v636_v27, %s2633_s17 }
 0x14e   : > { %v673_v28 = vpop.permute.xlu0 %672 }
 0x14f   : > { %v684_v29 = vsel %vm637_vm2, %v673_v28, 0.0 }
 0x150   : > { %685 = vadd.xlane.f32.xlu0 %v684_v29 }
 0x152   : > { %v675_v30 = vpop.permute.xlu0 %674  ;;  %v677_v31 = vpop.permute.xlu1 %676 }
 0x153   : > { %v690_v32 = vsel %vm637_vm2, %v677_v31, 0.0  ;;  %v687_v33 = vsel %vm637_vm2, %v675_v30, 0.0 }
 0x154   : > { %691 = vadd.xlane.f32.xlu0 %v690_v32  ;;  %688 = vadd.xlane.f32.xlu1 %v687_v33 }
 0x156   : > { %v679_v34 = vpop.permute.xlu1 %678 }
 0x157   : > { %v693_v36 = vsel %vm637_vm2, %v679_v34, 0.0 }
 0x158   : > { %639 = vadd.xlane.f32.xlu1 %v638_v35  ;;  %694 = vadd.xlane.f32.xlu0 %v693_v36 }
 0x15c   : > { %645 = vadd.xlane.f32.xlu1 %v644_v37  ;;  %642 = vadd.xlane.f32.xlu0 %v641_v38 }
 0x160   : > { %648 = vadd.xlane.f32.xlu0 %v647_v39 }
 0x1d9   : > { %v686_v40 = vpop.xlane.xlu0 %685 }
 0x1da   : > { %v696_v41 = vadd.f32 1e-24, %v686_v40 }
 0x1dc   : > { %2531 = vrsqrt.f32 %v696_v41 }
 0x1dd   : > { %v692_v42 = vpop.xlane.xlu0 %691  ;;  %v689_v43 = vpop.xlane.xlu1 %688 }
 0x1de   : > { %v698_v44 = vadd.f32 1e-24, %v692_v42  ;;  %v697_v45 = vadd.f32 1e-24, %v689_v43  ;;  %v621_v43 = vld [vmem:[%s3166_s6] sm:$0xf] }
 0x1e0   : > { %2533 = vrsqrt.f32 %v698_v44 }
 0x1e1   : > { %2535 = vrsqrt.f32 %v697_v45  ;;  %v695_v46 = vpop.xlane.xlu0 %694  ;;  %v640_v60 = vpop.xlane.xlu1 %639 }
 0x1e2   : > { %v699_v47 = vadd.f32 1e-24, %v695_v46  ;;  %v650_v62 = vadd.f32 1e-24, %v640_v60 }
 0x1e4   : > { %2537 = vrsqrt.f32 %v699_v47 }
 0x1e5   : > { %v643_v61 = vpop.xlane.xlu0 %642  ;;  %2539 = vrsqrt.f32 %v650_v62  ;;  %v646_v11 = vpop.xlane.xlu1 %645 }
 0x1e6   : > { %v651_v0 = vadd.f32 1e-24, %v643_v61  ;;  %v652_v12 = vadd.f32 1e-24, %v646_v11 }
 0x1e8   : > { %2541 = vrsqrt.f32 %v651_v0 }
 0x1e9   : > { %v2532_v48 = vpop.eup %2531  ;;  %v649_v63 = vpop.xlane.xlu0 %648 }
 0x1ea   : > { %v704_v49 = vmul.f32 %v2532_v48, %v2785_v16  ;;  %v653_v2 = vadd.f32 1e-24, %v649_v63 }
 0x1ec   : > { %v712_v50 = vpack.c.bf16 %v704_v49, %v704_v49  ;;  %2543 = vrsqrt.f32 %v653_v2 }
 0x1ed   : > { %v2534_v51 = vpop.eup %2533  ;;  %2545 = vrsqrt.f32 %v652_v12 }
 0x1ee   : > { %v2536_v52 = vpop.eup %2535  ;;  %717 = vrot.lane.b32.xlu1 %v712_v50, %s2633_s17  ;;  %v706_v53 = vmul.f32 %v2534_v51, %v2795_v21 }
 0x1ef   : > { %v705_v54 = vmul.f32 %v2536_v52, %v2789_v18 }
 0x1f0   : > { %v714_v55 = vpack.c.bf16 %v706_v53, %v706_v53 }
 0x1f1   : > { %v2538_v56 = vpop.eup %2537  ;;  %v713_v57 = vpack.c.bf16 %v705_v54, %v705_v54 }
 0x1f2   : > { %816 = vrot.lane.b32.xlu1 %v714_v55, %s2633_s17  ;;  %v707_v58 = vmul.f32 %v2538_v56, %v2801_v23  ;;  %v2540_v13 = vpop.eup %2539 }
 0x1f3   : > { %767 = vrot.lane.b32.xlu0 %v713_v57, %s2633_s17  ;;  %v660_v15 = vmul.f32 %v2540_v13, %v659_v14 }
 0x1f4   : > { %v715_v59 = vpack.c.bf16 %v707_v58, %v707_v58 }
 0x1f5   : > { %v2542_v20 = vpop.eup %2541  ;;  %v664_v22 = vmul.f32 %v660_v15, %v2785_v16 }
 0x1f6   : > { %865 = vrot.lane.b32.xlu1 %v715_v59, %s2633_s17  ;;  %v661_v28 = vmul.f32 %v2542_v20, %v659_v14 }
 0x1f7   : > { %1217 = vrot.lane.b32.xlu0 %v2793_v19, %s2634_s24  ;;  %v708_v30 = vpack.c.bf16 %v664_v22, %v664_v22 }
 0x1f8   : > { %v665_v34 = vmul.f32 %v661_v28, %v2789_v18 }
 0x1fa   : > { %1219 = vrot.lane.b32.xlu1 %v634_v24, %s2634_s24  ;;  %v709_v38 = vpack.c.bf16 %v665_v34, %v665_v34  ;;  %v2902_v34 = vpack.c.bf16 %v2789_v18, %v2789_v18 }
 0x1fb   : > { %1173 = vrot.lane.b32.xlu0 %v2793_v19, %s2635_s25 }
 0x1fe   : > { %1175 = vrot.lane.b32.xlu1 %v634_v24, %s2635_s25  ;;  %v2544_v24 = vpop.eup %2543 }
 0x1ff   : > { %1221 = vrot.lane.b32.xlu0 %v2807_v25, %s2634_s24  ;;  %v663_v29 = vmul.f32 %v2544_v24, %v659_v14  ;;  %v2546_v36 = vpop.eup %2545 }
 0x200   : > { %v662_v37 = vmul.f32 %v2546_v36, %v659_v14 }
 0x201   : > { %v667_v35 = vmul.f32 %v663_v29, %v2801_v23 }
 0x202   : > { %1223 = vrot.lane.b32.xlu1 %v636_v27, %s2634_s24  ;;  %v666_v41 = vmul.f32 %v662_v37, %v2795_v21 }
 0x203   : > { %1177 = vrot.lane.b32.xlu0 %v2807_v25, %s2635_s25  ;;  %v711_v39 = vpack.c.bf16 %v667_v35, %v667_v35  ;;  %v2908_v35 = vpack.c.bf16 %v2801_v23, %v2801_v23 }
 0x204   : > { %v710_v42 = vpack.c.bf16 %v666_v41, %v666_v41 }
 0x206   : > { %1179 = vrot.lane.b32.xlu1 %v636_v27, %s2635_s25 }
 0x260   : > { %v718_v17 = vpop.permute.xlu1 %717 }
 0x261   : > { %v724_v19 = vsel %vm719_vm3, %v718_v17, 0 }
 0x262   : > { %2346 = vmatpush3.bf16.xpose.msra.mxu1 %v724_v19 }
 0x263   : > { %2351 = vmatprep.subr.bf16.mxu1 %v2631_v1 }
 0x264   : > { %v817_v25 = vpop.permute.xlu1 %816 }
 0x265   : > { %v768_v27 = vpop.permute.xlu0 %767  ;;  %v822_v40 = vsel %vm719_vm3, %v817_v25, 0 }
 0x266   : > { %v773_v32 = vsel %vm719_vm3, %v768_v27, 0 }
 0x268   : > { %v866_v31 = vpop.permute.xlu1 %865 }
 0x269   : > { %2348 = vmatmul.mubr.msk.bf16.vlgmr.msra.gmra.mxu1 %vm719_vm3, %v708_v30  ;;  %v871_v33 = vsel %vm719_vm3, %v866_v31, 0  ;;  %v1218_v56 = vpop.permute.xlu0 %1217 }
 0x26a   : > { %2352 = vmatpush3.bf16.xpose.msra.mxu1 %v773_v32  ;;  %2364 = vmatpush3.bf16.xpose.msra.mxu0 %v871_v33  ;;  %v1229_v63 = vsel %vm637_vm2, %v1218_v56, 0.0 }
 0x26b   : > { %2353 = vmatprep.mubr.msk.bf16.mxu1 %vm2632_vm0, %v2631_v1  ;;  %2357 = vmatprep.subr.bf16.mxu1 %v2631_v1 }
 0x26c   : > { %2375 = vmatprep.subr.bf16.mxu0 %v2631_v1  ;;  %v1220_v0 = vpop.permute.xlu1 %1219 }
 0x26d   : > { %v1232_v12 = vsel %vm637_vm2, %v1220_v0, 0.0  ;;  %v1174_v13 = vpop.permute.xlu0 %1173 }
 0x26e   : > { %v1185_v19 = vsel %vm637_vm2, %v1174_v13, 0.0 }
 0x270   : > { %v1176_v15 = vpop.permute.xlu1 %1175 }
 0x271   : > { %2354 = vmatmul.mubr.msk.bf16.vlgmr.msra.gmra.mxu1 %vm719_vm3, %v709_v38  ;;  %2366 = vmatmul.mubr.msk.bf16.vlgmr.msra.gmra.mxu0 %vm719_vm3, %v711_v39  ;;  %v1222_v20 = vpop.permute.xlu0 %1221  ;;  %v1188_v22 = vsel %vm637_vm2, %v1176_v15, 0.0 }
 0x272   : > { %2358 = vmatpush3.bf16.xpose.msra.mxu1 %v822_v40  ;;  %2359 = vmatprep.mubr.msk.bf16.mxu1 %vm2632_vm0, %v2631_v1  ;;  %v1235_v33 = vsel %vm637_vm2, %v1222_v20, 0.0 }
 0x273   : > { %2369 = vmatprep.subr.bf16.mxu1 %v2631_v1  ;;  %2377 = vmatprep.mubr.msk.bf16.mxu0 %vm2632_vm0, %v2631_v1 }
 0x274   : > { %v1224_v24 = vpop.permute.xlu1 %1223 }
 0x275   : > { %v1238_v25 = vsel %vm637_vm2, %v1224_v24, 0.0  ;;  %v1178_v27 = vpop.permute.xlu0 %1177 }
 0x276   : > { %v1191_v28 = vsel %vm637_vm2, %v1178_v27, 0.0 }
 0x278   : > { %v1180_v29 = vpop.permute.xlu1 %1179 }
 0x279   : > { %2360 = vmatmul.mubr.msk.bf16.vlgmr.msra.gmra.mxu1 %vm719_vm3, %v710_v42  ;;  %v1194_v31 = vsel %vm637_vm2, %v1180_v29, 0.0 }
 0x27a   : > { %2371 = vmatprep.mubr.msk.bf16.mxu1 %vm2632_vm0, %v2631_v1 }
 0x329   : > { %v760_v44 = vpop.f32.mrf.mxu1 }
 0x32a   : > { %v761_v45 = vadd.f32 %v760_v44, %v621_v43 }
 0x32b   : > { %v2349_v46 = vpop.f32.mrf.mxu1 }
 0x32c   : > { %v914_v47 = vsel %vm913_vm4, %v761_v45, -inf }
 0x32d   : > { %915 = vmax.xlane.f32.xlu0 %v914_v47  ;;  %v763_v48 = vpop.f32.mrf.mxu1 }
 0x32f   : > { %v2350_v49 = vpop.f32.mrf.mxu1 }
 0x331   : > { %v809_v50 = vpop.f32.mrf.mxu1  ;;  %v907_v51 = vpop.f32.mrf.mxu0 }
 0x332   : > { %v810_v52 = vadd.f32 %v809_v50, %v621_v43  ;;  %v908_v53 = vadd.f32 %v907_v51, %v621_v43 }
 0x333   : > { %v2355_v54 = vpop.f32.mrf.mxu1  ;;  %v2367_v55 = vpop.f32.mrf.mxu0 }
 0x334   : > { %v923_v57 = vsel %vm913_vm4, %v908_v53, -inf  ;;  %v917_v58 = vsel %vm913_vm4, %v810_v52, -inf }
 0x335   : > { %v910_v59 = vpop.f32.mrf.mxu0  ;;  %924 = vmax.xlane.f32.xlu0 %v923_v57  ;;  %918 = vmax.xlane.f32.xlu1 %v917_v58  ;;  %v812_v60 = vpop.f32.mrf.mxu1 }
 0x337   : > { %v2356_v61 = vpop.f32.mrf.mxu1  ;;  %v2368_v62 = vpop.f32.mrf.mxu0 }
 0x339   : > { %1230 = vadd.xlane.f32.xlu0 %v1229_v63  ;;  %v858_v2 = vpop.f32.mrf.mxu1 }
 0x33a   : > { %v2888_v30 = vadd.f32 %v858_v2, %v621_v43 }
 0x33b   : > { %v2361_v11 = vpop.f32.mrf.mxu1 }
 0x33c   : > { %v920_v32 = vsel %vm913_vm4, %v2888_v30, -inf }
 0x33d   : > { %1233 = vadd.xlane.f32.xlu0 %v1232_v12  ;;  %v861_v14 = vpop.f32.mrf.mxu1 }
 0x33e   : > { %v2932_v14 = vpack.c.bf16 %v2795_v21, %v2795_v21 }
 0x33f   : > { %v2362_v17 = vpop.f32.mrf.mxu1 }
 0x341   : > { %1186 = vadd.xlane.f32.xlu0 %v1185_v19 }
 0x345   : > { %1189 = vadd.xlane.f32.xlu0 %v1188_v22 }
 0x346   : > { %1205 = vrot.lane.b32.xlu1 %v2815_v26, %s2636_s30  ;;  %v2896_v26 = vpack.c.bf16 %v2785_v16, %v2785_v16 }
 0x349   : > { %1239 = vadd.xlane.f32.xlu0 %v1238_v25 }
 0x34d   : > { %1192 = vadd.xlane.f32.xlu0 %v1191_v28 }
 0x351   : > { %1195 = vadd.xlane.f32.xlu0 %v1194_v31 }
 0x355   : > { %921 = vmax.xlane.f32.xlu0 %v920_v32 }
 0x36a   : > { %1236 = vadd.xlane.f32.xlu1 %v1235_v33 }
 0x36b   : > { %967 = vrot.lane.b32.xlu0 %v2896_v26, %s2637_s16 }
 0x37b   : > { %1018 = vrot.lane.b32.xlu1 %v2902_v34, %s2637_s16 }
 0x37f   : > { %1116 = vrot.lane.b32.xlu1 %v2908_v35, %s2637_s16 }
 0x3b6   : > { %v916_v36 = vpop.xlane.xlu0 %915 }
 0x3b7   : > { %v926_v37 = vsub.f32 %v761_v45, %v916_v36 }
 0x3b9   : > { %v930_v38 = vmul.f32 1.442695, %v926_v37 }
 0x3bb   : > { %2547 = vpow2.f32 %v930_v38 }
 0x3be   : > { %v925_v39 = vpop.xlane.xlu0 %924  ;;  %v919_v40 = vpop.xlane.xlu1 %918 }
 0x3bf   : > { %v929_v41 = vsub.f32 %v908_v53, %v925_v39  ;;  %v927_v42 = vsub.f32 %v810_v52, %v919_v40 }
 0x3c1   : > { %v936_v43 = vmul.f32 1.442695, %v929_v41  ;;  %v932_v44 = vmul.f32 1.442695, %v927_v42 }
 0x3c2   : > { %v2912_v46 = vpop.xlane.xlu0 %1230  ;;  %v1206_v47 = vpop.permute.xlu1 %1205 }
 0x3c3   : > { %2549 = vpow2.f32 %v936_v43  ;;  %2483 = vpush %v1206_v47  ;;  %v1241_v39 = vadd.f32 1e-24, %v2912_v46 }
 0x3c4   : > { %2551 = vpow2.f32 %v932_v44 }
 0x3c6   : > { %v1234_v48 = vpop.xlane.xlu0 %1233 }
 0x3c7   : > { %v1242_v49 = vadd.f32 1e-24, %v1234_v48 }
 0x3c8   : > { %v2914_v50 = vpop.eup %2547 }
 0x3c9   : > { %2553 = vrsqrt.f32 %v1242_v49  ;;  %v938_v45 = vsel %vm913_vm4, %v2914_v50, 0.0 }
 0x3ca   : > { %v1187_v51 = vpop.xlane.xlu0 %1186  ;;  %939 = vadd.xlane.f32.xlu0 %v938_v45 }
 0x3cb   : > { %v1197_v40 = vadd.f32 1e-24, %v1187_v51 }
 0x3ce   : > { %v1190_v53 = vpop.xlane.xlu0 %1189 }
 0x3cf   : > { %v1198_v11 = vadd.f32 1e-24, %v1190_v53 }
 0x3d0   : > { %v2918_v52 = vpop.eup %2549 }
 0x3d1   : > { %v947_v54 = vsel %vm913_vm4, %v2918_v52, 0.0  ;;  %v2922_v55 = vpop.eup %2551  ;;  %2555 = vrsqrt.f32 %v1198_v11 }
 0x3d2   : > { %v1240_v56 = vpop.xlane.xlu0 %1239  ;;  %948 = vadd.xlane.f32.xlu0 %v947_v54  ;;  %v941_v57 = vsel %vm913_vm4, %v2922_v55, 0.0 }
 0x3d3   : > { %v1244_v12 = vadd.f32 1e-24, %v1240_v56 }
 0x3d5   : > { %2557 = vrsqrt.f32 %v1244_v12 }
 0x3d6   : > { %v2554_v58 = vpop.eup %2553  ;;  %v1193_v59 = vpop.xlane.xlu0 %1192  ;;  %942 = vadd.xlane.f32.xlu0 %v941_v57 }
 0x3d7   : > { %v1250_v60 = vmul.f32 %v2554_v58, %v2789_v18  ;;  %v1199_v43 = vadd.f32 1e-24, %v1193_v59 }
 0x3d9   : > { %v1258_v61 = vpack.c.bf16 %v1250_v60, %v1250_v60 }
 0x3da   : > { %v1196_v62 = vpop.xlane.xlu0 %1195 }
 0x3db   : > { %1317 = vrot.lane.b32.xlu1 %v1258_v61, %s2634_s24  ;;  %v1200_v13 = vadd.f32 1e-24, %v1196_v62 }
 0x3dd   : > { %2559 = vrsqrt.f32 %v1200_v13 }
 0x3de   : > { %v922_v63 = vpop.xlane.xlu0 %921  ;;  %v2556_v19 = vpop.eup %2555 }
 0x3df   : > { %v928_v15 = vsub.f32 %v2888_v30, %v922_v63 }
 0x3e1   : > { %v934_v22 = vmul.f32 1.442695, %v928_v15 }
 0x3e2   : > { %v968_v0 = vpop.permute.xlu0 %967  ;;  %v2558_v25 = vpop.eup %2557 }
 0x3e3   : > { %v975_v2 = vsel %vm973_vm5, %v968_v0, 0  ;;  %2561 = vpow2.f32 %v934_v22  ;;  %v1252_v36 = vmul.f32 %v2558_v25, %v2801_v23 }
 0x3e4   : > { %2370 = vmatpush3.bf16.msra.mxu1 %v975_v2  ;;  %2563 = vrsqrt.f32 %v1241_v39 }
 0x3e5   : > { %2381 = vmatprep.subr.bf16.mxu1 %v2631_v1  ;;  %v1260_v30 = vpack.c.bf16 %v1252_v36, %v1252_v36  ;;  %2565 = vrsqrt.f32 %v1197_v40 }
 0x3ea   : > { %v2560_v31 = vpop.eup %2559 }
 0x3ec   : > { %1067 = vrot.lane.b32.xlu0 %v2932_v14, %s2637_s16 }
 0x3f3   : > { %v1237_v17 = vpop.xlane.xlu1 %1236 }
 0x3f4   : > { %s2484_s17 = spop %2483  ;;  %v1243_v42 = vadd.f32 1e-24, %v1237_v17 }
 0x3f5   : > { %v1208_v20 = vstv %s2484_s17 }
 0x3f6   : > { %v1210_v24 = vmul.f32 %v2556_v19, %v1208_v20  ;;  %v1212_v32 = vmul.f32 %v2560_v31, %v1208_v20  ;;  %2567 = vrsqrt.f32 %v1243_v42 }
 0x3f7   : > { %v1019_v27 = vpop.permute.xlu1 %1018  ;;  %2569 = vrsqrt.f32 %v1199_v43 }
 0x3f8   : > { %v1024_v28 = vsel %vm973_vm5, %v1019_v27, 0  ;;  %v1214_v29 = vmul.f32 %v1210_v24, %v2789_v18  ;;  %v1216_v37 = vmul.f32 %v1212_v32, %v2801_v23  ;;  %v2945_v18 = vpop.eup %2561 }
 0x3f9   : > { %2376 = vmatpush3.bf16.msra.mxu0 %v1024_v28  ;;  %v944_v41 = vsel %vm913_vm4, %v2945_v18, 0.0  ;;  %v2564_v23 = vpop.eup %2563 }
 0x3fa   : > { %v1254_v33 = vpack.c.bf16 %v1214_v29, %v1214_v29  ;;  %2387 = vmatprep.subr.bf16.mxu0 %v2631_v1  ;;  %v1256_v38 = vpack.c.bf16 %v1216_v37, %v1216_v37  ;;  %v2566_v44 = vpop.eup %2565  ;;  %v1249_v48 = vmul.f32 %v2564_v23, %v2785_v16 }
 0x3fb   : > { %v1209_v47 = vmul.f32 %v2566_v44, %v1208_v20  ;;  %v1117_v13 = vpop.permute.xlu1 %1116 }
 0x3fc   : > { %1314 = vrot.lane.b32.xlu1 %v1254_v33, %s2635_s25  ;;  %v1257_v49 = vpack.c.bf16 %v1249_v48, %v1249_v48  ;;  %v1122_v17 = vsel %vm973_vm5, %v1117_v13, 0 }
 0x3fd   : > { %v1213_v45 = vmul.f32 %v1209_v47, %v2785_v16 }
 0x3ff   : > { %v1253_v54 = vpack.c.bf16 %v1213_v45, %v1213_v45 }
 0x400   : > { %1421 = vrot.lane.b32.xlu1 %v1260_v30, %s2634_s24 }
 0x403   : > { %v2568_v46 = vpop.eup %2567 }
 0x404   : > { %1418 = vrot.lane.b32.xlu1 %v1256_v38, %s2635_s25  ;;  %v2570_v51 = vpop.eup %2569  ;;  %v1251_v56 = vmul.f32 %v2568_v46, %v2795_v21 }
 0x405   : > { %v1211_v53 = vmul.f32 %v2570_v51, %v1208_v20 }
 0x406   : > { %v1259_v57 = vpack.c.bf16 %v1251_v56, %v1251_v56 }
 0x407   : > { %v1215_v58 = vmul.f32 %v1211_v53, %v2795_v21  ;;  %v622_v53 = vld [vmem:[%s3166_s6 + $0x4] sm:$0xf] }
 0x409   : > { %v1255_v59 = vpack.c.bf16 %v1215_v58, %v1215_v58 }
 0x40b   : > { %945 = vadd.xlane.f32.xlu0 %v944_v41 }
 0x421   : > { %1265 = vrot.lane.b32.xlu0 %v1257_v49, %s2634_s24 }
 0x425   : > { %1262 = vrot.lane.b32.xlu0 %v1253_v54, %s2635_s25 }
 0x429   : > { %1369 = vrot.lane.b32.xlu0 %v1259_v57, %s2634_s24  ;;  %s2638_s24 = smov 48  }
 0x42d   : > { %1366 = vrot.lane.b32.xlu0 %v1255_v59, %s2635_s25  ;;  %s532_s25 = scalar_lea.vmem %s3175_s15, %s2284_s26 }
 0x44d   : > { %v1318_v20 = vpop.permute.xlu1 %1317 }
 0x453   : > { %v940_v60 = vpop.xlane.xlu0 %939 }
 0x454   : > { %2571 = vrcp.f32 %v940_v60 }
 0x45b   : > { %v949_v16 = vpop.xlane.xlu0 %948 }
 0x45f   : > { %v943_v61 = vpop.xlane.xlu0 %942 }
 0x460   : > { %2573 = vrcp.f32 %v943_v61 }
 0x461   : > { %v2572_v62 = vpop.eup %2571  ;;  %2575 = vrcp.f32 %v949_v16 }
 0x462   : > { %v954_v63 = vmul.f32 %v2572_v62, %v2914_v50 }
 0x463   : > { %v1068_v0 = vpop.permute.xlu0 %1067 }
 0x464   : > { %v1073_v2 = vsel %vm973_vm5, %v1068_v0, 0  ;;  %v958_v11 = vpack.c.bf16 %v954_v63, %v954_v63 }
 0x466   : > { %2372 = vmatmul.mubr.msk.bf16.vlgmr.msra.gmra.mxu1 %vm969_vm6, %v958_v11 }
 0x467   : > { %2382 = vmatpush3.bf16.msra.mxu1 %v1073_v2  ;;  %2383 = vmatprep.mubr.msk.bf16.mxu1 %vm2632_vm0, %v2631_v1 }
 0x468   : > { %2393 = vmatprep.subr.bf16.mxu1 %v2631_v1 }
 0x46d   : > { %v2574_v21 = vpop.eup %2573 }
 0x46e   : > { %v955_v12 = vmul.f32 %v2574_v21, %v2922_v55  ;;  %v2576_v50 = vpop.eup %2575  ;;  %v1315_v24 = vpop.permute.xlu1 %1314  ;;  %v1323_v55 = vsel %vm719_vm3, %v1318_v20, 0 }
 0x46f   : > { %v957_v19 = vmul.f32 %v2576_v50, %v2918_v52 }
 0x470   : > { %v959_v15 = vpack.c.bf16 %v955_v12, %v955_v12 }
 0x471   : > { %v961_v22 = vpack.c.bf16 %v957_v19, %v957_v19 }
 0x472   : > { %2378 = vmatmul.mubr.msk.bf16.vlgmr.msra.gmra.mxu0 %vm969_vm6, %v959_v15  ;;  %v1422_v25 = vpop.permute.xlu1 %1421 }
 0x473   : > { %2388 = vmatpush3.bf16.msra.mxu0 %v1122_v17  ;;  %2389 = vmatprep.mubr.msk.bf16.mxu0 %vm2632_vm0, %v2631_v1  ;;  %v1427_v27 = vsel %vm719_vm3, %v1422_v25, 0 }
 0x474   : > { %2399 = vmatprep.subr.bf16.mxu0 %v2631_v1 }
 0x476   : > { %v1419_v52 = vpop.permute.xlu1 %1418 }
 0x47a   : > { %2390 = vmatmul.mubr.msk.bf16.vlgmr.msra.gmra.mxu0 %vm969_vm6, %v961_v22 }
 0x47b   : > { %2400 = vmatpush3.bf16.xpose.msra.mxu0 %v1323_v55  ;;  %2401 = vmatprep.mubr.msk.bf16.mxu0 %vm2632_vm0, %v2631_v1 }
 0x47c   : > { %2411 = vmatprep.subr.bf16.mxu0 %v2631_v1 }
 0x482   : > { %2402 = vmatmul.mubr.msk.bf16.vlgmr.msra.gmra.mxu0 %vm719_vm3, %v1315_v24 }
 0x483   : > { %2412 = vmatpush3.bf16.xpose.msra.mxu0 %v1427_v27  ;;  %2413 = vmatprep.mubr.msk.bf16.mxu0 %vm2632_vm0, %v2631_v1 }
 0x484   : > { %2423 = vmatprep.subr.bf16.mxu0 %v2631_v1 }
 0x48a   : > { %2414 = vmatmul.mubr.msk.bf16.vlgmr.msra.gmra.mxu0 %vm719_vm3, %v1419_v52 }
 0x48b   : > { %2425 = vmatprep.mubr.msk.bf16.mxu0 %vm2632_vm0, %v2631_v1 }
 0x494   : > { %v946_v28 = vpop.xlane.xlu0 %945 }
 0x495   : > { %2577 = vrcp.f32 %v946_v28 }
 0x498   : > { %v1266_v29 = vpop.permute.xlu0 %1265 }
 0x499   : > { %v1271_v30 = vsel %vm719_vm3, %v1266_v29, 0 }
 0x49c   : > { %v1263_v36 = vpop.permute.xlu0 %1262 }
 0x4a0   : > { %v1370_v37 = vpop.permute.xlu0 %1369 }
 0x4a1   : > { %v1375_v38 = vsel %vm719_vm3, %v1370_v37, 0 }
 0x4a2   : > { %v2578_v31 = vpop.eup %2577 }
 0x4a3   : > { %v956_v32 = vmul.f32 %v2578_v31, %v2945_v18 }
 0x4a4   : > { %v1367_v18 = vpop.permute.xlu0 %1366 }
 0x4a5   : > { %v960_v33 = vpack.c.bf16 %v956_v32, %v956_v32 }
 0x4a7   : > { %2384 = vmatmul.mubr.msk.bf16.vlgmr.msra.gmra.mxu1 %vm969_vm6, %v960_v33 }
 0x4a8   : > { %2394 = vmatpush3.bf16.xpose.msra.mxu1 %v1271_v30  ;;  %2395 = vmatprep.mubr.msk.bf16.mxu1 %vm2632_vm0, %v2631_v1 }
 0x4a9   : > { %2405 = vmatprep.subr.bf16.mxu1 %v2631_v1 }
 0x4af   : > { %2396 = vmatmul.mubr.msk.bf16.vlgmr.msra.gmra.mxu1 %vm719_vm3, %v1263_v36 }
 0x4b0   : > { %2406 = vmatpush3.bf16.xpose.msra.mxu1 %v1375_v38  ;;  %2407 = vmatprep.mubr.msk.bf16.mxu1 %vm2632_vm0, %v2631_v1 }
 0x4b1   : > { %2417 = vmatprep.subr.bf16.mxu1 %v2631_v1 }
 0x4b7   : > { %2408 = vmatmul.mubr.msk.bf16.vlgmr.msra.gmra.mxu1 %vm719_vm3, %v1367_v18 }
 0x4b8   : > { %2419 = vmatprep.mubr.msk.bf16.mxu1 %vm2632_vm0, %v2631_v1 }
 0x526   : > { %v1011_v39 = vpop.f32.mrf.mxu1 }
 0x528   : > { %v2373_v40 = vpop.f32.mrf.mxu1 }
 0x52a   : > { %v1014_v41 = vpop.f32.mrf.mxu1 }
 0x52c   : > { %v2374_v42 = vpop.f32.mrf.mxu1 }
 0x532   : > { %v1060_v43 = vpop.f32.mrf.mxu0 }
 0x533   : > { %v1168_v23 = vcombine.low %v1011_v39, %v1060_v43 }
 0x534   : > { %v2379_v44 = vpop.f32.mrf.mxu0 }
 0x536   : > { %v1063_v47 = vpop.f32.mrf.mxu0 }
 0x538   : > { %v2380_v48 = vpop.f32.mrf.mxu0 }
 0x53a   : > { %v1158_v49 = vpop.f32.mrf.mxu0 }
 0x53c   : > { %v2391_v45 = vpop.f32.mrf.mxu0 }
 0x53e   : > { %v1161_v46 = vpop.f32.mrf.mxu0 }
 0x540   : > { %v2392_v51 = vpop.f32.mrf.mxu0 }
 0x542   : > { %v1359_v54 = vpop.f32.mrf.mxu0 }
 0x543   : > { %v1360_v56 = vadd.f32 %v1359_v54, %v622_v53 }
 0x544   : > { %v2403_v57 = vpop.f32.mrf.mxu0 }
 0x545   : > { %v1472_v58 = vsel %vm913_vm4, %v1360_v56, -inf }
 0x546   : > { %1473 = vmax.xlane.f32.xlu1 %v1472_v58  ;;  %v1362_v59 = vpop.f32.mrf.mxu0 }
 0x548   : > { %v2404_v60 = vpop.f32.mrf.mxu0 }
 0x54a   : > { %v1463_v16 = vpop.f32.mrf.mxu0 }
 0x54b   : > { %v1464_v27 = vadd.f32 %v1463_v16, %v622_v53 }
 0x54c   : > { %v2415_v61 = vpop.f32.mrf.mxu0 }
 0x54d   : > { %v1478_v29 = vsel %vm913_vm4, %v1464_v27, -inf }
 0x54e   : > { %v1466_v62 = vpop.f32.mrf.mxu0 }
 0x550   : > { %v2416_v63 = vpop.f32.mrf.mxu0 }
 0x557   : > { %1517 = vrot.lane.b32.xlu1 %v2896_v26, %s2638_s24 }
 0x567   : > { %v1109_v0 = vpop.f32.mrf.mxu1 }
 0x568   : > { %v1169_v2 = vcombine.low %v1109_v0, %v1158_v49 }
 0x569   : > { %v2385_v11 = vpop.f32.mrf.mxu1 }
 0x56a   : > { %v3004_v21 = vpack.c.bf16 %v1169_v2, %v1168_v23 }
 0x56b   : > { %v1112_v12 = vpop.f32.mrf.mxu1 }
 0x56d   : > { %v2386_v13 = vpop.f32.mrf.mxu1 }
 0x56f   : > { %v1307_v15 = vpop.f32.mrf.mxu1 }
 0x570   : > { %v1308_v50 = vadd.f32 %v1307_v15, %v622_v53 }
 0x571   : > { %v2397_v17 = vpop.f32.mrf.mxu1 }
 0x572   : > { %v1469_v19 = vsel %vm913_vm4, %v1308_v50, -inf }
 0x573   : > { %1470 = vmax.xlane.f32.xlu0 %v1469_v19  ;;  %v1310_v20 = vpop.f32.mrf.mxu1  ;;  %v2519_v19 = vld [vmem:[%s3163_s3] sm:$0xff]  }
 0x575   : > { %v2398_v22 = vpop.f32.mrf.mxu1 }
 0x576   : > { %v2520_v22 = vld [vmem:[%s3163_s3 + $0x8] sm:$0xff]  }
 0x577   : > { %v1411_v24 = vpop.f32.mrf.mxu1 }
 0x578   : > { %v1412_v55 = vadd.f32 %v1411_v24, %v622_v53 }
 0x579   : > { %v2409_v25 = vpop.f32.mrf.mxu1 }
 0x57a   : > { %v1475_v26 = vsel %vm913_vm4, %v1412_v55, -inf }
 0x57b   : > { %1476 = vmax.xlane.f32.xlu0 %v1475_v26  ;;  %v1414_v52 = vpop.f32.mrf.mxu1 }
 0x57d   : > { %v2410_v28 = vpop.f32.mrf.mxu1 }
 0x57f   : > { %1479 = vmax.xlane.f32.xlu0 %v1478_v29 }
 0x5cf   : > { %v1474_v31 = vpop.xlane.xlu1 %1473 }
 0x5d0   : > { %v1482_v32 = vsub.f32 %v1360_v56, %v1474_v31 }
 0x5d2   : > { %v1487_v33 = vmul.f32 1.442695, %v1482_v32 }
 0x5d3   : > { %v1518_v36 = vpop.permute.xlu1 %1517 }
 0x5d4   : > { %2579 = vpow2.f32 %v1487_v33  ;;  %v1523_v30 = vsel %vm973_vm5, %v1518_v36, 0 }
 0x5d5   : > { %2418 = vmatpush3.bf16.msra.mxu1 %v1523_v30 }
 0x5d6   : > { %2429 = vmatprep.subr.bf16.mxu1 %v2631_v1 }
 0x5e1   : > { %v2580_v37 = vpop.eup %2579 }
 0x5e2   : > { %v1496_v38 = vsel %vm913_vm4, %v2580_v37, 0.0 }
 0x5e3   : > { %1497 = vadd.xlane.f32.xlu0 %v1496_v38 }
 0x5fc   : > { %v1471_v18 = vpop.xlane.xlu0 %1470 }
 0x5fd   : > { %v1481_v39 = vsub.f32 %v1308_v50, %v1471_v18 }
 0x5ff   : > { %v1485_v40 = vmul.f32 1.442695, %v1481_v39 }
 0x601   : > { %2581 = vpow2.f32 %v1485_v40 }
 0x604   : > { %v1477_v41 = vpop.xlane.xlu0 %1476 }
 0x605   : > { %v1483_v42 = vsub.f32 %v1412_v55, %v1477_v41 }
 0x607   : > { %v1489_v43 = vmul.f32 1.442695, %v1483_v42 }
 0x608   : > { %v1480_v23 = vpop.xlane.xlu0 %1479 }
 0x609   : > { %2583 = vpow2.f32 %v1489_v43  ;;  %v1484_v44 = vsub.f32 %v1464_v27, %v1480_v23 }
 0x60b   : > { %v1491_v47 = vmul.f32 1.442695, %v1484_v44 }
 0x60d   : > { %2585 = vpow2.f32 %v1491_v47  ;;  %v2264_v47 = vld [vmem:[%s3164_s4] ss:$0 sm:$0xff] }
 0x60e   : > { %v2582_v48 = vpop.eup %2581 }
 0x60f   : > { %v1493_v49 = vsel %vm913_vm4, %v2582_v48, 0.0 }
 0x610   : > { %1494 = vadd.xlane.f32.xlu1 %v1493_v49 }
 0x616   : > { %v2584_v45 = vpop.eup %2583 }
 0x617   : > { %v1499_v46 = vsel %vm913_vm4, %v2584_v45, 0.0 }
 0x618   : > { %1500 = vadd.xlane.f32.xlu1 %v1499_v46 }
 0x61a   : > { %v2586_v51 = vpop.eup %2585 }
 0x61b   : > { %v1502_v53 = vsel %vm913_vm4, %v2586_v51, 0.0 }
 0x61c   : > { %1503 = vadd.xlane.f32.xlu0 %v1502_v53 }
 0x629   : > { %1613 = vrot.lane.b32.xlu1 %v2932_v14, %s2638_s24 }
 0x62d   : > { %1661 = vrot.lane.b32.xlu1 %v2908_v35, %s2638_s24 }
 0x632   : > { %1565 = vrot.lane.b32.xlu0 %v2902_v34, %s2638_s24 }
 0x66c   : > { %v1498_v54 = vpop.xlane.xlu0 %1497 }
 0x66d   : > { %2587 = vrcp.f32 %v1498_v54 }
 0x67a   : > { %v2588_v58 = vpop.eup %2587 }
 0x67b   : > { %v1510_v62 = vmul.f32 %v2588_v58, %v2580_v37 }
 0x67d   : > { %v1514_v2 = vpack.c.bf16 %v1510_v62, %v1510_v62 }
 0x699   : > { %v1495_v56 = vpop.xlane.xlu1 %1494 }
 0x69a   : > { %2589 = vrcp.f32 %v1495_v56 }
 0x6a1   : > { %v1501_v57 = vpop.xlane.xlu1 %1500 }
 0x6a2   : > { %2591 = vrcp.f32 %v1501_v57 }
 0x6a5   : > { %v1614_v59 = vpop.permute.xlu1 %1613  ;;  %v1504_v60 = vpop.xlane.xlu0 %1503 }
 0x6a6   : > { %2593 = vrcp.f32 %v1504_v60  ;;  %v1619_v34 = vsel %vm973_vm5, %v1614_v59, 0 }
 0x6a7   : > { %v2590_v16 = vpop.eup %2589 }
 0x6a8   : > { %v1509_v61 = vmul.f32 %v2590_v16, %v2582_v48 }
 0x6a9   : > { %v1566_v14 = vpop.permute.xlu0 %1565  ;;  %v1662_v0 = vpop.permute.xlu1 %1661 }
 0x6aa   : > { %v1571_v63 = vsel %vm973_vm5, %v1566_v14, 0  ;;  %v1513_v35 = vpack.c.bf16 %v1509_v61, %v1509_v61  ;;  %v1667_v11 = vsel %vm973_vm5, %v1662_v0, 0 }
 0x6ab   : > { %2424 = vmatpush3.bf16.msra.mxu0 %v1571_v63 }
 0x6ac   : > { %2420 = vmatmul.mubr.msk.bf16.vlgmr.msra.gmra.mxu1 %vm969_vm6, %v1513_v35  ;;  %2435 = vmatprep.subr.bf16.mxu0 %v2631_v1 }
 0x6ad   : > { %2430 = vmatpush3.bf16.msra.mxu1 %v1619_v34  ;;  %2431 = vmatprep.mubr.msk.bf16.mxu1 %vm2632_vm0, %v2631_v1  ;;  %v2521_v34 = vld [vmem:[%s3169_s9 + $0x8] sm:$0xff]  }
 0x6ae   : > { %2426 = vmatmul.mubr.msk.bf16.vlgmr.msra.gmra.mxu0 %vm969_vm6, %v1514_v2  ;;  %2441 = vmatprep.subr.bf16.mxu1 %v2631_v1  ;;  %v2522_v2 = vld [vmem:[%s3169_s9] sm:$0xff]  }
 0x6af   : > { %v2592_v12 = vpop.eup %2591  ;;  %2436 = vmatpush3.bf16.msra.mxu0 %v1667_v11  ;;  %2437 = vmatprep.mubr.msk.bf16.mxu0 %vm2632_vm0, %v2631_v1  ;;  %v2523_v11 = vld [vmem:[%s3171_s11 + $0x38] sm:$0xff]  }
 0x6b0   : > { %v1511_v13 = vmul.f32 %v2592_v12, %v2584_v45  ;;  %2447 = vmatprep.subr.bf16.mxu0 %v2631_v1 }
 0x6b2   : > { %v1515_v15 = vpack.c.bf16 %v1511_v13, %v1511_v13 }
 0x6b3   : > { %v2594_v50 = vpop.eup %2593 }
 0x6b4   : > { %2432 = vmatmul.mubr.msk.bf16.vlgmr.msra.gmra.mxu1 %vm969_vm6, %v1515_v15  ;;  %v1512_v17 = vmul.f32 %v2594_v50, %v2586_v51 }
 0x6b5   : > { %2443 = vmatprep.mubr.msk.bf16.mxu1 %vm2632_vm0, %v2631_v1  ;;  %2442 = vmatpush3.bf16.msra.mxu1 %v2520_v22  ;;  %v2265_v22 = vld [vmem:[%s3167_s7] ss:$0 sm:$0xff] }
 0x6b6   : > { %v1516_v20 = vpack.c.bf16 %v1512_v17, %v1512_v17  ;;  %2453 = vmatprep.subr.bf16.mxu1 %v2631_v1 }
 0x6b8   : > { %2438 = vmatmul.mubr.msk.bf16.vlgmr.msra.gmra.mxu0 %vm969_vm6, %v1516_v20 }
 0x6b9   : > { %2448 = vmatpush3.bf16.msra.mxu0 %v2519_v19  ;;  %2449 = vmatprep.mubr.msk.bf16.mxu0 %vm2632_vm0, %v2631_v1 }
 0x6ba   : > { %2461 = vmatprep.subr.bf16.mxu0 %v2631_v1 }
 0x6c0   : > { %2450 = vmatmul.mubr.msk.bf16.vlgmr.msra.gmra.mxu0 %vm719_vm3, %v3004_v21 }
 0x6c1   : > { %2477 = vmatprep.mubr.msk.bf16.mxu0 %vm2632_vm0, %v2631_v1  ;;  %2462 = vmatpush3.bf16.msra.mxu0 %v2523_v11 }
 0x6c2   : > { %2463 = vmatprep.subr.bf16.mxu0 %v2631_v1 }
 0x6c5   : > { %2464 = vmatpush3.bf16.msra.mxu0 %v2524_v3 }
 0x6c6   : > { %2465 = vmatprep.subr.bf16.mxu0 %v2631_v1 }
 0x6c9   : > { %2466 = vmatpush3.bf16.msra.mxu0 %v2525_v5 }
 0x6ca   : > { %2467 = vmatprep.subr.bf16.mxu0 %v2631_v1 }
 0x6cd   : > { %2468 = vmatpush3.bf16.msra.mxu0 %v2526_v6 }
 0x6ce   : > { %2469 = vmatprep.subr.bf16.mxu0 %v2631_v1 }
 0x76c   : > { %v1559_v24 = vpop.f32.mrf.mxu1 }
 0x76e   : > { %v2421_v55 = vpop.f32.mrf.mxu1  ;;  %v1607_v25 = vpop.f32.mrf.mxu0 }
 0x76f   : > { %v1713_v36 = vcombine.low %v1559_v24, %v1607_v25  ;;  %v2266_v55 = vld [vmem:[%s3168_s8] ss:$0 sm:$0xff] }
 0x770   : > { %v1562_v27 = vpop.f32.mrf.mxu1  ;;  %v2427_v26 = vpop.f32.mrf.mxu0 }
 0x772   : > { %v2422_v52 = vpop.f32.mrf.mxu1  ;;  %v1610_v28 = vpop.f32.mrf.mxu0 }
 0x774   : > { %v2428_v29 = vpop.f32.mrf.mxu0  ;;  %v1655_v31 = vpop.f32.mrf.mxu1 }
 0x776   : > { %v2433_v21 = vpop.f32.mrf.mxu1 }
 0x778   : > { %v1658_v32 = vpop.f32.mrf.mxu1  ;;  %v1703_v33 = vpop.f32.mrf.mxu0 }
 0x779   : > { %v1714_v30 = vcombine.low %v1655_v31, %v1703_v33 }
 0x77a   : > { %v2434_v37 = vpop.f32.mrf.mxu1  ;;  %v2439_v38 = vpop.f32.mrf.mxu0 }
 0x77b   : > { %v1717_v18 = vpack.c.bf16 %v1714_v30, %v1713_v36  ;;  %v2530_v38 = vld [vmem:[%s3171_s11] sm:$0xff]  }
 0x77c   : > { %v1706_v39 = vpop.f32.mrf.mxu0 }
 0x77d   : > { %2444 = vmatmul.mubr.msk.bf16.vlgmr.msra.gmra.mxu1 %vm719_vm3, %v1717_v18  ;;  %v2267_v18 = vld [vmem:[%s3170_s10] ss:$0 sm:$0xff] }
 0x77e   : > { %v2440_v40 = vpop.f32.mrf.mxu0  ;;  %2457 = vmatprep.mubr.msk.bf16.mxu1 %vm2632_vm0, %v2631_v1  ;;  %2454 = vmatpush3.bf16.msra.mxu1 %v2521_v34 }
 0x77f   : > { %2455 = vmatprep.subr.bf16.mxu1 %v2631_v1 }
 0x780   : > { %v1811_v41 = vpop.f32.mrf.mxu0 }
 0x782   : > { %v2451_v42 = vpop.f32.mrf.mxu0  ;;  %2456 = vmatpush3.bf16.msra.mxu1 %v2522_v2 }
 0x784   : > { %v1814_v43 = vpop.f32.mrf.mxu0 }
 0x786   : > { %v2452_v23 = vpop.f32.mrf.mxu0 }
 0x83d   : > { %v1761_v44 = vpop.f32.mrf.mxu1 }
 0x83e   : > { %v1812_v48 = vadd.f32 %v1811_v41, %v1761_v44 }
 0x83f   : > { %v2445_v49 = vpop.f32.mrf.mxu1 }
 0x840   : > { %v1825_v45 = vadd.f32 %v2264_v47, %v1812_v48 }
 0x841   : > { %v1764_v46 = vpop.f32.mrf.mxu1 }
 0x842   : > { %v1815_v51 = vadd.f32 %v1814_v43, %v1764_v46  ;;  %v1829_v53 = vsel %vm575_vm1, %v1825_v45, 0.0 }
 0x843   : > { %1830 = vadd.xlane.f32.xlu0 %v1829_v53  ;;  %v2446_v54 = vpop.f32.mrf.mxu1 }
 0x844   : > { %v1826_v56 = vadd.f32 %v2264_v47, %v1815_v51 }
 0x846   : > { %v1832_v57 = vsel %vm575_vm1, %v1826_v56, 0.0 }
 0x847   : > { %1833 = vadd.xlane.f32.xlu1 %v1832_v57  ;;  %v2271_v57 = vld [vmem:[%s3172_s12] ss:$0 sm:$0xff] }
 0x8cc   : > { %v1831_v58 = vpop.xlane.xlu0 %1830 }
 0x8cd   : > { %v1836_v59 = vmul.f32 0.03125, %v1831_v58 }
 0x8cf   : > { %v1838_v60 = vsub.f32 %v1825_v45, %v1836_v59 }
 0x8d0   : > { %v1834_v16 = vpop.xlane.xlu1 %1833 }
 0x8d1   : > { %v1837_v61 = vmul.f32 0.03125, %v1834_v16  ;;  %v1840_v62 = vmul.f32 %v1838_v60, %v1838_v60 }
 0x8d3   : > { %v1839_v14 = vsub.f32 %v1826_v56, %v1837_v61  ;;  %v1842_v63 = vsel %vm575_vm1, %v1840_v62, 0.0 }
 0x8d4   : > { %1843 = vadd.xlane.f32.xlu0 %v1842_v63 }
 0x8d5   : > { %v1841_v35 = vmul.f32 %v1839_v14, %v1839_v14 }
 0x8d7   : > { %v1845_v0 = vsel %vm575_vm1, %v1841_v35, 0.0 }
 0x8d8   : > { %1846 = vadd.xlane.f32.xlu0 %v1845_v0 }
 0x95d   : > { %v1844_v12 = vpop.xlane.xlu0 %1843 }
 0x95e   : > { %v1848_v13 = vmul.f32 0.03125, %v1844_v12 }
 0x960   : > { %v1850_v15 = vadd.f32 1e-05, %v1848_v13 }
 0x961   : > { %v1847_v50 = vpop.xlane.xlu0 %1846 }
 0x962   : > { %2595 = vrsqrt.f32 %v1850_v15  ;;  %v1849_v17 = vmul.f32 0.03125, %v1847_v50 }
 0x964   : > { %v1851_v19 = vadd.f32 1e-05, %v1849_v17 }
 0x966   : > { %2597 = vrsqrt.f32 %v1851_v19 }
 0x96f   : > { %v2596_v20 = vpop.eup %2595 }
 0x970   : > { %v1854_v24 = vmul.f32 %v2596_v20, %v1838_v60 }
 0x972   : > { %v1862_v25 = vmul.f32 %v2265_v22, %v1854_v24 }
 0x973   : > { %v2598_v27 = vpop.eup %2597 }
 0x974   : > { %v1855_v26 = vmul.f32 %v2598_v27, %v1839_v14  ;;  %v1870_v52 = vadd.f32 %v2266_v55, %v1862_v25 }
 0x976   : > { %v1863_v28 = vmul.f32 %v2265_v22, %v1855_v26  ;;  %v1874_v29 = vcombine.high %v1870_v52, %v1870_v52  ;;  %v3084_v33 = vadd.f32 %v1870_v52, %v539_v7  ;;  %v2527_v7 = vld [vmem:[%s3171_s11 + $0x18] sm:$0xff]   ;;  %v2280_v26 = vld [vmem:[%s3173_s13] ss:$0 sm:$0xff] }
 0x977   : > { %2470 = vmatpush3.bf16.msra.mxu0 %v2527_v7 }
 0x978   : > { %v1871_v31 = vadd.f32 %v2266_v55, %v1863_v28  ;;  %v3080_v32 = vadd.f32 %v1874_v29, %v540_v8  ;;  %2471 = vmatprep.subr.bf16.mxu0 %v2631_v1  ;;  %v2281_v28 = vld [vmem:[%s3174_s14] ss:$0 sm:$0xff] }
 0x97a   : > { %v1875_v21 = vcombine.high %v1871_v31, %v1871_v31  ;;  %v3088_v36 = vadd.f32 %v1871_v31, %v541_v9  ;;  %v1886_v37 = vcombine.low %v3084_v33, %v3080_v32  ;;  %v2528_v9 = vld [vmem:[%s3171_s11 + $0x10] sm:$0xff]  }
 0x97b   : > { %2472 = vmatpush3.bf16.msra.mxu0 %v2528_v9 }
 0x97c   : > { %v3092_v30 = vadd.f32 %v1875_v21, %v542_v10  ;;  %2473 = vmatprep.subr.bf16.mxu0 %v2631_v1  ;;  %v2529_v10 = vld [vmem:[%s3171_s11 + $0x8] sm:$0xff]  }
 0x97e   : > { %v1887_v4 = vcombine.low %v3088_v36, %v3092_v30 }
 0x97f   : > { %2474 = vmatpush3.bf16.msra.mxu0 %v2529_v10 }
 0x980   : > { %v1890_v8 = vpack.c.bf16 %v1887_v4, %v1886_v37  ;;  %2475 = vmatprep.subr.bf16.mxu0 %v2631_v1 }
 0x982   : > { %2458 = vmatmul.mubr.msk.bf16.vlgmr.msra.gmra.mxu1 %vm575_vm1, %v1890_v8 }
 0x983   : > { %2476 = vmatpush3.bf16.msra.mxu0 %v2530_v38 }
 0xa42   : > { %v1951_v39 = vpop.f32.mrf.mxu1 }
 0xa43   : > { %v1952_v40 = vadd.f32 %v2267_v18, %v1951_v39 }
 0xa44   : > { %v2459_v41 = vpop.f32.mrf.mxu1 }
 0xa45   : > { %v1960_v42 = vmul.f32 0.70710677, %v1952_v40  ;;  %v1958_v45 = vmul.f32 0.5, %v1952_v40 }
 0xa46   : > { %v1954_v43 = vpop.f32.mrf.mxu1 }
 0xa47   : > { %2599 = verf.f32 %v1960_v42  ;;  %v1955_v23 = vadd.f32 %v2267_v18, %v1954_v43 }
 0xa48   : > { %v2460_v44 = vpop.f32.mrf.mxu1 }
 0xa49   : > { %v1961_v47 = vmul.f32 0.70710677, %v1955_v23  ;;  %v1959_v46 = vmul.f32 0.5, %v1955_v23 }
 0xa4b   : > { %2601 = verf.f32 %v1961_v47 }
 0xa54   : > { %v2600_v1 = vpop.eup %2599 }
 0xa55   : > { %v1964_v48 = vadd.f32 1.0, %v2600_v1 }
 0xa57   : > { %v1966_v53 = vmul.f32 %v1964_v48, %v1958_v45 }
 0xa58   : > { %v2602_v49 = vpop.eup %2601 }
 0xa59   : > { %v1965_v51 = vadd.f32 1.0, %v2602_v49 }
 0xa5b   : > { %v1967_v54 = vmul.f32 %v1965_v51, %v1959_v46 }
 0xa5d   : > { %v1968_v56 = vpack.c.bf16 %v1967_v54, %v1966_v53 }
 0xa5f   : > { %2478 = vmatmul.mubr.bf16.vlgmr.msra.gmra.mxu0 %v1968_v56 }
 0xb1f   : > { %v2074_v58 = vpop.f32.mrf.mxu0 }
 0xb20   : > { %v2075_v59 = vadd.f32 %v2271_v57, %v2074_v58 }
 0xb21   : > { %v2479_v60 = vpop.f32.mrf.mxu0 }
 0xb22   : > { %v2083_v16 = vsel %vm575_vm1, %v2075_v59, 0.0 }
 0xb23   : > { %2084 = vadd.xlane.f32.xlu1 %v2083_v16  ;;  %v2077_v61 = vpop.f32.mrf.mxu0 }
 0xb24   : > { %v2078_v62 = vadd.f32 %v2271_v57, %v2077_v61 }
 0xb25   : > { %v2480_v14 = vpop.f32.mrf.mxu0 }
 0xb26   : > { %v2086_v63 = vsel %vm575_vm1, %v2078_v62, 0.0 }
 0xb27   : > { %2087 = vadd.xlane.f32.xlu0 %v2086_v63 }
 0xbac   : > { %v2085_v35 = vpop.xlane.xlu1 %2084 }
 0xbad   : > { %v2089_v0 = vmul.f32 0.03125, %v2085_v35 }
 0xbaf   : > { %v2091_v34 = vsub.f32 %v2075_v59, %v2089_v0 }
 0xbb0   : > { %v2088_v2 = vpop.xlane.xlu0 %2087 }
 0xbb1   : > { %v2090_v11 = vmul.f32 0.03125, %v2088_v2  ;;  %v2093_v12 = vmul.f32 %v2091_v34, %v2091_v34 }
 0xbb3   : > { %v2092_v13 = vsub.f32 %v2078_v62, %v2090_v11  ;;  %v2095_v15 = vsel %vm575_vm1, %v2093_v12, 0.0 }
 0xbb4   : > { %2096 = vadd.xlane.f32.xlu1 %v2095_v15 }
 0xbb5   : > { %v2094_v50 = vmul.f32 %v2092_v13, %v2092_v13 }
 0xbb7   : > { %v2098_v17 = vsel %vm575_vm1, %v2094_v50, 0.0 }
 0xbb8   : > { %2099 = vadd.xlane.f32.xlu0 %v2098_v17 }
 0xc3d   : > { %v2097_v19 = vpop.xlane.xlu1 %2096 }
 0xc3e   : > { %v2101_v20 = vmul.f32 0.03125, %v2097_v19 }
 0xc40   : > { %v2103_v22 = vadd.f32 1e-05, %v2101_v20 }
 0xc41   : > { %v2100_v24 = vpop.xlane.xlu0 %2099 }
 0xc42   : > { %2603 = vrsqrt.f32 %v2103_v22  ;;  %v2102_v55 = vmul.f32 0.03125, %v2100_v24 }
 0xc44   : > { %v2104_v25 = vadd.f32 1e-05, %v2102_v55 }
 0xc46   : > { %2605 = vrsqrt.f32 %v2104_v25 }
 0xc4f   : > { %v2604_v27 = vpop.eup %2603 }
 0xc50   : > { %v2107_v52 = vmul.f32 %v2604_v27, %v2091_v34 }
 0xc52   : > { %v2115_v29 = vmul.f32 %v2280_v26, %v2107_v52 }
 0xc53   : > { %v2606_v31 = vpop.eup %2605 }
 0xc54   : > { %v2123_v21 = vadd.f32 %v2281_v28, %v2115_v29  ;;  %v2108_v37 = vmul.f32 %v2606_v31, %v2092_v13 }
 0xc56   : > { %v2127_v4 = vcombine.high %v2123_v21, %v2123_v21  ;;  %v2131_v8 = vadd.f32 %v2123_v21, %v3084_v33  ;;  %v2116_v3 = vmul.f32 %v2280_v26, %v2108_v37 }
 0xc58   : > { %v2132_v5 = vadd.f32 %v2127_v4, %v3080_v32  ;;  %v2135_v6 = vpack.c.bf16 %v2131_v8, %v2131_v8  ;;  %v2124_v7 = vadd.f32 %v2281_v28, %v2116_v3 }
 0xc5a   : > { %v2136_v9 = vpack.c.bf16 %v2132_v5, %v2132_v5  ;;  %2140 = vst.msk [vmem:[%s532_s25] sm:$0x3] %vm2139_vm7, %v2135_v6  ;;  %v2128_v10 = vcombine.high %v2124_v7, %v2124_v7  ;;  %v2133_v38 = vadd.f32 %v2124_v7, %v3088_v36 }
 0xc5c   : > { %2141 = vst.msk [vmem:[%s532_s25 + $0x2] sm:$0x3] %vm2139_vm7, %v2136_v9  ;;  %v2134_v18 = vadd.f32 %v2128_v10, %v3092_v30  ;;  %v2137_v33 = vpack.c.bf16 %v2133_v38, %v2133_v38 }
 0xc5e   : > { %v2138_v39 = vpack.c.bf16 %v2134_v18, %v2134_v18  ;;  %2142 = vst.msk [vmem:[%s532_s25 + $0x4] sm:$0x3] %vm2139_vm7, %v2137_v33 }
 0xc60   : > { %2143 = vst.msk [vmem:[%s532_s25 + $0x6] sm:$0x3] %vm2139_vm7, %v2138_v39 }
 0xc61 PF: > { %s25_s20 = sadd.s32 1, %s2629_s20   ;;  %s3176_s18 = smov %s2625_s19 }
 0xc62   : > { %p22_p5 = scmp.ge.s32.totalorder %s25_s20, 4   ;;  %s3177_s19 = smov %s3179_s21 }
 0xc64   :  { %24 = sbr.rel (!%p22_p5) target bundleno = 2 (0x2), region = 110 }

// kernel: _lambda_.8
= control target key start
LH: loop header
LB: loop body
LE: loop exit
PB: predicated region body
PF: predicated region fallthrough
CT: control target
= control target key end

     0   :  { %s3017_s27 = smov 0   ;;  %s3019_s28 = smov 0   ;;  %s3500_s0 = inlined_call_operand.vmem [shape: bf16[2,4,4,32], index: 0, kind: input, shape index: {}]   ;;  %s3501_s1 = inlined_call_operand.vmem [shape: bf16[32,96], index: 1, kind: input, shape index: {}]   ;;  %s3502_s2 = inlined_call_operand.vmem [shape: f32[1,96], index: 2, kind: input, shape index: {}]   ;;  %s3503_s3 = inlined_call_operand.vmem [shape: bf16[32,32], index: 3, kind: input, shape index: {}]   ;;  %s3504_s4 = inlined_call_operand.vmem [shape: f32[1,32], index: 4, kind: input, shape index: {}, may-alias: {4,8,12,14,17}]   ;;  %s3505_s5 = inlined_call_operand.vmem [shape: f32[1,2], index: 5, kind: input, shape index: {}]   ;;  %s3506_s6 = inlined_call_operand.vmem [shape: f32[2,4,4], index: 6, kind: input, shape index: {}]   ;;  %s3507_s7 = inlined_call_operand.vmem [shape: f32[1,32], index: 7, kind: input, shape index: {}, may-alias: {7,13,16}]   ;;  %s3508_s8 = inlined_call_operand.vmem [shape: f32[1,32], index: 8, kind: input, shape index: {}, may-alias: {4,8,12,14,17}]   ;;  %s3509_s9 = inlined_call_operand.vmem [shape: bf16[32,128], index: 9, kind: input, shape index: {}]   ;;  %s3510_s10 = inlined_call_operand.vmem [shape: f32[1,128], index: 10, kind: input, shape index: {}]   ;;  %s3511_s11 = inlined_call_operand.vmem [shape: bf16[128,32], index: 11, kind: input, shape index: {}]   ;;  %s3512_s12 = inlined_call_operand.vmem [shape: f32[1,32], index: 12, kind: input, shape index: {}, may-alias: {4,8,12,14,17}]   ;;  %s3513_s13 = inlined_call_operand.vmem [shape: f32[1,32], index: 13, kind: input, shape index: {}, may-alias: {7,13,16}]   ;;  %s3514_s14 = inlined_call_operand.vmem [shape: f32[1,32], index: 14, kind: input, shape index: {}, may-alias: {4,8,12,14,17}]   ;;  %s3515_s15 = inlined_call_operand.vmem [shape: f32[4,4,4], index: 15, kind: input, shape index: {}]   ;;  %s3516_s16 = inlined_call_operand.vmem [shape: f32[1,32], index: 16, kind: input, shape index: {}, may-alias: {7,13,16}]   ;;  %s3517_s17 = inlined_call_operand.vmem [shape: f32[1,32], index: 17, kind: input, shape index: {}, may-alias: {4,8,12,14,17}]   ;;  %s3518_s18 = inlined_call_operand.vmem [shape: bf16[2,4,4,32], index: 18, kind: output, shape index: {}]  }
   0x1   :  { %3520 = sst [smem:[#allocation2_spill]] %s3500_s0  ;;  %s3021_s29 = smov 0  }
   0x2   :  { %3521 = sst [smem:[#allocation3_spill]] %s3501_s1 }
   0x3   :  { %3522 = sst [smem:[#allocation4_spill]] %s3502_s2 }
   0x4 LB: > { %s40_s30 = sadd.s32 1, %s2906_s28  ;;  %p2508_p0 = scmp.ge.s32.totalorder %s2910_s29, 1  ;;  %s2910_s29 = sphi %s3021_s29, %s28_s29   ;;  %s2906_s28 = sphi %s3019_s28, %s3527_s28   ;;  %s2902_s27 = sphi %s3017_s27, %s3526_s27  }
   0x5   : > { %p42_p1 = scmp.ge.s32.totalorder %s40_s30, 2  ;;  %p544_p2 = scmp.lt.s32.totalorder %s2910_s29, 3 }
   0x7   : > { %s3529_s30 = smov (%p42_p1, %s40_s30), 0  ;;  %p545_p3 = pnand %p2508_p0, %p544_p2 }
   0x8   : > { %s3523_s1 = sld [smem:[#allocation3_spill]] (!%p545_p3)  ;;  %p612_p4 = scmp.lt.s32.totalorder (!%p545_p3), %s2902_s27, 1 }
   0x9   : > { %548 = sbr.rel (%p545_p3) target bundleno = 3491 (0xda3), region = 92  ;;  %s3524_s24 = sld [smem:[#allocation2_spill]] (!%p545_p3) }
   0xa   : > { %s3525_s19 = sld [smem:[#allocation4_spill]] (!%p545_p3)  ;;  %s2914_s20 = smov (!%p545_p3), 96  }
   0xb   : > { %s2915_s23 = smov (!%p545_p3), 80   ;;  %s2917_s0 = smov (!%p545_p3), 127  }
   0xc   : > { %s2918_s21 = smov (!%p545_p3), 64  }
   0xe   : > { %v2794_v0 = vld [vmem:[%s3523_s1 + $0x8] sm:$0xff]   ;;  %v2912_v1 = vmov 0.0   ;;  %v2795_v2 = vld [vmem:[%s3523_s1] sm:$0xff]   ;;  %vm2913_vm0 = vmmov 0   ;;  %s3531_s27 = smov (!%p612_p4, %s2902_s27), 1  ;;  %vm678_vm1 = vcmask 261120  }
   0xf   : > { %2612 = vmatprep.subr.bf16.mxu1 %v2912_v1  ;;  %2638 = vmatprep.subr.bf16.mxu0 %v2912_v1  ;;  %s2559_s22 = sshll.u32 %s3531_s27, 3  ;;  %v3113_v26 = vld [vmem:[%s3505_s5] sm:$0x1]  ;;  %vm744_vm2 = vcmask 125952   ;;  %vm826_vm3 = vcmask 130048   ;;  %vm1024_vm4 = vcmask 27648  }
  0x10   : > { %2613 = vmatpush3.bf16.msra.mxu1 %v2794_v0  ;;  %2616 = vmatprep.mubr.msk.bf16.mxu1 %vm2913_vm0, %v2912_v1  ;;  %s619_s25 = scalar_lea.vmem %s3524_s24, %s2559_s22  ;;  %v2513_v14 = vld [vmem:[%s3525_s19] ss:$0 sm:$0xff]  ;;  %2756 = vpush %v3113_v26  ;;  %s2916_s24 = smov 112   ;;  %vm1084_vm5 = vcmask 1041408   ;;  %vm1080_vm6 = vcmask 31744   ;;  %vm2396_vm7 = vcmask 254976  }
  0x11   : > { %2614 = vmatprep.subr.bf16.mxu1 %v2912_v1  ;;  %2640 = vmatprep.mubr.msk.bf16.mxu0 %vm2913_vm0, %v2912_v1  ;;  %v3057_v3 = vld [vmem:[%s619_s25] sm:$0x3]  ;;  %v3059_v4 = vld [vmem:[%s619_s25 + $0x2] sm:$0x3]  ;;  %v3061_v5 = vld [vmem:[%s619_s25 + $0x4] sm:$0x3] }
  0x12   : > { %v3063_v6 = vld [vmem:[%s619_s25 + $0x6] sm:$0x3]  ;;  %v642_v7 = vunpack.c.l.bf16 %v3057_v3  ;;  %v643_v8 = vunpack.c.l.bf16 %v3059_v4  ;;  %v644_v9 = vunpack.c.l.bf16 %v3061_v5  ;;  %v2801_v3 = vld [vmem:[%s3511_s11 + $0x30] sm:$0xff]   ;;  %v2802_v5 = vld [vmem:[%s3511_s11 + $0x28] sm:$0xff]  }
  0x13   : > { %v645_v10 = vunpack.c.l.bf16 %v3063_v6  ;;  %v2803_v6 = vld [vmem:[%s3511_s11 + $0x20] sm:$0xff]  }
  0x14   : > { %2615 = vmatpush3.bf16.msra.mxu1 %v2795_v2  ;;  %v650_v11 = vcombine.low %v642_v7, %v643_v8 }
  0x15   : > { %2620 = vmatprep.subr.bf16.mxu1 %v2912_v1  ;;  %v651_v12 = vcombine.low %v644_v9, %v645_v10 }
  0x17   : > { %v654_v13 = vpack.c.bf16 %v651_v12, %v650_v11 }
  0x19   : > { %2617 = vmatmul.mubr.msk.bf16.vlgmr.msra.gmra.mxu1 %vm678_vm1, %v654_v13 }
  0x1a   : > { %2622 = vmatprep.mubr.msk.bf16.mxu1 %vm2913_vm0, %v2912_v1 }
  0x41   : > { %s2757_s25 = spop %2756 }
  0xd9   : > { %v716_v15 = vpop.f32.mrf.mxu1 }
  0xda   : > { %v3083_v16 = vadd.f32 %v2513_v14, %v716_v15 }
  0xdb   : > { %v2618_v17 = vpop.f32.mrf.mxu1 }
  0xdc   : > { %v3087_v18 = vcombine.high %v3083_v16, %v3083_v16  ;;  %v3091_v19 = vmul.f32 %v3083_v16, %v3083_v16 }
  0xdd   : > { %v719_v20 = vpop.f32.mrf.mxu1 }
  0xde   : > { %v3093_v21 = vadd.f32 %v2513_v14, %v719_v20  ;;  %779 = vrot.lane.b32.xlu0 %v3091_v19, %s2914_s20  ;;  %v741_v24 = vmul.f32 %v3087_v18, %v3087_v18  ;;  %v745_v35 = vsel %vm744_vm2, %v3091_v19, 0.0  ;;  %v766_v14 = vstv %s2757_s25  ;;  %s2919_s25 = smov 48  }
  0xdf   : > { %v2619_v22 = vpop.f32.mrf.mxu1 }
  0xe0   : > { %v3099_v23 = vcombine.high %v3093_v21, %v3093_v21  ;;  %v3105_v25 = vmul.f32 %v3093_v21, %v3093_v21  ;;  %v748_v38 = vsel %vm744_vm2, %v741_v24, 0.0 }
  0xe2   : > { %781 = vrot.lane.b32.xlu0 %v741_v24, %s2914_s20  ;;  %783 = vrot.lane.b32.xlu1 %v3105_v25, %s2914_s20  ;;  %v743_v27 = vmul.f32 %v3099_v23, %v3099_v23  ;;  %v751_v37 = vsel %vm744_vm2, %v3105_v25, 0.0 }
  0xe4   : > { %v754_v39 = vsel %vm744_vm2, %v743_v27, 0.0 }
  0xe6   : > { %785 = vrot.lane.b32.xlu1 %v743_v27, %s2914_s20 }
 0x150   : > { %v780_v28 = vpop.permute.xlu0 %779 }
 0x151   : > { %v791_v29 = vsel %vm744_vm2, %v780_v28, 0.0 }
 0x152   : > { %792 = vadd.xlane.f32.xlu0 %v791_v29 }
 0x154   : > { %v782_v30 = vpop.permute.xlu0 %781  ;;  %v784_v31 = vpop.permute.xlu1 %783 }
 0x155   : > { %v797_v32 = vsel %vm744_vm2, %v784_v31, 0.0  ;;  %v794_v33 = vsel %vm744_vm2, %v782_v30, 0.0 }
 0x156   : > { %798 = vadd.xlane.f32.xlu0 %v797_v32  ;;  %795 = vadd.xlane.f32.xlu1 %v794_v33 }
 0x158   : > { %v786_v34 = vpop.permute.xlu1 %785 }
 0x159   : > { %v800_v36 = vsel %vm744_vm2, %v786_v34, 0.0 }
 0x15a   : > { %746 = vadd.xlane.f32.xlu1 %v745_v35  ;;  %801 = vadd.xlane.f32.xlu0 %v800_v36 }
 0x15e   : > { %752 = vadd.xlane.f32.xlu1 %v751_v37  ;;  %749 = vadd.xlane.f32.xlu0 %v748_v38 }
 0x162   : > { %755 = vadd.xlane.f32.xlu0 %v754_v39 }
 0x1db   : > { %v793_v40 = vpop.xlane.xlu0 %792 }
 0x1dc   : > { %v803_v41 = vadd.f32 1e-24, %v793_v40 }
 0x1de   : > { %2808 = vrsqrt.f32 %v803_v41 }
 0x1df   : > { %v799_v42 = vpop.xlane.xlu0 %798  ;;  %v796_v43 = vpop.xlane.xlu1 %795 }
 0x1e0   : > { %v805_v44 = vadd.f32 1e-24, %v799_v42  ;;  %v804_v45 = vadd.f32 1e-24, %v796_v43  ;;  %v724_v43 = vld [vmem:[%s3506_s6] sm:$0xf] }
 0x1e2   : > { %2810 = vrsqrt.f32 %v805_v44 }
 0x1e3   : > { %2812 = vrsqrt.f32 %v804_v45  ;;  %v802_v46 = vpop.xlane.xlu0 %801  ;;  %v747_v60 = vpop.xlane.xlu1 %746  ;;  %v3179_v45 = vld [vmem:[%s3515_s15] sm:$0xf] }
 0x1e4   : > { %v806_v47 = vadd.f32 1e-24, %v802_v46  ;;  %v757_v62 = vadd.f32 1e-24, %v747_v60 }
 0x1e6   : > { %2814 = vrsqrt.f32 %v806_v47 }
 0x1e7   : > { %v750_v61 = vpop.xlane.xlu0 %749  ;;  %2816 = vrsqrt.f32 %v757_v62  ;;  %v753_v11 = vpop.xlane.xlu1 %752 }
 0x1e8   : > { %v758_v0 = vadd.f32 1e-24, %v750_v61  ;;  %v759_v12 = vadd.f32 1e-24, %v753_v11 }
 0x1ea   : > { %2818 = vrsqrt.f32 %v758_v0 }
 0x1eb   : > { %v2809_v48 = vpop.eup %2808  ;;  %v756_v63 = vpop.xlane.xlu0 %755 }
 0x1ec   : > { %v811_v49 = vmul.f32 %v2809_v48, %v3083_v16  ;;  %v760_v2 = vadd.f32 1e-24, %v756_v63 }
 0x1ee   : > { %v819_v50 = vpack.c.bf16 %v811_v49, %v811_v49  ;;  %2820 = vrsqrt.f32 %v760_v2 }
 0x1ef   : > { %v2811_v51 = vpop.eup %2810  ;;  %2822 = vrsqrt.f32 %v759_v12 }
 0x1f0   : > { %v2813_v52 = vpop.eup %2812  ;;  %824 = vrot.lane.b32.xlu1 %v819_v50, %s2914_s20  ;;  %v813_v53 = vmul.f32 %v2811_v51, %v3093_v21 }
 0x1f1   : > { %v812_v54 = vmul.f32 %v2813_v52, %v3087_v18 }
 0x1f2   : > { %v821_v55 = vpack.c.bf16 %v813_v53, %v813_v53 }
 0x1f3   : > { %v2815_v56 = vpop.eup %2814  ;;  %v820_v57 = vpack.c.bf16 %v812_v54, %v812_v54  ;;  %v3189_v54 = vld [vmem:[%s3515_s15 + $0xc] sm:$0xf] }
 0x1f4   : > { %923 = vrot.lane.b32.xlu1 %v821_v55, %s2914_s20  ;;  %v814_v58 = vmul.f32 %v2815_v56, %v3099_v23  ;;  %v2817_v13 = vpop.eup %2816  ;;  %v3194_v55 = vld [vmem:[%s3515_s15 + $0x4] sm:$0xf] }
 0x1f5   : > { %874 = vrot.lane.b32.xlu0 %v820_v57, %s2914_s20  ;;  %v767_v15 = vmul.f32 %v2817_v13, %v766_v14 }
 0x1f6   : > { %v822_v59 = vpack.c.bf16 %v814_v58, %v814_v58 }
 0x1f7   : > { %v2819_v20 = vpop.eup %2818  ;;  %v771_v22 = vmul.f32 %v767_v15, %v3083_v16 }
 0x1f8   : > { %972 = vrot.lane.b32.xlu1 %v822_v59, %s2914_s20  ;;  %v768_v28 = vmul.f32 %v2819_v20, %v766_v14 }
 0x1f9   : > { %1328 = vrot.lane.b32.xlu0 %v3091_v19, %s2915_s23  ;;  %v815_v30 = vpack.c.bf16 %v771_v22, %v771_v22 }
 0x1fa   : > { %v772_v34 = vmul.f32 %v768_v28, %v3087_v18 }
 0x1fc   : > { %1330 = vrot.lane.b32.xlu1 %v741_v24, %s2915_s23  ;;  %v816_v38 = vpack.c.bf16 %v772_v34, %v772_v34 }
 0x1fd   : > { %1284 = vrot.lane.b32.xlu0 %v3091_v19, %s2916_s24 }
 0x200   : > { %1286 = vrot.lane.b32.xlu1 %v741_v24, %s2916_s24  ;;  %v2821_v24 = vpop.eup %2820 }
 0x201   : > { %1332 = vrot.lane.b32.xlu0 %v3105_v25, %s2915_s23  ;;  %v770_v29 = vmul.f32 %v2821_v24, %v766_v14  ;;  %v2823_v36 = vpop.eup %2822 }
 0x202   : > { %v769_v37 = vmul.f32 %v2823_v36, %v766_v14 }
 0x203   : > { %v774_v35 = vmul.f32 %v770_v29, %v3099_v23 }
 0x204   : > { %1334 = vrot.lane.b32.xlu1 %v743_v27, %s2915_s23  ;;  %v773_v41 = vmul.f32 %v769_v37, %v3093_v21  ;;  %v3210_v37 = vld [vmem:[%s3515_s15 + $0x8] sm:$0xf] }
 0x205   : > { %1288 = vrot.lane.b32.xlu0 %v3105_v25, %s2916_s24  ;;  %v818_v39 = vpack.c.bf16 %v774_v35, %v774_v35 }
 0x206   : > { %v817_v42 = vpack.c.bf16 %v773_v41, %v773_v41  ;;  %v3221_v41 = vpack.c.bf16 %v3083_v16, %v3083_v16 }
 0x208   : > { %1290 = vrot.lane.b32.xlu1 %v743_v27, %s2916_s24 }
 0x262   : > { %v825_v17 = vpop.permute.xlu1 %824 }
 0x263   : > { %v831_v19 = vsel %vm826_vm3, %v825_v17, 0 }
 0x264   : > { %2621 = vmatpush3.bf16.xpose.msra.mxu1 %v831_v19 }
 0x265   : > { %2626 = vmatprep.subr.bf16.mxu1 %v2912_v1 }
 0x266   : > { %v924_v25 = vpop.permute.xlu1 %923 }
 0x267   : > { %v875_v27 = vpop.permute.xlu0 %874  ;;  %v929_v40 = vsel %vm826_vm3, %v924_v25, 0 }
 0x268   : > { %v880_v32 = vsel %vm826_vm3, %v875_v27, 0 }
 0x26a   : > { %v973_v31 = vpop.permute.xlu1 %972 }
 0x26b   : > { %2623 = vmatmul.mubr.msk.bf16.vlgmr.msra.gmra.mxu1 %vm826_vm3, %v815_v30  ;;  %v978_v33 = vsel %vm826_vm3, %v973_v31, 0  ;;  %v1329_v0 = vpop.permute.xlu0 %1328 }
 0x26c   : > { %2627 = vmatpush3.bf16.xpose.msra.mxu1 %v880_v32  ;;  %2639 = vmatpush3.bf16.xpose.msra.mxu0 %v978_v33  ;;  %v1340_v15 = vsel %vm744_vm2, %v1329_v0, 0.0 }
 0x26d   : > { %2628 = vmatprep.mubr.msk.bf16.mxu1 %vm2913_vm0, %v2912_v1  ;;  %2632 = vmatprep.subr.bf16.mxu1 %v2912_v1 }
 0x26e   : > { %2650 = vmatprep.subr.bf16.mxu0 %v2912_v1  ;;  %v1331_v17 = vpop.permute.xlu1 %1330 }
 0x26f   : > { %v1343_v22 = vsel %vm744_vm2, %v1331_v17, 0.0  ;;  %v1285_v24 = vpop.permute.xlu0 %1284 }
 0x270   : > { %v1296_v28 = vsel %vm744_vm2, %v1285_v24, 0.0 }
 0x272   : > { %v1287_v27 = vpop.permute.xlu1 %1286 }
 0x273   : > { %2629 = vmatmul.mubr.msk.bf16.vlgmr.msra.gmra.mxu1 %vm826_vm3, %v816_v38  ;;  %2641 = vmatmul.mubr.msk.bf16.vlgmr.msra.gmra.mxu0 %vm826_vm3, %v818_v39  ;;  %v1333_v29 = vpop.permute.xlu0 %1332  ;;  %v1299_v30 = vsel %vm744_vm2, %v1287_v27, 0.0 }
 0x274   : > { %2633 = vmatpush3.bf16.xpose.msra.mxu1 %v929_v40  ;;  %2634 = vmatprep.mubr.msk.bf16.mxu1 %vm2913_vm0, %v2912_v1  ;;  %v1346_v40 = vsel %vm744_vm2, %v1333_v29, 0.0 }
 0x275   : > { %2644 = vmatprep.subr.bf16.mxu1 %v2912_v1  ;;  %2652 = vmatprep.mubr.msk.bf16.mxu0 %vm2913_vm0, %v2912_v1 }
 0x276   : > { %v1335_v31 = vpop.permute.xlu1 %1334 }
 0x277   : > { %v1349_v32 = vsel %vm744_vm2, %v1335_v31, 0.0  ;;  %v1289_v33 = vpop.permute.xlu0 %1288 }
 0x278   : > { %v1302_v35 = vsel %vm744_vm2, %v1289_v33, 0.0 }
 0x27a   : > { %v1291_v36 = vpop.permute.xlu1 %1290 }
 0x27b   : > { %2635 = vmatmul.mubr.msk.bf16.vlgmr.msra.gmra.mxu1 %vm826_vm3, %v817_v42  ;;  %v1305_v38 = vsel %vm744_vm2, %v1291_v36, 0.0  ;;  %v3227_v42 = vpack.c.bf16 %v3087_v18, %v3087_v18 }
 0x27c   : > { %2646 = vmatprep.mubr.msk.bf16.mxu1 %vm2913_vm0, %v2912_v1 }
 0x32b   : > { %v867_v44 = vpop.f32.mrf.mxu1 }
 0x32c   : > { %v868_v46 = vadd.f32 %v867_v44, %v724_v43 }
 0x32d   : > { %v2624_v47 = vpop.f32.mrf.mxu1 }
 0x32e   : > { %v3182_v48 = vadd.f32 %v868_v46, %v3179_v45 }
 0x32f   : > { %v870_v49 = vpop.f32.mrf.mxu1 }
 0x330   : > { %v1025_v50 = vsel %vm1024_vm4, %v3182_v48, -inf }
 0x331   : > { %1026 = vmax.xlane.f32.xlu0 %v1025_v50  ;;  %v2625_v51 = vpop.f32.mrf.mxu1 }
 0x333   : > { %v916_v52 = vpop.f32.mrf.mxu1  ;;  %v1014_v53 = vpop.f32.mrf.mxu0 }
 0x334   : > { %v917_v56 = vadd.f32 %v916_v52, %v724_v43  ;;  %v1015_v57 = vadd.f32 %v1014_v53, %v724_v43 }
 0x335   : > { %v2630_v58 = vpop.f32.mrf.mxu1  ;;  %v2642_v59 = vpop.f32.mrf.mxu0 }
 0x336   : > { %v1023_v60 = vadd.f32 %v1015_v57, %v3189_v54  ;;  %v1021_v61 = vadd.f32 %v917_v56, %v3194_v55 }
 0x337   : > { %v919_v62 = vpop.f32.mrf.mxu1  ;;  %v1017_v63 = vpop.f32.mrf.mxu0 }
 0x338   : > { %v1034_v2 = vsel %vm1024_vm4, %v1023_v60, -inf  ;;  %v1028_v11 = vsel %vm1024_vm4, %v1021_v61, -inf }
 0x339   : > { %v2643_v12 = vpop.f32.mrf.mxu0  ;;  %1035 = vmax.xlane.f32.xlu0 %v1034_v2  ;;  %1029 = vmax.xlane.f32.xlu1 %v1028_v11  ;;  %v2631_v13 = vpop.f32.mrf.mxu1 }
 0x33b   : > { %v965_v14 = vpop.f32.mrf.mxu1 }
 0x33c   : > { %v966_v34 = vadd.f32 %v965_v14, %v724_v43  ;;  %v3233_v43 = vpack.c.bf16 %v3099_v23, %v3099_v23 }
 0x33d   : > { %1341 = vadd.xlane.f32.xlu0 %v1340_v15  ;;  %v2636_v19 = vpop.f32.mrf.mxu1 }
 0x33e   : > { %v3214_v39 = vadd.f32 %v966_v34, %v3210_v37 }
 0x33f   : > { %v968_v20 = vpop.f32.mrf.mxu1 }
 0x341   : > { %1344 = vadd.xlane.f32.xlu0 %v1343_v22  ;;  %v2637_v25 = vpop.f32.mrf.mxu1 }
 0x345   : > { %1297 = vadd.xlane.f32.xlu0 %v1296_v28 }
 0x349   : > { %1300 = vadd.xlane.f32.xlu0 %v1299_v30  ;;  %v3258_v30 = vpack.c.bf16 %v3093_v21, %v3093_v21 }
 0x34a   : > { %1316 = vrot.lane.b32.xlu1 %v3113_v26, %s2917_s0  ;;  %v1031_v26 = vsel %vm1024_vm4, %v3214_v39, -inf }
 0x34d   : > { %1350 = vadd.xlane.f32.xlu0 %v1349_v32 }
 0x351   : > { %1303 = vadd.xlane.f32.xlu0 %v1302_v35 }
 0x355   : > { %1306 = vadd.xlane.f32.xlu0 %v1305_v38 }
 0x359   : > { %1032 = vmax.xlane.f32.xlu0 %v1031_v26 }
 0x36e   : > { %1347 = vadd.xlane.f32.xlu1 %v1346_v40 }
 0x36f   : > { %1078 = vrot.lane.b32.xlu0 %v3221_v41, %s2918_s21 }
 0x37f   : > { %1129 = vrot.lane.b32.xlu1 %v3227_v42, %s2918_s21 }
 0x383   : > { %1227 = vrot.lane.b32.xlu1 %v3233_v43, %s2918_s21 }
 0x3ba   : > { %v1027_v44 = vpop.xlane.xlu0 %1026 }
 0x3bb   : > { %v1037_v46 = vsub.f32 %v3182_v48, %v1027_v44 }
 0x3bd   : > { %v1041_v47 = vmul.f32 1.442695, %v1037_v46 }
 0x3bf   : > { %2824 = vpow2.f32 %v1041_v47 }
 0x3c2   : > { %v1036_v49 = vpop.xlane.xlu0 %1035  ;;  %v1030_v50 = vpop.xlane.xlu1 %1029 }
 0x3c3   : > { %v1040_v51 = vsub.f32 %v1023_v60, %v1036_v49  ;;  %v1038_v52 = vsub.f32 %v1021_v61, %v1030_v50 }
 0x3c5   : > { %v1047_v53 = vmul.f32 1.442695, %v1040_v51  ;;  %v1043_v56 = vmul.f32 1.442695, %v1038_v52 }
 0x3c6   : > { %v3238_v57 = vpop.xlane.xlu0 %1341  ;;  %v1317_v58 = vpop.permute.xlu1 %1316 }
 0x3c7   : > { %2826 = vpow2.f32 %v1047_v53  ;;  %2758 = vpush %v1317_v58  ;;  %v1352_v53 = vadd.f32 1e-24, %v3238_v57 }
 0x3c8   : > { %2828 = vpow2.f32 %v1043_v56 }
 0x3ca   : > { %v1345_v59 = vpop.xlane.xlu0 %1344 }
 0x3cb   : > { %v1353_v62 = vadd.f32 1e-24, %v1345_v59 }
 0x3cc   : > { %v3240_v63 = vpop.eup %2824 }
 0x3cd   : > { %2830 = vrsqrt.f32 %v1353_v62  ;;  %v1049_v48 = vsel %vm1024_vm4, %v3240_v63, 0.0 }
 0x3ce   : > { %v1298_v0 = vpop.xlane.xlu0 %1297  ;;  %1050 = vadd.xlane.f32.xlu0 %v1049_v48 }
 0x3cf   : > { %v1308_v56 = vadd.f32 1e-24, %v1298_v0 }
 0x3d2   : > { %v1301_v60 = vpop.xlane.xlu0 %1300 }
 0x3d3   : > { %v1309_v27 = vadd.f32 1e-24, %v1301_v60 }
 0x3d4   : > { %v3244_v61 = vpop.eup %2826 }
 0x3d5   : > { %v1058_v2 = vsel %vm1024_vm4, %v3244_v61, 0.0  ;;  %v3248_v11 = vpop.eup %2828  ;;  %2832 = vrsqrt.f32 %v1309_v27 }
 0x3d6   : > { %v1351_v12 = vpop.xlane.xlu0 %1350  ;;  %1059 = vadd.xlane.f32.xlu0 %v1058_v2  ;;  %v1052_v13 = vsel %vm1024_vm4, %v3248_v11, 0.0 }
 0x3d7   : > { %v1355_v28 = vadd.f32 1e-24, %v1351_v12 }
 0x3d9   : > { %2834 = vrsqrt.f32 %v1355_v28 }
 0x3da   : > { %v2831_v14 = vpop.eup %2830  ;;  %v1304_v15 = vpop.xlane.xlu0 %1303  ;;  %1053 = vadd.xlane.f32.xlu0 %v1052_v13 }
 0x3db   : > { %v1361_v17 = vmul.f32 %v2831_v14, %v3087_v18  ;;  %v1310_v62 = vadd.f32 1e-24, %v1304_v15 }
 0x3dd   : > { %v1369_v19 = vpack.c.bf16 %v1361_v17, %v1361_v17 }
 0x3de   : > { %v1307_v20 = vpop.xlane.xlu0 %1306 }
 0x3df   : > { %1428 = vrot.lane.b32.xlu1 %v1369_v19, %s2915_s23  ;;  %v1311_v29 = vadd.f32 1e-24, %v1307_v20 }
 0x3e1   : > { %2836 = vrsqrt.f32 %v1311_v29 }
 0x3e2   : > { %v1033_v22 = vpop.xlane.xlu0 %1032  ;;  %v2833_v33 = vpop.eup %2832 }
 0x3e3   : > { %v1039_v31 = vsub.f32 %v3214_v39, %v1033_v22 }
 0x3e5   : > { %v1045_v35 = vmul.f32 1.442695, %v1039_v31 }
 0x3e6   : > { %v1079_v24 = vpop.permute.xlu0 %1078  ;;  %v2835_v38 = vpop.eup %2834 }
 0x3e7   : > { %v1086_v25 = vsel %vm1084_vm5, %v1079_v24, 0  ;;  %2838 = vpow2.f32 %v1045_v35  ;;  %v1363_v50 = vmul.f32 %v2835_v38, %v3099_v23 }
 0x3e8   : > { %2645 = vmatpush3.bf16.msra.mxu1 %v1086_v25  ;;  %2840 = vrsqrt.f32 %v1352_v53 }
 0x3e9   : > { %2656 = vmatprep.subr.bf16.mxu1 %v2912_v1  ;;  %v1371_v39 = vpack.c.bf16 %v1363_v50, %v1363_v50  ;;  %2842 = vrsqrt.f32 %v1308_v56 }
 0x3ee   : > { %v2837_v46 = vpop.eup %2836 }
 0x3f0   : > { %1178 = vrot.lane.b32.xlu0 %v3258_v30, %s2918_s21 }
 0x3f7   : > { %v1348_v32 = vpop.xlane.xlu1 %1347 }
 0x3f8   : > { %s2759_s2 = spop %2758  ;;  %v1354_v59 = vadd.f32 1e-24, %v1348_v32 }
 0x3f9   : > { %v1319_v34 = vstv %s2759_s2 }
 0x3fa   : > { %v1321_v36 = vmul.f32 %v2833_v33, %v1319_v34  ;;  %v1323_v47 = vmul.f32 %v2837_v46, %v1319_v34  ;;  %2844 = vrsqrt.f32 %v1354_v59 }
 0x3fb   : > { %v1130_v26 = vpop.permute.xlu1 %1129  ;;  %2846 = vrsqrt.f32 %v1310_v62 }
 0x3fc   : > { %v1135_v40 = vsel %vm1084_vm5, %v1130_v26, 0  ;;  %v1325_v44 = vmul.f32 %v1321_v36, %v3087_v18  ;;  %v1327_v51 = vmul.f32 %v1323_v47, %v3099_v23  ;;  %v3271_v18 = vpop.eup %2838 }
 0x3fd   : > { %2651 = vmatpush3.bf16.msra.mxu0 %v1135_v40  ;;  %v1055_v58 = vsel %vm1024_vm4, %v3271_v18, 0.0  ;;  %v2841_v23 = vpop.eup %2840 }
 0x3fe   : > { %v1365_v49 = vpack.c.bf16 %v1325_v44, %v1325_v44  ;;  %2662 = vmatprep.subr.bf16.mxu0 %v2912_v1  ;;  %v1367_v52 = vpack.c.bf16 %v1327_v51, %v1327_v51  ;;  %v2843_v48 = vpop.eup %2842  ;;  %v1360_v2 = vmul.f32 %v2841_v23, %v3083_v16 }
 0x3ff   : > { %v1320_v60 = vmul.f32 %v2843_v48, %v1319_v34 }
 0x400   : > { %1425 = vrot.lane.b32.xlu1 %v1365_v49, %s2916_s24  ;;  %v1368_v12 = vpack.c.bf16 %v1360_v2, %v1360_v2 }
 0x401   : > { %v1324_v13 = vmul.f32 %v1320_v60, %v3083_v16 }
 0x403   : > { %v1364_v17 = vpack.c.bf16 %v1324_v13, %v1324_v13 }
 0x404   : > { %1532 = vrot.lane.b32.xlu1 %v1371_v39, %s2915_s23 }
 0x407   : > { %v2845_v57 = vpop.eup %2844 }
 0x408   : > { %1529 = vrot.lane.b32.xlu1 %v1367_v52, %s2916_s24  ;;  %v2847_v0 = vpop.eup %2846  ;;  %v1362_v19 = vmul.f32 %v2845_v57, %v3093_v21 }
 0x409   : > { %v1322_v14 = vmul.f32 %v2847_v0, %v1319_v34  ;;  %v1228_v34 = vpop.permute.xlu1 %1227 }
 0x40a   : > { %v1370_v15 = vpack.c.bf16 %v1362_v19, %v1362_v19  ;;  %v1233_v36 = vsel %vm1084_vm5, %v1228_v34, 0 }
 0x40b   : > { %v1326_v20 = vmul.f32 %v1322_v14, %v3093_v21 }
 0x40d   : > { %v1366_v22 = vpack.c.bf16 %v1326_v20, %v1326_v20  ;;  %v725_v20 = vld [vmem:[%s3506_s6 + $0x4] sm:$0xf] }
 0x40f   : > { %1056 = vadd.xlane.f32.xlu0 %v1055_v58 }
 0x425   : > { %1376 = vrot.lane.b32.xlu0 %v1368_v12, %s2915_s23 }
 0x429   : > { %1373 = vrot.lane.b32.xlu0 %v1364_v17, %s2916_s24 }
 0x42d   : > { %1480 = vrot.lane.b32.xlu0 %v1370_v15, %s2915_s23 }
 0x431   : > { %1477 = vrot.lane.b32.xlu0 %v1366_v22, %s2916_s24 }
 0x451   : > { %v1429_v26 = vpop.permute.xlu1 %1428 }
 0x457   : > { %v1051_v24 = vpop.xlane.xlu0 %1050 }
 0x458   : > { %2848 = vrcp.f32 %v1051_v24 }
 0x45f   : > { %v1060_v16 = vpop.xlane.xlu0 %1059 }
 0x463   : > { %v1054_v25 = vpop.xlane.xlu0 %1053 }
 0x464   : > { %2850 = vrcp.f32 %v1054_v25 }
 0x465   : > { %v2849_v27 = vpop.eup %2848  ;;  %2852 = vrcp.f32 %v1060_v16 }
 0x466   : > { %v1065_v28 = vmul.f32 %v2849_v27, %v3240_v63 }
 0x467   : > { %v1179_v29 = vpop.permute.xlu0 %1178 }
 0x468   : > { %v1184_v31 = vsel %vm1084_vm5, %v1179_v29, 0  ;;  %v1069_v32 = vpack.c.bf16 %v1065_v28, %v1065_v28 }
 0x46a   : > { %2647 = vmatmul.mubr.msk.bf16.vlgmr.msra.gmra.mxu1 %vm1080_vm6, %v1069_v32 }
 0x46b   : > { %2657 = vmatpush3.bf16.msra.mxu1 %v1184_v31  ;;  %2658 = vmatprep.mubr.msk.bf16.mxu1 %vm2913_vm0, %v2912_v1 }
 0x46c   : > { %2668 = vmatprep.subr.bf16.mxu1 %v2912_v1 }
 0x471   : > { %v2851_v21 = vpop.eup %2850 }
 0x472   : > { %v1066_v33 = vmul.f32 %v2851_v21, %v3248_v11  ;;  %v2853_v63 = vpop.eup %2852  ;;  %v1426_v44 = vpop.permute.xlu1 %1425  ;;  %v1434_v11 = vsel %vm826_vm3, %v1429_v26, 0 }
 0x473   : > { %v1068_v38 = vmul.f32 %v2853_v63, %v3244_v61 }
 0x474   : > { %v1070_v35 = vpack.c.bf16 %v1066_v33, %v1066_v33 }
 0x475   : > { %v1072_v40 = vpack.c.bf16 %v1068_v38, %v1068_v38 }
 0x476   : > { %2653 = vmatmul.mubr.msk.bf16.vlgmr.msra.gmra.mxu0 %vm1080_vm6, %v1070_v35  ;;  %v1533_v46 = vpop.permute.xlu1 %1532 }
 0x477   : > { %2663 = vmatpush3.bf16.msra.mxu0 %v1233_v36  ;;  %2664 = vmatprep.mubr.msk.bf16.mxu0 %vm2913_vm0, %v2912_v1  ;;  %v1538_v47 = vsel %vm826_vm3, %v1533_v46, 0 }
 0x478   : > { %2674 = vmatprep.subr.bf16.mxu0 %v2912_v1 }
 0x47a   : > { %v1530_v61 = vpop.permute.xlu1 %1529 }
 0x47e   : > { %2665 = vmatmul.mubr.msk.bf16.vlgmr.msra.gmra.mxu0 %vm1080_vm6, %v1072_v40 }
 0x47f   : > { %2675 = vmatpush3.bf16.xpose.msra.mxu0 %v1434_v11  ;;  %2676 = vmatprep.mubr.msk.bf16.mxu0 %vm2913_vm0, %v2912_v1 }
 0x480   : > { %2686 = vmatprep.subr.bf16.mxu0 %v2912_v1 }
 0x486   : > { %2677 = vmatmul.mubr.msk.bf16.vlgmr.msra.gmra.mxu0 %vm826_vm3, %v1426_v44 }
 0x487   : > { %2687 = vmatpush3.bf16.xpose.msra.mxu0 %v1538_v47  ;;  %2688 = vmatprep.mubr.msk.bf16.mxu0 %vm2913_vm0, %v2912_v1 }
 0x488   : > { %2698 = vmatprep.subr.bf16.mxu0 %v2912_v1 }
 0x48e   : > { %2689 = vmatmul.mubr.msk.bf16.vlgmr.msra.gmra.mxu0 %vm826_vm3, %v1530_v61 }
 0x48f   : > { %2700 = vmatprep.mubr.msk.bf16.mxu0 %vm2913_vm0, %v2912_v1 }
 0x498   : > { %v1057_v49 = vpop.xlane.xlu0 %1056 }
 0x499   : > { %2854 = vrcp.f32 %v1057_v49 }
 0x49c   : > { %v1377_v50 = vpop.permute.xlu0 %1376 }
 0x49d   : > { %v1382_v56 = vsel %vm826_vm3, %v1377_v50, 0 }
 0x4a0   : > { %v1374_v53 = vpop.permute.xlu0 %1373 }
 0x4a4   : > { %v1481_v58 = vpop.permute.xlu0 %1480 }
 0x4a5   : > { %v1486_v59 = vsel %vm826_vm3, %v1481_v58, 0 }
 0x4a6   : > { %v2855_v39 = vpop.eup %2854 }
 0x4a7   : > { %v1067_v51 = vmul.f32 %v2855_v39, %v3271_v18 }
 0x4a8   : > { %v1478_v18 = vpop.permute.xlu0 %1477 }
 0x4a9   : > { %v1071_v52 = vpack.c.bf16 %v1067_v51, %v1067_v51 }
 0x4ab   : > { %2659 = vmatmul.mubr.msk.bf16.vlgmr.msra.gmra.mxu1 %vm1080_vm6, %v1071_v52 }
 0x4ac   : > { %2669 = vmatpush3.bf16.xpose.msra.mxu1 %v1382_v56  ;;  %2670 = vmatprep.mubr.msk.bf16.mxu1 %vm2913_vm0, %v2912_v1 }
 0x4ad   : > { %2680 = vmatprep.subr.bf16.mxu1 %v2912_v1 }
 0x4b3   : > { %2671 = vmatmul.mubr.msk.bf16.vlgmr.msra.gmra.mxu1 %vm826_vm3, %v1374_v53 }
 0x4b4   : > { %2681 = vmatpush3.bf16.xpose.msra.mxu1 %v1486_v59  ;;  %2682 = vmatprep.mubr.msk.bf16.mxu1 %vm2913_vm0, %v2912_v1 }
 0x4b5   : > { %2692 = vmatprep.subr.bf16.mxu1 %v2912_v1 }
 0x4bb   : > { %2683 = vmatmul.mubr.msk.bf16.vlgmr.msra.gmra.mxu1 %vm826_vm3, %v1478_v18 }
 0x4bc   : > { %2694 = vmatprep.mubr.msk.bf16.mxu1 %vm2913_vm0, %v2912_v1 }
 0x52a   : > { %v1122_v62 = vpop.f32.mrf.mxu1 }
 0x52c   : > { %v2648_v23 = vpop.f32.mrf.mxu1 }
 0x52e   : > { %v1125_v48 = vpop.f32.mrf.mxu1 }
 0x530   : > { %v2649_v60 = vpop.f32.mrf.mxu1 }
 0x536   : > { %v1171_v2 = vpop.f32.mrf.mxu0 }
 0x537   : > { %v1279_v12 = vcombine.low %v1122_v62, %v1171_v2 }
 0x538   : > { %v2654_v13 = vpop.f32.mrf.mxu0 }
 0x53a   : > { %v1174_v57 = vpop.f32.mrf.mxu0 }
 0x53c   : > { %v2655_v0 = vpop.f32.mrf.mxu0 }
 0x53e   : > { %v1269_v14 = vpop.f32.mrf.mxu0 }
 0x540   : > { %v2666_v17 = vpop.f32.mrf.mxu0 }
 0x542   : > { %v1272_v19 = vpop.f32.mrf.mxu0 }
 0x544   : > { %v2667_v15 = vpop.f32.mrf.mxu0 }
 0x546   : > { %v1470_v22 = vpop.f32.mrf.mxu0 }
 0x547   : > { %v1471_v24 = vadd.f32 %v1470_v22, %v725_v20 }
 0x548   : > { %v2678_v16 = vpop.f32.mrf.mxu0 }
 0x549   : > { %v1581_v25 = vadd.f32 %v1471_v24, %v3194_v55 }
 0x54a   : > { %v1473_v27 = vpop.f32.mrf.mxu0 }
 0x54b   : > { %v1587_v28 = vsel %vm1024_vm4, %v1581_v25, -inf }
 0x54c   : > { %1588 = vmax.xlane.f32.xlu1 %v1587_v28  ;;  %v2679_v29 = vpop.f32.mrf.mxu0 }
 0x54e   : > { %v1574_v31 = vpop.f32.mrf.mxu0 }
 0x54f   : > { %v1575_v50 = vadd.f32 %v1574_v31, %v725_v20 }
 0x550   : > { %v2690_v32 = vpop.f32.mrf.mxu0 }
 0x551   : > { %v1583_v56 = vadd.f32 %v1575_v50, %v3189_v54  ;;  %v2797_v50 = vld [vmem:[%s3503_s3 + $0x8] sm:$0xff]  }
 0x552   : > { %v1577_v21 = vpop.f32.mrf.mxu0 }
 0x554   : > { %v2691_v33 = vpop.f32.mrf.mxu0 }
 0x55d   : > { %1632 = vrot.lane.b32.xlu1 %v3221_v41, %s2919_s25 }
 0x56b   : > { %v1220_v34 = vpop.f32.mrf.mxu1 }
 0x56c   : > { %v1280_v35 = vcombine.low %v1220_v34, %v1269_v14 }
 0x56d   : > { %v2660_v63 = vpop.f32.mrf.mxu1 }
 0x56e   : > { %v3331_v36 = vpack.c.bf16 %v1280_v35, %v1279_v12 }
 0x56f   : > { %v1223_v38 = vpop.f32.mrf.mxu1 }
 0x571   : > { %v2661_v55 = vpop.f32.mrf.mxu1 }
 0x573   : > { %v1418_v26 = vpop.f32.mrf.mxu1 }
 0x574   : > { %v1419_v40 = vadd.f32 %v1418_v26, %v725_v20 }
 0x575   : > { %v2672_v44 = vpop.f32.mrf.mxu1 }
 0x576   : > { %v1580_v11 = vadd.f32 %v1419_v40, %v3179_v45  ;;  %v1593_v45 = vsel %vm1024_vm4, %v1583_v56, -inf }
 0x577   : > { %v1421_v46 = vpop.f32.mrf.mxu1 }
 0x578   : > { %v1584_v47 = vsel %vm1024_vm4, %v1580_v11, -inf }
 0x579   : > { %1585 = vmax.xlane.f32.xlu0 %v1584_v47  ;;  %v2673_v61 = vpop.f32.mrf.mxu1 }
 0x57a   : > { %v2796_v61 = vld [vmem:[%s3503_s3] sm:$0xff]  }
 0x57b   : > { %v1522_v49 = vpop.f32.mrf.mxu1 }
 0x57c   : > { %v1523_v41 = vadd.f32 %v1522_v49, %v725_v20 }
 0x57d   : > { %v2684_v39 = vpop.f32.mrf.mxu1 }
 0x57e   : > { %v1582_v51 = vadd.f32 %v1523_v41, %v3210_v37 }
 0x57f   : > { %v1525_v52 = vpop.f32.mrf.mxu1 }
 0x580   : > { %v1590_v53 = vsel %vm1024_vm4, %v1582_v51, -inf }
 0x581   : > { %1591 = vmax.xlane.f32.xlu0 %v1590_v53  ;;  %v2685_v58 = vpop.f32.mrf.mxu1 }
 0x585   : > { %1594 = vmax.xlane.f32.xlu0 %v1593_v45 }
 0x5d5   : > { %v1589_v59 = vpop.xlane.xlu1 %1588 }
 0x5d6   : > { %v1597_v18 = vsub.f32 %v1581_v25, %v1589_v59 }
 0x5d8   : > { %v1602_v62 = vmul.f32 1.442695, %v1597_v18 }
 0x5d9   : > { %v1633_v23 = vpop.permute.xlu1 %1632 }
 0x5da   : > { %2856 = vpow2.f32 %v1602_v62  ;;  %v1638_v48 = vsel %vm1084_vm5, %v1633_v23, 0 }
 0x5db   : > { %2693 = vmatpush3.bf16.msra.mxu1 %v1638_v48 }
 0x5dc   : > { %2704 = vmatprep.subr.bf16.mxu1 %v2912_v1 }
 0x5e7   : > { %v2857_v37 = vpop.eup %2856 }
 0x5e8   : > { %v1611_v60 = vsel %vm1024_vm4, %v2857_v37, 0.0 }
 0x5e9   : > { %1612 = vadd.xlane.f32.xlu0 %v1611_v60 }
 0x602   : > { %v1586_v54 = vpop.xlane.xlu0 %1585 }
 0x603   : > { %v1596_v2 = vsub.f32 %v1580_v11, %v1586_v54 }
 0x605   : > { %v1600_v12 = vmul.f32 1.442695, %v1596_v2 }
 0x607   : > { %2858 = vpow2.f32 %v1600_v12 }
 0x60a   : > { %v1592_v13 = vpop.xlane.xlu0 %1591 }
 0x60b   : > { %v1598_v57 = vsub.f32 %v1582_v51, %v1592_v13 }
 0x60d   : > { %v1604_v0 = vmul.f32 1.442695, %v1598_v57 }
 0x60e   : > { %v1595_v14 = vpop.xlane.xlu0 %1594 }
 0x60f   : > { %2860 = vpow2.f32 %v1604_v0  ;;  %v1599_v17 = vsub.f32 %v1583_v56, %v1595_v14 }
 0x611   : > { %v1606_v19 = vmul.f32 1.442695, %v1599_v17 }
 0x613   : > { %2862 = vpow2.f32 %v1606_v19  ;;  %v2537_v19 = vld [vmem:[%s3504_s4] ss:$0 sm:$0xff] }
 0x614   : > { %v2859_v15 = vpop.eup %2858 }
 0x615   : > { %v1608_v20 = vsel %vm1024_vm4, %v2859_v15, 0.0 }
 0x616   : > { %1609 = vadd.xlane.f32.xlu1 %v1608_v20 }
 0x61c   : > { %v2861_v22 = vpop.eup %2860 }
 0x61d   : > { %v1614_v24 = vsel %vm1024_vm4, %v2861_v22, 0.0 }
 0x61e   : > { %1615 = vadd.xlane.f32.xlu1 %v1614_v24 }
 0x620   : > { %v2863_v16 = vpop.eup %2862 }
 0x621   : > { %v1617_v25 = vsel %vm1024_vm4, %v2863_v16, 0.0 }
 0x622   : > { %1618 = vadd.xlane.f32.xlu0 %v1617_v25 }
 0x62f   : > { %1728 = vrot.lane.b32.xlu1 %v3258_v30, %s2919_s25 }
 0x633   : > { %1776 = vrot.lane.b32.xlu1 %v3233_v43, %s2919_s25 }
 0x638   : > { %1680 = vrot.lane.b32.xlu0 %v3227_v42, %s2919_s25  ;;  %s635_s25 = scalar_lea.vmem %s3518_s18, %s2559_s22 }
 0x672   : > { %v1613_v27 = vpop.xlane.xlu0 %1612 }
 0x673   : > { %2864 = vrcp.f32 %v1613_v27 }
 0x680   : > { %v2865_v31 = vpop.eup %2864 }
 0x681   : > { %v1625_v35 = vmul.f32 %v2865_v31, %v2857_v37 }
 0x683   : > { %v1629_v55 = vpack.c.bf16 %v1625_v35, %v1625_v35 }
 0x69f   : > { %v1610_v28 = vpop.xlane.xlu1 %1609 }
 0x6a0   : > { %2866 = vrcp.f32 %v1610_v28 }
 0x6a7   : > { %v1616_v29 = vpop.xlane.xlu1 %1615 }
 0x6a8   : > { %2868 = vrcp.f32 %v1616_v29 }
 0x6ab   : > { %v1729_v32 = vpop.permute.xlu1 %1728  ;;  %v1619_v21 = vpop.xlane.xlu0 %1618 }
 0x6ac   : > { %2870 = vrcp.f32 %v1619_v21  ;;  %v1734_v42 = vsel %vm1084_vm5, %v1729_v32, 0 }
 0x6ad   : > { %v2867_v33 = vpop.eup %2866 }
 0x6ae   : > { %v1624_v34 = vmul.f32 %v2867_v33, %v2859_v15 }
 0x6af   : > { %v1681_v30 = vpop.permute.xlu0 %1680  ;;  %v1777_v38 = vpop.permute.xlu1 %1776 }
 0x6b0   : > { %v1686_v63 = vsel %vm1084_vm5, %v1681_v30, 0  ;;  %v1628_v43 = vpack.c.bf16 %v1624_v34, %v1624_v34  ;;  %v1782_v26 = vsel %vm1084_vm5, %v1777_v38, 0 }
 0x6b1   : > { %2699 = vmatpush3.bf16.msra.mxu0 %v1686_v63 }
 0x6b2   : > { %2695 = vmatmul.mubr.msk.bf16.vlgmr.msra.gmra.mxu1 %vm1080_vm6, %v1628_v43  ;;  %2710 = vmatprep.subr.bf16.mxu0 %v2912_v1 }
 0x6b3   : > { %2705 = vmatpush3.bf16.msra.mxu1 %v1734_v42  ;;  %2706 = vmatprep.mubr.msk.bf16.mxu1 %vm2913_vm0, %v2912_v1  ;;  %v2798_v42 = vld [vmem:[%s3509_s9 + $0x8] sm:$0xff]  }
 0x6b4   : > { %2701 = vmatmul.mubr.msk.bf16.vlgmr.msra.gmra.mxu0 %vm1080_vm6, %v1629_v55  ;;  %2716 = vmatprep.subr.bf16.mxu1 %v2912_v1  ;;  %v2799_v55 = vld [vmem:[%s3509_s9] sm:$0xff]  }
 0x6b5   : > { %v2869_v40 = vpop.eup %2868  ;;  %2711 = vmatpush3.bf16.msra.mxu0 %v1782_v26  ;;  %2712 = vmatprep.mubr.msk.bf16.mxu0 %vm2913_vm0, %v2912_v1  ;;  %v2800_v26 = vld [vmem:[%s3511_s11 + $0x38] sm:$0xff]  }
 0x6b6   : > { %v1626_v44 = vmul.f32 %v2869_v40, %v2861_v22  ;;  %2722 = vmatprep.subr.bf16.mxu0 %v2912_v1 }
 0x6b8   : > { %v1630_v11 = vpack.c.bf16 %v1626_v44, %v1626_v44 }
 0x6b9   : > { %v2871_v46 = vpop.eup %2870 }
 0x6ba   : > { %2707 = vmatmul.mubr.msk.bf16.vlgmr.msra.gmra.mxu1 %vm1080_vm6, %v1630_v11  ;;  %v1627_v47 = vmul.f32 %v2871_v46, %v2863_v16 }
 0x6bb   : > { %2718 = vmatprep.mubr.msk.bf16.mxu1 %vm2913_vm0, %v2912_v1  ;;  %2717 = vmatpush3.bf16.msra.mxu1 %v2797_v50  ;;  %v2538_v50 = vld [vmem:[%s3507_s7] ss:$0 sm:$0xff] }
 0x6bc   : > { %v1631_v49 = vpack.c.bf16 %v1627_v47, %v1627_v47  ;;  %2728 = vmatprep.subr.bf16.mxu1 %v2912_v1 }
 0x6be   : > { %2713 = vmatmul.mubr.msk.bf16.vlgmr.msra.gmra.mxu0 %vm1080_vm6, %v1631_v49 }
 0x6bf   : > { %2723 = vmatpush3.bf16.msra.mxu0 %v2796_v61  ;;  %2724 = vmatprep.mubr.msk.bf16.mxu0 %vm2913_vm0, %v2912_v1 }
 0x6c0   : > { %2736 = vmatprep.subr.bf16.mxu0 %v2912_v1 }
 0x6c6   : > { %2725 = vmatmul.mubr.msk.bf16.vlgmr.msra.gmra.mxu0 %vm826_vm3, %v3331_v36 }
 0x6c7   : > { %2752 = vmatprep.mubr.msk.bf16.mxu0 %vm2913_vm0, %v2912_v1  ;;  %2737 = vmatpush3.bf16.msra.mxu0 %v2800_v26 }
 0x6c8   : > { %2738 = vmatprep.subr.bf16.mxu0 %v2912_v1 }
 0x6cb   : > { %2739 = vmatpush3.bf16.msra.mxu0 %v2801_v3 }
 0x6cc   : > { %2740 = vmatprep.subr.bf16.mxu0 %v2912_v1 }
 0x6cf   : > { %2741 = vmatpush3.bf16.msra.mxu0 %v2802_v5 }
 0x6d0   : > { %2742 = vmatprep.subr.bf16.mxu0 %v2912_v1 }
 0x6d3   : > { %2743 = vmatpush3.bf16.msra.mxu0 %v2803_v6 }
 0x6d4   : > { %2744 = vmatprep.subr.bf16.mxu0 %v2912_v1 }
 0x772   : > { %v1674_v41 = vpop.f32.mrf.mxu1 }
 0x774   : > { %v2696_v39 = vpop.f32.mrf.mxu1  ;;  %v1722_v51 = vpop.f32.mrf.mxu0 }
 0x775   : > { %v1828_v23 = vcombine.low %v1674_v41, %v1722_v51  ;;  %v2539_v39 = vld [vmem:[%s3508_s8] ss:$0 sm:$0xff] }
 0x776   : > { %v1677_v52 = vpop.f32.mrf.mxu1  ;;  %v2702_v53 = vpop.f32.mrf.mxu0 }
 0x778   : > { %v2697_v56 = vpop.f32.mrf.mxu1  ;;  %v1725_v58 = vpop.f32.mrf.mxu0 }
 0x77a   : > { %v2703_v45 = vpop.f32.mrf.mxu0  ;;  %v1770_v59 = vpop.f32.mrf.mxu1 }
 0x77c   : > { %v2708_v36 = vpop.f32.mrf.mxu1 }
 0x77e   : > { %v1773_v18 = vpop.f32.mrf.mxu1  ;;  %v1818_v62 = vpop.f32.mrf.mxu0 }
 0x77f   : > { %v1829_v48 = vcombine.low %v1770_v59, %v1818_v62 }
 0x780   : > { %v2709_v37 = vpop.f32.mrf.mxu1  ;;  %v2714_v60 = vpop.f32.mrf.mxu0 }
 0x781   : > { %v1832_v54 = vpack.c.bf16 %v1829_v48, %v1828_v23  ;;  %v2807_v60 = vld [vmem:[%s3511_s11] sm:$0xff]  }
 0x782   : > { %v1821_v2 = vpop.f32.mrf.mxu0 }
 0x783   : > { %2719 = vmatmul.mubr.msk.bf16.vlgmr.msra.gmra.mxu1 %vm826_vm3, %v1832_v54  ;;  %v2540_v54 = vld [vmem:[%s3510_s10] ss:$0 sm:$0xff] }
 0x784   : > { %v2715_v12 = vpop.f32.mrf.mxu0  ;;  %2732 = vmatprep.mubr.msk.bf16.mxu1 %vm2913_vm0, %v2912_v1  ;;  %2729 = vmatpush3.bf16.msra.mxu1 %v2798_v42 }
 0x785   : > { %2730 = vmatprep.subr.bf16.mxu1 %v2912_v1 }
 0x786   : > { %v1926_v13 = vpop.f32.mrf.mxu0 }
 0x788   : > { %v2726_v57 = vpop.f32.mrf.mxu0  ;;  %2731 = vmatpush3.bf16.msra.mxu1 %v2799_v55 }
 0x78a   : > { %v1929_v0 = vpop.f32.mrf.mxu0 }
 0x78c   : > { %v2727_v14 = vpop.f32.mrf.mxu0 }
 0x843   : > { %v1876_v17 = vpop.f32.mrf.mxu1 }
 0x844   : > { %v1927_v15 = vadd.f32 %v1926_v13, %v1876_v17 }
 0x845   : > { %v2720_v20 = vpop.f32.mrf.mxu1 }
 0x846   : > { %v1940_v22 = vadd.f32 %v2537_v19, %v1927_v15 }
 0x847   : > { %v1879_v24 = vpop.f32.mrf.mxu1 }
 0x848   : > { %v1930_v16 = vadd.f32 %v1929_v0, %v1879_v24  ;;  %v1944_v25 = vsel %vm678_vm1, %v1940_v22, 0.0 }
 0x849   : > { %1945 = vadd.xlane.f32.xlu0 %v1944_v25  ;;  %v2721_v27 = vpop.f32.mrf.mxu1 }
 0x84a   : > { %v1941_v28 = vadd.f32 %v2537_v19, %v1930_v16 }
 0x84c   : > { %v1947_v29 = vsel %vm678_vm1, %v1941_v28, 0.0 }
 0x84d   : > { %1948 = vadd.xlane.f32.xlu1 %v1947_v29  ;;  %v2544_v29 = vld [vmem:[%s3512_s12] ss:$0 sm:$0xff] }
 0x8d2   : > { %v1946_v31 = vpop.xlane.xlu0 %1945 }
 0x8d3   : > { %v1951_v32 = vmul.f32 0.03125, %v1946_v31 }
 0x8d5   : > { %v1953_v21 = vsub.f32 %v1940_v22, %v1951_v32 }
 0x8d6   : > { %v1949_v33 = vpop.xlane.xlu1 %1948 }
 0x8d7   : > { %v1952_v34 = vmul.f32 0.03125, %v1949_v33  ;;  %v1955_v35 = vmul.f32 %v1953_v21, %v1953_v21 }
 0x8d9   : > { %v1954_v30 = vsub.f32 %v1941_v28, %v1952_v34  ;;  %v1957_v63 = vsel %vm678_vm1, %v1955_v35, 0.0 }
 0x8da   : > { %1958 = vadd.xlane.f32.xlu0 %v1957_v63 }
 0x8db   : > { %v1956_v43 = vmul.f32 %v1954_v30, %v1954_v30 }
 0x8dd   : > { %v1960_v38 = vsel %vm678_vm1, %v1956_v43, 0.0 }
 0x8de   : > { %1961 = vadd.xlane.f32.xlu0 %v1960_v38 }
 0x963   : > { %v1959_v40 = vpop.xlane.xlu0 %1958 }
 0x964   : > { %v1963_v44 = vmul.f32 0.03125, %v1959_v40 }
 0x966   : > { %v1965_v11 = vadd.f32 1e-05, %v1963_v44 }
 0x967   : > { %v1962_v46 = vpop.xlane.xlu0 %1961 }
 0x968   : > { %2872 = vrsqrt.f32 %v1965_v11  ;;  %v1964_v47 = vmul.f32 0.03125, %v1962_v46 }
 0x96a   : > { %v1966_v61 = vadd.f32 1e-05, %v1964_v47 }
 0x96c   : > { %2874 = vrsqrt.f32 %v1966_v61 }
 0x975   : > { %v2873_v49 = vpop.eup %2872 }
 0x976   : > { %v1969_v41 = vmul.f32 %v2873_v49, %v1953_v21 }
 0x978   : > { %v1977_v51 = vmul.f32 %v2538_v50, %v1969_v41 }
 0x979   : > { %v2875_v52 = vpop.eup %2874 }
 0x97a   : > { %v1970_v53 = vmul.f32 %v2875_v52, %v1954_v30  ;;  %v1985_v56 = vadd.f32 %v2539_v39, %v1977_v51 }
 0x97c   : > { %v1978_v58 = vmul.f32 %v2538_v50, %v1970_v53  ;;  %v1989_v45 = vcombine.high %v1985_v56, %v1985_v56  ;;  %v3414_v62 = vadd.f32 %v1985_v56, %v642_v7  ;;  %v2804_v7 = vld [vmem:[%s3511_s11 + $0x18] sm:$0xff]   ;;  %v2553_v53 = vld [vmem:[%s3513_s13] ss:$0 sm:$0xff] }
 0x97d   : > { %2745 = vmatpush3.bf16.msra.mxu0 %v2804_v7 }
 0x97e   : > { %v1986_v59 = vadd.f32 %v2539_v39, %v1978_v58  ;;  %v3410_v18 = vadd.f32 %v1989_v45, %v643_v8  ;;  %2746 = vmatprep.subr.bf16.mxu0 %v2912_v1  ;;  %v2554_v58 = vld [vmem:[%s3514_s14] ss:$0 sm:$0xff] }
 0x980   : > { %v1990_v36 = vcombine.high %v1986_v59, %v1986_v59  ;;  %v3418_v23 = vadd.f32 %v1986_v59, %v644_v9  ;;  %v2001_v37 = vcombine.low %v3414_v62, %v3410_v18  ;;  %v2805_v9 = vld [vmem:[%s3511_s11 + $0x10] sm:$0xff]  }
 0x981   : > { %2747 = vmatpush3.bf16.msra.mxu0 %v2805_v9 }
 0x982   : > { %v3422_v48 = vadd.f32 %v1990_v36, %v645_v10  ;;  %2748 = vmatprep.subr.bf16.mxu0 %v2912_v1  ;;  %v2806_v10 = vld [vmem:[%s3511_s11 + $0x8] sm:$0xff]  }
 0x984   : > { %v2002_v4 = vcombine.low %v3418_v23, %v3422_v48 }
 0x985   : > { %2749 = vmatpush3.bf16.msra.mxu0 %v2806_v10 }
 0x986   : > { %v2005_v8 = vpack.c.bf16 %v2002_v4, %v2001_v37  ;;  %2750 = vmatprep.subr.bf16.mxu0 %v2912_v1 }
 0x988   : > { %2733 = vmatmul.mubr.msk.bf16.vlgmr.msra.gmra.mxu1 %vm678_vm1, %v2005_v8 }
 0x989   : > { %2751 = vmatpush3.bf16.msra.mxu0 %v2807_v60 }
 0xa48   : > { %v2066_v2 = vpop.f32.mrf.mxu1 }
 0xa49   : > { %v2067_v12 = vadd.f32 %v2540_v54, %v2066_v2 }
 0xa4a   : > { %v2734_v13 = vpop.f32.mrf.mxu1 }
 0xa4b   : > { %v2075_v57 = vmul.f32 0.70710677, %v2067_v12  ;;  %v2073_v22 = vmul.f32 0.5, %v2067_v12  ;;  %v2920_v13 = vmov 839922192  }
 0xa4c   : > { %v2069_v0 = vpop.f32.mrf.mxu1 }
 0xa4d   : > { %2876 = verf.f32 %v2075_v57  ;;  %v2070_v14 = vadd.f32 %v2540_v54, %v2069_v0  ;;  %v2271_v57 = vunpack.c.l.s4 %v2920_v13  ;;  %v2273_v0 = vlaneseq }
 0xa4e   : > { %v2735_v17 = vpop.f32.mrf.mxu1 }
 0xa4f   : > { %v2076_v19 = vmul.f32 0.70710677, %v2070_v14  ;;  %v2074_v24 = vmul.f32 0.5, %v2070_v14  ;;  %v2274_v17 = vshrl.u32 %v2273_v0, 7 }
 0xa51   : > { %2878 = verf.f32 %v2076_v19 }
 0xa5a   : > { %v2877_v1 = vpop.eup %2876 }
 0xa5b   : > { %v2079_v15 = vadd.f32 1.0, %v2877_v1 }
 0xa5d   : > { %v2081_v25 = vmul.f32 %v2079_v15, %v2073_v22 }
 0xa5e   : > { %v2879_v20 = vpop.eup %2878 }
 0xa5f   : > { %v2080_v16 = vadd.f32 1.0, %v2879_v20 }
 0xa61   : > { %v2082_v27 = vmul.f32 %v2080_v16, %v2074_v24 }
 0xa63   : > { %v2083_v28 = vpack.c.bf16 %v2082_v27, %v2081_v25 }
 0xa65   : > { %2753 = vmatmul.mubr.bf16.vlgmr.msra.gmra.mxu0 %v2083_v28 }
 0xb25   : > { %v2189_v31 = vpop.f32.mrf.mxu0 }
 0xb26   : > { %v2190_v32 = vadd.f32 %v2544_v29, %v2189_v31 }
 0xb27   : > { %v2754_v21 = vpop.f32.mrf.mxu0 }
 0xb28   : > { %v2198_v33 = vsel %vm678_vm1, %v2190_v32, 0.0 }
 0xb29   : > { %2199 = vadd.xlane.f32.xlu1 %v2198_v33  ;;  %v2192_v34 = vpop.f32.mrf.mxu0 }
 0xb2a   : > { %v2193_v35 = vadd.f32 %v2544_v29, %v2192_v34 }
 0xb2b   : > { %v2755_v30 = vpop.f32.mrf.mxu0 }
 0xb2c   : > { %v2201_v63 = vsel %vm678_vm1, %v2193_v35, 0.0 }
 0xb2d   : > { %2202 = vadd.xlane.f32.xlu0 %v2201_v63 }
 0xbb2   : > { %v2200_v43 = vpop.xlane.xlu1 %2199 }
 0xbb3   : > { %v2204_v38 = vmul.f32 0.03125, %v2200_v43 }
 0xbb5   : > { %v2206_v42 = vsub.f32 %v2190_v32, %v2204_v38 }
 0xbb6   : > { %v2203_v55 = vpop.xlane.xlu0 %2202 }
 0xbb7   : > { %v2205_v26 = vmul.f32 0.03125, %v2203_v55  ;;  %v2208_v40 = vmul.f32 %v2206_v42, %v2206_v42 }
 0xbb9   : > { %v2207_v44 = vsub.f32 %v2193_v35, %v2205_v26  ;;  %v2210_v11 = vsel %vm678_vm1, %v2208_v40, 0.0 }
 0xbba   : > { %2211 = vadd.xlane.f32.xlu1 %v2210_v11 }
 0xbbb   : > { %v2209_v46 = vmul.f32 %v2207_v44, %v2207_v44 }
 0xbbd   : > { %v2213_v47 = vsel %vm678_vm1, %v2209_v46, 0.0  ;;  %v2555_v46 = vld [vmem:[%s3516_s16] ss:$0 sm:$0xff] }
 0xbbe   : > { %2214 = vadd.xlane.f32.xlu0 %v2213_v47 }
 0xc43   : > { %v2212_v61 = vpop.xlane.xlu1 %2211 }
 0xc44   : > { %v2216_v49 = vmul.f32 0.03125, %v2212_v61  ;;  %v2556_v61 = vld [vmem:[%s3517_s17] ss:$0 sm:$0xff] }
 0xc46   : > { %v2218_v50 = vadd.f32 1e-05, %v2216_v49  ;;  %v2374_v49 = vcombine.high %v2555_v46, %v2555_v46 }
 0xc47   : > { %v2215_v41 = vpop.xlane.xlu0 %2214 }
 0xc48   : > { %2880 = vrsqrt.f32 %v2218_v50  ;;  %v2217_v39 = vmul.f32 0.03125, %v2215_v41 }
 0xc4a   : > { %v2219_v51 = vadd.f32 1e-05, %v2217_v39  ;;  %v2386_v39 = vcombine.high %v2556_v61, %v2556_v61 }
 0xc4c   : > { %2882 = vrsqrt.f32 %v2219_v51 }
 0xc55   : > { %v2881_v52 = vpop.eup %2880 }
 0xc56   : > { %v2222_v56 = vmul.f32 %v2881_v52, %v2206_v42 }
 0xc58   : > { %v2230_v45 = vmul.f32 %v2553_v53, %v2222_v56 }
 0xc59   : > { %v2883_v59 = vpop.eup %2882 }
 0xc5a   : > { %v2238_v36 = vadd.f32 %v2554_v58, %v2230_v45  ;;  %v2223_v37 = vmul.f32 %v2883_v59, %v2207_v44 }
 0xc5c   : > { %v2242_v4 = vcombine.high %v2238_v36, %v2238_v36  ;;  %v2231_v8 = vmul.f32 %v2553_v53, %v2223_v37  ;;  %v2246_v3 = vadd.f32 %v2238_v36, %v3414_v62  ;;  %v2921_v62 = vmov 1985246804  }
 0xc5d   : > { %v2278_v14 = vunpack.c.l.s4 %v2921_v62 }
 0xc5e   : > { %v2247_v5 = vadd.f32 %v2242_v4, %v3410_v18  ;;  %v2239_v6 = vadd.f32 %v2554_v58, %v2231_v8  ;;  %v2272_v18 = vunpack.c.0.s8 %v2271_v57 }
 0xc5f   : > { %v2279_v19 = vunpack.c.0.s8 %v2278_v14 }
 0xc60   : > { %v2256_v7 = vcombine.low %v2246_v3, %v2247_v5  ;;  %v2243_v9 = vcombine.high %v2239_v6, %v2239_v6  ;;  %v2248_v60 = vadd.f32 %v2239_v6, %v3418_v23  ;;  %v2275_v1 = vsub.s32 %v2272_v18, %v2274_v17 }
 0xc61   : > { %v2282_v15 = vsub.s32 %v2279_v19, %v2274_v17 }
 0xc62   : > { %v2260_v10 = vsel %vm678_vm1, %v2256_v7, 0.0  ;;  %v2249_v54 = vadd.f32 %v2243_v9, %v3422_v48 }
 0xc63   : > { %2261 = vadd.xlane.f32.xlu1 %v2260_v10 }
 0xc64   : > { %v2257_v2 = vcombine.low %v2248_v60, %v2249_v54 }
 0xc66   : > { %v2263_v12 = vsel %vm678_vm1, %v2257_v2, 0.0 }
 0xc67   : > { %2264 = vadd.xlane.f32.xlu0 %v2263_v12 }
 0xcec   : > { %v2262_v20 = vpop.xlane.xlu1 %2261 }
 0xced   : > { %v2266_v22 = vmul.f32 0.03125, %v2262_v20 }
 0xcef   : > { %v2276_v23 = vrot.slane %v2266_v22, %v2275_v1  ;;  %v2283_v24 = vrot.slane %v2266_v22, %v2282_v15 }
 0xcf0   : > { %v2265_v48 = vpop.xlane.xlu0 %2264 }
 0xcf1   : > { %v2302_v16 = vsub.f32 %v2246_v3, %v2276_v23  ;;  %v2303_v25 = vsub.f32 %v2247_v5, %v2283_v24  ;;  %v2267_v27 = vmul.f32 0.03125, %v2265_v48 }
 0xcf3   : > { %v2290_v28 = vrot.slane %v2267_v27, %v2275_v1  ;;  %v2297_v29 = vrot.slane %v2267_v27, %v2282_v15  ;;  %v2306_v31 = vmul.f32 %v2302_v16, %v2302_v16  ;;  %v2307_v32 = vmul.f32 %v2303_v25, %v2303_v25 }
 0xcf5   : > { %v2304_v21 = vsub.f32 %v2248_v60, %v2290_v28  ;;  %v2305_v33 = vsub.f32 %v2249_v54, %v2297_v29  ;;  %v2314_v34 = vcombine.low %v2306_v31, %v2307_v32 }
 0xcf7   : > { %v2318_v35 = vsel %vm678_vm1, %v2314_v34, 0.0  ;;  %v2308_v30 = vmul.f32 %v2304_v21, %v2304_v21  ;;  %v2309_v63 = vmul.f32 %v2305_v33, %v2305_v33 }
 0xcf8   : > { %2319 = vadd.xlane.f32.xlu1 %v2318_v35 }
 0xcf9   : > { %v2315_v43 = vcombine.low %v2308_v30, %v2309_v63 }
 0xcfb   : > { %v2321_v38 = vsel %vm678_vm1, %v2315_v43, 0.0 }
 0xcfc   : > { %2322 = vadd.xlane.f32.xlu0 %v2321_v38 }
 0xd81   : > { %v2320_v42 = vpop.xlane.xlu1 %2319 }
 0xd82   : > { %v2324_v55 = vmul.f32 0.03125, %v2320_v42 }
 0xd84   : > { %v2326_v26 = vadd.f32 1e-05, %v2324_v55 }
 0xd85   : > { %v2323_v40 = vpop.xlane.xlu0 %2322 }
 0xd86   : > { %2884 = vrsqrt.f32 %v2326_v26  ;;  %v2325_v44 = vmul.f32 0.03125, %v2323_v40 }
 0xd88   : > { %v2327_v11 = vadd.f32 1e-05, %v2325_v44 }
 0xd8a   : > { %2886 = vrsqrt.f32 %v2327_v11 }
 0xd93   : > { %v2885_v47 = vpop.eup %2884 }
 0xd94   : > { %v2338_v50 = vrot.slane %v2885_v47, %v2275_v1  ;;  %v2345_v41 = vrot.slane %v2885_v47, %v2282_v15 }
 0xd96   : > { %v2364_v51 = vmul.f32 %v2338_v50, %v2302_v16  ;;  %v2365_v52 = vmul.f32 %v2345_v41, %v2303_v25 }
 0xd97   : > { %v2887_v53 = vpop.eup %2886 }
 0xd98   : > { %v2376_v56 = vmul.f32 %v2555_v46, %v2364_v51  ;;  %v2377_v58 = vmul.f32 %v2374_v49, %v2365_v52  ;;  %v2352_v45 = vrot.slane %v2887_v53, %v2275_v1  ;;  %v2359_v59 = vrot.slane %v2887_v53, %v2282_v15 }
 0xd9a   : > { %v2388_v36 = vadd.f32 %v2556_v61, %v2376_v56  ;;  %v2389_v37 = vadd.f32 %v2386_v39, %v2377_v58  ;;  %v2366_v4 = vmul.f32 %v2352_v45, %v2304_v21  ;;  %v2367_v8 = vmul.f32 %v2359_v59, %v2305_v33 }
 0xd9c   : > { %v2392_v3 = vpack.c.bf16 %v2388_v36, %v2388_v36  ;;  %v2393_v5 = vpack.c.bf16 %v2389_v37, %v2389_v37  ;;  %v2378_v6 = vmul.f32 %v2555_v46, %v2366_v4  ;;  %v2379_v7 = vmul.f32 %v2374_v49, %v2367_v8 }
 0xd9e   : > { %2397 = vst.msk [vmem:[%s635_s25] sm:$0x3] %vm2396_vm7, %v2392_v3  ;;  %2398 = vst.msk [vmem:[%s635_s25 + $0x2] sm:$0x3] %vm2396_vm7, %v2393_v5  ;;  %v2390_v9 = vadd.f32 %v2556_v61, %v2378_v6  ;;  %v2391_v10 = vadd.f32 %v2386_v39, %v2379_v7 }
 0xda0   : > { %v2394_v60 = vpack.c.bf16 %v2390_v9, %v2390_v9  ;;  %v2395_v54 = vpack.c.bf16 %v2391_v10, %v2391_v10 }
 0xda2   : > { %2399 = vst.msk [vmem:[%s635_s25 + $0x4] sm:$0x3] %vm2396_vm7, %v2394_v60  ;;  %2400 = vst.msk [vmem:[%s635_s25 + $0x6] sm:$0x3] %vm2396_vm7, %v2395_v54 }
 0xda3 PF: > { %s28_s29 = sadd.s32 1, %s2910_s29   ;;  %s3526_s27 = smov %s2906_s28 }
 0xda4   : > { %p25_p5 = scmp.ge.s32.totalorder %s28_s29, 4   ;;  %s3527_s28 = smov %s3529_s30 }
 0xda6   :  { %27 = sbr.rel (!%p25_p5) target bundleno = 4 (0x4), region = 125 }

// kernel: _lambda_.10
= control target key start
LH: loop header
LB: loop body
LE: loop exit
PB: predicated region body
PF: predicated region fallthrough
CT: control target
= control target key end

     0   :  { %s2262_s18 = smov 0   ;;  %s2264_s19 = smov 0   ;;  %s2605_s0 = inlined_call_operand.vmem [shape: bf16[2,1,4,64], index: 0, kind: input, shape index: {}]   ;;  %s2606_s1 = inlined_call_operand.vmem [shape: bf16[64,192], index: 1, kind: input, shape index: {}]   ;;  %s2607_s2 = inlined_call_operand.vmem [shape: f32[1,192], index: 2, kind: input, shape index: {}]   ;;  %s2608_s3 = inlined_call_operand.vmem [shape: bf16[64,64], index: 3, kind: input, shape index: {}]   ;;  %s2609_s4 = inlined_call_operand.vmem [shape: f32[1,64], index: 4, kind: input, shape index: {}, may-alias: {4,8,12,14}]   ;;  %s2610_s5 = inlined_call_operand.vmem [shape: f32[1,4], index: 5, kind: input, shape index: {}]   ;;  %s2611_s6 = inlined_call_operand.vmem [shape: f32[4,4,4], index: 6, kind: input, shape index: {}]   ;;  %s2612_s7 = inlined_call_operand.vmem [shape: f32[1,64], index: 7, kind: input, shape index: {}, may-alias: {7,13}]   ;;  %s2613_s8 = inlined_call_operand.vmem [shape: f32[1,64], index: 8, kind: input, shape index: {}, may-alias: {4,8,12,14}]   ;;  %s2614_s9 = inlined_call_operand.vmem [shape: bf16[64,256], index: 9, kind: input, shape index: {}]   ;;  %s2615_s10 = inlined_call_operand.vmem [shape: f32[1,256], index: 10, kind: input, shape index: {}]   ;;  %s2616_s11 = inlined_call_operand.vmem [shape: bf16[256,64], index: 11, kind: input, shape index: {}]   ;;  %s2617_s12 = inlined_call_operand.vmem [shape: f32[1,64], index: 12, kind: input, shape index: {}, may-alias: {4,8,12,14}]   ;;  %s2618_s13 = inlined_call_operand.vmem [shape: f32[1,64], index: 13, kind: input, shape index: {}, may-alias: {7,13}]   ;;  %s2619_s14 = inlined_call_operand.vmem [shape: f32[1,64], index: 14, kind: input, shape index: {}, may-alias: {4,8,12,14}]   ;;  %s2620_s15 = inlined_call_operand.vmem [shape: bf16[2,1,4,64], index: 15, kind: output, shape index: {}]  }
   0x1   :  { %s2266_s20 = smov 0  }
   0x2 LB: > { %s37_s21 = sadd.s32 1, %s2163_s19  ;;  %p1835_p0 = scmp.ge.s32.totalorder %s2167_s20, 1  ;;  %s2167_s20 = sphi %s2266_s20, %s25_s20   ;;  %s2163_s19 = sphi %s2264_s19, %s2624_s19   ;;  %s2159_s18 = sphi %s2262_s18, %s2623_s18  }
   0x3   : > { %p39_p1 = scmp.ge.s32.totalorder %s37_s21, 2  ;;  %p455_p2 = scmp.lt.s32.totalorder %s2167_s20, 3 }
   0x5   : > { %s2626_s21 = smov (%p39_p1, %s37_s21), 0  ;;  %p456_p3 = pnand %p1835_p0, %p455_p2 }
   0x6   : > { %2621 = sst [smem:[#allocation2_spill]] %s2626_s21  ;;  %p507_p4 = scmp.lt.s32.totalorder (!%p456_p3), %s2159_s18, 1 }
   0x7   : > { %459 = sbr.rel (%p456_p3) target bundleno = 3870 (0xf1e), region = 80  ;;  %s2171_s23 = smov (!%p456_p3), 112  }
   0x8   : > { %s2172_s24 = smov (!%p456_p3), 64   ;;  %s2173_s25 = smov (!%p456_p3), 48  }
   0x9   : > { %s2174_s26 = smov (!%p456_p3), 127   ;;  %s2176_s22 = smov (!%p456_p3), 32  }
   0xa   : > { %s2179_s30 = smov (!%p456_p3), 80   ;;  %s2180_s16 = smov (!%p456_p3), 125  }
   0xb   : > { %s2181_s21 = smov (!%p456_p3), 16  }
   0xc   : > { %v2060_v0 = vld [vmem:[%s2606_s1 + $0x34] ss:$8 sps:$4 sm:$0xff]   ;;  %v2062_v1 = vld [vmem:[%s2606_s1 + $0x30] ss:$8 sps:$4 sm:$0xff]   ;;  %v2169_v2 = vmov 0   ;;  %s2628_s18 = smov (!%p507_p4, %s2159_s18), 1  ;;  %v535_v13 = vlaneseq }
   0xd   : > { %621 = vmatprep.mubr.bf16.mxu0 %v2169_v2  ;;  %597 = vmatprep.subr.bf16.mxu0 %v2060_v0  ;;  %v2063_v3 = vld [vmem:[%s2606_s1 + $0x24] ss:$8 sps:$4 sm:$0xff]   ;;  %v2065_v4 = vld [vmem:[%s2606_s1 + $0x20] ss:$8 sps:$4 sm:$0xff]   ;;  %v2066_v5 = vld [vmem:[%s2606_s1 + $0x14] ss:$8 sps:$4 sm:$0xff]  }
   0xe   : > { %598 = vmatpush1.bf16.msra.mxu0 %v2062_v1  ;;  %s1836_s17 = sshll.u32 %s2628_s18, 1  ;;  %v2068_v6 = vld [vmem:[%s2606_s1 + $0x10] ss:$8 sps:$4 sm:$0xff]   ;;  %v2069_v7 = vld [vmem:[%s2606_s1 + $0x4] ss:$8 sps:$4 sm:$0xff]   ;;  %vm585_vm0 = vcmask 523264  }
   0xf   : > { %599 = vmatprep.subr.bf16.mxu0 %v2063_v3  ;;  %s513_s28 = scalar_lea.vmem %s2605_s0, %s1836_s17  ;;  %v2071_v8 = vld [vmem:[%s2606_s1] ss:$8 sps:$4 sm:$0xff]   ;;  %v2170_v11 = vmov 0.0   ;;  %v2326_v14 = vshrl.u32 %v535_v13, 7  ;;  %vm734_vm1 = vcmask 1041408   ;;  %vm644_vm2 = vcmask 125952  }
  0x10   : > { %v2313_v9 = vld [vmem:[%s513_s28] sm:$0x3]  ;;  %1949 = vmatprep.subr.bf16.mxu1 %v2170_v11  ;;  %vm2175_vm3 = vmmov 0   ;;  %vm669_vm4 = vcmask 130048   ;;  %vm716_vm5 = vcmask 27648   ;;  %vm730_vm6 = vcmask 31744  }
  0x11   : > { %v1838_v10 = vcombine.low %v2313_v9, %v2313_v9  ;;  %v2323_v12 = vld [vmem:[%s2610_s5] sm:$0x1]  ;;  %v537_v15 = vsub.s32 0, %v2326_v14  ;;  %v541_v17 = vsub.s32 1, %v2326_v14  ;;  %1951 = vmatprep.mubr.msk.bf16.mxu1 %vm2175_vm3, %v2170_v11  ;;  %v632_v13 = vld [vmem:[%s2611_s6 + $0x4] sm:$0xf] }
  0x12   : > { %600 = vmatpush1.bf16.msra.mxu0 %v2065_v4  ;;  %2015 = vpush %v2323_v12  ;;  %v533_v16 = vld [vmem:[%s2607_s2] sm:$0x3]  ;;  %vm1402_vm7 = vcmask 519168   ;;  %vm1755_vm8 = vcmask 517120  }
  0x13   : > { %601 = vmatprep.subr.bf16.mxu0 %v2066_v5  ;;  %v538_v18 = vrot.slane %v533_v16, %v537_v15  ;;  %v542_v19 = vrot.slane %v533_v16, %v541_v17  ;;  %v631_v3 = vld [vmem:[%s2611_s6] sm:$0xf] }
  0x16   : > { %602 = vmatpush1.bf16.msra.mxu0 %v2068_v6 }
  0x17   : > { %603 = vmatprep.subr.bf16.mxu0 %v2069_v7 }
  0x1a   : > { %604 = vmatpush1.bf16.msra.mxu0 %v2071_v8 }
  0x1b   : > { %1943 = vmatprep.subr.bf16.mxu0 %v2170_v11 }
  0x1d   : > { %1847 = vmatmul.mubr.msk.bf16.vlgmr.msra.gmra.mxu0 %vm585_vm0, %v1838_v10 }
  0x1e   : > { %1945 = vmatprep.mubr.msk.bf16.mxu0 %vm2175_vm3, %v2170_v11 }
  0x43   : > { %s2016_s27 = spop %2015 }
  0x44   : > { %v651_v57 = vstv %s2016_s27 }
  0xdd   : > { %v623_v20 = vpop.f32.mrf.mxu0 }
  0xde   : > { %v2337_v21 = vadd.f32 %v623_v20, %v538_v18 }
  0xdf   : > { %v625_v22 = vpop.f32.mrf.mxu0 }
  0xe0   : > { %v626_v23 = vadd.f32 %v625_v22, %v542_v19  ;;  %v2341_v24 = vmul.f32 %v2337_v21, %v2337_v21 }
  0xe1   : > { %v627_v25 = vpop.f32.mrf.mxu0 }
  0xe2   : > { %v2343_v26 = vpack.c.bf16 %v626_v23, %v626_v23  ;;  %779 = vrot.lane.b32.xlu1 %v2341_v24, %s2171_s23  ;;  %655 = vrot.lane.b32.xlu0 %v2341_v24, %s2172_s24  ;;  %v645_v36 = vsel %vm644_vm2, %v2341_v24, 0.0 }
  0xe3   : > { %v628_v27 = vpop.f32.mrf.mxu0 }
  0xe4   : > { %v736_v28 = vsel %vm734_vm1, %v2343_v26, 0 }
  0xe5   : > { %1950 = vmatpush3.bf16.msra.mxu1 %v736_v28 }
  0xe6   : > { %793 = vrot.lane.b32.xlu0 %v2341_v24, %s2173_s25  ;;  %787 = vrot.lane.b32.xlu1 %v2323_v12, %s2174_s26 }
  0xe7   : > { %1961 = vmatprep.subr.bf16.mxu1 %v2170_v11 }
 0x154   : > { %v780_v29 = vpop.permute.xlu1 %779  ;;  %v656_v30 = vpop.permute.xlu0 %655 }
 0x155   : > { %v658_v31 = vsel %vm644_vm2, %v656_v30, 0.0  ;;  %v782_v34 = vsel %vm644_vm2, %v780_v29, 0.0 }
 0x156   : > { %659 = vadd.xlane.f32.xlu0 %v658_v31 }
 0x158   : > { %v794_v32 = vpop.permute.xlu0 %793  ;;  %v788_v33 = vpop.permute.xlu1 %787 }
 0x159   : > { %v796_v35 = vsel %vm644_vm2, %v794_v32, 0.0  ;;  %2017 = vpush %v788_v33 }
 0x15a   : > { %783 = vadd.xlane.f32.xlu0 %v782_v34  ;;  %797 = vadd.xlane.f32.xlu1 %v796_v35 }
 0x15e   : > { %646 = vadd.xlane.f32.xlu0 %v645_v36 }
 0x18a   : > { %s2018_s28 = spop %2017 }
 0x18b   : > { %v790_v48 = vstv %s2018_s28 }
 0x1df   : > { %v660_v37 = vpop.xlane.xlu0 %659 }
 0x1e0   : > { %v661_v38 = vadd.f32 1e-24, %v660_v37 }
 0x1e2   : > { %2105 = vrsqrt.f32 %v661_v38 }
 0x1e3   : > { %v798_v39 = vpop.xlane.xlu1 %797  ;;  %v784_v40 = vpop.xlane.xlu0 %783 }
 0x1e4   : > { %v799_v41 = vadd.f32 1e-24, %v798_v39  ;;  %v785_v42 = vadd.f32 1e-24, %v784_v40 }
 0x1e6   : > { %2107 = vrsqrt.f32 %v799_v41 }
 0x1e7   : > { %2109 = vrsqrt.f32 %v785_v42  ;;  %v647_v54 = vpop.xlane.xlu0 %646 }
 0x1e8   : > { %v648_v55 = vadd.f32 1e-24, %v647_v54 }
 0x1ea   : > { %2111 = vrsqrt.f32 %v648_v55 }
 0x1ef   : > { %v2106_v43 = vpop.eup %2105 }
 0x1f0   : > { %v663_v44 = vmul.f32 %v2106_v43, %v2337_v21 }
 0x1f2   : > { %v665_v45 = vpack.c.bf16 %v663_v44, %v663_v44 }
 0x1f3   : > { %v2108_v46 = vpop.eup %2107 }
 0x1f4   : > { %v2110_v47 = vpop.eup %2109  ;;  %667 = vrot.lane.b32.xlu1 %v665_v45, %s2172_s24  ;;  %v801_v49 = vmul.f32 %v2108_v46, %v2337_v21  ;;  %s2177_s24 = smov 126  }
 0x1f5   : > { %v791_v50 = vmul.f32 %v2110_v47, %v790_v48 }
 0x1f6   : > { %v803_v51 = vpack.c.bf16 %v801_v49, %v801_v49 }
 0x1f7   : > { %v792_v52 = vmul.f32 %v791_v50, %v2337_v21  ;;  %v2112_v56 = vpop.eup %2111 }
 0x1f8   : > { %808 = vrot.lane.b32.xlu0 %v803_v51, %s2173_s25  ;;  %v652_v58 = vmul.f32 %v2112_v56, %v651_v57  ;;  %s2178_s25 = smov 96   ;;  %v2073_v51 = vld [vmem:[%s2608_s3] sm:$0xff]  }
 0x1f9   : > { %v802_v53 = vpack.c.bf16 %v792_v52, %v792_v52  ;;  %v2074_v52 = vld [vmem:[%s2608_s3 + $0x8] sm:$0xff]  }
 0x1fa   : > { %v653_v61 = vmul.f32 %v652_v58, %v2337_v21 }
 0x1fb   : > { %805 = vrot.lane.b32.xlu1 %v802_v53, %s2171_s23 }
 0x1fc   : > { %v664_v63 = vpack.c.bf16 %v653_v61, %v653_v61 }
 0x266   : > { %v668_v59 = vpop.permute.xlu1 %667 }
 0x267   : > { %v674_v60 = vsel %vm669_vm4, %v668_v59, 0 }
 0x268   : > { %1944 = vmatpush3.bf16.xpose.msra.mxu0 %v674_v60 }
 0x269   : > { %1955 = vmatprep.subr.bf16.mxu0 %v2170_v11 }
 0x26a   : > { %v809_v62 = vpop.permute.xlu0 %808 }
 0x26b   : > { %v814_v0 = vsel %vm669_vm4, %v809_v62, 0 }
 0x26d   : > { %v806_v1 = vpop.permute.xlu1 %805 }
 0x26f   : > { %1946 = vmatmul.mubr.msk.bf16.vlgmr.msra.gmra.mxu0 %vm669_vm4, %v664_v63 }
 0x270   : > { %1956 = vmatpush3.bf16.xpose.msra.mxu0 %v814_v0  ;;  %1957 = vmatprep.mubr.msk.bf16.mxu0 %vm2175_vm3, %v2170_v11 }
 0x271   : > { %1967 = vmatprep.subr.bf16.mxu0 %v2170_v11 }
 0x277   : > { %1958 = vmatmul.mubr.msk.bf16.vlgmr.msra.gmra.mxu0 %vm669_vm4, %v806_v1 }
 0x278   : > { %1969 = vmatprep.mubr.msk.bf16.mxu0 %vm2175_vm3, %v2170_v11  ;;  %1968 = vmatpush3.bf16.msra.mxu0 %v2074_v52 }
 0x279   : > { %1979 = vmatprep.subr.bf16.mxu0 %v2170_v11 }
 0x32f   : > { %v710_v4 = vpop.f32.mrf.mxu0 }
 0x330   : > { %v711_v5 = vadd.f32 %v710_v4, %v631_v3 }
 0x331   : > { %v1947_v6 = vpop.f32.mrf.mxu0 }
 0x332   : > { %v717_v7 = vsel %vm716_vm5, %v711_v5, -inf }
 0x333   : > { %718 = vmax.xlane.f32.xlu1 %v717_v7  ;;  %v713_v8 = vpop.f32.mrf.mxu0 }
 0x335   : > { %v1948_v10 = vpop.f32.mrf.mxu0 }
 0x337   : > { %v850_v16 = vpop.f32.mrf.mxu0 }
 0x338   : > { %v851_v18 = vadd.f32 %v850_v16, %v632_v13 }
 0x339   : > { %v1959_v19 = vpop.f32.mrf.mxu0 }
 0x33a   : > { %v856_v20 = vsel %vm716_vm5, %v851_v18, -inf }
 0x33b   : > { %857 = vmax.xlane.f32.xlu0 %v856_v20  ;;  %v853_v22 = vpop.f32.mrf.mxu0 }
 0x33d   : > { %v1960_v23 = vpop.f32.mrf.mxu0 }
 0x3bc   : > { %v719_v25 = vpop.xlane.xlu1 %718 }
 0x3bd   : > { %v720_v27 = vsub.f32 %v711_v5, %v719_v25 }
 0x3bf   : > { %v721_v28 = vmul.f32 1.442695, %v720_v27 }
 0x3c1   : > { %2113 = vpow2.f32 %v721_v28 }
 0x3c4   : > { %v858_v29 = vpop.xlane.xlu0 %857 }
 0x3c5   : > { %v859_v30 = vsub.f32 %v851_v18, %v858_v29 }
 0x3c7   : > { %v860_v31 = vmul.f32 1.442695, %v859_v30 }
 0x3c9   : > { %2115 = vpow2.f32 %v860_v31 }
 0x3ce   : > { %v2114_v32 = vpop.eup %2113 }
 0x3cf   : > { %v723_v33 = vsel %vm716_vm5, %v2114_v32, 0.0 }
 0x3d0   : > { %724 = vadd.xlane.f32.xlu0 %v723_v33 }
 0x3d6   : > { %v2116_v34 = vpop.eup %2115 }
 0x3d7   : > { %v862_v35 = vsel %vm716_vm5, %v2116_v34, 0.0 }
 0x3d8   : > { %863 = vadd.xlane.f32.xlu1 %v862_v35  ;;  %v633_v35 = vld [vmem:[%s2611_s6 + $0x8] sm:$0xf] }
 0x3e6   : > { %869 = vrot.lane.b32.xlu0 %v2343_v26, %s2171_s23 }
 0x3e9   : > { %1030 = vrot.lane.b32.xlu1 %v2341_v24, %s2176_s22 }
 0x3ea   : > { %1024 = vrot.lane.b32.xlu0 %v2323_v12, %s2177_s24 }
 0x3ed   : > { %1016 = vrot.lane.b32.xlu1 %v2341_v24, %s2178_s25 }
 0x459   : > { %v725_v36 = vpop.xlane.xlu0 %724 }
 0x45a   : > { %2117 = vrcp.f32 %v725_v36 }
 0x45d   : > { %v870_v37 = vpop.permute.xlu0 %869 }
 0x45e   : > { %v875_v47 = vsel %vm734_vm1, %v870_v37, 0 }
 0x461   : > { %v864_v38 = vpop.xlane.xlu1 %863  ;;  %v1025_v39 = vpop.permute.xlu0 %1024 }
 0x462   : > { %2119 = vrcp.f32 %v864_v38  ;;  %2019 = vpush %v1025_v39 }
 0x465   : > { %v1031_v40 = vpop.permute.xlu1 %1030 }
 0x466   : > { %v1033_v41 = vsel %vm644_vm2, %v1031_v40, 0.0 }
 0x467   : > { %v2118_v42 = vpop.eup %2117  ;;  %1034 = vadd.xlane.f32.xlu1 %v1033_v41 }
 0x468   : > { %v727_v43 = vmul.f32 %v2118_v42, %v2114_v32 }
 0x469   : > { %v1017_v44 = vpop.permute.xlu1 %1016 }
 0x46a   : > { %v1019_v45 = vsel %vm644_vm2, %v1017_v44, 0.0  ;;  %v728_v46 = vpack.c.bf16 %v727_v43, %v727_v43 }
 0x46b   : > { %1020 = vadd.xlane.f32.xlu0 %v1019_v45 }
 0x46c   : > { %1952 = vmatmul.mubr.msk.bf16.vlgmr.msra.gmra.mxu1 %vm730_vm6, %v728_v46 }
 0x46d   : > { %1962 = vmatpush3.bf16.msra.mxu1 %v875_v47  ;;  %1963 = vmatprep.mubr.msk.bf16.mxu1 %vm2175_vm3, %v2170_v11 }
 0x46e   : > { %1973 = vmatprep.subr.bf16.mxu1 %v2170_v11 }
 0x46f   : > { %v2120_v48 = vpop.eup %2119 }
 0x470   : > { %v866_v49 = vmul.f32 %v2120_v48, %v2116_v34 }
 0x472   : > { %v867_v50 = vpack.c.bf16 %v866_v49, %v866_v49 }
 0x474   : > { %1964 = vmatmul.mubr.msk.bf16.vlgmr.msra.gmra.mxu1 %vm730_vm6, %v867_v50 }
 0x475   : > { %1975 = vmatprep.mubr.msk.bf16.mxu1 %vm2175_vm3, %v2170_v11  ;;  %1974 = vmatpush3.bf16.msra.mxu1 %v2073_v51 }
 0x476   : > { %1985 = vmatprep.subr.bf16.mxu1 %v2170_v11 }
 0x493   : > { %s2020_s29 = spop %2019 }
 0x494   : > { %v1027_v61 = vstv %s2020_s29  ;;  %s520_s29 = scalar_lea.vmem %s2620_s15, %s1836_s17 }
 0x4f0   : > { %v1035_v53 = vpop.xlane.xlu1 %1034 }
 0x4f1   : > { %v1036_v54 = vadd.f32 1e-24, %v1035_v53 }
 0x4f3   : > { %2121 = vrsqrt.f32 %v1036_v54 }
 0x4f4   : > { %v1021_v55 = vpop.xlane.xlu0 %1020 }
 0x4f5   : > { %v1022_v56 = vadd.f32 1e-24, %v1021_v55 }
 0x4f7   : > { %2123 = vrsqrt.f32 %v1022_v56 }
 0x500   : > { %v2122_v57 = vpop.eup %2121 }
 0x501   : > { %v1038_v58 = vmul.f32 %v2122_v57, %v2337_v21 }
 0x503   : > { %v1040_v59 = vpack.c.bf16 %v1038_v58, %v1038_v58 }
 0x504   : > { %v2124_v60 = vpop.eup %2123 }
 0x505   : > { %1045 = vrot.lane.b32.xlu0 %v1040_v59, %s2176_s22  ;;  %v1028_v62 = vmul.f32 %v2124_v60, %v1027_v61 }
 0x507   : > { %v1029_v63 = vmul.f32 %v1028_v62, %v2337_v21 }
 0x509   : > { %1204 = vrot.lane.b32.xlu0 %v2341_v24, %s2179_s30  ;;  %v1039_v0 = vpack.c.bf16 %v1029_v63, %v1029_v63 }
 0x50b   : > { %1042 = vrot.lane.b32.xlu1 %v1039_v0, %s2178_s25 }
 0x50d   : > { %1212 = vrot.lane.b32.xlu0 %v2323_v12, %s2180_s16 }
 0x50f   : > { %1218 = vrot.lane.b32.xlu1 %v2341_v24, %s2181_s21 }
 0x52c   : > { %v772_v1 = vpop.f32.mrf.mxu1 }
 0x52d   : > { %v778_v3 = vpack.c.bf16 %v772_v1, %v772_v1 }
 0x52e   : > { %v1953_v4 = vpop.f32.mrf.mxu1 }
 0x52f   : > { %1976 = vmatmul.mubr.msk.bf16.vlgmr.msra.gmra.mxu1 %vm669_vm4, %v778_v3 }
 0x530   : > { %v775_v5 = vpop.f32.mrf.mxu1  ;;  %1987 = vmatprep.mubr.msk.bf16.mxu1 %vm2175_vm3, %v2170_v11 }
 0x531   : > { %v2075_v5 = vld [vmem:[%s2608_s3 + $0x10] sm:$0xff]  }
 0x532   : > { %v1954_v6 = vpop.f32.mrf.mxu1 }
 0x534   : > { %v911_v7 = vpop.f32.mrf.mxu1 }
 0x535   : > { %v917_v8 = vpack.c.bf16 %v911_v7, %v911_v7 }
 0x536   : > { %v1965_v10 = vpop.f32.mrf.mxu1 }
 0x537   : > { %1970 = vmatmul.mubr.msk.bf16.vlgmr.msra.gmra.mxu0 %vm669_vm4, %v917_v8 }
 0x538   : > { %v914_v12 = vpop.f32.mrf.mxu1  ;;  %1981 = vmatprep.mubr.msk.bf16.mxu0 %vm2175_vm3, %v2170_v11 }
 0x53a   : > { %v1966_v24 = vpop.f32.mrf.mxu1 }
 0x53b   : > { %v634_v24 = vld [vmem:[%s2611_s6 + $0xc] sm:$0xf] }
 0x577   : > { %v1046_v13 = vpop.permute.xlu0 %1045 }
 0x578   : > { %v1051_v16 = vsel %vm669_vm4, %v1046_v13, 0 }
 0x579   : > { %1980 = vmatpush3.bf16.xpose.msra.mxu0 %v1051_v16 }
 0x57a   : > { %1991 = vmatprep.subr.bf16.mxu0 %v2170_v11 }
 0x57b   : > { %v1205_v18 = vpop.permute.xlu0 %1204 }
 0x57c   : > { %v1207_v42 = vsel %vm644_vm2, %v1205_v18, 0.0 }
 0x57d   : > { %v1043_v19 = vpop.permute.xlu1 %1042 }
 0x57f   : > { %v1213_v20 = vpop.permute.xlu0 %1212 }
 0x580   : > { %1982 = vmatmul.mubr.msk.bf16.vlgmr.msra.gmra.mxu0 %vm669_vm4, %v1043_v19  ;;  %2021 = vpush %v1213_v20 }
 0x581   : > { %v1219_v22 = vpop.permute.xlu1 %1218  ;;  %1993 = vmatprep.mubr.msk.bf16.mxu0 %vm2175_vm3, %v2170_v11  ;;  %1992 = vmatpush3.bf16.msra.mxu0 %v2075_v5 }
 0x582   : > { %v1221_v23 = vsel %vm644_vm2, %v1219_v22, 0.0  ;;  %2003 = vmatprep.subr.bf16.mxu0 %v2170_v11 }
 0x583   : > { %1222 = vadd.xlane.f32.xlu0 %v1221_v23 }
 0x5b1   : > { %s2022_s23 = spop %2021 }
 0x5b2   : > { %v1215_v53 = vstv %s2022_s23 }
 0x5ef   : > { %v1010_v25 = vpop.f32.mrf.mxu1 }
 0x5f1   : > { %v1977_v27 = vpop.f32.mrf.mxu1 }
 0x5f3   : > { %v1013_v28 = vpop.f32.mrf.mxu1 }
 0x5f5   : > { %v1978_v29 = vpop.f32.mrf.mxu1 }
 0x5f7   : > { %v961_v30 = vpop.f32.mrf.mxu0 }
 0x5f8   : > { %v2437_v31 = vadd.f32 %v1010_v25, %v961_v30 }
 0x5f9   : > { %v1971_v32 = vpop.f32.mrf.mxu0 }
 0x5fb   : > { %v964_v33 = vpop.f32.mrf.mxu0 }
 0x5fc   : > { %v2076_v33 = vld [vmem:[%s2608_s3 + $0x18] sm:$0xff]  }
 0x5fd   : > { %v1972_v34 = vpop.f32.mrf.mxu0 }
 0x60c   : > { %v1223_v50 = vpop.xlane.xlu0 %1222 }
 0x60d   : > { %v1224_v51 = vadd.f32 1e-24, %v1223_v50 }
 0x640   : > { %v1087_v36 = vpop.f32.mrf.mxu0 }
 0x641   : > { %v1088_v37 = vadd.f32 %v1087_v36, %v633_v35 }
 0x642   : > { %v1983_v38 = vpop.f32.mrf.mxu0 }
 0x643   : > { %v1093_v39 = vsel %vm716_vm5, %v1088_v37, -inf }
 0x644   : > { %1094 = vmax.xlane.f32.xlu1 %v1093_v39  ;;  %v1090_v40 = vpop.f32.mrf.mxu0 }
 0x646   : > { %v1984_v41 = vpop.f32.mrf.mxu0 }
 0x648   : > { %1208 = vadd.xlane.f32.xlu1 %v1207_v42 }
 0x659   : > { %1105 = vrot.lane.b32.xlu1 %v2343_v26, %s2178_s25 }
 0x6cd   : > { %v1095_v43 = vpop.xlane.xlu1 %1094 }
 0x6ce   : > { %v1096_v44 = vsub.f32 %v1088_v37, %v1095_v43 }
 0x6d0   : > { %v1097_v45 = vmul.f32 1.442695, %v1096_v44 }
 0x6d1   : > { %v1209_v46 = vpop.xlane.xlu1 %1208 }
 0x6d2   : > { %2125 = vpow2.f32 %v1097_v45  ;;  %v1210_v47 = vadd.f32 1e-24, %v1209_v46  ;;  %v1864_v46 = vld [vmem:[%s2609_s4] ss:$0 sm:$0xff] }
 0x6d4   : > { %2127 = vrsqrt.f32 %v1210_v47 }
 0x6d5   : > { %v1106_v48 = vpop.permute.xlu1 %1105  ;;  %2129 = vrsqrt.f32 %v1224_v51 }
 0x6d6   : > { %v1111_v49 = vsel %vm734_vm1, %v1106_v48, 0 }
 0x6d7   : > { %1986 = vmatpush3.bf16.msra.mxu1 %v1111_v49 }
 0x6d8   : > { %1997 = vmatprep.subr.bf16.mxu1 %v2170_v11 }
 0x6df   : > { %v2126_v52 = vpop.eup %2125 }
 0x6e0   : > { %v1099_v54 = vsel %vm716_vm5, %v2126_v52, 0.0 }
 0x6e1   : > { %v2128_v55 = vpop.eup %2127  ;;  %1100 = vadd.xlane.f32.xlu0 %v1099_v54 }
 0x6e2   : > { %v1216_v56 = vmul.f32 %v2128_v55, %v1215_v53  ;;  %v2130_v59 = vpop.eup %2129 }
 0x6e3   : > { %v1226_v60 = vmul.f32 %v2130_v59, %v2337_v21  ;;  %v2082_v59 = vld [vmem:[%s2614_s9 + $0x24] ss:$8 sps:$4 sm:$0xff]  }
 0x6e4   : > { %v1217_v57 = vmul.f32 %v1216_v56, %v2337_v21 }
 0x6e5   : > { %v1228_v61 = vpack.c.bf16 %v1226_v60, %v1226_v60  ;;  %v2080_v60 = vld [vmem:[%s2614_s9 + $0x20] ss:$8 sps:$4 sm:$0xff]  }
 0x6e6   : > { %v1227_v58 = vpack.c.bf16 %v1217_v57, %v1217_v57  ;;  %v2079_v57 = vld [vmem:[%s2614_s9 + $0x34] ss:$8 sps:$4 sm:$0xff]  }
 0x6e8   : > { %1230 = vrot.lane.b32.xlu1 %v1227_v58, %s2179_s30  ;;  %v2077_v58 = vld [vmem:[%s2614_s9 + $0x30] ss:$8 sps:$4 sm:$0xff]  }
 0x6f7   : > { %1233 = vrot.lane.b32.xlu0 %v1228_v61, %s2181_s21  ;;  %v2085_v61 = vld [vmem:[%s2614_s9 + $0x14] ss:$8 sps:$4 sm:$0xff]  }
 0x75a   : > { %v1231_v21 = vpop.permute.xlu1 %1230 }
 0x76a   : > { %v1101_v62 = vpop.xlane.xlu0 %1100 }
 0x76b   : > { %2131 = vrcp.f32 %v1101_v62  ;;  %v2083_v62 = vld [vmem:[%s2614_s9 + $0x10] ss:$8 sps:$4 sm:$0xff]  }
 0x76e   : > { %v1234_v1 = vpop.permute.xlu0 %1233 }
 0x76f   : > { %v1239_v4 = vsel %vm669_vm4, %v1234_v1, 0  ;;  %v2089_v1 = vld [vmem:[%s2616_s11 + $0x78] sm:$0xff]  }
 0x778   : > { %v2132_v63 = vpop.eup %2131 }
 0x779   : > { %v1103_v0 = vmul.f32 %v2132_v63, %v2126_v52  ;;  %v2088_v63 = vld [vmem:[%s2614_s9 + $0x4] ss:$8 sps:$4 sm:$0xff]  }
 0x77b   : > { %v1104_v3 = vpack.c.bf16 %v1103_v0, %v1103_v0  ;;  %v2086_v0 = vld [vmem:[%s2614_s9] ss:$8 sps:$4 sm:$0xff]  }
 0x77d   : > { %1988 = vmatmul.mubr.msk.bf16.vlgmr.msra.gmra.mxu1 %vm730_vm6, %v1104_v3  ;;  %v2090_v3 = vld [vmem:[%s2616_s11 + $0x38] sm:$0xff]  }
 0x77e   : > { %1998 = vmatpush3.bf16.xpose.msra.mxu1 %v1239_v4  ;;  %1999 = vmatprep.mubr.msk.bf16.mxu1 %vm2175_vm3, %v2170_v11 }
 0x77f   : > { %2009 = vmatprep.subr.bf16.mxu1 %v2170_v11 }
 0x785   : > { %2000 = vmatmul.mubr.msk.bf16.vlgmr.msra.gmra.mxu1 %vm669_vm4, %v1231_v21 }
 0x786   : > { %2011 = vmatprep.mubr.msk.bf16.mxu1 %vm2175_vm3, %v2170_v11  ;;  %2010 = vmatpush3.bf16.msra.mxu1 %v2076_v33  ;;  %v2103_v33 = vld [vmem:[%s2616_s11 + $0x40] sm:$0xff]  }
 0x787   : > { %1921 = vmatprep.subr.bf16.mxu1 %v2089_v1 }
 0x83d   : > { %v1147_v6 = vpop.f32.mrf.mxu1 }
 0x83e   : > { %v1153_v7 = vpack.c.bf16 %v1147_v6, %v1147_v6 }
 0x83f   : > { %v1989_v8 = vpop.f32.mrf.mxu1 }
 0x840   : > { %1994 = vmatmul.mubr.msk.bf16.vlgmr.msra.gmra.mxu0 %vm669_vm4, %v1153_v7  ;;  %v1865_v7 = vld [vmem:[%s2612_s7] ss:$0 sm:$0xff] }
 0x841   : > { %v1150_v10 = vpop.f32.mrf.mxu1  ;;  %2005 = vmatprep.mubr.msk.bf16.mxu0 %vm2175_vm3, %v2170_v11 }
 0x842   : > { %v1866_v10 = vld [vmem:[%s2613_s8] ss:$0 sm:$0xff] }
 0x843   : > { %v1990_v12 = vpop.f32.mrf.mxu1 }
 0x844   : > { %v523_v12 = vunpack.c.l.bf16 %v2313_v9  ;;  %v2093_v9 = vld [vmem:[%s2616_s11 + $0x68] sm:$0xff]  }
 0x845   : > { %v1275_v13 = vpop.f32.mrf.mxu1 }
 0x846   : > { %v1276_v16 = vadd.f32 %v1275_v13, %v634_v24 }
 0x847   : > { %v2001_v18 = vpop.f32.mrf.mxu1 }
 0x848   : > { %v1281_v19 = vsel %vm716_vm5, %v1276_v16, -inf }
 0x849   : > { %1282 = vmax.xlane.f32.xlu1 %v1281_v19  ;;  %v1278_v20 = vpop.f32.mrf.mxu1  ;;  %v2091_v19 = vld [vmem:[%s2616_s11 + $0x70] sm:$0xff]  }
 0x84a   : > { %v2092_v20 = vld [vmem:[%s2616_s11 + $0x30] sm:$0xff]  }
 0x84b   : > { %v2002_v22 = vpop.f32.mrf.mxu1 }
 0x84c   : > { %v2094_v22 = vld [vmem:[%s2616_s11 + $0x28] sm:$0xff]  }
 0x8d2   : > { %v1283_v23 = vpop.xlane.xlu1 %1282 }
 0x8d3   : > { %v1284_v25 = vsub.f32 %v1276_v16, %v1283_v23  ;;  %v2095_v23 = vld [vmem:[%s2616_s11 + $0x60] sm:$0xff]  }
 0x8d5   : > { %v1285_v27 = vmul.f32 1.442695, %v1284_v25  ;;  %v2096_v25 = vld [vmem:[%s2616_s11 + $0x20] sm:$0xff]  }
 0x8d7   : > { %2133 = vpow2.f32 %v1285_v27  ;;  %v2097_v27 = vld [vmem:[%s2616_s11 + $0x58] sm:$0xff]  }
 0x8e4   : > { %v2134_v28 = vpop.eup %2133 }
 0x8e5   : > { %v1287_v11 = vsel %vm716_vm5, %v2134_v28, 0.0 }
 0x8e6   : > { %1288 = vadd.xlane.f32.xlu0 %v1287_v11  ;;  %v2099_v11 = vld [vmem:[%s2616_s11 + $0x50] sm:$0xff]  }
 0x8fc   : > { %1293 = vrot.lane.b32.xlu0 %v2343_v26, %s2179_s30 }
 0x900   : > { %v1197_v29 = vpop.f32.mrf.mxu0 }
 0x901   : > { %v1203_v30 = vadd.f32 %v1197_v29, %v2437_v31  ;;  %v2100_v29 = vld [vmem:[%s2616_s11 + $0x10] sm:$0xff]  }
 0x902   : > { %v1995_v32 = vpop.f32.mrf.mxu0 }
 0x903   : > { %v2102_v32 = vld [vmem:[%s2616_s11 + $0x8] sm:$0xff]  }
 0x904   : > { %v1200_v34 = vpop.f32.mrf.mxu0 }
 0x905   : > { %v2104_v34 = vld [vmem:[%s2616_s11] sm:$0xff]  }
 0x906   : > { %v1996_v35 = vpop.f32.mrf.mxu0 }
 0x907   : > { %v1441_v35 = vld [vmem:[%s2615_s10] sm:$0x3] }
 0x96f   : > { %v1289_v36 = vpop.xlane.xlu0 %1288 }
 0x970   : > { %2135 = vrcp.f32 %v1289_v36  ;;  %v1446_v36 = vrot.slane %v1441_v35, %v537_v15 }
 0x973   : > { %v1294_v37 = vpop.permute.xlu0 %1293 }
 0x974   : > { %v1299_v38 = vsel %vm734_vm1, %v1294_v37, 0  ;;  %v1450_v37 = vrot.slane %v1441_v35, %v541_v17 }
 0x975   : > { %2004 = vmatpush3.bf16.msra.mxu0 %v1299_v38 }
 0x976   : > { %1504 = vmatprep.subr.bf16.mxu0 %v2079_v57 }
 0x97d   : > { %v2136_v39 = vpop.eup %2135 }
 0x97e   : > { %v1291_v40 = vmul.f32 %v2136_v39, %v2134_v28  ;;  %v2098_v28 = vld [vmem:[%s2616_s11 + $0x18] sm:$0xff]  }
 0x980   : > { %v1292_v26 = vpack.c.bf16 %v1291_v40, %v1291_v40 }
 0x982   : > { %2006 = vmatmul.mubr.msk.bf16.vlgmr.msra.gmra.mxu0 %vm730_vm6, %v1292_v26 }
 0x983   : > { %1528 = vmatprep.mubr.bf16.mxu0 %v2169_v2  ;;  %1505 = vmatpush1.bf16.msra.mxu0 %v2077_v58 }
 0x984   : > { %1506 = vmatprep.subr.bf16.mxu0 %v2082_v59 }
 0x987   : > { %1507 = vmatpush1.bf16.msra.mxu0 %v2080_v60 }
 0x988   : > { %1508 = vmatprep.subr.bf16.mxu0 %v2085_v61 }
 0x98b   : > { %1509 = vmatpush1.bf16.msra.mxu0 %v2083_v62 }
 0x98c   : > { %1510 = vmatprep.subr.bf16.mxu0 %v2088_v63 }
 0x98f   : > { %1511 = vmatpush1.bf16.msra.mxu0 %v2086_v0 }
 0xa42   : > { %v1335_v31 = vpop.f32.mrf.mxu0 }
 0xa43   : > { %v1341_v41 = vpack.c.bf16 %v1335_v31, %v1335_v31 }
 0xa44   : > { %v2007_v42 = vpop.f32.mrf.mxu0 }
 0xa45   : > { %2012 = vmatmul.mubr.msk.bf16.vlgmr.msra.gmra.mxu1 %vm669_vm4, %v1341_v41 }
 0xa46   : > { %v1338_v43 = vpop.f32.mrf.mxu0  ;;  %1922 = vmatpush3.bf16.msra.mxu1 %v2090_v3 }
 0xa47   : > { %1923 = vmatprep.subr.bf16.mxu1 %v2091_v19 }
 0xa48   : > { %v2008_v44 = vpop.f32.mrf.mxu0 }
 0xa4a   : > { %1924 = vmatpush3.bf16.msra.mxu1 %v2092_v20 }
 0xa4b   : > { %1925 = vmatprep.subr.bf16.mxu1 %v2093_v9 }
 0xa4e   : > { %1926 = vmatpush3.bf16.msra.mxu1 %v2094_v22 }
 0xa4f   : > { %1927 = vmatprep.subr.bf16.mxu1 %v2095_v23 }
 0xa52   : > { %1928 = vmatpush3.bf16.msra.mxu1 %v2096_v25 }
 0xa53   : > { %1929 = vmatprep.subr.bf16.mxu1 %v2097_v27 }
 0xa56   : > { %1930 = vmatpush3.bf16.msra.mxu1 %v2098_v28 }
 0xa57   : > { %1931 = vmatprep.subr.bf16.mxu1 %v2099_v11 }
 0xa5a   : > { %1932 = vmatpush3.bf16.msra.mxu1 %v2100_v29 }
 0xb05   : > { %v1385_v45 = vpop.f32.mrf.mxu1 }
 0xb06   : > { %v1391_v47 = vadd.f32 %v1385_v45, %v1203_v30  ;;  %v2101_v30 = vld [vmem:[%s2616_s11 + $0x48] sm:$0xff]  }
 0xb07   : > { %v2013_v48 = vpop.f32.mrf.mxu1  ;;  %1933 = vmatprep.subr.bf16.mxu1 %v2101_v30 }
 0xb08   : > { %v1399_v49 = vadd.f32 %v1864_v46, %v1391_v47  ;;  %1934 = vmatpush3.bf16.msra.mxu1 %v2102_v32 }
 0xb09   : > { %v1388_v50 = vpop.f32.mrf.mxu1  ;;  %1935 = vmatprep.subr.bf16.mxu1 %v2103_v33 }
 0xb0a   : > { %v1403_v51 = vsel %vm1402_vm7, %v1399_v49, 0.0 }
 0xb0b   : > { %1404 = vadd.xlane.f32.xlu1 %v1403_v51  ;;  %v2014_v2 = vpop.f32.mrf.mxu1 }
 0xb0c   : > { %1936 = vmatpush3.bf16.msra.mxu1 %v2104_v34 }
 0xb94   : > { %v1405_v52 = vpop.xlane.xlu1 %1404 }
 0xb95   : > { %v1407_v53 = vmul.f32 0.015625, %v1405_v52  ;;  %v1876_v52 = vld [vmem:[%s2617_s12] ss:$0 sm:$0xff] }
 0xb97   : > { %v1408_v54 = vsub.f32 %v1399_v49, %v1407_v53 }
 0xb99   : > { %v1409_v55 = vmul.f32 %v1408_v54, %v1408_v54 }
 0xb9b   : > { %v1410_v56 = vsel %vm1402_vm7, %v1409_v55, 0.0 }
 0xb9c   : > { %1411 = vadd.xlane.f32.xlu1 %v1410_v56 }
 0xc25   : > { %v1412_v4 = vpop.xlane.xlu1 %1411 }
 0xc26   : > { %v1413_v21 = vmul.f32 0.015625, %v1412_v4  ;;  %v1893_v4 = vld [vmem:[%s2618_s13] ss:$0 sm:$0xff] }
 0xc28   : > { %v1414_v5 = vadd.f32 1e-05, %v1413_v21 }
 0xc2a   : > { %2137 = vrsqrt.f32 %v1414_v5  ;;  %v1894_v5 = vld [vmem:[%s2619_s14] ss:$0 sm:$0xff] }
 0xc37   : > { %v2138_v6 = vpop.eup %2137 }
 0xc38   : > { %v1416_v8 = vmul.f32 %v2138_v6, %v1408_v54 }
 0xc3a   : > { %v1423_v24 = vmul.f32 %v1865_v7, %v1416_v8 }
 0xc3c   : > { %v1430_v13 = vadd.f32 %v1866_v10, %v1423_v24 }
 0xc3e   : > { %v2525_v16 = vadd.f32 %v1430_v13, %v523_v12 }
 0xc40   : > { %v1432_v18 = vpack.c.bf16 %v2525_v16, %v2525_v16 }
 0xc42   : > { %1875 = vmatmul.mubr.msk.bf16.vlgmr.msra.gmra.mxu0 %vm585_vm0, %v1432_v18 }
 0xd02   : > { %v1530_v38 = vpop.f32.mrf.mxu0 }
 0xd03   : > { %v1531_v39 = vadd.f32 %v1530_v38, %v1446_v36 }
 0xd04   : > { %v1532_v40 = vpop.f32.mrf.mxu0 }
 0xd05   : > { %v1539_v26 = vmul.f32 0.70710677, %v1531_v39  ;;  %v1533_v31 = vadd.f32 %v1532_v40, %v1450_v37  ;;  %v1537_v47 = vmul.f32 0.5, %v1531_v39 }
 0xd06   : > { %v1534_v41 = vpop.f32.mrf.mxu0 }
 0xd07   : > { %2139 = verf.f32 %v1539_v26  ;;  %v1540_v42 = vmul.f32 0.70710677, %v1533_v31  ;;  %v1538_v48 = vmul.f32 0.5, %v1533_v31 }
 0xd08   : > { %v1535_v43 = vpop.f32.mrf.mxu0 }
 0xd09   : > { %2141 = verf.f32 %v1540_v42 }
 0xd14   : > { %v2140_v44 = vpop.eup %2139 }
 0xd15   : > { %v1543_v45 = vadd.f32 1.0, %v2140_v44 }
 0xd16   : > { %v2142_v46 = vpop.eup %2141 }
 0xd17   : > { %v1544_v49 = vadd.f32 1.0, %v2142_v46  ;;  %v1545_v15 = vmul.f32 %v1543_v45, %v1537_v47 }
 0xd19   : > { %v1546_v50 = vmul.f32 %v1544_v49, %v1538_v48  ;;  %v1547_v17 = vpack.c.bf16 %v1545_v15, %v1545_v15 }
 0xd1b   : > { %v1548_v14 = vpack.c.bf16 %v1546_v50, %v1546_v50 }
 0xd1d   : > { %1716 = vmatprep.mubr.bf16.mxu1 %v1548_v14 }
 0xd1e   : > { %1717 = vmatmul.mubr.bf16.vlgmr.msra.gmra.mxu1 %v1547_v17 }
 0xdde   : > { %v1937_v51 = vpop.f32.mrf.mxu1 }
 0xde0   : > { %v1938_v2 = vpop.f32.mrf.mxu1 }
 0xde1   : > { %v1939_v53 = vadd.f32 %v1938_v2, %v1937_v51 }
 0xde2   : > { %v1940_v54 = vpop.f32.mrf.mxu1 }
 0xde3   : > { %v1719_v55 = vadd.f32 %v1939_v53, %v1876_v52 }
 0xde4   : > { %v1941_v56 = vpop.f32.mrf.mxu1 }
 0xde5   : > { %v1726_v57 = vsel %vm1402_vm7, %v1719_v55, 0.0 }
 0xde6   : > { %1727 = vadd.xlane.f32.xlu1 %v1726_v57 }
 0xe6f   : > { %v1728_v58 = vpop.xlane.xlu1 %1727 }
 0xe70   : > { %v1729_v59 = vmul.f32 0.015625, %v1728_v58 }
 0xe72   : > { %v1730_v60 = vsub.f32 %v1719_v55, %v1729_v59 }
 0xe74   : > { %v1731_v61 = vmul.f32 %v1730_v60, %v1730_v60 }
 0xe76   : > { %v1732_v62 = vsel %vm1402_vm7, %v1731_v61, 0.0 }
 0xe77   : > { %1733 = vadd.xlane.f32.xlu1 %v1732_v62 }
 0xf00   : > { %v1734_v63 = vpop.xlane.xlu1 %1733 }
 0xf01   : > { %v1735_v0 = vmul.f32 0.015625, %v1734_v63 }
 0xf03   : > { %v1736_v1 = vadd.f32 1e-05, %v1735_v0 }
 0xf05   : > { %2143 = vrsqrt.f32 %v1736_v1 }
 0xf12   : > { %v2144_v3 = vpop.eup %2143 }
 0xf13   : > { %v1738_v21 = vmul.f32 %v2144_v3, %v1730_v60 }
 0xf15   : > { %v1745_v6 = vmul.f32 %v1893_v4, %v1738_v21 }
 0xf17   : > { %v1752_v7 = vadd.f32 %v1894_v5, %v1745_v6 }
 0xf19   : > { %v1753_v8 = vadd.f32 %v1752_v7, %v2525_v16 }
 0xf1b   : > { %v1754_v10 = vpack.c.bf16 %v1753_v8, %v1753_v8 }
 0xf1d   : > { %1756 = vst.msk [vmem:[%s520_s29] sm:$0x3] %vm1755_vm8, %v1754_v10 }
 0xf1e PF: > { %s25_s20 = sadd.s32 1, %s2167_s20   ;;  %s2622_s16 = sld [smem:[#allocation2_spill]] }
 0xf1f   : > { %p22_p5 = scmp.ge.s32.totalorder %s25_s20, 4   ;;  %s2623_s18 = smov %s2163_s19 }
 0xf21   :  { %24 = sbr.rel (!%p22_p5) target bundleno = 2 (0x2), region = 110 }
 0xf24   : > { %s2624_s19 = smov %s2622_s16 }

// kernel: _lambda_.11
= control target key start
LH: loop header
LB: loop body
LE: loop exit
PB: predicated region body
PF: predicated region fallthrough
CT: control target
= control target key end

     0   :  { %s2359_s24 = smov 0   ;;  %s2361_s25 = smov 0   ;;  %s2710_s0 = inlined_call_operand.vmem [shape: bf16[2,1,4,64], index: 0, kind: input, shape index: {}]   ;;  %s2711_s1 = inlined_call_operand.vmem [shape: bf16[64,192], index: 1, kind: input, shape index: {}]   ;;  %s2712_s2 = inlined_call_operand.vmem [shape: f32[1,192], index: 2, kind: input, shape index: {}]   ;;  %s2713_s3 = inlined_call_operand.vmem [shape: bf16[64,64], index: 3, kind: input, shape index: {}]   ;;  %s2714_s4 = inlined_call_operand.vmem [shape: f32[1,64], index: 4, kind: input, shape index: {}, may-alias: {4,8,12,14,16}]   ;;  %s2715_s5 = inlined_call_operand.vmem [shape: f32[1,4], index: 5, kind: input, shape index: {}]   ;;  %s2716_s6 = inlined_call_operand.vmem [shape: f32[4,4,4], index: 6, kind: input, shape index: {}]   ;;  %s2717_s7 = inlined_call_operand.vmem [shape: f32[1,64], index: 7, kind: input, shape index: {}, may-alias: {7,13,15}]   ;;  %s2718_s8 = inlined_call_operand.vmem [shape: f32[1,64], index: 8, kind: input, shape index: {}, may-alias: {4,8,12,14,16}]   ;;  %s2719_s9 = inlined_call_operand.vmem [shape: bf16[64,256], index: 9, kind: input, shape index: {}]   ;;  %s2720_s10 = inlined_call_operand.vmem [shape: f32[1,256], index: 10, kind: input, shape index: {}]   ;;  %s2721_s11 = inlined_call_operand.vmem [shape: bf16[256,64], index: 11, kind: input, shape index: {}]   ;;  %s2722_s12 = inlined_call_operand.vmem [shape: f32[1,64], index: 12, kind: input, shape index: {}, may-alias: {4,8,12,14,16}]   ;;  %s2723_s13 = inlined_call_operand.vmem [shape: f32[1,64], index: 13, kind: input, shape index: {}, may-alias: {7,13,15}]   ;;  %s2724_s14 = inlined_call_operand.vmem [shape: f32[1,64], index: 14, kind: input, shape index: {}, may-alias: {4,8,12,14,16}]   ;;  %s2725_s15 = inlined_call_operand.vmem [shape: f32[1,64], index: 15, kind: input, shape index: {}, may-alias: {7,13,15}]   ;;  %s2726_s16 = inlined_call_operand.vmem [shape: f32[1,64], index: 16, kind: input, shape index: {}, may-alias: {4,8,12,14,16}]   ;;  %s2727_s17 = inlined_call_operand.vmem [shape: bf16[2,1,4,64], index: 17, kind: output, shape index: {}]  }
   0x1   :  { %2731 = sst [smem:[#allocation5_spill]] %s2710_s0  ;;  %s2363_s26 = smov 0  }
   0x2   :  { %2732 = sst [smem:[#allocation6_spill]] %s2711_s1 }
   0x3 LB: > { %2733 = sst [smem:[#allocation2_spill]] %s2250_s25  ;;  %s39_s27 = sadd.s32 1, %s2250_s25  ;;  %s2254_s26 = sphi %s2363_s26, %s27_s26   ;;  %s2250_s25 = sphi %s2361_s25, %s2740_s25   ;;  %s2246_s24 = sphi %s2359_s24, %s2739_s24  }
   0x4   : > { %2734 = sst [smem:[#allocation3_spill]] %s2254_s26  ;;  %p1918_p0 = scmp.ge.s32.totalorder %s2254_s26, 1 }
   0x5   : > { %p41_p1 = scmp.ge.s32.totalorder %s39_s27, 2  ;;  %p505_p2 = scmp.lt.s32.totalorder %s2254_s26, 3 }
   0x7   : > { %s2742_s27 = smov (%p41_p1, %s39_s27), 0  ;;  %p506_p3 = pnand %p1918_p0, %p505_p2 }
   0x8   : > { %2735 = sst [smem:[#allocation4_spill]] %s2742_s27  ;;  %p561_p4 = scmp.lt.s32.totalorder (!%p506_p3), %s2246_s24, 1 }
   0x9   : > { %509 = sbr.rel (%p506_p3) target bundleno = 4181 (0x1055), region = 88  ;;  %s2736_s0 = sld [smem:[#allocation6_spill]] (!%p506_p3) }
   0xa   : > { %s2737_s25 = sld [smem:[#allocation5_spill]] (!%p506_p3)  ;;  %s2258_s23 = smov (!%p506_p3), 112  }
   0xb   : > { %s2259_s29 = smov (!%p506_p3), 64   ;;  %s2260_s30 = smov (!%p506_p3), 48  }
   0xc   : > { %s2261_s18 = smov (!%p506_p3), 127   ;;  %s2263_s26 = smov (!%p506_p3), 32  }
   0xd   : > { %s2264_s22 = smov (!%p506_p3), 126   ;;  %s2267_s21 = smov (!%p506_p3), 125  }
   0xe   : > { %v2256_v2 = vmov 0   ;;  %s2744_s24 = smov (!%p561_p4, %s2246_s24), 1  ;;  %vm639_vm0 = vcmask 523264   ;;  %v2257_v11 = vmov 0.0   ;;  %v2420_v12 = vld [vmem:[%s2715_s5] sm:$0x1]  ;;  %v589_v13 = vlaneseq }
   0xf   : > { %v2145_v0 = vld [vmem:[%s2736_s0 + $0x34] ss:$8 sps:$4 sm:$0xff]   ;;  %v2147_v1 = vld [vmem:[%s2736_s0 + $0x30] ss:$8 sps:$4 sm:$0xff]   ;;  %675 = vmatprep.mubr.bf16.mxu0 %v2256_v2  ;;  %v2148_v3 = vld [vmem:[%s2736_s0 + $0x24] ss:$8 sps:$4 sm:$0xff]   ;;  %2034 = vmatprep.subr.bf16.mxu1 %v2257_v11  ;;  %2100 = vpush %v2420_v12 }
  0x10   : > { %651 = vmatprep.subr.bf16.mxu0 %v2145_v0  ;;  %v2150_v4 = vld [vmem:[%s2736_s0 + $0x20] ss:$8 sps:$4 sm:$0xff]   ;;  %v2151_v5 = vld [vmem:[%s2736_s0 + $0x14] ss:$8 sps:$4 sm:$0xff]   ;;  %s1919_s28 = sshll.u32 %s2744_s24, 1  ;;  %v2423_v14 = vshrl.u32 %v589_v13, 7 }
  0x11   : > { %652 = vmatpush1.bf16.msra.mxu0 %v2147_v1  ;;  %v2153_v6 = vld [vmem:[%s2736_s0 + $0x10] ss:$8 sps:$4 sm:$0xff]   ;;  %v2154_v7 = vld [vmem:[%s2736_s0 + $0x4] ss:$8 sps:$4 sm:$0xff]   ;;  %s567_s20 = scalar_lea.vmem %s2737_s25, %s1919_s28  ;;  %v2156_v8 = vld [vmem:[%s2736_s0] ss:$8 sps:$4 sm:$0xff]  }
  0x12   : > { %653 = vmatprep.subr.bf16.mxu0 %v2148_v3  ;;  %v2410_v9 = vld [vmem:[%s567_s20] sm:$0x3]  ;;  %v591_v15 = vsub.s32 0, %v2423_v14  ;;  %v595_v17 = vsub.s32 1, %v2423_v14  ;;  %vm788_vm1 = vcmask 1041408   ;;  %vm698_vm2 = vcmask 125952  }
  0x13   : > { %v1921_v10 = vcombine.low %v2410_v9, %v2410_v9  ;;  %v587_v16 = vld [vmem:[%s2712_s2] sm:$0x3]  ;;  %vm2262_vm3 = vmmov 0   ;;  %vm723_vm4 = vcmask 130048   ;;  %vm770_vm5 = vcmask 27648   ;;  %s2266_s20 = smov 80  }
  0x14   : > { %v592_v18 = vrot.slane %v587_v16, %v591_v15  ;;  %v596_v19 = vrot.slane %v587_v16, %v595_v17  ;;  %2036 = vmatprep.mubr.msk.bf16.mxu1 %vm2262_vm3, %v2257_v11  ;;  %v685_v3 = vld [vmem:[%s2716_s6] sm:$0xf]  ;;  %v686_v13 = vld [vmem:[%s2716_s6 + $0x4] sm:$0xf]  ;;  %vm784_vm6 = vcmask 31744   ;;  %s2268_s25 = smov 16  }
  0x15   : > { %654 = vmatpush1.bf16.msra.mxu0 %v2150_v4  ;;  %vm1456_vm7 = vcmask 519168   ;;  %vm1838_vm8 = vcmask 517120  }
  0x16   : > { %655 = vmatprep.subr.bf16.mxu0 %v2151_v5 }
  0x19   : > { %656 = vmatpush1.bf16.msra.mxu0 %v2153_v6 }
  0x1a   : > { %657 = vmatprep.subr.bf16.mxu0 %v2154_v7 }
  0x1d   : > { %658 = vmatpush1.bf16.msra.mxu0 %v2156_v8 }
  0x1e   : > { %2028 = vmatprep.subr.bf16.mxu0 %v2257_v11 }
  0x20   : > { %1930 = vmatmul.mubr.msk.bf16.vlgmr.msra.gmra.mxu0 %vm639_vm0, %v1921_v10 }
  0x21   : > { %2030 = vmatprep.mubr.msk.bf16.mxu0 %vm2262_vm3, %v2257_v11 }
  0x40   : > { %s2101_s19 = spop %2100 }
  0x41   : > { %v705_v57 = vstv %s2101_s19 }
  0xe0   : > { %v677_v20 = vpop.f32.mrf.mxu0 }
  0xe1   : > { %v2434_v21 = vadd.f32 %v677_v20, %v592_v18 }
  0xe2   : > { %v679_v22 = vpop.f32.mrf.mxu0 }
  0xe3   : > { %v680_v23 = vadd.f32 %v679_v22, %v596_v19  ;;  %v2438_v24 = vmul.f32 %v2434_v21, %v2434_v21 }
  0xe4   : > { %v681_v25 = vpop.f32.mrf.mxu0 }
  0xe5   : > { %v2440_v26 = vpack.c.bf16 %v680_v23, %v680_v23  ;;  %833 = vrot.lane.b32.xlu1 %v2438_v24, %s2258_s23  ;;  %709 = vrot.lane.b32.xlu0 %v2438_v24, %s2259_s29  ;;  %v699_v36 = vsel %vm698_vm2, %v2438_v24, 0.0 }
  0xe6   : > { %v682_v27 = vpop.f32.mrf.mxu0 }
  0xe7   : > { %v790_v28 = vsel %vm788_vm1, %v2440_v26, 0 }
  0xe8   : > { %2035 = vmatpush3.bf16.msra.mxu1 %v790_v28 }
  0xe9   : > { %847 = vrot.lane.b32.xlu0 %v2438_v24, %s2260_s30  ;;  %841 = vrot.lane.b32.xlu1 %v2420_v12, %s2261_s18 }
  0xea   : > { %2046 = vmatprep.subr.bf16.mxu1 %v2257_v11 }
 0x157   : > { %v834_v29 = vpop.permute.xlu1 %833  ;;  %v710_v30 = vpop.permute.xlu0 %709 }
 0x158   : > { %v712_v31 = vsel %vm698_vm2, %v710_v30, 0.0  ;;  %v836_v34 = vsel %vm698_vm2, %v834_v29, 0.0 }
 0x159   : > { %713 = vadd.xlane.f32.xlu0 %v712_v31 }
 0x15b   : > { %v848_v32 = vpop.permute.xlu0 %847  ;;  %v842_v33 = vpop.permute.xlu1 %841 }
 0x15c   : > { %v850_v35 = vsel %vm698_vm2, %v848_v32, 0.0  ;;  %2102 = vpush %v842_v33 }
 0x15d   : > { %837 = vadd.xlane.f32.xlu0 %v836_v34  ;;  %851 = vadd.xlane.f32.xlu1 %v850_v35 }
 0x161   : > { %700 = vadd.xlane.f32.xlu0 %v699_v36 }
 0x18d   : > { %s2103_s1 = spop %2102 }
 0x18e   : > { %v844_v48 = vstv %s2103_s1 }
 0x1e2   : > { %v714_v37 = vpop.xlane.xlu0 %713 }
 0x1e3   : > { %v715_v38 = vadd.f32 1e-24, %v714_v37 }
 0x1e5   : > { %2190 = vrsqrt.f32 %v715_v38 }
 0x1e6   : > { %v852_v39 = vpop.xlane.xlu1 %851  ;;  %v838_v40 = vpop.xlane.xlu0 %837 }
 0x1e7   : > { %v853_v41 = vadd.f32 1e-24, %v852_v39  ;;  %v839_v42 = vadd.f32 1e-24, %v838_v40 }
 0x1e9   : > { %2192 = vrsqrt.f32 %v853_v41 }
 0x1ea   : > { %2194 = vrsqrt.f32 %v839_v42  ;;  %v701_v54 = vpop.xlane.xlu0 %700 }
 0x1eb   : > { %v702_v55 = vadd.f32 1e-24, %v701_v54 }
 0x1ed   : > { %2196 = vrsqrt.f32 %v702_v55 }
 0x1f2   : > { %v2191_v43 = vpop.eup %2190 }
 0x1f3   : > { %v717_v44 = vmul.f32 %v2191_v43, %v2434_v21 }
 0x1f5   : > { %v719_v45 = vpack.c.bf16 %v717_v44, %v717_v44 }
 0x1f6   : > { %v2193_v46 = vpop.eup %2192 }
 0x1f7   : > { %v2195_v47 = vpop.eup %2194  ;;  %721 = vrot.lane.b32.xlu1 %v719_v45, %s2259_s29  ;;  %v855_v49 = vmul.f32 %v2193_v46, %v2434_v21  ;;  %s2265_s29 = smov 96  }
 0x1f8   : > { %v845_v50 = vmul.f32 %v2195_v47, %v844_v48 }
 0x1f9   : > { %v857_v51 = vpack.c.bf16 %v855_v49, %v855_v49 }
 0x1fa   : > { %v846_v52 = vmul.f32 %v845_v50, %v2434_v21  ;;  %v2197_v56 = vpop.eup %2196 }
 0x1fb   : > { %862 = vrot.lane.b32.xlu0 %v857_v51, %s2260_s30  ;;  %v706_v58 = vmul.f32 %v2197_v56, %v705_v57  ;;  %v2158_v51 = vld [vmem:[%s2713_s3] sm:$0xff]   ;;  %s574_s30 = scalar_lea.vmem %s2727_s17, %s1919_s28 }
 0x1fc   : > { %v856_v53 = vpack.c.bf16 %v846_v52, %v846_v52  ;;  %v2159_v52 = vld [vmem:[%s2713_s3 + $0x8] sm:$0xff]  }
 0x1fd   : > { %v707_v61 = vmul.f32 %v706_v58, %v2434_v21 }
 0x1fe   : > { %859 = vrot.lane.b32.xlu1 %v856_v53, %s2258_s23 }
 0x1ff   : > { %v718_v63 = vpack.c.bf16 %v707_v61, %v707_v61 }
 0x269   : > { %v722_v59 = vpop.permute.xlu1 %721 }
 0x26a   : > { %v728_v60 = vsel %vm723_vm4, %v722_v59, 0 }
 0x26b   : > { %2029 = vmatpush3.bf16.xpose.msra.mxu0 %v728_v60 }
 0x26c   : > { %2040 = vmatprep.subr.bf16.mxu0 %v2257_v11 }
 0x26d   : > { %v863_v62 = vpop.permute.xlu0 %862 }
 0x26e   : > { %v868_v0 = vsel %vm723_vm4, %v863_v62, 0 }
 0x270   : > { %v860_v1 = vpop.permute.xlu1 %859 }
 0x272   : > { %2031 = vmatmul.mubr.msk.bf16.vlgmr.msra.gmra.mxu0 %vm723_vm4, %v718_v63 }
 0x273   : > { %2041 = vmatpush3.bf16.xpose.msra.mxu0 %v868_v0  ;;  %2042 = vmatprep.mubr.msk.bf16.mxu0 %vm2262_vm3, %v2257_v11 }
 0x274   : > { %2052 = vmatprep.subr.bf16.mxu0 %v2257_v11 }
 0x27a   : > { %2043 = vmatmul.mubr.msk.bf16.vlgmr.msra.gmra.mxu0 %vm723_vm4, %v860_v1 }
 0x27b   : > { %2054 = vmatprep.mubr.msk.bf16.mxu0 %vm2262_vm3, %v2257_v11  ;;  %2053 = vmatpush3.bf16.msra.mxu0 %v2159_v52 }
 0x27c   : > { %2064 = vmatprep.subr.bf16.mxu0 %v2257_v11 }
 0x332   : > { %v764_v4 = vpop.f32.mrf.mxu0 }
 0x333   : > { %v765_v5 = vadd.f32 %v764_v4, %v685_v3 }
 0x334   : > { %v2032_v6 = vpop.f32.mrf.mxu0 }
 0x335   : > { %v771_v7 = vsel %vm770_vm5, %v765_v5, -inf }
 0x336   : > { %772 = vmax.xlane.f32.xlu1 %v771_v7  ;;  %v767_v8 = vpop.f32.mrf.mxu0 }
 0x338   : > { %v2033_v10 = vpop.f32.mrf.mxu0 }
 0x33a   : > { %v904_v16 = vpop.f32.mrf.mxu0 }
 0x33b   : > { %v905_v18 = vadd.f32 %v904_v16, %v686_v13 }
 0x33c   : > { %v2044_v19 = vpop.f32.mrf.mxu0 }
 0x33d   : > { %v910_v20 = vsel %vm770_vm5, %v905_v18, -inf }
 0x33e   : > { %911 = vmax.xlane.f32.xlu0 %v910_v20  ;;  %v907_v22 = vpop.f32.mrf.mxu0 }
 0x340   : > { %v2045_v23 = vpop.f32.mrf.mxu0 }
 0x3bf   : > { %v773_v25 = vpop.xlane.xlu1 %772 }
 0x3c0   : > { %v774_v27 = vsub.f32 %v765_v5, %v773_v25 }
 0x3c2   : > { %v775_v28 = vmul.f32 1.442695, %v774_v27 }
 0x3c4   : > { %2198 = vpow2.f32 %v775_v28 }
 0x3c7   : > { %v912_v29 = vpop.xlane.xlu0 %911 }
 0x3c8   : > { %v913_v30 = vsub.f32 %v905_v18, %v912_v29 }
 0x3ca   : > { %v914_v31 = vmul.f32 1.442695, %v913_v30 }
 0x3cc   : > { %2200 = vpow2.f32 %v914_v31 }
 0x3d1   : > { %v2199_v32 = vpop.eup %2198 }
 0x3d2   : > { %v777_v33 = vsel %vm770_vm5, %v2199_v32, 0.0 }
 0x3d3   : > { %778 = vadd.xlane.f32.xlu0 %v777_v33 }
 0x3d9   : > { %v2201_v34 = vpop.eup %2200 }
 0x3da   : > { %v916_v35 = vsel %vm770_vm5, %v2201_v34, 0.0 }
 0x3db   : > { %917 = vadd.xlane.f32.xlu1 %v916_v35  ;;  %v687_v35 = vld [vmem:[%s2716_s6 + $0x8] sm:$0xf] }
 0x3e9   : > { %923 = vrot.lane.b32.xlu0 %v2440_v26, %s2258_s23 }
 0x3ec   : > { %1084 = vrot.lane.b32.xlu1 %v2438_v24, %s2263_s26 }
 0x3ed   : > { %1078 = vrot.lane.b32.xlu0 %v2420_v12, %s2264_s22 }
 0x3f0   : > { %1070 = vrot.lane.b32.xlu1 %v2438_v24, %s2265_s29 }
 0x45c   : > { %v779_v36 = vpop.xlane.xlu0 %778 }
 0x45d   : > { %2202 = vrcp.f32 %v779_v36 }
 0x460   : > { %v924_v37 = vpop.permute.xlu0 %923 }
 0x461   : > { %v929_v47 = vsel %vm788_vm1, %v924_v37, 0 }
 0x464   : > { %v918_v38 = vpop.xlane.xlu1 %917  ;;  %v1079_v39 = vpop.permute.xlu0 %1078 }
 0x465   : > { %2204 = vrcp.f32 %v918_v38  ;;  %2104 = vpush %v1079_v39 }
 0x468   : > { %v1085_v40 = vpop.permute.xlu1 %1084 }
 0x469   : > { %v1087_v41 = vsel %vm698_vm2, %v1085_v40, 0.0 }
 0x46a   : > { %v2203_v42 = vpop.eup %2202  ;;  %1088 = vadd.xlane.f32.xlu1 %v1087_v41 }
 0x46b   : > { %v781_v43 = vmul.f32 %v2203_v42, %v2199_v32 }
 0x46c   : > { %v1071_v44 = vpop.permute.xlu1 %1070 }
 0x46d   : > { %v1073_v45 = vsel %vm698_vm2, %v1071_v44, 0.0  ;;  %v782_v46 = vpack.c.bf16 %v781_v43, %v781_v43 }
 0x46e   : > { %1074 = vadd.xlane.f32.xlu0 %v1073_v45 }
 0x46f   : > { %2037 = vmatmul.mubr.msk.bf16.vlgmr.msra.gmra.mxu1 %vm784_vm6, %v782_v46 }
 0x470   : > { %2047 = vmatpush3.bf16.msra.mxu1 %v929_v47  ;;  %2048 = vmatprep.mubr.msk.bf16.mxu1 %vm2262_vm3, %v2257_v11 }
 0x471   : > { %2058 = vmatprep.subr.bf16.mxu1 %v2257_v11 }
 0x472   : > { %v2205_v48 = vpop.eup %2204 }
 0x473   : > { %v920_v49 = vmul.f32 %v2205_v48, %v2201_v34 }
 0x475   : > { %v921_v50 = vpack.c.bf16 %v920_v49, %v920_v49 }
 0x477   : > { %2049 = vmatmul.mubr.msk.bf16.vlgmr.msra.gmra.mxu1 %vm784_vm6, %v921_v50 }
 0x478   : > { %2060 = vmatprep.mubr.msk.bf16.mxu1 %vm2262_vm3, %v2257_v11  ;;  %2059 = vmatpush3.bf16.msra.mxu1 %v2158_v51 }
 0x479   : > { %2070 = vmatprep.subr.bf16.mxu1 %v2257_v11 }
 0x496   : > { %s2105_s1 = spop %2104 }
 0x497   : > { %v1081_v61 = vstv %s2105_s1 }
 0x4f3   : > { %v1089_v53 = vpop.xlane.xlu1 %1088 }
 0x4f4   : > { %v1090_v54 = vadd.f32 1e-24, %v1089_v53 }
 0x4f6   : > { %2206 = vrsqrt.f32 %v1090_v54 }
 0x4f7   : > { %v1075_v55 = vpop.xlane.xlu0 %1074 }
 0x4f8   : > { %v1076_v56 = vadd.f32 1e-24, %v1075_v55 }
 0x4fa   : > { %2208 = vrsqrt.f32 %v1076_v56 }
 0x503   : > { %v2207_v57 = vpop.eup %2206 }
 0x504   : > { %v1092_v58 = vmul.f32 %v2207_v57, %v2434_v21 }
 0x506   : > { %v1094_v59 = vpack.c.bf16 %v1092_v58, %v1092_v58 }
 0x507   : > { %v2209_v60 = vpop.eup %2208 }
 0x508   : > { %1099 = vrot.lane.b32.xlu0 %v1094_v59, %s2263_s26  ;;  %v1082_v62 = vmul.f32 %v2209_v60, %v1081_v61 }
 0x50a   : > { %v1083_v63 = vmul.f32 %v1082_v62, %v2434_v21 }
 0x50c   : > { %1258 = vrot.lane.b32.xlu0 %v2438_v24, %s2266_s20  ;;  %v1093_v0 = vpack.c.bf16 %v1083_v63, %v1083_v63 }
 0x50e   : > { %1096 = vrot.lane.b32.xlu1 %v1093_v0, %s2265_s29 }
 0x510   : > { %1266 = vrot.lane.b32.xlu0 %v2420_v12, %s2267_s21 }
 0x512   : > { %1272 = vrot.lane.b32.xlu1 %v2438_v24, %s2268_s25 }
 0x52f   : > { %v826_v1 = vpop.f32.mrf.mxu1 }
 0x530   : > { %v832_v3 = vpack.c.bf16 %v826_v1, %v826_v1 }
 0x531   : > { %v2038_v4 = vpop.f32.mrf.mxu1 }
 0x532   : > { %2061 = vmatmul.mubr.msk.bf16.vlgmr.msra.gmra.mxu1 %vm723_vm4, %v832_v3 }
 0x533   : > { %v829_v5 = vpop.f32.mrf.mxu1  ;;  %2072 = vmatprep.mubr.msk.bf16.mxu1 %vm2262_vm3, %v2257_v11 }
 0x534   : > { %v2160_v5 = vld [vmem:[%s2713_s3 + $0x10] sm:$0xff]  }
 0x535   : > { %v2039_v6 = vpop.f32.mrf.mxu1 }
 0x537   : > { %v965_v7 = vpop.f32.mrf.mxu1 }
 0x538   : > { %v971_v8 = vpack.c.bf16 %v965_v7, %v965_v7 }
 0x539   : > { %v2050_v10 = vpop.f32.mrf.mxu1 }
 0x53a   : > { %2055 = vmatmul.mubr.msk.bf16.vlgmr.msra.gmra.mxu0 %vm723_vm4, %v971_v8 }
 0x53b   : > { %v968_v12 = vpop.f32.mrf.mxu1  ;;  %2066 = vmatprep.mubr.msk.bf16.mxu0 %vm2262_vm3, %v2257_v11 }
 0x53d   : > { %v2051_v24 = vpop.f32.mrf.mxu1 }
 0x53e   : > { %v688_v24 = vld [vmem:[%s2716_s6 + $0xc] sm:$0xf] }
 0x57a   : > { %v1100_v13 = vpop.permute.xlu0 %1099 }
 0x57b   : > { %v1105_v16 = vsel %vm723_vm4, %v1100_v13, 0 }
 0x57c   : > { %2065 = vmatpush3.bf16.xpose.msra.mxu0 %v1105_v16 }
 0x57d   : > { %2076 = vmatprep.subr.bf16.mxu0 %v2257_v11 }
 0x57e   : > { %v1259_v18 = vpop.permute.xlu0 %1258 }
 0x57f   : > { %v1261_v42 = vsel %vm698_vm2, %v1259_v18, 0.0 }
 0x580   : > { %v1097_v19 = vpop.permute.xlu1 %1096 }
 0x582   : > { %v1267_v20 = vpop.permute.xlu0 %1266 }
 0x583   : > { %2067 = vmatmul.mubr.msk.bf16.vlgmr.msra.gmra.mxu0 %vm723_vm4, %v1097_v19  ;;  %2106 = vpush %v1267_v20 }
 0x584   : > { %v1273_v22 = vpop.permute.xlu1 %1272  ;;  %2078 = vmatprep.mubr.msk.bf16.mxu0 %vm2262_vm3, %v2257_v11  ;;  %2077 = vmatpush3.bf16.msra.mxu0 %v2160_v5 }
 0x585   : > { %v1275_v23 = vsel %vm698_vm2, %v1273_v22, 0.0  ;;  %2088 = vmatprep.subr.bf16.mxu0 %v2257_v11 }
 0x586   : > { %1276 = vadd.xlane.f32.xlu0 %v1275_v23 }
 0x5b4   : > { %s2107_s22 = spop %2106 }
 0x5b5   : > { %v1269_v53 = vstv %s2107_s22 }
 0x5f2   : > { %v1064_v25 = vpop.f32.mrf.mxu1 }
 0x5f4   : > { %v2062_v27 = vpop.f32.mrf.mxu1 }
 0x5f6   : > { %v1067_v28 = vpop.f32.mrf.mxu1 }
 0x5f8   : > { %v2063_v29 = vpop.f32.mrf.mxu1 }
 0x5fa   : > { %v1015_v30 = vpop.f32.mrf.mxu0 }
 0x5fb   : > { %v2534_v31 = vadd.f32 %v1064_v25, %v1015_v30 }
 0x5fc   : > { %v2056_v32 = vpop.f32.mrf.mxu0 }
 0x5fe   : > { %v1018_v33 = vpop.f32.mrf.mxu0 }
 0x5ff   : > { %v2161_v33 = vld [vmem:[%s2713_s3 + $0x18] sm:$0xff]  }
 0x600   : > { %v2057_v34 = vpop.f32.mrf.mxu0 }
 0x60f   : > { %v1277_v50 = vpop.xlane.xlu0 %1276 }
 0x610   : > { %v1278_v51 = vadd.f32 1e-24, %v1277_v50 }
 0x643   : > { %v1141_v36 = vpop.f32.mrf.mxu0 }
 0x644   : > { %v1142_v37 = vadd.f32 %v1141_v36, %v687_v35 }
 0x645   : > { %v2068_v38 = vpop.f32.mrf.mxu0 }
 0x646   : > { %v1147_v39 = vsel %vm770_vm5, %v1142_v37, -inf }
 0x647   : > { %1148 = vmax.xlane.f32.xlu1 %v1147_v39  ;;  %v1144_v40 = vpop.f32.mrf.mxu0 }
 0x649   : > { %v2069_v41 = vpop.f32.mrf.mxu0 }
 0x64b   : > { %1262 = vadd.xlane.f32.xlu1 %v1261_v42 }
 0x65c   : > { %1159 = vrot.lane.b32.xlu1 %v2440_v26, %s2265_s29 }
 0x6d0   : > { %v1149_v43 = vpop.xlane.xlu1 %1148 }
 0x6d1   : > { %v1150_v44 = vsub.f32 %v1142_v37, %v1149_v43 }
 0x6d3   : > { %v1151_v45 = vmul.f32 1.442695, %v1150_v44 }
 0x6d4   : > { %v1263_v46 = vpop.xlane.xlu1 %1262 }
 0x6d5   : > { %2210 = vpow2.f32 %v1151_v45  ;;  %v1264_v47 = vadd.f32 1e-24, %v1263_v46  ;;  %v1947_v46 = vld [vmem:[%s2714_s4] ss:$0 sm:$0xff] }
 0x6d7   : > { %2212 = vrsqrt.f32 %v1264_v47 }
 0x6d8   : > { %v1160_v48 = vpop.permute.xlu1 %1159  ;;  %2214 = vrsqrt.f32 %v1278_v51 }
 0x6d9   : > { %v1165_v49 = vsel %vm788_vm1, %v1160_v48, 0 }
 0x6da   : > { %2071 = vmatpush3.bf16.msra.mxu1 %v1165_v49 }
 0x6db   : > { %2082 = vmatprep.subr.bf16.mxu1 %v2257_v11 }
 0x6e2   : > { %v2211_v52 = vpop.eup %2210 }
 0x6e3   : > { %v1153_v54 = vsel %vm770_vm5, %v2211_v52, 0.0 }
 0x6e4   : > { %v2213_v55 = vpop.eup %2212  ;;  %1154 = vadd.xlane.f32.xlu0 %v1153_v54 }
 0x6e5   : > { %v1270_v56 = vmul.f32 %v2213_v55, %v1269_v53  ;;  %v2215_v59 = vpop.eup %2214 }
 0x6e6   : > { %v1280_v60 = vmul.f32 %v2215_v59, %v2434_v21  ;;  %v2167_v59 = vld [vmem:[%s2719_s9 + $0x24] ss:$8 sps:$4 sm:$0xff]  }
 0x6e7   : > { %v1271_v57 = vmul.f32 %v1270_v56, %v2434_v21 }
 0x6e8   : > { %v1282_v61 = vpack.c.bf16 %v1280_v60, %v1280_v60  ;;  %v2165_v60 = vld [vmem:[%s2719_s9 + $0x20] ss:$8 sps:$4 sm:$0xff]  }
 0x6e9   : > { %v1281_v58 = vpack.c.bf16 %v1271_v57, %v1271_v57  ;;  %v2164_v57 = vld [vmem:[%s2719_s9 + $0x34] ss:$8 sps:$4 sm:$0xff]  }
 0x6eb   : > { %1284 = vrot.lane.b32.xlu1 %v1281_v58, %s2266_s20  ;;  %v2162_v58 = vld [vmem:[%s2719_s9 + $0x30] ss:$8 sps:$4 sm:$0xff]  }
 0x6fa   : > { %1287 = vrot.lane.b32.xlu0 %v1282_v61, %s2268_s25  ;;  %v2170_v61 = vld [vmem:[%s2719_s9 + $0x14] ss:$8 sps:$4 sm:$0xff]  }
 0x75d   : > { %v1285_v21 = vpop.permute.xlu1 %1284 }
 0x76d   : > { %v1155_v62 = vpop.xlane.xlu0 %1154 }
 0x76e   : > { %2216 = vrcp.f32 %v1155_v62  ;;  %v2168_v62 = vld [vmem:[%s2719_s9 + $0x10] ss:$8 sps:$4 sm:$0xff]  }
 0x771   : > { %v1288_v1 = vpop.permute.xlu0 %1287 }
 0x772   : > { %v1293_v4 = vsel %vm723_vm4, %v1288_v1, 0  ;;  %v2174_v1 = vld [vmem:[%s2721_s11 + $0x78] sm:$0xff]  }
 0x77b   : > { %v2217_v63 = vpop.eup %2216 }
 0x77c   : > { %v1157_v0 = vmul.f32 %v2217_v63, %v2211_v52  ;;  %v2173_v63 = vld [vmem:[%s2719_s9 + $0x4] ss:$8 sps:$4 sm:$0xff]  }
 0x77e   : > { %v1158_v3 = vpack.c.bf16 %v1157_v0, %v1157_v0  ;;  %v2171_v0 = vld [vmem:[%s2719_s9] ss:$8 sps:$4 sm:$0xff]  }
 0x780   : > { %2073 = vmatmul.mubr.msk.bf16.vlgmr.msra.gmra.mxu1 %vm784_vm6, %v1158_v3  ;;  %v2175_v3 = vld [vmem:[%s2721_s11 + $0x38] sm:$0xff]  }
 0x781   : > { %2083 = vmatpush3.bf16.xpose.msra.mxu1 %v1293_v4  ;;  %2084 = vmatprep.mubr.msk.bf16.mxu1 %vm2262_vm3, %v2257_v11 }
 0x782   : > { %2094 = vmatprep.subr.bf16.mxu1 %v2257_v11 }
 0x788   : > { %2085 = vmatmul.mubr.msk.bf16.vlgmr.msra.gmra.mxu1 %vm723_vm4, %v1285_v21 }
 0x789   : > { %2096 = vmatprep.mubr.msk.bf16.mxu1 %vm2262_vm3, %v2257_v11  ;;  %2095 = vmatpush3.bf16.msra.mxu1 %v2161_v33  ;;  %v2188_v33 = vld [vmem:[%s2721_s11 + $0x40] sm:$0xff]  }
 0x78a   : > { %2006 = vmatprep.subr.bf16.mxu1 %v2174_v1 }
 0x840   : > { %v1201_v6 = vpop.f32.mrf.mxu1 }
 0x841   : > { %v1207_v7 = vpack.c.bf16 %v1201_v6, %v1201_v6 }
 0x842   : > { %v2074_v8 = vpop.f32.mrf.mxu1 }
 0x843   : > { %2079 = vmatmul.mubr.msk.bf16.vlgmr.msra.gmra.mxu0 %vm723_vm4, %v1207_v7  ;;  %v1948_v7 = vld [vmem:[%s2717_s7] ss:$0 sm:$0xff] }
 0x844   : > { %v1204_v10 = vpop.f32.mrf.mxu1  ;;  %2090 = vmatprep.mubr.msk.bf16.mxu0 %vm2262_vm3, %v2257_v11 }
 0x845   : > { %v1949_v10 = vld [vmem:[%s2718_s8] ss:$0 sm:$0xff] }
 0x846   : > { %v2075_v12 = vpop.f32.mrf.mxu1 }
 0x847   : > { %v577_v12 = vunpack.c.l.bf16 %v2410_v9  ;;  %v2178_v9 = vld [vmem:[%s2721_s11 + $0x68] sm:$0xff]  }
 0x848   : > { %v1329_v13 = vpop.f32.mrf.mxu1 }
 0x849   : > { %v1330_v16 = vadd.f32 %v1329_v13, %v688_v24 }
 0x84a   : > { %v2086_v18 = vpop.f32.mrf.mxu1 }
 0x84b   : > { %v1335_v19 = vsel %vm770_vm5, %v1330_v16, -inf }
 0x84c   : > { %1336 = vmax.xlane.f32.xlu1 %v1335_v19  ;;  %v1332_v20 = vpop.f32.mrf.mxu1  ;;  %v2176_v19 = vld [vmem:[%s2721_s11 + $0x70] sm:$0xff]  }
 0x84d   : > { %v2177_v20 = vld [vmem:[%s2721_s11 + $0x30] sm:$0xff]  }
 0x84e   : > { %v2087_v22 = vpop.f32.mrf.mxu1 }
 0x84f   : > { %v2179_v22 = vld [vmem:[%s2721_s11 + $0x28] sm:$0xff]  }
 0x8d5   : > { %v1337_v23 = vpop.xlane.xlu1 %1336 }
 0x8d6   : > { %v1338_v25 = vsub.f32 %v1330_v16, %v1337_v23  ;;  %v2180_v23 = vld [vmem:[%s2721_s11 + $0x60] sm:$0xff]  }
 0x8d8   : > { %v1339_v27 = vmul.f32 1.442695, %v1338_v25  ;;  %v2181_v25 = vld [vmem:[%s2721_s11 + $0x20] sm:$0xff]  }
 0x8da   : > { %2218 = vpow2.f32 %v1339_v27  ;;  %v2182_v27 = vld [vmem:[%s2721_s11 + $0x58] sm:$0xff]  }
 0x8e7   : > { %v2219_v28 = vpop.eup %2218 }
 0x8e8   : > { %v1341_v11 = vsel %vm770_vm5, %v2219_v28, 0.0 }
 0x8e9   : > { %1342 = vadd.xlane.f32.xlu0 %v1341_v11  ;;  %v2184_v11 = vld [vmem:[%s2721_s11 + $0x50] sm:$0xff]  }
 0x8ff   : > { %1347 = vrot.lane.b32.xlu0 %v2440_v26, %s2266_s20 }
 0x903   : > { %v1251_v29 = vpop.f32.mrf.mxu0 }
 0x904   : > { %v1257_v30 = vadd.f32 %v1251_v29, %v2534_v31  ;;  %v2185_v29 = vld [vmem:[%s2721_s11 + $0x10] sm:$0xff]  }
 0x905   : > { %v2080_v32 = vpop.f32.mrf.mxu0 }
 0x906   : > { %v2187_v32 = vld [vmem:[%s2721_s11 + $0x8] sm:$0xff]  }
 0x907   : > { %v1254_v34 = vpop.f32.mrf.mxu0 }
 0x908   : > { %v2189_v34 = vld [vmem:[%s2721_s11] sm:$0xff]  }
 0x909   : > { %v2081_v35 = vpop.f32.mrf.mxu0 }
 0x90a   : > { %v1495_v35 = vld [vmem:[%s2720_s10] sm:$0x3] }
 0x972   : > { %v1343_v36 = vpop.xlane.xlu0 %1342 }
 0x973   : > { %2220 = vrcp.f32 %v1343_v36  ;;  %v1500_v36 = vrot.slane %v1495_v35, %v591_v15 }
 0x976   : > { %v1348_v37 = vpop.permute.xlu0 %1347 }
 0x977   : > { %v1353_v38 = vsel %vm788_vm1, %v1348_v37, 0  ;;  %v1504_v37 = vrot.slane %v1495_v35, %v595_v17 }
 0x978   : > { %2089 = vmatpush3.bf16.msra.mxu0 %v1353_v38 }
 0x979   : > { %1558 = vmatprep.subr.bf16.mxu0 %v2164_v57 }
 0x980   : > { %v2221_v39 = vpop.eup %2220 }
 0x981   : > { %v1345_v40 = vmul.f32 %v2221_v39, %v2219_v28  ;;  %v2183_v28 = vld [vmem:[%s2721_s11 + $0x18] sm:$0xff]  }
 0x983   : > { %v1346_v26 = vpack.c.bf16 %v1345_v40, %v1345_v40 }
 0x985   : > { %2091 = vmatmul.mubr.msk.bf16.vlgmr.msra.gmra.mxu0 %vm784_vm6, %v1346_v26 }
 0x986   : > { %1582 = vmatprep.mubr.bf16.mxu0 %v2256_v2  ;;  %1559 = vmatpush1.bf16.msra.mxu0 %v2162_v58 }
 0x987   : > { %1560 = vmatprep.subr.bf16.mxu0 %v2167_v59 }
 0x98a   : > { %1561 = vmatpush1.bf16.msra.mxu0 %v2165_v60 }
 0x98b   : > { %1562 = vmatprep.subr.bf16.mxu0 %v2170_v61 }
 0x98e   : > { %1563 = vmatpush1.bf16.msra.mxu0 %v2168_v62 }
 0x98f   : > { %1564 = vmatprep.subr.bf16.mxu0 %v2173_v63 }
 0x992   : > { %1565 = vmatpush1.bf16.msra.mxu0 %v2171_v0 }
 0xa45   : > { %v1389_v31 = vpop.f32.mrf.mxu0 }
 0xa46   : > { %v1395_v41 = vpack.c.bf16 %v1389_v31, %v1389_v31 }
 0xa47   : > { %v2092_v42 = vpop.f32.mrf.mxu0 }
 0xa48   : > { %2097 = vmatmul.mubr.msk.bf16.vlgmr.msra.gmra.mxu1 %vm723_vm4, %v1395_v41 }
 0xa49   : > { %v1392_v43 = vpop.f32.mrf.mxu0  ;;  %2007 = vmatpush3.bf16.msra.mxu1 %v2175_v3 }
 0xa4a   : > { %2008 = vmatprep.subr.bf16.mxu1 %v2176_v19 }
 0xa4b   : > { %v2093_v44 = vpop.f32.mrf.mxu0 }
 0xa4d   : > { %2009 = vmatpush3.bf16.msra.mxu1 %v2177_v20 }
 0xa4e   : > { %2010 = vmatprep.subr.bf16.mxu1 %v2178_v9 }
 0xa51   : > { %2011 = vmatpush3.bf16.msra.mxu1 %v2179_v22 }
 0xa52   : > { %2012 = vmatprep.subr.bf16.mxu1 %v2180_v23 }
 0xa55   : > { %2013 = vmatpush3.bf16.msra.mxu1 %v2181_v25 }
 0xa56   : > { %2014 = vmatprep.subr.bf16.mxu1 %v2182_v27  ;;  %v1979_v27 = vld [vmem:[%s2726_s16] ss:$0 sm:$0xff] }
 0xa59   : > { %2015 = vmatpush3.bf16.msra.mxu1 %v2183_v28 }
 0xa5a   : > { %2016 = vmatprep.subr.bf16.mxu1 %v2184_v11 }
 0xa5d   : > { %2017 = vmatpush3.bf16.msra.mxu1 %v2185_v29 }
 0xb08   : > { %v1439_v45 = vpop.f32.mrf.mxu1 }
 0xb09   : > { %v1445_v47 = vadd.f32 %v1439_v45, %v1257_v30  ;;  %v2186_v30 = vld [vmem:[%s2721_s11 + $0x48] sm:$0xff]  }
 0xb0a   : > { %v2098_v48 = vpop.f32.mrf.mxu1  ;;  %2018 = vmatprep.subr.bf16.mxu1 %v2186_v30 }
 0xb0b   : > { %v1453_v49 = vadd.f32 %v1947_v46, %v1445_v47  ;;  %2019 = vmatpush3.bf16.msra.mxu1 %v2187_v32 }
 0xb0c   : > { %v1442_v50 = vpop.f32.mrf.mxu1  ;;  %2020 = vmatprep.subr.bf16.mxu1 %v2188_v33 }
 0xb0d   : > { %v1457_v51 = vsel %vm1456_vm7, %v1453_v49, 0.0 }
 0xb0e   : > { %1458 = vadd.xlane.f32.xlu1 %v1457_v51  ;;  %v2099_v2 = vpop.f32.mrf.mxu1 }
 0xb0f   : > { %2021 = vmatpush3.bf16.msra.mxu1 %v2189_v34 }
 0xb97   : > { %v1459_v52 = vpop.xlane.xlu1 %1458 }
 0xb98   : > { %v1461_v53 = vmul.f32 0.015625, %v1459_v52  ;;  %v1959_v52 = vld [vmem:[%s2722_s12] ss:$0 sm:$0xff] }
 0xb9a   : > { %v1462_v54 = vsub.f32 %v1453_v49, %v1461_v53 }
 0xb9c   : > { %v1463_v55 = vmul.f32 %v1462_v54, %v1462_v54 }
 0xb9e   : > { %v1464_v56 = vsel %vm1456_vm7, %v1463_v55, 0.0 }
 0xb9f   : > { %1465 = vadd.xlane.f32.xlu1 %v1464_v56 }
 0xc28   : > { %v1466_v4 = vpop.xlane.xlu1 %1465 }
 0xc29   : > { %v1467_v21 = vmul.f32 0.015625, %v1466_v4  ;;  %v1976_v4 = vld [vmem:[%s2723_s13] ss:$0 sm:$0xff] }
 0xc2b   : > { %v1468_v5 = vadd.f32 1e-05, %v1467_v21 }
 0xc2d   : > { %2222 = vrsqrt.f32 %v1468_v5  ;;  %v1977_v5 = vld [vmem:[%s2724_s14] ss:$0 sm:$0xff] }
 0xc3a   : > { %v2223_v6 = vpop.eup %2222 }
 0xc3b   : > { %v1470_v8 = vmul.f32 %v2223_v6, %v1462_v54 }
 0xc3d   : > { %v1477_v24 = vmul.f32 %v1948_v7, %v1470_v8 }
 0xc3f   : > { %v1484_v13 = vadd.f32 %v1949_v10, %v1477_v24 }
 0xc41   : > { %v2622_v16 = vadd.f32 %v1484_v13, %v577_v12 }
 0xc43   : > { %v1486_v18 = vpack.c.bf16 %v2622_v16, %v2622_v16 }
 0xc45   : > { %1958 = vmatmul.mubr.msk.bf16.vlgmr.msra.gmra.mxu0 %vm639_vm0, %v1486_v18 }
 0xd05   : > { %v1584_v38 = vpop.f32.mrf.mxu0 }
 0xd06   : > { %v1585_v39 = vadd.f32 %v1584_v38, %v1500_v36 }
 0xd07   : > { %v1586_v40 = vpop.f32.mrf.mxu0 }
 0xd08   : > { %v1593_v26 = vmul.f32 0.70710677, %v1585_v39  ;;  %v1587_v31 = vadd.f32 %v1586_v40, %v1504_v37  ;;  %v1591_v47 = vmul.f32 0.5, %v1585_v39 }
 0xd09   : > { %v1588_v41 = vpop.f32.mrf.mxu0 }
 0xd0a   : > { %2224 = verf.f32 %v1593_v26  ;;  %v1594_v42 = vmul.f32 0.70710677, %v1587_v31  ;;  %v1592_v48 = vmul.f32 0.5, %v1587_v31 }
 0xd0b   : > { %v1589_v43 = vpop.f32.mrf.mxu0 }
 0xd0c   : > { %2226 = verf.f32 %v1594_v42 }
 0xd17   : > { %v2225_v44 = vpop.eup %2224 }
 0xd18   : > { %v1597_v45 = vadd.f32 1.0, %v2225_v44 }
 0xd19   : > { %v2227_v46 = vpop.eup %2226 }
 0xd1a   : > { %v1598_v49 = vadd.f32 1.0, %v2227_v46  ;;  %v1599_v15 = vmul.f32 %v1597_v45, %v1591_v47 }
 0xd1c   : > { %v1600_v50 = vmul.f32 %v1598_v49, %v1592_v48  ;;  %v1601_v17 = vpack.c.bf16 %v1599_v15, %v1599_v15 }
 0xd1e   : > { %v1602_v14 = vpack.c.bf16 %v1600_v50, %v1600_v50 }
 0xd20   : > { %1770 = vmatprep.mubr.bf16.mxu1 %v1602_v14 }
 0xd21   : > { %1771 = vmatmul.mubr.bf16.vlgmr.msra.gmra.mxu1 %v1601_v17 }
 0xde1   : > { %v2022_v51 = vpop.f32.mrf.mxu1 }
 0xde3   : > { %v2023_v2 = vpop.f32.mrf.mxu1 }
 0xde4   : > { %v2024_v53 = vadd.f32 %v2023_v2, %v2022_v51 }
 0xde5   : > { %v2025_v54 = vpop.f32.mrf.mxu1 }
 0xde6   : > { %v1773_v55 = vadd.f32 %v2024_v53, %v1959_v52 }
 0xde7   : > { %v2026_v56 = vpop.f32.mrf.mxu1 }
 0xde8   : > { %v1780_v57 = vsel %vm1456_vm7, %v1773_v55, 0.0 }
 0xde9   : > { %1781 = vadd.xlane.f32.xlu1 %v1780_v57 }
 0xe72   : > { %v1782_v58 = vpop.xlane.xlu1 %1781 }
 0xe73   : > { %v1783_v59 = vmul.f32 0.015625, %v1782_v58 }
 0xe75   : > { %v1784_v60 = vsub.f32 %v1773_v55, %v1783_v59 }
 0xe77   : > { %v1785_v61 = vmul.f32 %v1784_v60, %v1784_v60 }
 0xe79   : > { %v1786_v62 = vsel %vm1456_vm7, %v1785_v61, 0.0 }
 0xe7a   : > { %1787 = vadd.xlane.f32.xlu1 %v1786_v62 }
 0xf03   : > { %v1788_v63 = vpop.xlane.xlu1 %1787 }
 0xf04   : > { %v1789_v0 = vmul.f32 0.015625, %v1788_v63 }
 0xf06   : > { %v1790_v1 = vadd.f32 1e-05, %v1789_v0 }
 0xf08   : > { %2228 = vrsqrt.f32 %v1790_v1 }
 0xf15   : > { %v2229_v3 = vpop.eup %2228 }
 0xf16   : > { %v1792_v21 = vmul.f32 %v2229_v3, %v1784_v60 }
 0xf18   : > { %v1799_v6 = vmul.f32 %v1976_v4, %v1792_v21 }
 0xf1a   : > { %v1806_v7 = vadd.f32 %v1977_v5, %v1799_v6 }
 0xf1c   : > { %v1807_v8 = vadd.f32 %v1806_v7, %v2622_v16  ;;  %v1978_v16 = vld [vmem:[%s2725_s15] ss:$0 sm:$0xff] }
 0xf1e   : > { %v1810_v10 = vsel %vm1456_vm7, %v1807_v8, 0.0 }
 0xf1f   : > { %1811 = vadd.xlane.f32.xlu1 %v1810_v10 }
 0xfa8   : > { %v1812_v12 = vpop.xlane.xlu1 %1811 }
 0xfa9   : > { %v1813_v24 = vmul.f32 0.015625, %v1812_v12 }
 0xfab   : > { %v1814_v13 = vsub.f32 %v1807_v8, %v1813_v24 }
 0xfad   : > { %v1815_v18 = vmul.f32 %v1814_v13, %v1814_v13 }
 0xfaf   : > { %v1816_v19 = vsel %vm1456_vm7, %v1815_v18, 0.0 }
 0xfb0   : > { %1817 = vadd.xlane.f32.xlu1 %v1816_v19 }
0x1039   : > { %v1818_v20 = vpop.xlane.xlu1 %1817 }
0x103a   : > { %v1819_v9 = vmul.f32 0.015625, %v1818_v20 }
0x103c   : > { %v1820_v22 = vadd.f32 1e-05, %v1819_v9 }
0x103e   : > { %2230 = vrsqrt.f32 %v1820_v22 }
0x104b   : > { %v2231_v23 = vpop.eup %2230 }
0x104c   : > { %v1822_v25 = vmul.f32 %v2231_v23, %v1814_v13 }
0x104e   : > { %v1829_v28 = vmul.f32 %v1978_v16, %v1822_v25 }
0x1050   : > { %v1836_v11 = vadd.f32 %v1979_v27, %v1829_v28 }
0x1052   : > { %v1837_v29 = vpack.c.bf16 %v1836_v11, %v1836_v11 }
0x1054   : > { %1839 = vst.msk [vmem:[%s574_s30] sm:$0x3] %vm1838_vm8, %v1837_v29 }
0x1055 PF: > { %s2738_s18 = sld [smem:[#allocation3_spill]] }
0x1056   : > { %s2739_s24 = sld [smem:[#allocation2_spill]] }
0x1057   : > { %s2740_s25 = sld [smem:[#allocation4_spill]] }
0x105b   : > { %s27_s26 = sadd.s32 1, %s2738_s18  }
0x105c   : > { %p24_p5 = scmp.ge.s32.totalorder %s27_s26, 4  }
0x105e   :  { %26 = sbr.rel (!%p24_p5) target bundleno = 3 (0x3), region = 118 }

</bundles_post_ra>
